<compile_context>
chip_gen: v6e
topology: v6e:2x2x1
jax: 0.10.0
libtpu: 0.0.40
codegen_flags: <defaults>
</compile_context>

<pallas_src>
import jax
import jax.numpy as jnp
import numpy as np
from jax.experimental import pallas as pl
from jax.experimental.pallas import tpu as pltpu


def make_encoder_kernel(R, E, H, W, eps=1e-5):
    """R = rows per block, E = embed dim, H = heads, W = grouped window width."""
    D = E // H
    G = R // W

    def kernel(x_ref, mask_ref, wqkv_ref, bqkv_ref, wo_ref, bo_ref,
               g1_ref, beta1_ref, w1_ref, b1_ref, w2_ref, b2_ref,
               g2_ref, beta2_ref, o_ref):
        f32, bf16 = jnp.float32, jnp.bfloat16
        x = x_ref[...]                                             # (R, E) f32

        # ---- Speech-MSA: fused QKV projection (bf16 operands, f32 accum).
        # The 1/sqrt(head_dim) Q-scaling is pre-folded into wqkv/bqkv.
        qkv = jnp.dot(x.astype(bf16), wqkv_ref[...],
                      preferred_element_type=f32) + bqkv_ref[...]  # (R, 3E)

        mask = mask_ref[...]                                       # (W, W) f32

        # Per-head grouped-window attention; head merge folded into the
        # output projection (accumulated per-head matmul — no concats).
        attn = None
        for h in range(H):
            lo = h * D
            qh = qkv[:, lo:lo + D].astype(bf16).reshape(G, W, D)
            kh = qkv[:, E + lo:E + lo + D].astype(bf16).reshape(G, W, D)
            vh = qkv[:, 2 * E + lo:2 * E + lo + D].astype(bf16).reshape(G, W, D)

            s = jnp.einsum('gqd,gkd->gqk', qh, kh,
                           preferred_element_type=f32)             # (G, W, W)
            s = s + mask                     # block-diagonal window mask
            m = jnp.max(s, axis=-1, keepdims=True)
            p = jnp.exp(s - m)
            denom = jnp.sum(p, axis=-1, keepdims=True)
            p = p * pl.reciprocal(denom, approx=True)
            ctx = jnp.einsum('gqk,gkd->gqd', p.astype(bf16), vh,
                             preferred_element_type=f32)           # (G, W, D)

            contrib = jnp.dot(ctx.reshape(R, D).astype(bf16),
                              wo_ref[lo:lo + D, :],
                              preferred_element_type=f32)          # (R, E)
            attn = contrib if attn is None else attn + contrib
        attn = attn + bo_ref[...]

        def layernorm(z, g, b):
            mu = jnp.mean(z, axis=-1, keepdims=True)
            ms = jnp.mean(z * z, axis=-1, keepdims=True)
            var = jnp.maximum(ms - mu * mu, 0.0)     # independent reductions
            return (z - mu) * jax.lax.rsqrt(var + eps) * g + b

        # ---- residual + LayerNorm ----
        x1 = layernorm(x + attn, g1_ref[...], beta1_ref[...])

        # ---- FFN + residual + LayerNorm ----
        h1 = jnp.dot(x1.astype(bf16), w1_ref[...],
                     preferred_element_type=f32) + b1_ref[...]
        h1 = jnp.maximum(h1, 0.0)                                  # relu
        y = jnp.dot(h1.astype(bf16), w2_ref[...],
                    preferred_element_type=f32) + b2_ref[...]
        out = layernorm(x1 + y, g2_ref[...], beta2_ref[...])

        o_ref[...] = out.astype(o_ref.dtype)

    return kernel


def _vmem_limit_bytes():
    cap = 64 * 1024 * 1024            # safe floor (v7x per-TC physical VMEM)
    try:
        info = pltpu.get_tpu_info()
        cap = int(getattr(info, "vmem_capacity_bytes", cap) or cap)
    except Exception:
        pass
    return (cap * 3) // 4             # headroom for compiler-internal scratch


def _derive_max_rows(E, ffn, D, group_target, vmem_limit, cap=2048):
    # Rough per-row live f32 footprint: x, qkv(3E), attn/x1/out, double-buffered
    # x/out blocks, ffn hidden, grouped score tiles and per-head temporaries.
    per_row_bytes = 4 * (10 * E + ffn + 2 * group_target + 3 * D)
    m = (vmem_limit // 2) // max(per_row_bytes, 1)
    return int(min(cap, max(group_target, m)))


def _pick_block_rows(rows, local, max_rows):
    """Largest multiple of `local` dividing `rows`, <= max_rows, sublane-
    friendly (multiple of 8); falls back to the full extent."""
    n_win = rows // local
    best = rows
    for d in range(1, n_win + 1):
        if n_win % d:
            continue
        cand = d * local
        if cand > max_rows:
            break
        if cand % 8 == 0 or cand == rows:
            best = cand
    return best


def _pick_group_width(block_rows, local, target):
    """Largest multiple of `local` that divides block_rows, capped at target."""
    best = local
    limit = max(target, local)
    m = 1
    while True:
        g = m * local
        if g > block_rows or g > limit:
            break
        if block_rows % g == 0:
            best = g
        m += 1
    return best


def prepare_params(params, num_heads):
    """One-time host-side preparation (cache the result across forwards):
    folds the 1/sqrt(head_dim) Q scaling into wqkv/bqkv and casts matmul
    weights to bf16 (biases / LayerNorm params stay f32)."""
    E = params["wo"].shape[0]
    D = E // num_heads
    scaling = float(D) ** (-0.5)
    f32, bf16 = jnp.float32, jnp.bfloat16
    wqkv = params["wqkv"].astype(f32).at[:, :E].multiply(scaling)
    bqkv = params["bqkv"].astype(f32).at[:, :E].multiply(scaling)
    return {
        "wqkv": wqkv.astype(bf16), "bqkv": bqkv,
        "wo": params["wo"].astype(bf16), "bo": params["bo"].astype(f32),
        "ln1_g": params["ln1_g"].astype(f32), "ln1_b": params["ln1_b"].astype(f32),
        "w1": params["w1"].astype(bf16), "b1": params["b1"].astype(f32),
        "w2": params["w2"].astype(bf16), "b2": params["b2"].astype(f32),
        "ln2_g": params["ln2_g"].astype(f32), "ln2_b": params["ln2_b"].astype(f32),
    }


def speechformer_encoder(x, prepared, *, num_heads, local_size,
                         max_rows_per_block=None, group_target=128,
                         interpret=False):
    """x: (B, T, E) float32. Returns (B, T, E). Eval-mode forward
    (dropout = identity, x_position = None). Non-overlap Speech-MSA path."""
    B, T, E = x.shape
    H = num_heads
    assert E % H == 0, "embed_dim must be divisible by num_heads"
    local = T if local_size == -1 else local_size
    assert local >= 1 and T % local == 0, \
        "pad T to a multiple of local_size outside the kernel"
    # TODO(synk): overlap=True path (get_overlap_segments) not implemented.

    D = E // H
    ffn = prepared["w1"].shape[1]
    rows = B * T

    vmem_limit = _vmem_limit_bytes()
    max_rows = _derive_max_rows(E, ffn, D, group_target, vmem_limit)
    if max_rows_per_block is not None:
        max_rows = min(max_rows, max_rows_per_block)
    if rows // 2 >= local:                # >= 2 grid steps -> v7x megacore
        max_rows = min(max_rows, rows // 2)
    block_rows = _pick_block_rows(rows, local, max_rows)
    W = _pick_group_width(block_rows, local, group_target)

    # Host-precomputed additive block-diagonal mask for a (W, W) grouped score
    # tile.  Windows never cross batch boundaries because T % local == 0.
    win = np.arange(W) // local
    mask = jnp.asarray(np.where(win[:, None] == win[None, :], 0.0, -1e30),
                       dtype=jnp.float32)

    plist = [mask,
             prepared["wqkv"], prepared["bqkv"], prepared["wo"], prepared["bo"],
             prepared["ln1_g"], prepared["ln1_b"],
             prepared["w1"], prepared["b1"], prepared["w2"], prepared["b2"],
             prepared["ln2_g"], prepared["ln2_b"]]

    kernel = make_encoder_kernel(block_rows, E, H, W)
    x_flat = x.reshape(rows, E)
    grid = (rows // block_rows,)

    def run(single_buffer_weights, limit):
        def const_spec(p):
            # Constant block index -> fetched once and kept resident.
            if single_buffer_weights:
                return pl.BlockSpec(p.shape, lambda i: (0, 0),
                                    pipeline_mode=pl.Buffered(1))
            return pl.BlockSpec(p.shape, lambda i: (0, 0))

        return pl.pallas_call(
            kernel,
            out_shape=jax.ShapeDtypeStruct((rows, E), x.dtype),
            grid=grid,
            in_specs=[pl.BlockSpec((block_rows, E), lambda i: (i, 0))]
                     + [const_spec(p) for p in plist],
            out_specs=pl.BlockSpec((block_rows, E), lambda i: (i, 0)),
            compiler_params=pltpu.CompilerParams(
                dimension_semantics=("parallel",),   # megacore-shardable
                vmem_limit_bytes=int(limit)),
            interpret=interpret,
        )(x_flat, *plist)

    try:
        out = run(True, vmem_limit)
    except Exception:
        # Fallback for lowerings that reject single-buffered weight specs or
        # tight VMEM budgets: double-buffered defaults + conservative limit.
        out = run(False, min(vmem_limit, 64 * 1024 * 1024))
    return out.reshape(B, T, E)


def reference_forward(x, p, num_heads, local_size, eps=1e-5):
    """Pure-JAX f32 mirror of the PyTorch forward (eval mode, non-overlap)."""
    B, T, E = x.shape
    H = num_heads
    D = E // H
    local = T if local_size == -1 else local_size
    hi = jax.lax.Precision.HIGHEST

    qkv = jnp.dot(x, p["wqkv"], precision=hi) + p["bqkv"][0]
    Q, K, V = jnp.split(qkv, 3, axis=-1)
    Q = Q * (float(D) ** -0.5)

    def split_heads(a):                        # (B, H, T, D)
        return a.reshape(B, T, H, D).transpose(0, 2, 1, 3)

    Q, K, V = map(split_heads, (Q, K, V))
    nw = T // local
    Qw = Q.reshape(B, H, nw, local, D)
    Kw = K.reshape(B, H, nw, local, D)
    Vw = V.reshape(B, H, nw, local, D)
    scores = jnp.einsum("bhwqd,bhwkd->bhwqk", Qw, Kw, precision=hi)
    pattn = jax.nn.softmax(scores, axis=-1)
    attn = jnp.einsum("bhwqk,bhwkd->bhwqd", pattn, Vw, precision=hi)
    attn = attn.reshape(B, H, T, D).transpose(0, 2, 1, 3).reshape(B, T, E)
    attn = jnp.dot(attn, p["wo"], precision=hi) + p["bo"][0]

    def layernorm(z, g, b):
        mu = jnp.mean(z, axis=-1, keepdims=True)
        var = jnp.mean((z - mu) ** 2, axis=-1, keepdims=True)
        return (z - mu) * jax.lax.rsqrt(var + eps) * g[0] + b[0]

    x1 = layernorm(x + attn, p["ln1_g"], p["ln1_b"])
    h = jnp.maximum(jnp.dot(x1, p["w1"], precision=hi) + p["b1"][0], 0.0)
    y = jnp.dot(h, p["w2"], precision=hi) + p["b2"][0]
    return layernorm(x1 + y, p["ln2_g"], p["ln2_b"])


if __name__ == "__main__":
    # Small but TPU-friendly shapes: head_dim = E // H = 128 (full lane width,
    # as in full-size SpeechFormer), local window = 8 (frame stage), E and ffn
    # multiples of 128.  rows = B*T = 256 -> 2 grid steps, grouped window
    # width W = 128 (16 windows per lane-dense score tile).
    B, T, E = 2, 128, 256
    H = 2
    local_size = 8
    ffn = 512

    keys = jax.random.split(jax.random.PRNGKey(0), 13)
    scale = 0.05
    params = {
        "wqkv": scale * jax.random.normal(keys[0], (E, 3 * E), jnp.float32),
        "bqkv": scale * jax.random.normal(keys[1], (1, 3 * E), jnp.float32),
        "wo":   scale * jax.random.normal(keys[2], (E, E), jnp.float32),
        "bo":   scale * jax.random.normal(keys[3], (1, E), jnp.float32),
        "w1":   scale * jax.random.normal(keys[4], (E, ffn), jnp.float32),
        "b1":   scale * jax.random.normal(keys[5], (1, ffn), jnp.float32),
        "w2":   scale * jax.random.normal(keys[6], (ffn, E), jnp.float32),
        "b2":   scale * jax.random.normal(keys[7], (1, E), jnp.float32),
        "ln1_g": 1.0 + 0.1 * jax.random.normal(keys[8], (1, E), jnp.float32),
        "ln1_b": 0.1 * jax.random.normal(keys[9], (1, E), jnp.float32),
        "ln2_g": 1.0 + 0.1 * jax.random.normal(keys[10], (1, E), jnp.float32),
        "ln2_b": 0.1 * jax.random.normal(keys[11], (1, E), jnp.float32),
    }
    x = jax.random.normal(keys[12], (B, T, E), jnp.float32)

    # One-time host-side fold/cast (cache across forwards).
    prepared = prepare_params(params, num_heads=H)

    out = speechformer_encoder(x, prepared, num_heads=H, local_size=local_size)
    out = jax.block_until_ready(out)

    ref = reference_forward(x, params, H, local_size)
    # bf16 matmul operands (f32 accumulation) -> relaxed tolerance vs f32 ref.
    np.testing.assert_allclose(np.asarray(out, dtype=np.float32),
                               np.asarray(ref), rtol=2e-2, atol=2e-2)

    print("KERNEL_OK")
</pallas_src>

<mosaic_0001>
module attributes {stable_mosaic.version = 11 : i64} {
  func.func @kernel(%arg0: i32, %arg1: memref<128x256xf32, #tpu.memory_space<vmem>>, %arg2: memref<128x128xf32, #tpu.memory_space<vmem>>, %arg3: memref<256x768xbf16, #tpu.memory_space<vmem>>, %arg4: memref<1x768xf32, #tpu.memory_space<vmem>>, %arg5: memref<256x256xbf16, #tpu.memory_space<vmem>>, %arg6: memref<1x256xf32, #tpu.memory_space<vmem>>, %arg7: memref<1x256xf32, #tpu.memory_space<vmem>>, %arg8: memref<1x256xf32, #tpu.memory_space<vmem>>, %arg9: memref<256x512xbf16, #tpu.memory_space<vmem>>, %arg10: memref<1x512xf32, #tpu.memory_space<vmem>>, %arg11: memref<512x256xbf16, #tpu.memory_space<vmem>>, %arg12: memref<1x256xf32, #tpu.memory_space<vmem>>, %arg13: memref<1x256xf32, #tpu.memory_space<vmem>>, %arg14: memref<1x256xf32, #tpu.memory_space<vmem>>, %arg15: memref<128x256xf32, #tpu.memory_space<vmem>>) attributes {dimension_semantics = [#tpu.dimension_semantics<parallel>], iteration_bounds = array<i64: 2>, scalar_prefetch = 0 : i64, scratch_operands = 0 : i64, tpu.core_type = #tpu.core_type<tc>, window_params = [{transform_indices = @transform_0, window_bounds = array<i64: 128, 256>}, {pipeline_mode = #tpu.pipeline_mode<synchronous>, transform_indices = @transform_1, window_bounds = array<i64: 128, 128>}, {pipeline_mode = #tpu.pipeline_mode<synchronous>, transform_indices = @transform_2, window_bounds = array<i64: 256, 768>}, {pipeline_mode = #tpu.pipeline_mode<synchronous>, transform_indices = @transform_3, window_bounds = array<i64: 1, 768>}, {pipeline_mode = #tpu.pipeline_mode<synchronous>, transform_indices = @transform_4, window_bounds = array<i64: 256, 256>}, {pipeline_mode = #tpu.pipeline_mode<synchronous>, transform_indices = @transform_5, window_bounds = array<i64: 1, 256>}, {pipeline_mode = #tpu.pipeline_mode<synchronous>, transform_indices = @transform_6, window_bounds = array<i64: 1, 256>}, {pipeline_mode = #tpu.pipeline_mode<synchronous>, transform_indices = @transform_7, window_bounds = array<i64: 1, 256>}, {pipeline_mode = #tpu.pipeline_mode<synchronous>, transform_indices = @transform_8, window_bounds = array<i64: 256, 512>}, {pipeline_mode = #tpu.pipeline_mode<synchronous>, transform_indices = @transform_9, window_bounds = array<i64: 1, 512>}, {pipeline_mode = #tpu.pipeline_mode<synchronous>, transform_indices = @transform_10, window_bounds = array<i64: 512, 256>}, {pipeline_mode = #tpu.pipeline_mode<synchronous>, transform_indices = @transform_11, window_bounds = array<i64: 1, 256>}, {pipeline_mode = #tpu.pipeline_mode<synchronous>, transform_indices = @transform_12, window_bounds = array<i64: 1, 256>}, {pipeline_mode = #tpu.pipeline_mode<synchronous>, transform_indices = @transform_13, window_bounds = array<i64: 1, 256>}, {transform_indices = @transform_14, window_bounds = array<i64: 128, 256>}]} {
    %c0 = arith.constant 0 : index
    %c0_0 = arith.constant 0 : index
    %0 = vector.load %arg1[%c0, %c0_0] : memref<128x256xf32, #tpu.memory_space<vmem>>, vector<128x256xf32>
    %1 = arith.truncf %0 : vector<128x256xf32> to vector<128x256xbf16>
    %c0_1 = arith.constant 0 : index
    %c0_2 = arith.constant 0 : index
    %2 = vector.load %arg3[%c0_1, %c0_2] : memref<256x768xbf16, #tpu.memory_space<vmem>>, vector<256x768xbf16>
    %cst = arith.constant dense<0.000000e+00> : vector<128x768xf32>
    %3 = tpu.matmul %1, %2, %cst {dimension_numbers = #tpu.dot_dimension_numbers<[1], [0], [0], [1], [0, 0, 1, 1], [], []>} : vector<128x256xbf16>, vector<256x768xbf16>, vector<128x768xf32> -> vector<128x768xf32>
    %c0_3 = arith.constant 0 : index
    %c0_4 = arith.constant 0 : index
    %4 = vector.load %arg4[%c0_3, %c0_4] : memref<1x768xf32, #tpu.memory_space<vmem>>, vector<1x768xf32>
    %5 = vector.broadcast %4 : vector<1x768xf32> to vector<128x768xf32>
    %6 = arith.addf %3, %5 : vector<128x768xf32>
    %c0_5 = arith.constant 0 : index
    %c0_6 = arith.constant 0 : index
    %7 = vector.load %arg2[%c0_5, %c0_6] : memref<128x128xf32, #tpu.memory_space<vmem>>, vector<128x128xf32>
    %8 = vector.extract_strided_slice %6 {offsets = [0, 0], sizes = [128, 128], strides = [1, 1]} : vector<128x768xf32> to vector<128x128xf32>
    %9 = arith.truncf %8 : vector<128x128xf32> to vector<128x128xbf16>
    %10 = vector.shape_cast %9 : vector<128x128xbf16> to vector<1x128x128xbf16>
    %11 = vector.extract_strided_slice %6 {offsets = [0, 256], sizes = [128, 128], strides = [1, 1]} : vector<128x768xf32> to vector<128x128xf32>
    %12 = arith.truncf %11 : vector<128x128xf32> to vector<128x128xbf16>
    %13 = vector.shape_cast %12 : vector<128x128xbf16> to vector<1x128x128xbf16>
    %14 = vector.extract_strided_slice %6 {offsets = [0, 512], sizes = [128, 128], strides = [1, 1]} : vector<128x768xf32> to vector<128x128xf32>
    %15 = arith.truncf %14 : vector<128x128xf32> to vector<128x128xbf16>
    %16 = vector.shape_cast %15 : vector<128x128xbf16> to vector<1x128x128xbf16>
    "tpu.trace_start"() <{level = 10 : i32, message = "gqd,gkd->gqk"}> : () -> ()
    %cst_7 = arith.constant dense<0.000000e+00> : vector<1x128x128xf32>
    %17 = tpu.matmul %10, %13, %cst_7 {dimension_numbers = #tpu.dot_dimension_numbers<[2], [2], [1], [1], [0, 0, 0, 1, 1, 1], [0], [0]>} : vector<1x128x128xbf16>, vector<1x128x128xbf16>, vector<1x128x128xf32> -> vector<1x128x128xf32>
    "tpu.trace_stop"() : () -> ()
    %18 = vector.shape_cast %7 : vector<128x128xf32> to vector<1x128x128xf32>
    %19 = arith.addf %17, %18 : vector<1x128x128xf32>
    %cst_8 = arith.constant dense<0xFF800000> : vector<1x128xf32>
    %20 = vector.multi_reduction <maximumf>, %19, %cst_8 [2] : vector<1x128x128xf32> to vector<1x128xf32>
    %21 = vector.shape_cast %20 : vector<1x128xf32> to vector<1x128x1xf32>
    %22 = vector.broadcast %21 : vector<1x128x1xf32> to vector<1x128x128xf32>
    %23 = arith.subf %19, %22 : vector<1x128x128xf32>
    %24 = math.exp %23 : vector<1x128x128xf32>
    %cst_9 = arith.constant dense<0.000000e+00> : vector<1x128xf32>
    %25 = vector.multi_reduction <add>, %24, %cst_9 [2] : vector<1x128x128xf32> to vector<1x128xf32>
    %26 = vector.shape_cast %25 : vector<1x128xf32> to vector<1x128x1xf32>
    %27 = tpu.reciprocal %26 {approx = true} : vector<1x128x1xf32> -> vector<1x128x1xf32>
    %28 = vector.broadcast %27 : vector<1x128x1xf32> to vector<1x128x128xf32>
    %29 = arith.mulf %24, %28 : vector<1x128x128xf32>
    %30 = arith.truncf %29 : vector<1x128x128xf32> to vector<1x128x128xbf16>
    "tpu.trace_start"() <{level = 10 : i32, message = "gqk,gkd->gqd"}> : () -> ()
    %cst_10 = arith.constant dense<0.000000e+00> : vector<1x128x128xf32>
    %31 = tpu.matmul %30, %16, %cst_10 {dimension_numbers = #tpu.dot_dimension_numbers<[2], [1], [1], [2], [0, 0, 0, 1, 1, 2], [0], [0]>} : vector<1x128x128xbf16>, vector<1x128x128xbf16>, vector<1x128x128xf32> -> vector<1x128x128xf32>
    "tpu.trace_stop"() : () -> ()
    %32 = vector.shape_cast %31 : vector<1x128x128xf32> to vector<128x128xf32>
    %33 = arith.truncf %32 : vector<128x128xf32> to vector<128x128xbf16>
    %c0_11 = arith.constant 0 : index
    %c0_12 = arith.constant 0 : index
    %34 = vector.load %arg5[%c0_11, %c0_12] : memref<256x256xbf16, #tpu.memory_space<vmem>>, vector<128x256xbf16>
    %cst_13 = arith.constant dense<0.000000e+00> : vector<128x256xf32>
    %35 = tpu.matmul %33, %34, %cst_13 {dimension_numbers = #tpu.dot_dimension_numbers<[1], [0], [0], [1], [0, 0, 1, 1], [], []>} : vector<128x128xbf16>, vector<128x256xbf16>, vector<128x256xf32> -> vector<128x256xf32>
    %36 = vector.extract_strided_slice %6 {offsets = [0, 128], sizes = [128, 128], strides = [1, 1]} : vector<128x768xf32> to vector<128x128xf32>
    %37 = arith.truncf %36 : vector<128x128xf32> to vector<128x128xbf16>
    %38 = vector.shape_cast %37 : vector<128x128xbf16> to vector<1x128x128xbf16>
    %39 = vector.extract_strided_slice %6 {offsets = [0, 384], sizes = [128, 128], strides = [1, 1]} : vector<128x768xf32> to vector<128x128xf32>
    %40 = arith.truncf %39 : vector<128x128xf32> to vector<128x128xbf16>
    %41 = vector.shape_cast %40 : vector<128x128xbf16> to vector<1x128x128xbf16>
    %42 = vector.extract_strided_slice %6 {offsets = [0, 640], sizes = [128, 128], strides = [1, 1]} : vector<128x768xf32> to vector<128x128xf32>
    %43 = arith.truncf %42 : vector<128x128xf32> to vector<128x128xbf16>
    %44 = vector.shape_cast %43 : vector<128x128xbf16> to vector<1x128x128xbf16>
    "tpu.trace_start"() <{level = 10 : i32, message = "gqd,gkd->gqk"}> : () -> ()
    %cst_14 = arith.constant dense<0.000000e+00> : vector<1x128x128xf32>
    %45 = tpu.matmul %38, %41, %cst_14 {dimension_numbers = #tpu.dot_dimension_numbers<[2], [2], [1], [1], [0, 0, 0, 1, 1, 1], [0], [0]>} : vector<1x128x128xbf16>, vector<1x128x128xbf16>, vector<1x128x128xf32> -> vector<1x128x128xf32>
    "tpu.trace_stop"() : () -> ()
    %46 = vector.shape_cast %7 : vector<128x128xf32> to vector<1x128x128xf32>
    %47 = arith.addf %45, %46 : vector<1x128x128xf32>
    %cst_15 = arith.constant dense<0xFF800000> : vector<1x128xf32>
    %48 = vector.multi_reduction <maximumf>, %47, %cst_15 [2] : vector<1x128x128xf32> to vector<1x128xf32>
    %49 = vector.shape_cast %48 : vector<1x128xf32> to vector<1x128x1xf32>
    %50 = vector.broadcast %49 : vector<1x128x1xf32> to vector<1x128x128xf32>
    %51 = arith.subf %47, %50 : vector<1x128x128xf32>
    %52 = math.exp %51 : vector<1x128x128xf32>
    %cst_16 = arith.constant dense<0.000000e+00> : vector<1x128xf32>
    %53 = vector.multi_reduction <add>, %52, %cst_16 [2] : vector<1x128x128xf32> to vector<1x128xf32>
    %54 = vector.shape_cast %53 : vector<1x128xf32> to vector<1x128x1xf32>
    %55 = tpu.reciprocal %54 {approx = true} : vector<1x128x1xf32> -> vector<1x128x1xf32>
    %56 = vector.broadcast %55 : vector<1x128x1xf32> to vector<1x128x128xf32>
    %57 = arith.mulf %52, %56 : vector<1x128x128xf32>
    %58 = arith.truncf %57 : vector<1x128x128xf32> to vector<1x128x128xbf16>
    "tpu.trace_start"() <{level = 10 : i32, message = "gqk,gkd->gqd"}> : () -> ()
    %cst_17 = arith.constant dense<0.000000e+00> : vector<1x128x128xf32>
    %59 = tpu.matmul %58, %44, %cst_17 {dimension_numbers = #tpu.dot_dimension_numbers<[2], [1], [1], [2], [0, 0, 0, 1, 1, 2], [0], [0]>} : vector<1x128x128xbf16>, vector<1x128x128xbf16>, vector<1x128x128xf32> -> vector<1x128x128xf32>
    "tpu.trace_stop"() : () -> ()
    %60 = vector.shape_cast %59 : vector<1x128x128xf32> to vector<128x128xf32>
    %61 = arith.truncf %60 : vector<128x128xf32> to vector<128x128xbf16>
    %c128 = arith.constant 128 : index
    %c0_18 = arith.constant 0 : index
    %62 = vector.load %arg5[%c128, %c0_18] : memref<256x256xbf16, #tpu.memory_space<vmem>>, vector<128x256xbf16>
    %cst_19 = arith.constant dense<0.000000e+00> : vector<128x256xf32>
    %63 = tpu.matmul %61, %62, %cst_19 {dimension_numbers = #tpu.dot_dimension_numbers<[1], [0], [0], [1], [0, 0, 1, 1], [], []>} : vector<128x128xbf16>, vector<128x256xbf16>, vector<128x256xf32> -> vector<128x256xf32>
    %64 = arith.addf %35, %63 : vector<128x256xf32>
    %c0_20 = arith.constant 0 : index
    %c0_21 = arith.constant 0 : index
    %65 = vector.load %arg6[%c0_20, %c0_21] : memref<1x256xf32, #tpu.memory_space<vmem>>, vector<1x256xf32>
    %66 = vector.broadcast %65 : vector<1x256xf32> to vector<128x256xf32>
    %67 = arith.addf %64, %66 : vector<128x256xf32>
    %68 = arith.addf %0, %67 : vector<128x256xf32>
    %c0_22 = arith.constant 0 : index
    %c0_23 = arith.constant 0 : index
    %69 = vector.load %arg7[%c0_22, %c0_23] : memref<1x256xf32, #tpu.memory_space<vmem>>, vector<1x256xf32>
    %c0_24 = arith.constant 0 : index
    %c0_25 = arith.constant 0 : index
    %70 = vector.load %arg8[%c0_24, %c0_25] : memref<1x256xf32, #tpu.memory_space<vmem>>, vector<1x256xf32>
    %cst_26 = arith.constant dense<0.000000e+00> : vector<128xf32>
    %71 = vector.multi_reduction <add>, %68, %cst_26 [1] : vector<128x256xf32> to vector<128xf32>
    %72 = vector.shape_cast %71 : vector<128xf32> to vector<128x1xf32>
    %cst_27 = arith.constant 2.560000e+02 : f32
    %73 = vector.broadcast %cst_27 : f32 to vector<128x1xf32>
    %74 = arith.divf %72, %73 : vector<128x1xf32>
    %75 = arith.mulf %68, %68 : vector<128x256xf32>
    %cst_28 = arith.constant dense<0.000000e+00> : vector<128xf32>
    %76 = vector.multi_reduction <add>, %75, %cst_28 [1] : vector<128x256xf32> to vector<128xf32>
    %77 = vector.shape_cast %76 : vector<128xf32> to vector<128x1xf32>
    %cst_29 = arith.constant 2.560000e+02 : f32
    %78 = vector.broadcast %cst_29 : f32 to vector<128x1xf32>
    %79 = arith.divf %77, %78 : vector<128x1xf32>
    %80 = arith.mulf %74, %74 : vector<128x1xf32>
    %81 = arith.subf %79, %80 : vector<128x1xf32>
    %cst_30 = arith.constant 0.000000e+00 : f32
    %82 = vector.broadcast %cst_30 : f32 to vector<128x1xf32>
    %83 = arith.maximumf %81, %82 : vector<128x1xf32>
    %84 = vector.broadcast %74 : vector<128x1xf32> to vector<128x256xf32>
    %85 = arith.subf %68, %84 : vector<128x256xf32>
    %cst_31 = arith.constant 9.99999974E-6 : f32
    %86 = vector.broadcast %cst_31 : f32 to vector<128x1xf32>
    %87 = arith.addf %83, %86 : vector<128x1xf32>
    %88 = math.rsqrt %87 : vector<128x1xf32>
    %89 = vector.broadcast %88 : vector<128x1xf32> to vector<128x256xf32>
    %90 = arith.mulf %85, %89 : vector<128x256xf32>
    %91 = vector.broadcast %69 : vector<1x256xf32> to vector<128x256xf32>
    %92 = arith.mulf %90, %91 : vector<128x256xf32>
    %93 = vector.broadcast %70 : vector<1x256xf32> to vector<128x256xf32>
    %94 = arith.addf %92, %93 : vector<128x256xf32>
    %95 = arith.truncf %94 : vector<128x256xf32> to vector<128x256xbf16>
    %c0_32 = arith.constant 0 : index
    %c0_33 = arith.constant 0 : index
    %96 = vector.load %arg9[%c0_32, %c0_33] : memref<256x512xbf16, #tpu.memory_space<vmem>>, vector<256x512xbf16>
    %cst_34 = arith.constant dense<0.000000e+00> : vector<128x512xf32>
    %97 = tpu.matmul %95, %96, %cst_34 {dimension_numbers = #tpu.dot_dimension_numbers<[1], [0], [0], [1], [0, 0, 1, 1], [], []>} : vector<128x256xbf16>, vector<256x512xbf16>, vector<128x512xf32> -> vector<128x512xf32>
    %c0_35 = arith.constant 0 : index
    %c0_36 = arith.constant 0 : index
    %98 = vector.load %arg10[%c0_35, %c0_36] : memref<1x512xf32, #tpu.memory_space<vmem>>, vector<1x512xf32>
    %99 = vector.broadcast %98 : vector<1x512xf32> to vector<128x512xf32>
    %100 = arith.addf %97, %99 : vector<128x512xf32>
    %cst_37 = arith.constant 0.000000e+00 : f32
    %101 = vector.broadcast %cst_37 : f32 to vector<128x512xf32>
    %102 = arith.maximumf %100, %101 : vector<128x512xf32>
    %103 = arith.truncf %102 : vector<128x512xf32> to vector<128x512xbf16>
    %c0_38 = arith.constant 0 : index
    %c0_39 = arith.constant 0 : index
    %104 = vector.load %arg11[%c0_38, %c0_39] : memref<512x256xbf16, #tpu.memory_space<vmem>>, vector<512x256xbf16>
    %cst_40 = arith.constant dense<0.000000e+00> : vector<128x256xf32>
    %105 = tpu.matmul %103, %104, %cst_40 {dimension_numbers = #tpu.dot_dimension_numbers<[1], [0], [0], [1], [0, 0, 1, 1], [], []>} : vector<128x512xbf16>, vector<512x256xbf16>, vector<128x256xf32> -> vector<128x256xf32>
    %c0_41 = arith.constant 0 : index
    %c0_42 = arith.constant 0 : index
    %106 = vector.load %arg12[%c0_41, %c0_42] : memref<1x256xf32, #tpu.memory_space<vmem>>, vector<1x256xf32>
    %107 = vector.broadcast %106 : vector<1x256xf32> to vector<128x256xf32>
    %108 = arith.addf %105, %107 : vector<128x256xf32>
    %109 = arith.addf %94, %108 : vector<128x256xf32>
    %c0_43 = arith.constant 0 : index
    %c0_44 = arith.constant 0 : index
    %110 = vector.load %arg13[%c0_43, %c0_44] : memref<1x256xf32, #tpu.memory_space<vmem>>, vector<1x256xf32>
    %c0_45 = arith.constant 0 : index
    %c0_46 = arith.constant 0 : index
    %111 = vector.load %arg14[%c0_45, %c0_46] : memref<1x256xf32, #tpu.memory_space<vmem>>, vector<1x256xf32>
    %cst_47 = arith.constant dense<0.000000e+00> : vector<128xf32>
    %112 = vector.multi_reduction <add>, %109, %cst_47 [1] : vector<128x256xf32> to vector<128xf32>
    %113 = vector.shape_cast %112 : vector<128xf32> to vector<128x1xf32>
    %cst_48 = arith.constant 2.560000e+02 : f32
    %114 = vector.broadcast %cst_48 : f32 to vector<128x1xf32>
    %115 = arith.divf %113, %114 : vector<128x1xf32>
    %116 = arith.mulf %109, %109 : vector<128x256xf32>
    %cst_49 = arith.constant dense<0.000000e+00> : vector<128xf32>
    %117 = vector.multi_reduction <add>, %116, %cst_49 [1] : vector<128x256xf32> to vector<128xf32>
    %118 = vector.shape_cast %117 : vector<128xf32> to vector<128x1xf32>
    %cst_50 = arith.constant 2.560000e+02 : f32
    %119 = vector.broadcast %cst_50 : f32 to vector<128x1xf32>
    %120 = arith.divf %118, %119 : vector<128x1xf32>
    %121 = arith.mulf %115, %115 : vector<128x1xf32>
    %122 = arith.subf %120, %121 : vector<128x1xf32>
    %cst_51 = arith.constant 0.000000e+00 : f32
    %123 = vector.broadcast %cst_51 : f32 to vector<128x1xf32>
    %124 = arith.maximumf %122, %123 : vector<128x1xf32>
    %125 = vector.broadcast %115 : vector<128x1xf32> to vector<128x256xf32>
    %126 = arith.subf %109, %125 : vector<128x256xf32>
    %cst_52 = arith.constant 9.99999974E-6 : f32
    %127 = vector.broadcast %cst_52 : f32 to vector<128x1xf32>
    %128 = arith.addf %124, %127 : vector<128x1xf32>
    %129 = math.rsqrt %128 : vector<128x1xf32>
    %130 = vector.broadcast %129 : vector<128x1xf32> to vector<128x256xf32>
    %131 = arith.mulf %126, %130 : vector<128x256xf32>
    %132 = vector.broadcast %110 : vector<1x256xf32> to vector<128x256xf32>
    %133 = arith.mulf %131, %132 : vector<128x256xf32>
    %134 = vector.broadcast %111 : vector<1x256xf32> to vector<128x256xf32>
    %135 = arith.addf %133, %134 : vector<128x256xf32>
    %c0_53 = arith.constant 0 : index
    %c0_54 = arith.constant 0 : index
    %136 = vector.load %arg15[%c0_53, %c0_54] : memref<128x256xf32, #tpu.memory_space<vmem>>, vector<128x256xf32>
    tpu.vector_store %arg15[%c0_53, %c0_54], %135 {strides = array<i32>} : memref<128x256xf32, #tpu.memory_space<vmem>>, vector<128x256xf32>,
    return
  }
  func.func @transform_0(%arg0: i32) -> (i32, i32) {
    %c0_i32 = arith.constant 0 : i32
    %c0_i32_0 = arith.constant 0 : i32
    return %arg0, %c0_i32 : i32, i32
  }
  func.func @transform_1(%arg0: i32) -> (i32, i32) {
    %c0_i32 = arith.constant 0 : i32
    %c0_i32_0 = arith.constant 0 : i32
    %c0_i32_1 = arith.constant 0 : i32
    return %c0_i32, %c0_i32_0 : i32, i32
  }
  func.func @transform_2(%arg0: i32) -> (i32, i32) {
    %c0_i32 = arith.constant 0 : i32
    %c0_i32_0 = arith.constant 0 : i32
    %c0_i32_1 = arith.constant 0 : i32
    return %c0_i32, %c0_i32_0 : i32, i32
  }
  func.func @transform_3(%arg0: i32) -> (i32, i32) {
    %c0_i32 = arith.constant 0 : i32
    %c0_i32_0 = arith.constant 0 : i32
    %c0_i32_1 = arith.constant 0 : i32
    return %c0_i32, %c0_i32_0 : i32, i32
  }
  func.func @transform_4(%arg0: i32) -> (i32, i32) {
    %c0_i32 = arith.constant 0 : i32
    %c0_i32_0 = arith.constant 0 : i32
    %c0_i32_1 = arith.constant 0 : i32
    return %c0_i32, %c0_i32_0 : i32, i32
  }
  func.func @transform_5(%arg0: i32) -> (i32, i32) {
    %c0_i32 = arith.constant 0 : i32
    %c0_i32_0 = arith.constant 0 : i32
    %c0_i32_1 = arith.constant 0 : i32
    return %c0_i32, %c0_i32_0 : i32, i32
  }
  func.func @transform_6(%arg0: i32) -> (i32, i32) {
    %c0_i32 = arith.constant 0 : i32
    %c0_i32_0 = arith.constant 0 : i32
    %c0_i32_1 = arith.constant 0 : i32
    return %c0_i32, %c0_i32_0 : i32, i32
  }
  func.func @transform_7(%arg0: i32) -> (i32, i32) {
    %c0_i32 = arith.constant 0 : i32
    %c0_i32_0 = arith.constant 0 : i32
    %c0_i32_1 = arith.constant 0 : i32
    return %c0_i32, %c0_i32_0 : i32, i32
  }
  func.func @transform_8(%arg0: i32) -> (i32, i32) {
    %c0_i32 = arith.constant 0 : i32
    %c0_i32_0 = arith.constant 0 : i32
    %c0_i32_1 = arith.constant 0 : i32
    return %c0_i32, %c0_i32_0 : i32, i32
  }
  func.func @transform_9(%arg0: i32) -> (i32, i32) {
    %c0_i32 = arith.constant 0 : i32
    %c0_i32_0 = arith.constant 0 : i32
    %c0_i32_1 = arith.constant 0 : i32
    return %c0_i32, %c0_i32_0 : i32, i32
  }
  func.func @transform_10(%arg0: i32) -> (i32, i32) {
    %c0_i32 = arith.constant 0 : i32
    %c0_i32_0 = arith.constant 0 : i32
    %c0_i32_1 = arith.constant 0 : i32
    return %c0_i32, %c0_i32_0 : i32, i32
  }
  func.func @transform_11(%arg0: i32) -> (i32, i32) {
    %c0_i32 = arith.constant 0 : i32
    %c0_i32_0 = arith.constant 0 : i32
    %c0_i32_1 = arith.constant 0 : i32
    return %c0_i32, %c0_i32_0 : i32, i32
  }
  func.func @transform_12(%arg0: i32) -> (i32, i32) {
    %c0_i32 = arith.constant 0 : i32
    %c0_i32_0 = arith.constant 0 : i32
    %c0_i32_1 = arith.constant 0 : i32
    return %c0_i32, %c0_i32_0 : i32, i32
  }
  func.func @transform_13(%arg0: i32) -> (i32, i32) {
    %c0_i32 = arith.constant 0 : i32
    %c0_i32_0 = arith.constant 0 : i32
    %c0_i32_1 = arith.constant 0 : i32
    return %c0_i32, %c0_i32_0 : i32, i32
  }
  func.func @transform_14(%arg0: i32) -> (i32, i32) {
    %c0_i32 = arith.constant 0 : i32
    %c0_i32_0 = arith.constant 0 : i32
    return %arg0, %c0_i32 : i32, i32
  }
}

module attributes {stable_mosaic.version = 11 : i64} {
  func.func @kernel(%arg0: i32, %arg1: memref<128x256xf32, #tpu.memory_space<vmem>>, %arg2: memref<128x128xf32, #tpu.memory_space<vmem>>, %arg3: memref<256x768xbf16, #tpu.memory_space<vmem>>, %arg4: memref<1x768xf32, #tpu.memory_space<vmem>>, %arg5: memref<256x256xbf16, #tpu.memory_space<vmem>>, %arg6: memref<1x256xf32, #tpu.memory_space<vmem>>, %arg7: memref<1x256xf32, #tpu.memory_space<vmem>>, %arg8: memref<1x256xf32, #tpu.memory_space<vmem>>, %arg9: memref<256x512xbf16, #tpu.memory_space<vmem>>, %arg10: memref<1x512xf32, #tpu.memory_space<vmem>>, %arg11: memref<512x256xbf16, #tpu.memory_space<vmem>>, %arg12: memref<1x256xf32, #tpu.memory_space<vmem>>, %arg13: memref<1x256xf32, #tpu.memory_space<vmem>>, %arg14: memref<1x256xf32, #tpu.memory_space<vmem>>, %arg15: memref<128x256xf32, #tpu.memory_space<vmem>>) attributes {dimension_semantics = [#tpu.dimension_semantics<parallel>], iteration_bounds = array<i64: 2>, scalar_prefetch = 0 : i64, scratch_operands = 0 : i64, tpu.core_type = #tpu.core_type<tc>, window_params = [{transform_indices = @transform_0, window_bounds = array<i64: 128, 256>}, {pipeline_mode = #tpu.pipeline_mode<synchronous>, transform_indices = @transform_1, window_bounds = array<i64: 128, 128>}, {pipeline_mode = #tpu.pipeline_mode<synchronous>, transform_indices = @transform_2, window_bounds = array<i64: 256, 768>}, {pipeline_mode = #tpu.pipeline_mode<synchronous>, transform_indices = @transform_3, window_bounds = array<i64: 1, 768>}, {pipeline_mode = #tpu.pipeline_mode<synchronous>, transform_indices = @transform_4, window_bounds = array<i64: 256, 256>}, {pipeline_mode = #tpu.pipeline_mode<synchronous>, transform_indices = @transform_5, window_bounds = array<i64: 1, 256>}, {pipeline_mode = #tpu.pipeline_mode<synchronous>, transform_indices = @transform_6, window_bounds = array<i64: 1, 256>}, {pipeline_mode = #tpu.pipeline_mode<synchronous>, transform_indices = @transform_7, window_bounds = array<i64: 1, 256>}, {pipeline_mode = #tpu.pipeline_mode<synchronous>, transform_indices = @transform_8, window_bounds = array<i64: 256, 512>}, {pipeline_mode = #tpu.pipeline_mode<synchronous>, transform_indices = @transform_9, window_bounds = array<i64: 1, 512>}, {pipeline_mode = #tpu.pipeline_mode<synchronous>, transform_indices = @transform_10, window_bounds = array<i64: 512, 256>}, {pipeline_mode = #tpu.pipeline_mode<synchronous>, transform_indices = @transform_11, window_bounds = array<i64: 1, 256>}, {pipeline_mode = #tpu.pipeline_mode<synchronous>, transform_indices = @transform_12, window_bounds = array<i64: 1, 256>}, {pipeline_mode = #tpu.pipeline_mode<synchronous>, transform_indices = @transform_13, window_bounds = array<i64: 1, 256>}, {transform_indices = @transform_14, window_bounds = array<i64: 128, 256>}]} {
    %c0 = arith.constant 0 : index
    %c0_0 = arith.constant 0 : index
    %0 = vector.load %arg1[%c0, %c0_0] : memref<128x256xf32, #tpu.memory_space<vmem>>, vector<128x256xf32>
    %1 = arith.truncf %0 : vector<128x256xf32> to vector<128x256xbf16>
    %c0_1 = arith.constant 0 : index
    %c0_2 = arith.constant 0 : index
    %2 = vector.load %arg3[%c0_1, %c0_2] : memref<256x768xbf16, #tpu.memory_space<vmem>>, vector<256x768xbf16>
    %cst = arith.constant dense<0.000000e+00> : vector<128x768xf32>
    %3 = tpu.matmul %1, %2, %cst {dimension_numbers = #tpu.dot_dimension_numbers<[1], [0], [0], [1], [0, 0, 1, 1], [], []>} : vector<128x256xbf16>, vector<256x768xbf16>, vector<128x768xf32> -> vector<128x768xf32>
    %c0_3 = arith.constant 0 : index
    %c0_4 = arith.constant 0 : index
    %4 = vector.load %arg4[%c0_3, %c0_4] : memref<1x768xf32, #tpu.memory_space<vmem>>, vector<1x768xf32>
    %5 = vector.broadcast %4 : vector<1x768xf32> to vector<128x768xf32>
    %6 = arith.addf %3, %5 : vector<128x768xf32>
    %c0_5 = arith.constant 0 : index
    %c0_6 = arith.constant 0 : index
    %7 = vector.load %arg2[%c0_5, %c0_6] : memref<128x128xf32, #tpu.memory_space<vmem>>, vector<128x128xf32>
    %8 = vector.extract_strided_slice %6 {offsets = [0, 0], sizes = [128, 128], strides = [1, 1]} : vector<128x768xf32> to vector<128x128xf32>
    %9 = arith.truncf %8 : vector<128x128xf32> to vector<128x128xbf16>
    %10 = vector.shape_cast %9 : vector<128x128xbf16> to vector<1x128x128xbf16>
    %11 = vector.extract_strided_slice %6 {offsets = [0, 256], sizes = [128, 128], strides = [1, 1]} : vector<128x768xf32> to vector<128x128xf32>
    %12 = arith.truncf %11 : vector<128x128xf32> to vector<128x128xbf16>
    %13 = vector.shape_cast %12 : vector<128x128xbf16> to vector<1x128x128xbf16>
    %14 = vector.extract_strided_slice %6 {offsets = [0, 512], sizes = [128, 128], strides = [1, 1]} : vector<128x768xf32> to vector<128x128xf32>
    %15 = arith.truncf %14 : vector<128x128xf32> to vector<128x128xbf16>
    %16 = vector.shape_cast %15 : vector<128x128xbf16> to vector<1x128x128xbf16>
    "tpu.trace_start"() <{level = 10 : i32, message = "gqd,gkd->gqk"}> : () -> ()
    %cst_7 = arith.constant dense<0.000000e+00> : vector<1x128x128xf32>
    %17 = tpu.matmul %10, %13, %cst_7 {dimension_numbers = #tpu.dot_dimension_numbers<[2], [2], [1], [1], [0, 0, 0, 1, 1, 1], [0], [0]>} : vector<1x128x128xbf16>, vector<1x128x128xbf16>, vector<1x128x128xf32> -> vector<1x128x128xf32>
    "tpu.trace_stop"() : () -> ()
    %18 = vector.shape_cast %7 : vector<128x128xf32> to vector<1x128x128xf32>
    %19 = arith.addf %17, %18 : vector<1x128x128xf32>
    %cst_8 = arith.constant dense<0xFF800000> : vector<1x128xf32>
    %20 = vector.multi_reduction <maximumf>, %19, %cst_8 [2] : vector<1x128x128xf32> to vector<1x128xf32>
    %21 = vector.shape_cast %20 : vector<1x128xf32> to vector<1x128x1xf32>
    %22 = vector.broadcast %21 : vector<1x128x1xf32> to vector<1x128x128xf32>
    %23 = arith.subf %19, %22 : vector<1x128x128xf32>
    %24 = math.exp %23 : vector<1x128x128xf32>
    %cst_9 = arith.constant dense<0.000000e+00> : vector<1x128xf32>
    %25 = vector.multi_reduction <add>, %24, %cst_9 [2] : vector<1x128x128xf32> to vector<1x128xf32>
    %26 = vector.shape_cast %25 : vector<1x128xf32> to vector<1x128x1xf32>
    %27 = tpu.reciprocal %26 {approx = true} : vector<1x128x1xf32> -> vector<1x128x1xf32>
    %28 = vector.broadcast %27 : vector<1x128x1xf32> to vector<1x128x128xf32>
    %29 = arith.mulf %24, %28 : vector<1x128x128xf32>
    %30 = arith.truncf %29 : vector<1x128x128xf32> to vector<1x128x128xbf16>
    "tpu.trace_start"() <{level = 10 : i32, message = "gqk,gkd->gqd"}> : () -> ()
    %cst_10 = arith.constant dense<0.000000e+00> : vector<1x128x128xf32>
    %31 = tpu.matmul %30, %16, %cst_10 {dimension_numbers = #tpu.dot_dimension_numbers<[2], [1], [1], [2], [0, 0, 0, 1, 1, 2], [0], [0]>} : vector<1x128x128xbf16>, vector<1x128x128xbf16>, vector<1x128x128xf32> -> vector<1x128x128xf32>
    "tpu.trace_stop"() : () -> ()
    %32 = vector.shape_cast %31 : vector<1x128x128xf32> to vector<128x128xf32>
    %33 = arith.truncf %32 : vector<128x128xf32> to vector<128x128xbf16>
    %c0_11 = arith.constant 0 : index
    %c0_12 = arith.constant 0 : index
    %34 = vector.load %arg5[%c0_11, %c0_12] : memref<256x256xbf16, #tpu.memory_space<vmem>>, vector<128x256xbf16>
    %cst_13 = arith.constant dense<0.000000e+00> : vector<128x256xf32>
    %35 = tpu.matmul %33, %34, %cst_13 {dimension_numbers = #tpu.dot_dimension_numbers<[1], [0], [0], [1], [0, 0, 1, 1], [], []>} : vector<128x128xbf16>, vector<128x256xbf16>, vector<128x256xf32> -> vector<128x256xf32>
    %36 = vector.extract_strided_slice %6 {offsets = [0, 128], sizes = [128, 128], strides = [1, 1]} : vector<128x768xf32> to vector<128x128xf32>
    %37 = arith.truncf %36 : vector<128x128xf32> to vector<128x128xbf16>
    %38 = vector.shape_cast %37 : vector<128x128xbf16> to vector<1x128x128xbf16>
    %39 = vector.extract_strided_slice %6 {offsets = [0, 384], sizes = [128, 128], strides = [1, 1]} : vector<128x768xf32> to vector<128x128xf32>
    %40 = arith.truncf %39 : vector<128x128xf32> to vector<128x128xbf16>
    %41 = vector.shape_cast %40 : vector<128x128xbf16> to vector<1x128x128xbf16>
    %42 = vector.extract_strided_slice %6 {offsets = [0, 640], sizes = [128, 128], strides = [1, 1]} : vector<128x768xf32> to vector<128x128xf32>
    %43 = arith.truncf %42 : vector<128x128xf32> to vector<128x128xbf16>
    %44 = vector.shape_cast %43 : vector<128x128xbf16> to vector<1x128x128xbf16>
    "tpu.trace_start"() <{level = 10 : i32, message = "gqd,gkd->gqk"}> : () -> ()
    %cst_14 = arith.constant dense<0.000000e+00> : vector<1x128x128xf32>
    %45 = tpu.matmul %38, %41, %cst_14 {dimension_numbers = #tpu.dot_dimension_numbers<[2], [2], [1], [1], [0, 0, 0, 1, 1, 1], [0], [0]>} : vector<1x128x128xbf16>, vector<1x128x128xbf16>, vector<1x128x128xf32> -> vector<1x128x128xf32>
    "tpu.trace_stop"() : () -> ()
    %46 = vector.shape_cast %7 : vector<128x128xf32> to vector<1x128x128xf32>
    %47 = arith.addf %45, %46 : vector<1x128x128xf32>
    %cst_15 = arith.constant dense<0xFF800000> : vector<1x128xf32>
    %48 = vector.multi_reduction <maximumf>, %47, %cst_15 [2] : vector<1x128x128xf32> to vector<1x128xf32>
    %49 = vector.shape_cast %48 : vector<1x128xf32> to vector<1x128x1xf32>
    %50 = vector.broadcast %49 : vector<1x128x1xf32> to vector<1x128x128xf32>
    %51 = arith.subf %47, %50 : vector<1x128x128xf32>
    %52 = math.exp %51 : vector<1x128x128xf32>
    %cst_16 = arith.constant dense<0.000000e+00> : vector<1x128xf32>
    %53 = vector.multi_reduction <add>, %52, %cst_16 [2] : vector<1x128x128xf32> to vector<1x128xf32>
    %54 = vector.shape_cast %53 : vector<1x128xf32> to vector<1x128x1xf32>
    %55 = tpu.reciprocal %54 {approx = true} : vector<1x128x1xf32> -> vector<1x128x1xf32>
    %56 = vector.broadcast %55 : vector<1x128x1xf32> to vector<1x128x128xf32>
    %57 = arith.mulf %52, %56 : vector<1x128x128xf32>
    %58 = arith.truncf %57 : vector<1x128x128xf32> to vector<1x128x128xbf16>
    "tpu.trace_start"() <{level = 10 : i32, message = "gqk,gkd->gqd"}> : () -> ()
    %cst_17 = arith.constant dense<0.000000e+00> : vector<1x128x128xf32>
    %59 = tpu.matmul %58, %44, %cst_17 {dimension_numbers = #tpu.dot_dimension_numbers<[2], [1], [1], [2], [0, 0, 0, 1, 1, 2], [0], [0]>} : vector<1x128x128xbf16>, vector<1x128x128xbf16>, vector<1x128x128xf32> -> vector<1x128x128xf32>
    "tpu.trace_stop"() : () -> ()
    %60 = vector.shape_cast %59 : vector<1x128x128xf32> to vector<128x128xf32>
    %61 = arith.truncf %60 : vector<128x128xf32> to vector<128x128xbf16>
    %c128 = arith.constant 128 : index
    %c0_18 = arith.constant 0 : index
    %62 = vector.load %arg5[%c128, %c0_18] : memref<256x256xbf16, #tpu.memory_space<vmem>>, vector<128x256xbf16>
    %cst_19 = arith.constant dense<0.000000e+00> : vector<128x256xf32>
    %63 = tpu.matmul %61, %62, %cst_19 {dimension_numbers = #tpu.dot_dimension_numbers<[1], [0], [0], [1], [0, 0, 1, 1], [], []>} : vector<128x128xbf16>, vector<128x256xbf16>, vector<128x256xf32> -> vector<128x256xf32>
    %64 = arith.addf %35, %63 : vector<128x256xf32>
    %c0_20 = arith.constant 0 : index
    %c0_21 = arith.constant 0 : index
    %65 = vector.load %arg6[%c0_20, %c0_21] : memref<1x256xf32, #tpu.memory_space<vmem>>, vector<1x256xf32>
    %66 = vector.broadcast %65 : vector<1x256xf32> to vector<128x256xf32>
    %67 = arith.addf %64, %66 : vector<128x256xf32>
    %68 = arith.addf %0, %67 : vector<128x256xf32>
    %c0_22 = arith.constant 0 : index
    %c0_23 = arith.constant 0 : index
    %69 = vector.load %arg7[%c0_22, %c0_23] : memref<1x256xf32, #tpu.memory_space<vmem>>, vector<1x256xf32>
    %c0_24 = arith.constant 0 : index
    %c0_25 = arith.constant 0 : index
    %70 = vector.load %arg8[%c0_24, %c0_25] : memref<1x256xf32, #tpu.memory_space<vmem>>, vector<1x256xf32>
    %cst_26 = arith.constant dense<0.000000e+00> : vector<128xf32>
    %71 = vector.multi_reduction <add>, %68, %cst_26 [1] : vector<128x256xf32> to vector<128xf32>
    %72 = vector.shape_cast %71 : vector<128xf32> to vector<128x1xf32>
    %cst_27 = arith.constant 2.560000e+02 : f32
    %73 = vector.broadcast %cst_27 : f32 to vector<128x1xf32>
    %74 = arith.divf %72, %73 : vector<128x1xf32>
    %75 = arith.mulf %68, %68 : vector<128x256xf32>
    %cst_28 = arith.constant dense<0.000000e+00> : vector<128xf32>
    %76 = vector.multi_reduction <add>, %75, %cst_28 [1] : vector<128x256xf32> to vector<128xf32>
    %77 = vector.shape_cast %76 : vector<128xf32> to vector<128x1xf32>
    %cst_29 = arith.constant 2.560000e+02 : f32
    %78 = vector.broadcast %cst_29 : f32 to vector<128x1xf32>
    %79 = arith.divf %77, %78 : vector<128x1xf32>
    %80 = arith.mulf %74, %74 : vector<128x1xf32>
    %81 = arith.subf %79, %80 : vector<128x1xf32>
    %cst_30 = arith.constant 0.000000e+00 : f32
    %82 = vector.broadcast %cst_30 : f32 to vector<128x1xf32>
    %83 = arith.maximumf %81, %82 : vector<128x1xf32>
    %84 = vector.broadcast %74 : vector<128x1xf32> to vector<128x256xf32>
    %85 = arith.subf %68, %84 : vector<128x256xf32>
    %cst_31 = arith.constant 9.99999974E-6 : f32
    %86 = vector.broadcast %cst_31 : f32 to vector<128x1xf32>
    %87 = arith.addf %83, %86 : vector<128x1xf32>
    %88 = math.rsqrt %87 : vector<128x1xf32>
    %89 = vector.broadcast %88 : vector<128x1xf32> to vector<128x256xf32>
    %90 = arith.mulf %85, %89 : vector<128x256xf32>
    %91 = vector.broadcast %69 : vector<1x256xf32> to vector<128x256xf32>
    %92 = arith.mulf %90, %91 : vector<128x256xf32>
    %93 = vector.broadcast %70 : vector<1x256xf32> to vector<128x256xf32>
    %94 = arith.addf %92, %93 : vector<128x256xf32>
    %95 = arith.truncf %94 : vector<128x256xf32> to vector<128x256xbf16>
    %c0_32 = arith.constant 0 : index
    %c0_33 = arith.constant 0 : index
    %96 = vector.load %arg9[%c0_32, %c0_33] : memref<256x512xbf16, #tpu.memory_space<vmem>>, vector<256x512xbf16>
    %cst_34 = arith.constant dense<0.000000e+00> : vector<128x512xf32>
    %97 = tpu.matmul %95, %96, %cst_34 {dimension_numbers = #tpu.dot_dimension_numbers<[1], [0], [0], [1], [0, 0, 1, 1], [], []>} : vector<128x256xbf16>, vector<256x512xbf16>, vector<128x512xf32> -> vector<128x512xf32>
    %c0_35 = arith.constant 0 : index
    %c0_36 = arith.constant 0 : index
    %98 = vector.load %arg10[%c0_35, %c0_36] : memref<1x512xf32, #tpu.memory_space<vmem>>, vector<1x512xf32>
    %99 = vector.broadcast %98 : vector<1x512xf32> to vector<128x512xf32>
    %100 = arith.addf %97, %99 : vector<128x512xf32>
    %cst_37 = arith.constant 0.000000e+00 : f32
    %101 = vector.broadcast %cst_37 : f32 to vector<128x512xf32>
    %102 = arith.maximumf %100, %101 : vector<128x512xf32>
    %103 = arith.truncf %102 : vector<128x512xf32> to vector<128x512xbf16>
    %c0_38 = arith.constant 0 : index
    %c0_39 = arith.constant 0 : index
    %104 = vector.load %arg11[%c0_38, %c0_39] : memref<512x256xbf16, #tpu.memory_space<vmem>>, vector<512x256xbf16>
    %cst_40 = arith.constant dense<0.000000e+00> : vector<128x256xf32>
    %105 = tpu.matmul %103, %104, %cst_40 {dimension_numbers = #tpu.dot_dimension_numbers<[1], [0], [0], [1], [0, 0, 1, 1], [], []>} : vector<128x512xbf16>, vector<512x256xbf16>, vector<128x256xf32> -> vector<128x256xf32>
    %c0_41 = arith.constant 0 : index
    %c0_42 = arith.constant 0 : index
    %106 = vector.load %arg12[%c0_41, %c0_42] : memref<1x256xf32, #tpu.memory_space<vmem>>, vector<1x256xf32>
    %107 = vector.broadcast %106 : vector<1x256xf32> to vector<128x256xf32>
    %108 = arith.addf %105, %107 : vector<128x256xf32>
    %109 = arith.addf %94, %108 : vector<128x256xf32>
    %c0_43 = arith.constant 0 : index
    %c0_44 = arith.constant 0 : index
    %110 = vector.load %arg13[%c0_43, %c0_44] : memref<1x256xf32, #tpu.memory_space<vmem>>, vector<1x256xf32>
    %c0_45 = arith.constant 0 : index
    %c0_46 = arith.constant 0 : index
    %111 = vector.load %arg14[%c0_45, %c0_46] : memref<1x256xf32, #tpu.memory_space<vmem>>, vector<1x256xf32>
    %cst_47 = arith.constant dense<0.000000e+00> : vector<128xf32>
    %112 = vector.multi_reduction <add>, %109, %cst_47 [1] : vector<128x256xf32> to vector<128xf32>
    %113 = vector.shape_cast %112 : vector<128xf32> to vector<128x1xf32>
    %cst_48 = arith.constant 2.560000e+02 : f32
    %114 = vector.broadcast %cst_48 : f32 to vector<128x1xf32>
    %115 = arith.divf %113, %114 : vector<128x1xf32>
    %116 = arith.mulf %109, %109 : vector<128x256xf32>
    %cst_49 = arith.constant dense<0.000000e+00> : vector<128xf32>
    %117 = vector.multi_reduction <add>, %116, %cst_49 [1] : vector<128x256xf32> to vector<128xf32>
    %118 = vector.shape_cast %117 : vector<128xf32> to vector<128x1xf32>
    %cst_50 = arith.constant 2.560000e+02 : f32
    %119 = vector.broadcast %cst_50 : f32 to vector<128x1xf32>
    %120 = arith.divf %118, %119 : vector<128x1xf32>
    %121 = arith.mulf %115, %115 : vector<128x1xf32>
    %122 = arith.subf %120, %121 : vector<128x1xf32>
    %cst_51 = arith.constant 0.000000e+00 : f32
    %123 = vector.broadcast %cst_51 : f32 to vector<128x1xf32>
    %124 = arith.maximumf %122, %123 : vector<128x1xf32>
    %125 = vector.broadcast %115 : vector<128x1xf32> to vector<128x256xf32>
    %126 = arith.subf %109, %125 : vector<128x256xf32>
    %cst_52 = arith.constant 9.99999974E-6 : f32
    %127 = vector.broadcast %cst_52 : f32 to vector<128x1xf32>
    %128 = arith.addf %124, %127 : vector<128x1xf32>
    %129 = math.rsqrt %128 : vector<128x1xf32>
    %130 = vector.broadcast %129 : vector<128x1xf32> to vector<128x256xf32>
    %131 = arith.mulf %126, %130 : vector<128x256xf32>
    %132 = vector.broadcast %110 : vector<1x256xf32> to vector<128x256xf32>
    %133 = arith.mulf %131, %132 : vector<128x256xf32>
    %134 = vector.broadcast %111 : vector<1x256xf32> to vector<128x256xf32>
    %135 = arith.addf %133, %134 : vector<128x256xf32>
    %c0_53 = arith.constant 0 : index
    %c0_54 = arith.constant 0 : index
    %136 = vector.load %arg15[%c0_53, %c0_54] : memref<128x256xf32, #tpu.memory_space<vmem>>, vector<128x256xf32>
    tpu.vector_store %arg15[%c0_53, %c0_54], %135 {strides = array<i32>} : memref<128x256xf32, #tpu.memory_space<vmem>>, vector<128x256xf32>,
    return
  }
  func.func @transform_0(%arg0: i32) -> (i32, i32) {
    %c0_i32 = arith.constant 0 : i32
    %c0_i32_0 = arith.constant 0 : i32
    return %arg0, %c0_i32 : i32, i32
  }
  func.func @transform_1(%arg0: i32) -> (i32, i32) {
    %c0_i32 = arith.constant 0 : i32
    %c0_i32_0 = arith.constant 0 : i32
    %c0_i32_1 = arith.constant 0 : i32
    return %c0_i32, %c0_i32_0 : i32, i32
  }
  func.func @transform_2(%arg0: i32) -> (i32, i32) {
    %c0_i32 = arith.constant 0 : i32
    %c0_i32_0 = arith.constant 0 : i32
    %c0_i32_1 = arith.constant 0 : i32
    return %c0_i32, %c0_i32_0 : i32, i32
  }
  func.func @transform_3(%arg0: i32) -> (i32, i32) {
    %c0_i32 = arith.constant 0 : i32
    %c0_i32_0 = arith.constant 0 : i32
    %c0_i32_1 = arith.constant 0 : i32
    return %c0_i32, %c0_i32_0 : i32, i32
  }
  func.func @transform_4(%arg0: i32) -> (i32, i32) {
    %c0_i32 = arith.constant 0 : i32
    %c0_i32_0 = arith.constant 0 : i32
    %c0_i32_1 = arith.constant 0 : i32
    return %c0_i32, %c0_i32_0 : i32, i32
  }
  func.func @transform_5(%arg0: i32) -> (i32, i32) {
    %c0_i32 = arith.constant 0 : i32
    %c0_i32_0 = arith.constant 0 : i32
    %c0_i32_1 = arith.constant 0 : i32
    return %c0_i32, %c0_i32_0 : i32, i32
  }
  func.func @transform_6(%arg0: i32) -> (i32, i32) {
    %c0_i32 = arith.constant 0 : i32
    %c0_i32_0 = arith.constant 0 : i32
    %c0_i32_1 = arith.constant 0 : i32
    return %c0_i32, %c0_i32_0 : i32, i32
  }
  func.func @transform_7(%arg0: i32) -> (i32, i32) {
    %c0_i32 = arith.constant 0 : i32
    %c0_i32_0 = arith.constant 0 : i32
    %c0_i32_1 = arith.constant 0 : i32
    return %c0_i32, %c0_i32_0 : i32, i32
  }
  func.func @transform_8(%arg0: i32) -> (i32, i32) {
    %c0_i32 = arith.constant 0 : i32
    %c0_i32_0 = arith.constant 0 : i32
    %c0_i32_1 = arith.constant 0 : i32
    return %c0_i32, %c0_i32_0 : i32, i32
  }
  func.func @transform_9(%arg0: i32) -> (i32, i32) {
    %c0_i32 = arith.constant 0 : i32
    %c0_i32_0 = arith.constant 0 : i32
    %c0_i32_1 = arith.constant 0 : i32
    return %c0_i32, %c0_i32_0 : i32, i32
  }
  func.func @transform_10(%arg0: i32) -> (i32, i32) {
    %c0_i32 = arith.constant 0 : i32
    %c0_i32_0 = arith.constant 0 : i32
    %c0_i32_1 = arith.constant 0 : i32
    return %c0_i32, %c0_i32_0 : i32, i32
  }
  func.func @transform_11(%arg0: i32) -> (i32, i32) {
    %c0_i32 = arith.constant 0 : i32
    %c0_i32_0 = arith.constant 0 : i32
    %c0_i32_1 = arith.constant 0 : i32
    return %c0_i32, %c0_i32_0 : i32, i32
  }
  func.func @transform_12(%arg0: i32) -> (i32, i32) {
    %c0_i32 = arith.constant 0 : i32
    %c0_i32_0 = arith.constant 0 : i32
    %c0_i32_1 = arith.constant 0 : i32
    return %c0_i32, %c0_i32_0 : i32, i32
  }
  func.func @transform_13(%arg0: i32) -> (i32, i32) {
    %c0_i32 = arith.constant 0 : i32
    %c0_i32_0 = arith.constant 0 : i32
    %c0_i32_1 = arith.constant 0 : i32
    return %c0_i32, %c0_i32_0 : i32, i32
  }
  func.func @transform_14(%arg0: i32) -> (i32, i32) {
    %c0_i32 = arith.constant 0 : i32
    %c0_i32_0 = arith.constant 0 : i32
    return %arg0, %c0_i32 : i32, i32
  }
}

</mosaic_0001>

<bundles_post_ra>
// kernel: tpu_custom_call.1
= control target key start
LH: loop header
LB: loop body
LE: loop exit
PB: predicated region body
PF: predicated region fallthrough
CT: control target
= control target key end

     0   :  { %s8939_s0 = inlined_call_operand.hbm [shape: f32[256,256], index: 0, kind: input, shape index: {}]   ;;  %s8940_s1 = inlined_call_operand.hbm [shape: f32[128,128], index: 1, kind: input, shape index: {}]   ;;  %s8941_s2 = inlined_call_operand.hbm [shape: bf16[256,768], index: 2, kind: input, shape index: {}]   ;;  %s8942_s3 = inlined_call_operand.hbm [shape: f32[1,768], index: 3, kind: input, shape index: {}]   ;;  %s8943_s4 = inlined_call_operand.hbm [shape: bf16[256,256], index: 4, kind: input, shape index: {}]   ;;  %s8944_s5 = inlined_call_operand.vmem [shape: f32[1,256], index: 5, kind: input, shape index: {}]   ;;  %s8945_s6 = inlined_call_operand.vmem [shape: f32[1,256], index: 6, kind: input, shape index: {}]   ;;  %s8946_s7 = inlined_call_operand.vmem [shape: f32[1,256], index: 7, kind: input, shape index: {}]   ;;  %s8947_s8 = inlined_call_operand.hbm [shape: bf16[256,512], index: 8, kind: input, shape index: {}]   ;;  %s8948_s9 = inlined_call_operand.vmem [shape: f32[1,512], index: 9, kind: input, shape index: {}]   ;;  %s8949_s10 = inlined_call_operand.hbm [shape: bf16[512,256], index: 10, kind: input, shape index: {}]   ;;  %s8950_s11 = inlined_call_operand.vmem [shape: f32[1,256], index: 11, kind: input, shape index: {}]   ;;  %s8951_s12 = inlined_call_operand.vmem [shape: f32[1,256], index: 12, kind: input, shape index: {}]   ;;  %s8952_s13 = inlined_call_operand.vmem [shape: f32[1,256], index: 13, kind: input, shape index: {}]   ;;  %s8953_s14 = inlined_call_operand.hbm [shape: f32[256,256], index: 14, kind: output, shape index: {}]  }
   0x1   :  { %8972 = sst [smem:[#allocation25_spill]] %s8940_s1 }
   0x2   :  { %8973 = sst [smem:[#allocation26_spill]] %s8941_s2 }
   0x3   :  { %8974 = sst [smem:[#allocation27_spill]] %s8942_s3 }
   0x4   :  { %8975 = sst [smem:[#allocation28_spill]] %s8943_s4 }
   0x5   :  { %8976 = sst [smem:[#allocation29_spill]] %s8947_s8 }
   0x6   :  { %8977 = sst [smem:[#allocation30_spill]] %s8949_s10 }
   0x7   :  { %8978 = sst [smem:[#allocation31_spill]] %s8952_s13 }
   0x8   :  { %8979 = sst [smem:[#allocation32_spill]] %s8953_s14 }
   0x9   :  { %19 = vsyncpa [#allocation3], 0 }
   0xa   :  { %21 = vsyncpa [#allocation3 + $0x1], 0 }
   0xb   :  { %22 = vsyncpa [#allocation6], 0 }
   0xc   :  { %23 = vsyncpa [#allocation9], 0 }
   0xd   :  { %24 = vsyncpa [#allocation12], 0 }
   0xe   :  { %25 = vsyncpa [#allocation4], 0 }
   0xf   :  { %27 = vsyncpa [#allocation4 + $0x1], 0  ;;  %s6754_s29 = smov 0   ;;  %s6756_s30 = smov 0  }
  0x10   :  { %s6758_s15 = smov 0   ;;  %s6760_s16 = smov 0  }
  0x11 LB: > { %s6662_s17 = smov [#allocation5]   ;;  %s6775_s19 = sadd.s32 4294967295, %s6660_s16   ;;  %s6660_s16 = sphi %s6760_s16, %s9038_s16   ;;  %s6656_s15 = sphi %s6758_s15, %s9037_s15   ;;  %s6652_s30 = sphi %s6756_s30, %s9036_s30   ;;  %s6648_s29 = sphi %s6754_s29, %s9035_s29  }
  0x12   : > { %s375_s18 = sshll.u32 %s6662_s17, 4  ;;  %p5197_p0 = scmp.ge.s32.totalorder %s6660_s16, 1  ;;  %s376_s18 = int_to_ptr.vmem [resolvable:$true] %s375_s18 }
  0x13   : > { %p8961_p1 = scmp.eq.s32.totalorder %s6775_s19, 0  ;;  %p363_p2 = scmp.lt.s32.totalorder %s6660_s16, 3 }
  0x14   : > { %s6663_s21 = smov [#allocation8]   ;;  %s6664_s24 = smov [#allocation11]  }
  0x15   : > { %p6780_p3 = pnand %p5197_p0, %p363_p2  ;;  %s402_s22 = sshll.u32 %s6663_s21, 4  ;;  %s403_s22 = int_to_ptr.vmem [resolvable:$true] %s402_s22 }
  0x16   : > { %s434_s25 = sshll.u32 %s6664_s24, 4  ;;  %s6411_s27 = scalar_lea.vmem %s376_s18, 2048  ;;  %s6793_s25 = int_to_ptr.vmem [resolvable:$true] %s434_s25 }
  0x17   : > { %s8980_s20 = scalar_select %p6780_p3, 1, 0 }
  0x18   : > { %p5704_p5 = pneg %p6780_p3  ;;  %p6412_p8 = scmp.ne.s32.totalorder %s376_s18, %s6411_s27 }
  0x19   : > { %p6419_p11 = scmp.lt.s32.totalorder %s376_s18, %s376_s18  ;;  %p6420_p12 = scmp.lt.s32.totalorder %s6411_s27, %s6411_s27 }
  0x1a   : > { %p6789_p6 = pnand %p5704_p5, %p8961_p1 }
  0x1b   : > { %p6421_p13 = por %p6420_p12, %p6419_p11 }
  0x1c   : > { %p6797_p7 = pneg %p6789_p6 }
  0x1e   : > { %p6414_p9 = pnand %p6412_p8, %p6797_p7 }
  0x20   : > { %p6415_p10 = pneg %p6414_p9 }
  0x22   : > { %p6422_p0 = pnand %p6421_p13, %p6415_p10 }
  0x24   : > { %6425 = shalt.err (!%p6422_p0)
}
  0x25   : > { %s8955_s28 = smov 128   ;;  %s8957_s17 = smov 8  }
  0x26   : > { %s8983_s1 = sld [smem:[#allocation25_spill]]  ;;  %s6437_s14 = scalar_lea.vmem %s403_s22, 96 }
  0x27   : > { %p6438_p2 = scmp.ne.s32.totalorder %s403_s22, %s6437_s14  ;;  %p6445_p9 = scmp.lt.s32.totalorder %s403_s22, %s403_s22 }
  0x28   : > { %p6446_p10 = scmp.lt.s32.totalorder %s6437_s14, %s6437_s14 }
  0x29   : > { %p6440_p5 = pnand %p6438_p2, %p6797_p7 }
  0x2a   : > { %p6447_p11 = por %p6446_p10, %p6445_p9 }
  0x2b   : > { %p6441_p8 = pneg %p6440_p5 }
  0x2c   : > { %5707 = dma.hbm_to_vmem [thread:$0]  (!%p6789_p6), %s8983_s1, 2048, %s376_s18, [#allocation6], %s8955_s28, %s8955_s28, %s8957_s17  }
  0x2d   : > { %p6448_p12 = pnand %p6447_p11, %p6441_p8 }
  0x2f   : > { %6451 = shalt.err (!%p6448_p12)
}
  0x30   : > { %s8984_s3 = sld [smem:[#allocation27_spill]]  ;;  %s6463_s18 = scalar_lea.vmem %s6793_s25, 8192 }
  0x31   : > { %p6464_p13 = scmp.ne.s32.totalorder %s6793_s25, %s6463_s18  ;;  %p6471_p5 = scmp.lt.s32.totalorder %s6793_s25, %s6793_s25 }
  0x32   : > { %p6472_p9 = scmp.lt.s32.totalorder %s6463_s18, %s6463_s18 }
  0x33   : > { %p6466_p0 = pnand %p6464_p13, %p6797_p7 }
  0x34   : > { %p6473_p8 = por %p6472_p9, %p6471_p5 }
  0x35   : > { %p6467_p2 = pneg %p6466_p0 }
  0x36   : > { %5713 = dma.hbm_to_vmem [thread:$0]  (!%p6789_p6), %s8984_s3, 96, %s403_s22, [#allocation9]  }
  0x37   : > { %p6474_p10 = pnand %p6473_p8, %p6467_p2 }
  0x39   : > { %6477 = shalt.err (!%p6474_p10)
}
  0x3a   : > { %s8959_s14 = smov 256   ;;  %s8960_s13 = smov 16  }
  0x3b   : > { %s8985_s8 = sld [smem:[#allocation29_spill]]  ;;  %s6669_s24 = smov [#allocation7]  }
  0x3c   : > { %s388_s27 = sshll.u32 %s6669_s24, 4  ;;  %s389_s27 = int_to_ptr.vmem [resolvable:$true] %s388_s27 }
  0x3d   : > { %s6489_s18 = scalar_lea.vmem %s389_s27, 12288  ;;  %p6497_p0 = scmp.lt.s32.totalorder %s389_s27, %s389_s27 }
  0x3e   : > { %p6490_p11 = scmp.ne.s32.totalorder %s389_s27, %s6489_s18  ;;  %p6498_p2 = scmp.lt.s32.totalorder %s6489_s18, %s6489_s18 }
  0x40   : > { %p6492_p12 = pnand %p6490_p11, %p6797_p7  ;;  %p6499_p5 = por %p6498_p2, %p6497_p0 }
  0x41   : > { %5719 = dma.hbm_to_vmem [thread:$0]  (!%p6789_p6), %s8985_s8, 8192, %s6793_s25, [#allocation12], %s8959_s14, %s8959_s14, %s8960_s13  }
  0x42   : > { %p6493_p13 = pneg %p6492_p12 }
  0x44   : > { %p6500_p9 = pnand %p6499_p5, %p6493_p13 }
  0x46   : > { %6503 = shalt.err (!%p6500_p9)
}
  0x47   : > { %s6670_s28 = smov 384   ;;  %s6671_s17 = smov 24  }
  0x48   : > { %s8986_s2 = sld [smem:[#allocation26_spill]]  ;;  %s6672_s21 = smov [#allocation10]  }
  0x49   : > { %s412_s24 = sshll.u32 %s6672_s21, 4  ;;  %s6673_s14 = smov [#allocation13]   ;;  %s413_s24 = int_to_ptr.vmem [resolvable:$true] %s412_s24 }
  0x4a   : > { %s450_s13 = sshll.u32 %s6673_s14, 4  ;;  %s6515_s1 = scalar_lea.vmem %s413_s24, 4096  ;;  %s451_s13 = int_to_ptr.vmem [resolvable:$true] %s450_s13 }
  0x4b   : > { %p6516_p8 = scmp.ne.s32.totalorder %s413_s24, %s6515_s1  ;;  %p6523_p12 = scmp.lt.s32.totalorder %s413_s24, %s413_s24 }
  0x4c   : > { %p6524_p13 = scmp.lt.s32.totalorder %s6515_s1, %s6515_s1 }
  0x4d   : > { %p6518_p10 = pnand %p6516_p8, %p6797_p7 }
  0x4e   : > { %5710 = dma.hbm_to_vmem [thread:$0]  (!%p6789_p6), %s8986_s2, 12288, %s389_s27, [#allocation6], %s6670_s28, %s6670_s28, %s6671_s17  }
  0x4f   : > { %p6519_p11 = pneg %p6518_p10  ;;  %p6525_p0 = por %p6524_p13, %p6523_p12 }
  0x51   : > { %p6526_p2 = pnand %p6525_p0, %p6519_p11 }
  0x53   : > { %6529 = shalt.err (!%p6526_p2)
}
  0x54   : > { %s8987_s18 = smov 8   ;;  %s8988_s28 = smov 128  }
  0x55   : > { %s8989_s4 = sld [smem:[#allocation28_spill]]  ;;  %s6541_s14 = scalar_lea.vmem %s451_s13, 8192 }
  0x56   : > { %p6542_p5 = scmp.ne.s32.totalorder %s451_s13, %s6541_s14  ;;  %p6549_p10 = scmp.lt.s32.totalorder %s451_s13, %s451_s13 }
  0x57   : > { %p6550_p4 = scmp.lt.s32.totalorder %s6541_s14, %s6541_s14 }
  0x58   : > { %p6544_p9 = pnand %p6542_p5, %p6797_p7 }
  0x59   : > { %p6551_p12 = por %p6550_p4, %p6549_p10 }
  0x5a   : > { %p6545_p8 = pneg %p6544_p9 }
  0x5b   : > { %5716 = dma.hbm_to_vmem [thread:$0]  (!%p6789_p6), %s8989_s4, 4096, %s413_s24, [#allocation9], %s8988_s28, %s8988_s28, %s8987_s18  }
  0x5c   : > { %p6552_p11 = pnand %p6551_p12, %p6545_p8 }
  0x5e   : > { %6555 = shalt.err (!%p6552_p11)
}
  0x5f   : > { %s8990_s10 = sld [smem:[#allocation30_spill]]  ;;  %s5196_s23 = sadd.s32 4294967294, %s6660_s16  }
  0x60   : > { %s6862_s26 = sadd.s32 1, %s6660_s16   ;;  %s40_s21 = sadd.s32 1, %s6656_s15 }
  0x61   : > { %s37_s25 = ssub.s32 %s6660_s16, %s6862_s26  ;;  %p47_p7 = scmp.ne.s32.totalorder %s6656_s15, %s6652_s30 }
  0x62   : > { %p38_p4 = scmp.eq.s32.totalorder %s37_s25, 0  ;;  %p48_p13 = scmp.eq.s32.totalorder %s6660_s16, 0 }
  0x63   : > { %p53_p0 = scmp.ne.s32.totalorder %s6652_s30, %s6648_s29  ;;  %p350_p5 = scmp.eq.s32.totalorder %s6775_s19, 1 }
  0x64   : > { %s6873_s24 = scalar_select %p38_p4, %s6656_s15, %s40_s21  }
  0x65   : > { %5722 = dma.hbm_to_vmem [thread:$0]  (!%p6789_p6), %s8990_s10, 8192, %s451_s13, [#allocation12], %s8988_s28, %s8988_s28, %s8987_s18  }
  0x66   : > { %p6875_p2 = por %p48_p13, %p47_p7  ;;  %p6881_p6 = por %p8961_p1, %p53_p0 }
  0x67   : > { %p356_p9 = scmp.eq.s32.totalorder %s5196_s23, 1  ;;  %p5737_p8 = scmp.lt.s32.totalorder %s6660_s16, 2 }
  0x68   : > { %s8992_s13 = scalar_select %p6881_p6, 1, 0 }
  0x69   : > { %s473_s18 = sand.u32 1, %s6656_s15   ;;  %p6888_p10 = por %p350_p5, %p47_p7 }
  0x6a   : > { %p6892_p12 = por %p356_p9, %p53_p0  ;;  %s5205_s14 = sshll.u32 %s473_s18, 8 }
  0x6b   : > { %s8993_s28 = scalar_select %p6888_p10, 1, 0 }
  0x6c   : > { %s8994_s27 = scalar_select %p6892_p12, 1, 0 }
  0x6d   : > { %s5481_s1 = sshll.u32 %s6660_s16, 12  ;;  %s477_s23 = scalar_lea.vmem [#allocation2], %s5205_s14 }
  0x6e   : > { %s6900_s21 = scalar_lea.hbm %s8939_s0, %s5481_s1  ;;  %s485_s2 = sshll.u32 %s477_s23, 4  ;;  %s6902_s2 = int_to_ptr.vmem [resolvable:$true] %s485_s2 }
  0x6f   : > { %p6906_p11 = pnand %p5737_p8, %p6875_p2  ;;  %s6910_s4 = scalar_lea.sflag [#allocation3], %s473_s18 }
  0x70   : > { %s6556_s8 = scalar_lea.hbm %s6900_s21, 4096  ;;  %s6561_s14 = scalar_lea.hbm %s8939_s0, 8192 }
  0x71   : > { %p6557_p4 = scmp.ne.s32.totalorder %s6900_s21, %s6556_s8  ;;  %p6558_p7 = pneg %p6906_p11 }
  0x72   : > { %p6562_p2 = scmp.lt.s32.totalorder %s6900_s21, %s8939_s0  ;;  %p6563_p5 = scmp.lt.s32.totalorder %s6561_s14, %s6556_s8 }
  0x73   : > { %p6559_p13 = pnand %p6558_p7, %p6557_p4 }
  0x74   : > { %p6564_p9 = por %p6563_p5, %p6562_p2 }
  0x75   : > { %p6560_p0 = pneg %p6559_p13 }
  0x77   : > { %p6565_p8 = pnand %p6564_p9, %p6560_p0 }
  0x79   : > { %6568 = shalt.err (!%p6565_p8)
}
  0x7a   : > { %s6569_s17 = scalar_lea.vmem %s6902_s2, 4096  ;;  %s6674_s18 = smov [#allocation2]  }
  0x7b   : > { %p6570_p1 = scmp.ne.s32.totalorder %s6902_s2, %s6569_s17  ;;  %s6574_s10 = sshll.u32 %s6674_s18, 4  ;;  %s6575_s10 = int_to_ptr.vmem [resolvable:$false] %s6574_s10 }
  0x7c   : > { %s6576_s1 = scalar_lea.vmem %s6575_s10, 8192  ;;  %p6577_p13 = scmp.lt.s32.totalorder %s6902_s2, %s6575_s10 }
  0x7d   : > { %p6572_p12 = pnand %p6570_p1, %p6558_p7  ;;  %p6578_p10 = scmp.lt.s32.totalorder %s6576_s1, %s6569_s17 }
  0x7f   : > { %p6573_p4 = pneg %p6572_p12  ;;  %p6579_p6 = por %p6578_p10, %p6577_p13 }
  0x81   : > { %p6580_p3 = pnand %p6579_p6, %p6573_p4 }
  0x83   : > { %6583 = shalt.err (!%p6580_p3)
}
  0x84   : > { %s8996_s8 = smov 16   ;;  %s8997_s22 = smov 256  }
  0x85   : > { %5726 = dma.hbm_to_vmem [thread:$0]  (!%p6906_p11), %s6900_s21, 4096, %s6902_s2, %s6910_s4, %s8997_s22, %s8997_s22, %s8996_s8  }
  0x86   : > { %p8998_p1 = scmp.ne.s32.totalorder %s8980_s20, 0 }
  0x88   : > { %497 = sbr.rel (%p8998_p1) target bundleno = 2329 (0x919), region = 76 }
  0x8d   : > { %s6937_s14 = sand.u32 1, %s6652_s30   ;;  %p8999_p3 = scmp.ne.s32.totalorder %s8992_s13, 0 }
  0x8e   : > { %s5210_s10 = sshll.u32 %s6937_s14, 8  ;;  %s500_s25 = scalar_lea.sflag [#allocation3], %s6937_s14 }
  0x8f   : > { %s6943_s3 = scalar_lea.vmem [#allocation2], %s5210_s10 }
  0x90   : > { %6627 = dma.done.wait (%p8999_p3), %s500_s25, 4096  }
  0x91   : > { %6629 = vsyncadd (%p8999_p3), %s500_s25, 4294963200  ;;  %p9000_p6 = scmp.eq.s32.totalorder %s6775_s19, 0 }
  0x93   : > { %6631 = dma.done.wait (%p9000_p6), [#allocation6], 14336   ;;  %p9001_p10 = pmov %p9000_p6 }
  0x94   : > { %p9002_p12 = pmov %p9000_p6 }
  0x95   : > { %6633 = vsyncadd (%p9001_p10), [#allocation6], 4294952960 }
  0x96   : > { %6635 = dma.done.wait (%p9002_p12), [#allocation9], 4192   ;;  %p9003_p11 = pmov %p9000_p6 }
  0x97   : > { %p9004_p7 = pmov %p9000_p6 }
  0x98   : > { %6637 = vsyncadd (%p9003_p11), [#allocation9], 4294963104 }
  0x99   : > { %6639 = dma.done.wait (%p9004_p7), [#allocation12], 16384   ;;  %p9005_p0 = pmov %p9000_p6 }
  0x9a   : > { %v5792_v0 = vld [vmem:[#allocation7 + $0x15c] ss:$24 sps:$4 sm:$0xff]   ;;  %v5794_v1 = vld [vmem:[#allocation7 + $0x158] ss:$24 sps:$4 sm:$0xff]   ;;  %v5795_v2 = vld [vmem:[#allocation7 + $0x12c] ss:$24 sps:$4 sm:$0xff]  }
  0x9b   : > { %6641 = vsyncadd (%p9005_p0), [#allocation12], 4294950912  ;;  %1344 = vmatprep.subr.bf16.mxu1 %v5792_v0  ;;  %v5797_v3 = vld [vmem:[#allocation7 + $0x128] ss:$24 sps:$4 sm:$0xff]   ;;  %v5798_v4 = vld [vmem:[#allocation7 + $0xfc] ss:$24 sps:$4 sm:$0xff]  }
  0x9c   : > { %1345 = vmatpush1.bf16.msra.mxu1 %v5794_v1  ;;  %v5800_v5 = vld [vmem:[#allocation7 + $0xf8] ss:$24 sps:$4 sm:$0xff]   ;;  %v5801_v6 = vld [vmem:[#allocation7 + $0xcc] ss:$24 sps:$4 sm:$0xff]   ;;  %v5803_v7 = vld [vmem:[#allocation7 + $0xc8] ss:$24 sps:$4 sm:$0xff]  }
  0x9d   : > { %1346 = vmatprep.subr.bf16.mxu1 %v5795_v2  ;;  %v5804_v8 = vld [vmem:[#allocation7 + $0x9c] ss:$24 sps:$4 sm:$0xff]   ;;  %v5806_v9 = vld [vmem:[#allocation7 + $0x98] ss:$24 sps:$4 sm:$0xff]   ;;  %v5807_v10 = vld [vmem:[#allocation7 + $0x6c] ss:$24 sps:$4 sm:$0xff]  }
  0x9e   : > { %v5809_v11 = vld [vmem:[#allocation7 + $0x68] ss:$24 sps:$4 sm:$0xff]   ;;  %v5810_v12 = vld [vmem:[#allocation7 + $0x3c] ss:$24 sps:$4 sm:$0xff]   ;;  %v5812_v16 = vld [vmem:[#allocation7 + $0x38] ss:$24 sps:$4 sm:$0xff]  }
  0x9f   : > { %v576_v13 = vld [vmem:[%s6943_s3 + $0x8] sm:$0xff]  ;;  %v578_v14 = vld [vmem:[%s6943_s3 + $0x18] sm:$0xff]  ;;  %v575_v53 = vld [vmem:[%s6943_s3] sm:$0xff]  ;;  %s9030_s4 = sld [smem:[#allocation31_spill]]  ;;  %s8701_s20 = scalar_lea.vmem [#allocation14], %s5210_s10 }
  0xa0   : > { %1347 = vmatpush1.bf16.msra.mxu1 %v5797_v3  ;;  %v6963_v15 = vpack.c.bf16 %v578_v14, %v576_v13  ;;  %v5813_v17 = vld [vmem:[#allocation7 + $0xc] ss:$24 sps:$4 sm:$0xff]   ;;  %v5842_v19 = vld [vmem:[#allocation7 + $0x150] ss:$24 sps:$4 sm:$0xff]   ;;  %v5816_v22 = vld [vmem:[#allocation7 + $0x2dc] ss:$24 sps:$4 sm:$0xff]  }
  0xa1   : > { %1348 = vmatprep.subr.bf16.mxu1 %v5798_v4  ;;  %v5840_v18 = vld [vmem:[#allocation7 + $0x154] ss:$24 sps:$4 sm:$0xff]   ;;  %v5815_v20 = vld [vmem:[#allocation7 + $0x8] ss:$24 sps:$4 sm:$0xff]   ;;  %v5843_v21 = vld [vmem:[#allocation7 + $0x124] ss:$24 sps:$4 sm:$0xff]  }
  0xa2   : > { %1376 = vmatprep.mubr.bf16.mxu1 %v6963_v15  ;;  %1263 = vmatprep.mubr.bf16.mxu0 %v6963_v15  ;;  %v5845_v23 = vld [vmem:[#allocation7 + $0x120] ss:$24 sps:$4 sm:$0xff]   ;;  %v5846_v24 = vld [vmem:[#allocation7 + $0xf4] ss:$24 sps:$4 sm:$0xff]   ;;  %v5848_v27 = vld [vmem:[#allocation7 + $0xf0] ss:$24 sps:$4 sm:$0xff]  }
  0xa3   : > { %1231 = vmatprep.subr.bf16.mxu0 %v5840_v18  ;;  %v5818_v25 = vld [vmem:[#allocation7 + $0x2d8] ss:$24 sps:$4 sm:$0xff]   ;;  %v5819_v26 = vld [vmem:[#allocation7 + $0x2ac] ss:$24 sps:$4 sm:$0xff]   ;;  %v5821_v29 = vld [vmem:[#allocation7 + $0x2a8] ss:$24 sps:$4 sm:$0xff]  }
  0xa4   : > { %1349 = vmatpush1.bf16.msra.mxu1 %v5800_v5  ;;  %1232 = vmatpush1.bf16.msra.mxu0 %v5842_v19  ;;  %v5849_v28 = vld [vmem:[#allocation7 + $0xc4] ss:$24 sps:$4 sm:$0xff]   ;;  %v5851_v31 = vld [vmem:[#allocation7 + $0xc0] ss:$24 sps:$4 sm:$0xff]   ;;  %v5852_v32 = vld [vmem:[#allocation7 + $0x94] ss:$24 sps:$4 sm:$0xff]  }
  0xa5   : > { %1350 = vmatprep.subr.bf16.mxu1 %v5801_v6  ;;  %1233 = vmatprep.subr.bf16.mxu0 %v5843_v21  ;;  %v5822_v30 = vld [vmem:[#allocation7 + $0x27c] ss:$24 sps:$4 sm:$0xff]   ;;  %v5824_v33 = vld [vmem:[#allocation7 + $0x278] ss:$24 sps:$4 sm:$0xff]   ;;  %v5825_v34 = vld [vmem:[#allocation7 + $0x24c] ss:$24 sps:$4 sm:$0xff]  }
  0xa6   : > { %v5854_v35 = vld [vmem:[#allocation7 + $0x90] ss:$24 sps:$4 sm:$0xff]   ;;  %v5855_v36 = vld [vmem:[#allocation7 + $0x64] ss:$24 sps:$4 sm:$0xff]   ;;  %v5857_v39 = vld [vmem:[#allocation7 + $0x60] ss:$24 sps:$4 sm:$0xff]  }
  0xa7   : > { %v5827_v37 = vld [vmem:[#allocation7 + $0x248] ss:$24 sps:$4 sm:$0xff]   ;;  %v5828_v38 = vld [vmem:[#allocation7 + $0x21c] ss:$24 sps:$4 sm:$0xff]   ;;  %v5830_v41 = vld [vmem:[#allocation7 + $0x218] ss:$24 sps:$4 sm:$0xff]  }
  0xa8   : > { %1351 = vmatpush1.bf16.msra.mxu1 %v5803_v7  ;;  %1234 = vmatpush1.bf16.msra.mxu0 %v5845_v23  ;;  %v5858_v40 = vld [vmem:[#allocation7 + $0x34] ss:$24 sps:$4 sm:$0xff]   ;;  %v5860_v43 = vld [vmem:[#allocation7 + $0x30] ss:$24 sps:$4 sm:$0xff]   ;;  %v5861_v44 = vld [vmem:[#allocation7 + $0x4] ss:$24 sps:$4 sm:$0xff]  }
  0xa9   : > { %1352 = vmatprep.subr.bf16.mxu1 %v5804_v8  ;;  %1235 = vmatprep.subr.bf16.mxu0 %v5846_v24  ;;  %v5831_v42 = vld [vmem:[#allocation7 + $0x1ec] ss:$24 sps:$4 sm:$0xff]   ;;  %v5833_v45 = vld [vmem:[#allocation7 + $0x1e8] ss:$24 sps:$4 sm:$0xff]   ;;  %v5834_v46 = vld [vmem:[#allocation7 + $0x1bc] ss:$24 sps:$4 sm:$0xff]  }
  0xaa   : > { %v5863_v47 = vld [vmem:[#allocation7] ss:$24 sps:$4 sm:$0xff]   ;;  %v5864_v48 = vld [vmem:[#allocation7 + $0x2d4] ss:$24 sps:$4 sm:$0xff]   ;;  %v5866_v52 = vld [vmem:[#allocation7 + $0x2d0] ss:$24 sps:$4 sm:$0xff]  }
  0xab   : > { %v5836_v49 = vld [vmem:[#allocation7 + $0x1b8] ss:$24 sps:$4 sm:$0xff]   ;;  %v5837_v50 = vld [vmem:[#allocation7 + $0x18c] ss:$24 sps:$4 sm:$0xff]   ;;  %v5839_v51 = vld [vmem:[#allocation7 + $0x188] ss:$24 sps:$4 sm:$0xff]  }
  0xac   : > { %1353 = vmatpush1.bf16.msra.mxu1 %v5806_v9  ;;  %1236 = vmatpush1.bf16.msra.mxu0 %v5848_v27  ;;  %v5867_v54 = vld [vmem:[#allocation7 + $0x2a4] ss:$24 sps:$4 sm:$0xff]   ;;  %v577_v55 = vld [vmem:[%s6943_s3 + $0x10] sm:$0xff]  ;;  %v580_v56 = vld [vmem:[%s6943_s3 + $0x28] sm:$0xff]  ;;  %s5483_s10 = sshll.u32 %s6775_s19, 12  ;;  %s5066_s13 = sshll.u32 %s8701_s20, 4  ;;  %s8890_s13 = int_to_ptr.vmem [resolvable:$true] %s5066_s13 }
  0xad   : > { %1354 = vmatprep.subr.bf16.mxu1 %v5807_v10  ;;  %1237 = vmatprep.subr.bf16.mxu0 %v5849_v28  ;;  %v582_v57 = vld [vmem:[%s6943_s3 + $0x38] sm:$0xff]  ;;  %v6971_v59 = vpack.c.bf16 %v577_v55, %v575_v53  ;;  %v5870_v60 = vld [vmem:[#allocation7 + $0x274] ss:$24 sps:$4 sm:$0xff]   ;;  %v5872_v62 = vld [vmem:[#allocation7 + $0x270] ss:$24 sps:$4 sm:$0xff]   ;;  %s9031_s17 = sld [smem:[#allocation32_spill]] }
  0xae   : > { %v5869_v58 = vld [vmem:[#allocation7 + $0x2a0] ss:$24 sps:$4 sm:$0xff]   ;;  %v6973_v61 = vpack.c.bf16 %v582_v57, %v580_v56  ;;  %v5873_v0 = vld [vmem:[#allocation7 + $0x244] ss:$24 sps:$4 sm:$0xff]   ;;  %v581_v1 = vld [vmem:[%s6943_s3 + $0x30] sm:$0xff]  ;;  %s5052_s19 = scalar_lea.sflag [#allocation4], %s6937_s14 }
  0xaf   : > { %v579_v63 = vld [vmem:[%s6943_s3 + $0x20] sm:$0xff]  ;;  %v584_v2 = vld [vmem:[%s6943_s3 + $0x48] sm:$0xff]  ;;  %v586_v3 = vld [vmem:[%s6943_s3 + $0x58] sm:$0xff]  ;;  %s6584_s1 = scalar_lea.vmem %s8890_s13, 4096  ;;  %p9032_p5 = scmp.ne.s32.totalorder %s8993_s28, 0 }
  0xb0   : > { %1355 = vmatpush1.bf16.msra.mxu1 %v5809_v11  ;;  %1238 = vmatpush1.bf16.msra.mxu0 %v5851_v31  ;;  %v5875_v4 = vld [vmem:[#allocation7 + $0x240] ss:$24 sps:$4 sm:$0xff]   ;;  %v6981_v5 = vpack.c.bf16 %v581_v1, %v579_v63  ;;  %v5876_v6 = vld [vmem:[#allocation7 + $0x214] ss:$24 sps:$4 sm:$0xff]   ;;  %v6983_v7 = vpack.c.bf16 %v586_v3, %v584_v2  ;;  %v5878_v8 = vld [vmem:[#allocation7 + $0x210] ss:$24 sps:$4 sm:$0xff]   ;;  %p6585_p2 = scmp.ne.s32.totalorder %s8890_s13, %s6584_s1 }
  0xb1   : > { %1356 = vmatprep.subr.bf16.mxu1 %v5810_v12  ;;  %1239 = vmatprep.subr.bf16.mxu0 %v5852_v32  ;;  %v5879_v9 = vld [vmem:[#allocation7 + $0x1e4] ss:$24 sps:$4 sm:$0xff]   ;;  %v585_v11 = vld [vmem:[%s6943_s3 + $0x50] sm:$0xff]  ;;  %v588_v12 = vld [vmem:[%s6943_s3 + $0x68] sm:$0xff]  ;;  %s6676_s8 = smov [#allocation14]  }
  0xb2   : > { %v583_v10 = vld [vmem:[%s6943_s3 + $0x40] sm:$0xff]  ;;  %v590_v13 = vld [vmem:[%s6943_s3 + $0x78] sm:$0xff]  ;;  %v5884_v19 = vld [vmem:[#allocation7 + $0x1b0] ss:$24 sps:$4 sm:$0xff]   ;;  %p6586_p9 = pnand %p6585_p2, %p9032_p5  ;;  %s6588_s22 = sshll.u32 %s6676_s8, 4  ;;  %s6589_s22 = int_to_ptr.vmem [resolvable:$false] %s6588_s22 }
  0xb3   : > { %v5881_v14 = vld [vmem:[#allocation7 + $0x1e0] ss:$24 sps:$4 sm:$0xff]   ;;  %v6993_v18 = vpack.c.bf16 %v590_v13, %v588_v12  ;;  %v592_v23 = vld [vmem:[%s6943_s3 + $0x88] sm:$0xff]  ;;  %v593_v32 = vld [vmem:[%s6943_s3 + $0x90] sm:$0xff]  ;;  %s8888_s18 = scalar_lea.hbm %s9031_s17, %s5483_s10  ;;  %s6590_s25 = scalar_lea.vmem %s6589_s22, 8192 }
  0xb4   : > { %1357 = vmatpush1.bf16.msra.mxu1 %v5812_v16  ;;  %1240 = vmatpush1.bf16.msra.mxu0 %v5854_v35  ;;  %v5882_v16 = vld [vmem:[#allocation7 + $0x1b4] ss:$24 sps:$4 sm:$0xff]   ;;  %v587_v21 = vld [vmem:[%s6943_s3 + $0x60] sm:$0xff]  ;;  %v594_v24 = vld [vmem:[%s6943_s3 + $0x98] sm:$0xff]  ;;  %p6587_p8 = pneg %p6586_p9  ;;  %p6591_p4 = scmp.lt.s32.totalorder %s8890_s13, %s6589_s22 }
  0xb5   : > { %1358 = vmatprep.subr.bf16.mxu1 %v5813_v17  ;;  %1241 = vmatprep.subr.bf16.mxu0 %v5855_v36  ;;  %v6991_v17 = vpack.c.bf16 %v585_v11, %v583_v10  ;;  %v7003_v28 = vpack.c.bf16 %v594_v24, %v592_v23  ;;  %v591_v31 = vld [vmem:[%s6943_s3 + $0x80] sm:$0xff]  ;;  %v5891_v35 = vld [vmem:[#allocation7 + $0x130] ss:$24 sps:$4 sm:$0xff]   ;;  %v5923_v11 = vld [vmem:[#allocation7 + $0x254] ss:$24 sps:$4 sm:$0xff]   ;;  %p6592_p13 = scmp.lt.s32.totalorder %s6590_s25, %s6584_s1 }
  0xb6   : > { %v5896_v36 = vld [vmem:[#allocation7 + $0x104] ss:$24 sps:$4 sm:$0xff]   ;;  %v604_v53 = vld [vmem:[%s6943_s3 + $0xe8] sm:$0xff]  ;;  %v5918_v10 = vld [vmem:[#allocation7 + $0x280] ss:$24 sps:$4 sm:$0xff]  }
  0xb7   : > { %v5903_v55 = vld [vmem:[#allocation7 + $0x70] ss:$24 sps:$4 sm:$0xff]   ;;  %v5908_v56 = vld [vmem:[#allocation7 + $0x44] ss:$24 sps:$4 sm:$0xff]   ;;  %p6593_p1 = por %p6592_p13, %p6591_p4 }
  0xb8   : > { %1359 = vmatpush1.bf16.msra.mxu1 %v5815_v20  ;;  %1242 = vmatpush1.bf16.msra.mxu0 %v5857_v39  ;;  %v5885_v20 = vld [vmem:[#allocation7 + $0x184] ss:$24 sps:$4 sm:$0xff]   ;;  %v5894_v39 = vld [vmem:[#allocation7 + $0x100] ss:$24 sps:$4 sm:$0xff]   ;;  %v5909_v1 = vld [vmem:[#allocation7 + $0x10] ss:$24 sps:$4 sm:$0xff]  }
  0xb9   : > { %1360 = vmatprep.subr.bf16.mxu1 %v5816_v22  ;;  %1243 = vmatprep.subr.bf16.mxu0 %v5858_v40  ;;  %v589_v22 = vld [vmem:[%s6943_s3 + $0x70] sm:$0xff]  ;;  %v603_v63 = vld [vmem:[%s6943_s3 + $0xe0] sm:$0xff]  ;;  %p6594_p3 = pnand %p6593_p1, %p6587_p8 }
  0xba   : > { %v7001_v27 = vpack.c.bf16 %v589_v22, %v587_v21  ;;  %v5899_v40 = vld [vmem:[#allocation7 + $0xd4] ss:$24 sps:$4 sm:$0xff]   ;;  %v5914_v2 = vld [vmem:[#allocation7 + $0x2e4] ss:$24 sps:$4 sm:$0xff]   ;;  %v5921_v12 = vld [vmem:[#allocation7 + $0x250] ss:$24 sps:$4 sm:$0xff]  }
  0xbb   : > { %v5926_v13 = vld [vmem:[#allocation7 + $0x224] ss:$24 sps:$4 sm:$0xff]   ;;  %v5930_v21 = vld [vmem:[#allocation7 + $0x1c0] ss:$24 sps:$4 sm:$0xff]   ;;  %v5935_v22 = vld [vmem:[#allocation7 + $0x194] ss:$24 sps:$4 sm:$0xff]  }
  0xbc   : > { %1361 = vmatpush2.bf16.msra.mxu1 %v5818_v25  ;;  %1244 = vmatpush1.bf16.msra.mxu0 %v5860_v43  ;;  %v5887_v25 = vld [vmem:[#allocation7 + $0x180] ss:$24 sps:$4 sm:$0xff]   ;;  %v600_v43 = vld [vmem:[%s6943_s3 + $0xc8] sm:$0xff] }
  0xbd   : > { %1362 = vmatprep.subr.bf16.mxu1 %v5819_v26  ;;  %1245 = vmatprep.subr.bf16.mxu0 %v5861_v44  ;;  %v5890_v26 = vld [vmem:[#allocation7 + $0x164] ss:$24 sps:$4 sm:$0xff]   ;;  %v5933_v23 = vld [vmem:[#allocation7 + $0x190] ss:$24 sps:$4 sm:$0xff]  }
  0xbe   : > { %v602_v44 = vld [vmem:[%s6943_s3 + $0xd8] sm:$0xff] }
  0xc0   : > { %1363 = vmatpush2.bf16.msra.mxu1 %v5821_v29  ;;  %1246 = vmatpush1.bf16.msra.mxu0 %v5863_v47  ;;  %v5888_v29 = vld [vmem:[#allocation7 + $0x160] ss:$24 sps:$4 sm:$0xff]  }
  0xc1   : > { %1364 = vmatprep.subr.bf16.mxu1 %v5822_v30  ;;  %1247 = vmatprep.subr.bf16.mxu0 %v5864_v48  ;;  %v5893_v30 = vld [vmem:[#allocation7 + $0x134] ss:$24 sps:$4 sm:$0xff]   ;;  %v7027_v48 = vpack.c.bf16 %v602_v44, %v600_v43 }
  0xc4   : > { %1365 = vmatpush2.bf16.msra.mxu1 %v5824_v33  ;;  %1248 = vmatpush2.bf16.msra.mxu0 %v5866_v52  ;;  %v596_v33 = vld [vmem:[%s6943_s3 + $0xa8] sm:$0xff]  ;;  %v601_v52 = vld [vmem:[%s6943_s3 + $0xd0] sm:$0xff] }
  0xc5   : > { %1366 = vmatprep.subr.bf16.mxu1 %v5825_v34  ;;  %1249 = vmatprep.subr.bf16.mxu0 %v5867_v54  ;;  %v598_v34 = vld [vmem:[%s6943_s3 + $0xb8] sm:$0xff] }
  0xc6   : > { %v606_v54 = vld [vmem:[%s6943_s3 + $0xf8] sm:$0xff] }
  0xc8   : > { %1367 = vmatpush2.bf16.msra.mxu1 %v5827_v37  ;;  %1250 = vmatpush2.bf16.msra.mxu0 %v5869_v58  ;;  %v7013_v37 = vpack.c.bf16 %v593_v32, %v591_v31  ;;  %v7039_v58 = vpack.c.bf16 %v606_v54, %v604_v53 }
  0xc9   : > { %1368 = vmatprep.subr.bf16.mxu1 %v5828_v38  ;;  %1251 = vmatprep.subr.bf16.mxu0 %v5870_v60  ;;  %v7015_v38 = vpack.c.bf16 %v598_v34, %v596_v33  ;;  %v5906_v60 = vld [vmem:[#allocation7 + $0x40] ss:$24 sps:$4 sm:$0xff]  }
  0xcc   : > { %1369 = vmatpush2.bf16.msra.mxu1 %v5830_v41  ;;  %1252 = vmatpush2.bf16.msra.mxu0 %v5872_v62  ;;  %v595_v41 = vld [vmem:[%s6943_s3 + $0xa0] sm:$0xff]  ;;  %v5911_v62 = vld [vmem:[#allocation7 + $0x14] ss:$24 sps:$4 sm:$0xff]  }
  0xcd   : > { %1370 = vmatprep.subr.bf16.mxu1 %v5831_v42  ;;  %1253 = vmatprep.subr.bf16.mxu0 %v5873_v0  ;;  %v597_v42 = vld [vmem:[%s6943_s3 + $0xb0] sm:$0xff] }
  0xce   : > { %v7025_v47 = vpack.c.bf16 %v597_v42, %v595_v41  ;;  %v605_v0 = vld [vmem:[%s6943_s3 + $0xf0] sm:$0xff] }
  0xcf   : > { %v621_v3 = vpack.c.bf16 %v605_v0, %v603_v63 }
  0xd0   : > { %1371 = vmatpush2.bf16.msra.mxu1 %v5833_v45  ;;  %1254 = vmatpush2.bf16.msra.mxu0 %v5875_v4  ;;  %v5897_v45 = vld [vmem:[#allocation7 + $0xd0] ss:$24 sps:$4 sm:$0xff]   ;;  %v5912_v4 = vld [vmem:[#allocation7 + $0x2e0] ss:$24 sps:$4 sm:$0xff]  }
  0xd1   : > { %1372 = vmatprep.subr.bf16.mxu1 %v5834_v46  ;;  %1255 = vmatprep.subr.bf16.mxu0 %v5876_v6  ;;  %v5902_v46 = vld [vmem:[#allocation7 + $0xa4] ss:$24 sps:$4 sm:$0xff]   ;;  %v5917_v6 = vld [vmem:[#allocation7 + $0x2b4] ss:$24 sps:$4 sm:$0xff]  }
  0xd4   : > { %1373 = vmatpush2.bf16.msra.mxu1 %v5836_v49  ;;  %1256 = vmatpush2.bf16.msra.mxu0 %v5878_v8  ;;  %v5900_v49 = vld [vmem:[#allocation7 + $0xa0] ss:$24 sps:$4 sm:$0xff]   ;;  %v5915_v8 = vld [vmem:[#allocation7 + $0x2b0] ss:$24 sps:$4 sm:$0xff]  }
  0xd5   : > { %1374 = vmatprep.subr.bf16.mxu1 %v5837_v50  ;;  %1257 = vmatprep.subr.bf16.mxu0 %v5879_v9  ;;  %v5905_v50 = vld [vmem:[#allocation7 + $0x74] ss:$24 sps:$4 sm:$0xff]   ;;  %v5920_v9 = vld [vmem:[#allocation7 + $0x284] ss:$24 sps:$4 sm:$0xff]  }
  0xd8   : > { %1375 = vmatpush2.bf16.msra.mxu1 %v5839_v51  ;;  %1258 = vmatpush2.bf16.msra.mxu0 %v5881_v14  ;;  %v599_v51 = vld [vmem:[%s6943_s3 + $0xc0] sm:$0xff] }
  0xd9   : > { %1259 = vmatprep.subr.bf16.mxu0 %v5882_v16  ;;  %v7037_v57 = vpack.c.bf16 %v601_v52, %v599_v51  ;;  %v5924_v14 = vld [vmem:[#allocation7 + $0x220] ss:$24 sps:$4 sm:$0xff]   ;;  %v5929_v16 = vld [vmem:[#allocation7 + $0x1f4] ss:$24 sps:$4 sm:$0xff]  }
  0xdb   : > { %1377 = vmatmul.mubr.bf16.vlgmr.msra.gmra.mxu1 %v6971_v59 }
  0xdc   : > { %1386 = vmatprep.mubr.bf16.mxu1 %v6973_v61  ;;  %1260 = vmatpush2.bf16.msra.mxu0 %v5884_v19  ;;  %v5927_v19 = vld [vmem:[#allocation7 + $0x1f0] ss:$24 sps:$4 sm:$0xff]  }
  0xdd   : > { %1261 = vmatprep.subr.bf16.mxu0 %v5885_v20  ;;  %v5932_v20 = vld [vmem:[#allocation7 + $0x1c4] ss:$24 sps:$4 sm:$0xff]  }
  0xe0   : > { %1262 = vmatpush2.bf16.msra.mxu0 %v5887_v25 }
  0xe1   : > { %1457 = vmatprep.subr.bf16.mxu0 %v5890_v26 }
  0xe3   : > { %1387 = vmatmul.mubr.bf16.gmra.mxu1 %v6981_v5  ;;  %1264 = vmatmul.mubr.bf16.vlgmr.msra.gmra.mxu0 %v6971_v59 }
  0xe4   : > { %1396 = vmatprep.mubr.bf16.mxu1 %v6983_v7  ;;  %1273 = vmatprep.mubr.bf16.mxu0 %v6973_v61 }
  0xe5   : > { %1458 = vmatpush1.bf16.msra.mxu0 %v5888_v29 }
  0xe6   : > { %1459 = vmatprep.subr.bf16.mxu0 %v5893_v30 }
  0xe9   : > { %1460 = vmatpush1.bf16.msra.mxu0 %v5891_v35 }
  0xea   : > { %1461 = vmatprep.subr.bf16.mxu0 %v5896_v36 }
  0xeb   : > { %1397 = vmatmul.mubr.bf16.gmra.mxu1 %v6991_v17  ;;  %1274 = vmatmul.mubr.bf16.gmra.mxu0 %v6981_v5 }
  0xec   : > { %1406 = vmatprep.mubr.bf16.mxu1 %v6993_v18  ;;  %1283 = vmatprep.mubr.bf16.mxu0 %v6983_v7 }
  0xed   : > { %1462 = vmatpush1.bf16.msra.mxu0 %v5894_v39 }
  0xee   : > { %1463 = vmatprep.subr.bf16.mxu0 %v5899_v40 }
  0xf1   : > { %1464 = vmatpush1.bf16.msra.mxu0 %v5897_v45 }
  0xf2   : > { %1465 = vmatprep.subr.bf16.mxu0 %v5902_v46 }
  0xf3   : > { %1407 = vmatmul.mubr.bf16.gmra.mxu1 %v7001_v27  ;;  %1284 = vmatmul.mubr.bf16.gmra.mxu0 %v6991_v17 }
  0xf4   : > { %1416 = vmatprep.mubr.bf16.mxu1 %v7003_v28  ;;  %1293 = vmatprep.mubr.bf16.mxu0 %v6993_v18 }
  0xf5   : > { %1466 = vmatpush1.bf16.msra.mxu0 %v5900_v49 }
  0xf6   : > { %1467 = vmatprep.subr.bf16.mxu0 %v5905_v50 }
  0xf9   : > { %1468 = vmatpush1.bf16.msra.mxu0 %v5903_v55 }
  0xfa   : > { %1469 = vmatprep.subr.bf16.mxu0 %v5908_v56 }
  0xfb   : > { %1417 = vmatmul.mubr.bf16.gmra.mxu1 %v7013_v37  ;;  %1294 = vmatmul.mubr.bf16.gmra.mxu0 %v7001_v27 }
  0xfc   : > { %1426 = vmatprep.mubr.bf16.mxu1 %v7015_v38  ;;  %1303 = vmatprep.mubr.bf16.mxu0 %v7003_v28 }
  0xfd   : > { %1470 = vmatpush1.bf16.msra.mxu0 %v5906_v60 }
  0xfe   : > { %1471 = vmatprep.subr.bf16.mxu0 %v5911_v62 }
 0x101   : > { %1472 = vmatpush1.bf16.msra.mxu0 %v5909_v1 }
 0x102   : > { %1473 = vmatprep.subr.bf16.mxu0 %v5914_v2 }
 0x103   : > { %1427 = vmatmul.mubr.bf16.gmra.mxu1 %v7025_v47  ;;  %1304 = vmatmul.mubr.bf16.gmra.mxu0 %v7013_v37 }
 0x104   : > { %1436 = vmatprep.mubr.bf16.mxu1 %v7027_v48  ;;  %1313 = vmatprep.mubr.bf16.mxu0 %v7015_v38 }
 0x105   : > { %1474 = vmatpush2.bf16.msra.mxu0 %v5912_v4 }
 0x106   : > { %1475 = vmatprep.subr.bf16.mxu0 %v5917_v6 }
 0x109   : > { %1476 = vmatpush2.bf16.msra.mxu0 %v5915_v8 }
 0x10a   : > { %1477 = vmatprep.subr.bf16.mxu0 %v5920_v9 }
 0x10b   : > { %1437 = vmatmul.mubr.bf16.gmra.mxu1 %v7037_v57  ;;  %1314 = vmatmul.mubr.bf16.gmra.mxu0 %v7025_v47 }
 0x10c   : > { %1446 = vmatprep.mubr.bf16.mxu1 %v7039_v58  ;;  %1323 = vmatprep.mubr.bf16.mxu0 %v7027_v48 }
 0x10d   : > { %1478 = vmatpush2.bf16.msra.mxu0 %v5918_v10 }
 0x10e   : > { %1479 = vmatprep.subr.bf16.mxu0 %v5923_v11 }
 0x111   : > { %1480 = vmatpush2.bf16.msra.mxu0 %v5921_v12 }
 0x112   : > { %1481 = vmatprep.subr.bf16.mxu0 %v5926_v13 }
 0x113   : > { %1447 = vmatmul.mubr.bf16.gmra.mxu1 %v621_v3  ;;  %1324 = vmatmul.mubr.bf16.gmra.mxu0 %v7037_v57 }
 0x114   : > { %1333 = vmatprep.mubr.bf16.mxu0 %v7039_v58 }
 0x115   : > { %1482 = vmatpush2.bf16.msra.mxu0 %v5924_v14 }
 0x116   : > { %1483 = vmatprep.subr.bf16.mxu0 %v5929_v16 }
 0x119   : > { %1484 = vmatpush2.bf16.msra.mxu0 %v5927_v19 }
 0x11a   : > { %1485 = vmatprep.subr.bf16.mxu0 %v5932_v20 }
 0x11b   : > { %1334 = vmatmul.mubr.bf16.gmra.mxu0 %v621_v3 }
 0x11c   : > { %1489 = vmatprep.mubr.bf16.mxu0 %v6963_v15  ;;  %v721_v15 = vlaneseq }
 0x11d   : > { %1486 = vmatpush2.bf16.msra.mxu0 %v5930_v21 }
 0x11e   : > { %1487 = vmatprep.subr.bf16.mxu0 %v5935_v22 }
 0x121   : > { %1488 = vmatpush2.bf16.msra.mxu0 %v5933_v23 }
 0x124   : > { %1490 = vmatmul.mubr.bf16.vlgmr.msra.gmra.mxu0 %v6971_v59  ;;  %v7068_v59 = vshrl.u32 %v721_v15, 7 }
 0x125   : > { %1499 = vmatprep.mubr.bf16.mxu0 %v6973_v61 }
 0x126   : > { %v8965_v61 = vsub.s32 2, %v7068_v59  ;;  %v7099_v41 = vsub.s32 0, %v7068_v59  ;;  %v7106_v44 = vsub.s32 1, %v7068_v59 }
 0x12c   : > { %1500 = vmatmul.mubr.bf16.gmra.mxu0 %v6981_v5  ;;  %v7071_v5 = vld [vmem:[#allocation8] sm:$0x3f] }
 0x12d   : > { %1509 = vmatprep.mubr.bf16.mxu0 %v6983_v7  ;;  %v7112_v46 = vrot.slane %v7071_v5, %v7099_v41  ;;  %v7118_v49 = vrot.slane %v7071_v5, %v7106_v44 }
 0x134   : > { %1510 = vmatmul.mubr.bf16.gmra.mxu0 %v6991_v17  ;;  %v7076_v17 = vrot.slane %v7071_v5, %v8965_v61 }
 0x135   : > { %1519 = vmatprep.mubr.bf16.mxu0 %v6993_v18 }
 0x13c   : > { %1520 = vmatmul.mubr.bf16.gmra.mxu0 %v7001_v27 }
 0x13d   : > { %1529 = vmatprep.mubr.bf16.mxu0 %v7003_v28 }
 0x144   : > { %1530 = vmatmul.mubr.bf16.gmra.mxu0 %v7013_v37 }
 0x145   : > { %1539 = vmatprep.mubr.bf16.mxu0 %v7015_v38 }
 0x14c   : > { %1540 = vmatmul.mubr.bf16.gmra.mxu0 %v7025_v47 }
 0x14d   : > { %1549 = vmatprep.mubr.bf16.mxu0 %v7027_v48 }
 0x154   : > { %1550 = vmatmul.mubr.bf16.gmra.mxu0 %v7037_v57 }
 0x155   : > { %1559 = vmatprep.mubr.bf16.mxu0 %v7039_v58 }
 0x15c   : > { %1560 = vmatmul.mubr.bf16.gmra.mxu0 %v621_v3 }
 0x19b   : > { %v1378_v7 = vpop.f32.mrf.mxu1 }
 0x19c   : > { %v1379_v25 = vadd.f32 %v1378_v7, %v7076_v17 }
 0x19d   : > { %v7078_v18 = vpop.f32.mrf.mxu1 }
 0x19f   : > { %v1382_v24 = vpop.f32.mrf.mxu1 }
 0x1a0   : > { %v1383_v26 = vadd.f32 %v1382_v24, %v7076_v17 }
 0x1a1   : > { %v7082_v27 = vpop.f32.mrf.mxu1 }
 0x1a2   : > { %v7084_v28 = vpack.c.bf16 %v1383_v26, %v1379_v25 }
 0x1a3   : > { %v1388_v29 = vpop.f32.mrf.mxu1  ;;  %v1265_v48 = vpop.f32.mrf.mxu0 }
 0x1a4   : > { %v1389_v32 = vadd.f32 %v1388_v29, %v7076_v17  ;;  %v1266_v52 = vadd.f32 %v1265_v48, %v7112_v46 }
 0x1a5   : > { %v7086_v30 = vpop.f32.mrf.mxu1  ;;  %v1267_v51 = vpop.f32.mrf.mxu0 }
 0x1a6   : > { %v1268_v55 = vadd.f32 %v1267_v51, %v7118_v49 }
 0x1a7   : > { %v1392_v31 = vpop.f32.mrf.mxu1  ;;  %v1269_v54 = vpop.f32.mrf.mxu0 }
 0x1a8   : > { %v1393_v33 = vadd.f32 %v1392_v31, %v7076_v17  ;;  %v1270_v56 = vadd.f32 %v1269_v54, %v7112_v46 }
 0x1a9   : > { %v7090_v34 = vpop.f32.mrf.mxu1  ;;  %v1271_v58 = vpop.f32.mrf.mxu0 }
 0x1aa   : > { %v7092_v35 = vpack.c.bf16 %v1393_v33, %v1389_v32  ;;  %v1586_v60 = vpack.c.bf16 %v1270_v56, %v1266_v52  ;;  %v1272_v62 = vadd.f32 %v1271_v58, %v7118_v49  ;;  %v8966_v56 = vsub.s32 3, %v7068_v59 }
 0x1ab   : > { %v1398_v36 = vpop.f32.mrf.mxu1  ;;  %v1275_v0 = vpop.f32.mrf.mxu0 }
 0x1ac   : > { %v1399_v39 = vadd.f32 %v1398_v36, %v7076_v17  ;;  %v1980_v1 = vpack.c.bf16 %v1272_v62, %v1268_v55  ;;  %v7133_v2 = vadd.f32 %v1275_v0, %v7112_v46  ;;  %5564 = vmatprep.mubr.bf16.mxu1 %v1586_v60 }
 0x1ad   : > { %v7094_v37 = vpop.f32.mrf.mxu1  ;;  %v1277_v4 = vpop.f32.mrf.mxu0 }
 0x1ae   : > { %v7138_v6 = vadd.f32 %v1277_v4, %v7118_v49  ;;  %5628 = vmatprep.mubr.bf16.mxu0 %v1980_v1 }
 0x1af   : > { %v1402_v38 = vpop.f32.mrf.mxu1  ;;  %v1279_v9 = vpop.f32.mrf.mxu0 }
 0x1b0   : > { %v1403_v40 = vadd.f32 %v1402_v38, %v7076_v17  ;;  %v7143_v10 = vadd.f32 %v1279_v9, %v7112_v46 }
 0x1b1   : > { %v7101_v42 = vpop.f32.mrf.mxu1  ;;  %v1281_v12 = vpop.f32.mrf.mxu0 }
 0x1b2   : > { %v7103_v43 = vpack.c.bf16 %v1403_v40, %v1399_v39  ;;  %v1587_v13 = vpack.c.bf16 %v7143_v10, %v7133_v2  ;;  %v7150_v14 = vadd.f32 %v1281_v12, %v7118_v49 }
 0x1b3   : > { %v7108_v45 = vpop.f32.mrf.mxu1  ;;  %v1285_v19 = vpop.f32.mrf.mxu0 }
 0x1b4   : > { %v7157_v21 = vadd.f32 %v1285_v19, %v7112_v46  ;;  %v7195_v19 = vrot.slane %v7071_v5, %v8966_v56 }
 0x1b5   : > { %v7114_v47 = vpop.f32.mrf.mxu1  ;;  %v1287_v23 = vpop.f32.mrf.mxu0 }
 0x1b6   : > { %v7160_v15 = vadd.f32 %v1287_v23, %v7118_v49 }
 0x1b7   : > { %v7120_v50 = vpop.f32.mrf.mxu1  ;;  %v1289_v24 = vpop.f32.mrf.mxu0 }
 0x1b8   : > { %v7163_v25 = vadd.f32 %v1289_v24, %v7112_v46 }
 0x1b9   : > { %v7123_v53 = vpop.f32.mrf.mxu1  ;;  %v1291_v29 = vpop.f32.mrf.mxu0 }
 0x1ba   : > { %v1588_v31 = vpack.c.bf16 %v7163_v25, %v7157_v21  ;;  %v7168_v32 = vadd.f32 %v1291_v29, %v7118_v49 }
 0x1bb   : > { %v7127_v57 = vpop.f32.mrf.mxu1  ;;  %v1295_v36 = vpop.f32.mrf.mxu0 }
 0x1bc   : > { %v7173_v39 = vadd.f32 %v1295_v36, %v7112_v46 }
 0x1bd   : > { %v7130_v63 = vpop.f32.mrf.mxu1  ;;  %v1297_v48 = vpop.f32.mrf.mxu0 }
 0x1be   : > { %v7176_v51 = vadd.f32 %v1297_v48, %v7118_v49 }
 0x1bf   : > { %v7135_v3 = vpop.f32.mrf.mxu1  ;;  %v1299_v54 = vpop.f32.mrf.mxu0 }
 0x1c0   : > { %v7179_v55 = vadd.f32 %v1299_v54, %v7112_v46 }
 0x1c1   : > { %v7140_v8 = vpop.f32.mrf.mxu1  ;;  %v1301_v60 = vpop.f32.mrf.mxu0 }
 0x1c2   : > { %v7185_v0 = vadd.f32 %v1301_v60, %v7118_v49  ;;  %v9008_v21 = vpack.c.bf16 %v7179_v55, %v7173_v39 }
 0x1c3   : > { %v7145_v11 = vpop.f32.mrf.mxu1  ;;  %v1305_v4 = vpop.f32.mrf.mxu0 }
 0x1c4   : > { %v7190_v12 = vadd.f32 %v1305_v4, %v7112_v46 }
 0x1c5   : > { %v7152_v16 = vpop.f32.mrf.mxu1  ;;  %v1307_v24 = vpop.f32.mrf.mxu0 }
 0x1c6   : > { %v7201_v54 = vadd.f32 %v1307_v24, %v7118_v49 }
 0x1c7   : > { %v1432_v22 = vpop.f32.mrf.mxu1  ;;  %v1309_v9 = vpop.f32.mrf.mxu0 }
 0x1c9   : > { %v1434_v7 = vpop.f32.mrf.mxu1 }
 0x1cb   : > { %v1438_v26 = vpop.f32.mrf.mxu1 }
 0x1cc   : > { %v1439_v60 = vadd.f32 %v1438_v26, %v7076_v17 }
 0x1cd   : > { %v1440_v33 = vpop.f32.mrf.mxu1 }
 0x1cf   : > { %v1442_v40 = vpop.f32.mrf.mxu1 }
 0x1d0   : > { %v1443_v29 = vadd.f32 %v1442_v40, %v7076_v17  ;;  %v7208_v40 = vadd.f32 %v1309_v9, %v7112_v46 }
 0x1d1   : > { %v1444_v52 = vpop.f32.mrf.mxu1 }
 0x1d2   : > { %v1445_v4 = vadd.f32 %v1444_v52, %v7195_v19  ;;  %v1600_v20 = vpack.c.bf16 %v1443_v29, %v1439_v60  ;;  %v1590_v26 = vpack.c.bf16 %v7208_v40, %v7190_v12 }
 0x1d3   : > { %v1448_v58 = vpop.f32.mrf.mxu1 }
 0x1d4   : > { %v1449_v36 = vadd.f32 %v1448_v58, %v7076_v17  ;;  %v1441_v58 = vadd.f32 %v1440_v33, %v7195_v19 }
 0x1d5   : > { %v1450_v1 = vpop.f32.mrf.mxu1 }
 0x1d6   : > { %v1451_v56 = vadd.f32 %v1450_v1, %v7195_v19 }
 0x1d7   : > { %v1452_v23 = vpop.f32.mrf.mxu1 }
 0x1d8   : > { %v1453_v48 = vadd.f32 %v1452_v23, %v7076_v17  ;;  %v1311_v23 = vpop.f32.mrf.mxu0 }
 0x1d9   : > { %v1454_v61 = vpop.f32.mrf.mxu1  ;;  %v7214_v52 = vadd.f32 %v1311_v23, %v7118_v49 }
 0x1da   : > { %v1601_v62 = vpack.c.bf16 %v1453_v48, %v1449_v36  ;;  %v1455_v38 = vadd.f32 %v1454_v61, %v7195_v19  ;;  %v1315_v1 = vpop.f32.mrf.mxu0  ;;  %v1994_v36 = vpack.c.bf16 %v1445_v4, %v1441_v58  ;;  %v1435_v48 = vadd.f32 %v1434_v7, %v7195_v19 }
 0x1db   : > { %v1984_v61 = vpack.c.bf16 %v7214_v52, %v7201_v54  ;;  %v7219_v33 = vadd.f32 %v1315_v1, %v7112_v46  ;;  %v1431_v58 = vadd.f32 %v7152_v16, %v7195_v19  ;;  %v1423_v16 = vadd.f32 %v7135_v3, %v7076_v17 }
 0x1dc   : > { %v1995_v24 = vpack.c.bf16 %v1455_v38, %v1451_v56  ;;  %5548 = vmatprep.subr.bf16.mxu1 %v1601_v62  ;;  %v1317_v38 = vpop.f32.mrf.mxu0  ;;  %v1433_v56 = vadd.f32 %v1432_v22, %v7076_v17 }
 0x1dd   : > { %5549 = vmatpush3.bf16.xpose.msra.mxu1 %v1601_v62  ;;  %v7223_v9 = vadd.f32 %v1317_v38, %v7118_v49  ;;  %v1429_v62 = vadd.f32 %v7145_v11, %v7076_v17  ;;  %v1993_v38 = vpack.c.bf16 %v1435_v48, %v1431_v58  ;;  %v1425_v48 = vadd.f32 %v7140_v8, %v7195_v19 }
 0x1de   : > { %5550 = vmatprep.subr.bf16.mxu1 %v1600_v20  ;;  %5612 = vmatprep.subr.bf16.mxu0 %v1995_v24  ;;  %v1319_v29 = vpop.f32.mrf.mxu0 }
 0x1df   : > { %5613 = vmatpush3.bf16.xpose.msra.mxu0 %v1995_v24  ;;  %v7229_v60 = vadd.f32 %v1319_v29, %v7112_v46  ;;  %v1599_v23 = vpack.c.bf16 %v1433_v56, %v1429_v62 }
 0x1e0   : > { %5614 = vmatprep.subr.bf16.mxu0 %v1994_v36  ;;  %v1321_v4 = vpop.f32.mrf.mxu0 }
 0x1e1   : > { %v7236_v24 = vadd.f32 %v1321_v4, %v7118_v49  ;;  %v9010_v12 = vpack.c.bf16 %v7229_v60, %v7219_v33 }
 0x1e2   : > { %v1325_v1 = vpop.f32.mrf.mxu0 }
 0x1e3   : > { %v7241_v7 = vadd.f32 %v1325_v1, %v7112_v46  ;;  %v9012_v54 = vpack.c.bf16 %v7236_v24, %v7223_v9 }
 0x1e4   : > { %v1327_v29 = vpop.f32.mrf.mxu0 }
 0x1e5   : > { %5551 = vmatpush3.bf16.xpose.msra.mxu1 %v1600_v20  ;;  %v7246_v56 = vadd.f32 %v1327_v29, %v7118_v49  ;;  %v1419_v20 = vadd.f32 %v7127_v57, %v7076_v17 }
 0x1e6   : > { %5552 = vmatprep.subr.bf16.mxu1 %v1599_v23  ;;  %v1329_v62 = vpop.f32.mrf.mxu0 }
 0x1e7   : > { %5615 = vmatpush3.bf16.xpose.msra.mxu0 %v1994_v36  ;;  %v7253_v4 = vadd.f32 %v1329_v62, %v7112_v46  ;;  %v1421_v36 = vadd.f32 %v7130_v63, %v7195_v19  ;;  %v1598_v1 = vpack.c.bf16 %v1423_v16, %v1419_v20  ;;  %v1413_v63 = vadd.f32 %v7120_v50, %v7076_v17 }
 0x1e8   : > { %5616 = vmatprep.subr.bf16.mxu0 %v1993_v38  ;;  %v1331_v58 = vpop.f32.mrf.mxu0  ;;  %v1411_v50 = vadd.f32 %v7114_v47, %v7195_v19 }
 0x1e9   : > { %v7260_v29 = vadd.f32 %v1331_v58, %v7118_v49  ;;  %v1992_v57 = vpack.c.bf16 %v1425_v48, %v1421_v36  ;;  %v1409_v48 = vadd.f32 %v7108_v45, %v7076_v17  ;;  %v1415_v58 = vadd.f32 %v7123_v53, %v7195_v19 }
 0x1ea   : > { %v1335_v11 = vpop.f32.mrf.mxu0 }
 0x1eb   : > { %v7265_v62 = vadd.f32 %v1335_v11, %v7112_v46  ;;  %v9013_v52 = vpack.c.bf16 %v7260_v29, %v7246_v56 }
 0x1ec   : > { %v1337_v22 = vpop.f32.mrf.mxu0 }
 0x1ed   : > { %5553 = vmatpush3.bf16.xpose.msra.mxu1 %v1599_v23  ;;  %v7270_v16 = vadd.f32 %v1337_v22, %v7118_v49  ;;  %v743_v23 = vsub.s32 5, %v7068_v59  ;;  %v1597_v22 = vpack.c.bf16 %v1413_v63, %v1409_v48 }
 0x1ee   : > { %5554 = vmatprep.subr.bf16.mxu1 %v1598_v1  ;;  %v1339_v20 = vpop.f32.mrf.mxu0 }
 0x1ef   : > { %5617 = vmatpush3.bf16.xpose.msra.mxu0 %v1993_v38  ;;  %v7278_v11 = vadd.f32 %v1339_v20, %v7112_v46  ;;  %v739_v38 = vsub.s32 4, %v7068_v59  ;;  %v7289_v17 = vrot.slane %v7071_v5, %v743_v23  ;;  %v1991_v46 = vpack.c.bf16 %v1415_v58, %v1411_v50 }
 0x1f0   : > { %5618 = vmatprep.subr.bf16.mxu0 %v1992_v57  ;;  %v1341_v36 = vpop.f32.mrf.mxu0  ;;  %v1401_v50 = vadd.f32 %v7094_v37, %v7195_v19  ;;  %v1395_v37 = vadd.f32 %v7090_v34, %v7195_v19 }
 0x1f1   : > { %v1593_v8 = vpack.c.bf16 %v7278_v11, %v7265_v62  ;;  %v7286_v3 = vadd.f32 %v1341_v36, %v7118_v49  ;;  %v7294_v47 = vrot.slane %v7071_v5, %v739_v38 }
 0x1f2   : > { %v1491_v45 = vpop.f32.mrf.mxu0 }
 0x1f3   : > { %v1492_v20 = vadd.f32 %v1491_v45, %v7294_v47 }
 0x1f4   : > { %v1493_v63 = vpop.f32.mrf.mxu0 }
 0x1f5   : > { %5555 = vmatpush3.bf16.xpose.msra.mxu1 %v1598_v1  ;;  %v1494_v49 = vadd.f32 %v1493_v63, %v7289_v17  ;;  %v1405_v1 = vadd.f32 %v7101_v42, %v7195_v19 }
 0x1f6   : > { %5556 = vmatprep.subr.bf16.mxu1 %v1597_v22  ;;  %v1495_v48 = vpop.f32.mrf.mxu0 }
 0x1f7   : > { %5619 = vmatpush3.bf16.xpose.msra.mxu0 %v1992_v57  ;;  %v1496_v23 = vadd.f32 %v1495_v48, %v7294_v47  ;;  %v1990_v38 = vpack.c.bf16 %v1405_v1, %v1401_v50  ;;  %v1391_v1 = vadd.f32 %v7086_v30, %v7195_v19  ;;  %v1385_v30 = vadd.f32 %v7082_v27, %v7195_v19 }
 0x1f8   : > { %5620 = vmatprep.subr.bf16.mxu0 %v1991_v46  ;;  %v1497_v58 = vpop.f32.mrf.mxu0 }
 0x1f9   : > { %v7303_v36 = vpack.c.bf16 %v1496_v23, %v1492_v20  ;;  %v1498_v5 = vadd.f32 %v1497_v58, %v7289_v17  ;;  %v1989_v58 = vpack.c.bf16 %v1395_v37, %v1391_v1 }
 0x1fa   : > { %v1501_v57 = vpop.f32.mrf.mxu0 }
 0x1fb   : > { %v7307_v45 = vpack.c.bf16 %v1498_v5, %v1494_v49  ;;  %v1502_v42 = vadd.f32 %v1501_v57, %v7294_v47 }
 0x1fc   : > { %v1503_v63 = vpop.f32.mrf.mxu0 }
 0x1fd   : > { %5557 = vmatpush3.bf16.xpose.msra.mxu1 %v1597_v22  ;;  %v1504_v48 = vadd.f32 %v1503_v63, %v7289_v17 }
 0x1fe   : > { %5558 = vmatprep.subr.bf16.mxu1 %v7103_v43  ;;  %v1505_v53 = vpop.f32.mrf.mxu0 }
 0x1ff   : > { %5621 = vmatpush3.bf16.xpose.msra.mxu0 %v1991_v46  ;;  %v1506_v20 = vadd.f32 %v1505_v53, %v7294_v47 }
 0x200   : > { %5622 = vmatprep.subr.bf16.mxu0 %v1990_v38  ;;  %v1507_v22 = vpop.f32.mrf.mxu0 }
 0x201   : > { %v7316_v23 = vpack.c.bf16 %v1506_v20, %v1502_v42  ;;  %v1508_v46 = vadd.f32 %v1507_v22, %v7289_v17 }
 0x202   : > { %v7320_v49 = vpop.f32.mrf.mxu0 }
 0x203   : > { %v7323_v50 = vpack.c.bf16 %v1508_v46, %v1504_v48 }
 0x204   : > { %v1513_v34 = vpop.f32.mrf.mxu0 }
 0x205   : > { %5559 = vmatpush3.bf16.xpose.msra.mxu1 %v7103_v43  ;;  %v1514_v53 = vadd.f32 %v1513_v34, %v7289_v17  ;;  %v1381_v43 = vadd.f32 %v7078_v18, %v7195_v19 }
 0x206   : > { %5560 = vmatprep.subr.bf16.mxu1 %v7092_v35  ;;  %v7326_v5 = vpop.f32.mrf.mxu0 }
 0x207   : > { %5623 = vmatpush3.bf16.xpose.msra.mxu0 %v1990_v38  ;;  %v1988_v38 = vpack.c.bf16 %v1385_v30, %v1381_v43  ;;  %v9006_v30 = vpack.c.bf16 %v7150_v14, %v7138_v6  ;;  %v9007_v43 = vpack.c.bf16 %v7168_v32, %v7160_v15  ;;  %v9009_v14 = vpack.c.bf16 %v7185_v0, %v7176_v51 }
 0x208   : > { %5624 = vmatprep.subr.bf16.mxu0 %v1989_v58  ;;  %v1517_v57 = vpop.f32.mrf.mxu0  ;;  %v9011_v51 = vpack.c.bf16 %v7253_v4, %v7241_v7 }
 0x209   : > { %v1518_v63 = vadd.f32 %v1517_v57, %v7289_v17 }
 0x20a   : > { %v7334_v42 = vpop.f32.mrf.mxu0 }
 0x20b   : > { %v7337_v48 = vpack.c.bf16 %v1518_v63, %v1514_v53 }
 0x20c   : > { %v1523_v37 = vpop.f32.mrf.mxu0 }
 0x20d   : > { %5561 = vmatpush3.bf16.xpose.msra.mxu1 %v7092_v35  ;;  %v1524_v27 = vadd.f32 %v1523_v37, %v7289_v17  ;;  %v9014_v37 = vpack.c.bf16 %v7286_v3, %v7270_v16  ;;  %v1512_v3 = vadd.f32 %v7320_v49, %v7294_v47  ;;  %v1516_v16 = vadd.f32 %v7326_v5, %v7294_v47  ;;  %v7422_v49 = vld [vmem:[#allocation5 + $0x10] sm:$0xff] }
 0x20e   : > { %5562 = vmatprep.subr.bf16.mxu1 %v7084_v28  ;;  %v1525_v20 = vpop.f32.mrf.mxu0 }
 0x20f   : > { %5625 = vmatpush3.bf16.xpose.msra.mxu0 %v1989_v58  ;;  %v1526_v62 = vadd.f32 %v1525_v20, %v7294_v47 }
 0x210   : > { %5626 = vmatprep.subr.bf16.mxu0 %v1988_v38  ;;  %v1527_v22 = vpop.f32.mrf.mxu0 }
 0x211   : > { %v1528_v18 = vadd.f32 %v1527_v22, %v7289_v17 }
 0x212   : > { %v1531_v19 = vpop.f32.mrf.mxu0 }
 0x213   : > { %v7342_v35 = vpack.c.bf16 %v1528_v18, %v1524_v27  ;;  %v1532_v27 = vadd.f32 %v1531_v19, %v7294_v47 }
 0x214   : > { %v1533_v1 = vpop.f32.mrf.mxu0 }
 0x215   : > { %5563 = vmatpush3.bf16.xpose.msra.mxu1 %v7084_v28  ;;  %v1534_v46 = vadd.f32 %v1533_v1, %v7289_v17  ;;  %v1604_v1 = vpack.c.bf16 %v1516_v16, %v1512_v3 }
 0x216   : > { %v1535_v34 = vpop.f32.mrf.mxu0 }
 0x217   : > { %5627 = vmatpush3.bf16.xpose.msra.mxu0 %v1988_v38  ;;  %v1536_v22 = vadd.f32 %v1535_v34, %v7294_v47  ;;  %v7424_v34 = vld [vmem:[#allocation5] sm:$0xff] }
 0x218   : > { %v1537_v53 = vpop.f32.mrf.mxu0 }
 0x219   : > { %v1538_v58 = vadd.f32 %v1537_v53, %v7289_v17  ;;  %v1606_v11 = vpack.c.bf16 %v1536_v22, %v1532_v27  ;;  %v1581_v22 = vld [vmem:[#allocation5 + $0x58] sm:$0xff] }
 0x21a   : > { %v1541_v28 = vpop.f32.mrf.mxu0 }
 0x21b   : > { %v7355_v57 = vpack.c.bf16 %v1538_v58, %v1534_v46  ;;  %v1542_v9 = vadd.f32 %v1541_v28, %v7294_v47 }
 0x21c   : > { %5565 = vmatmul.mubr.bf16.vlgmr.msra.gmra.mxu1 %v1587_v13  ;;  %v1543_v63 = vpop.f32.mrf.mxu0 }
 0x21d   : > { %5568 = vmatprep.mubr.bf16.mxu1 %v1588_v31  ;;  %v1544_v2 = vadd.f32 %v1543_v63, %v7289_v17 }
 0x21e   : > { %5629 = vmatmul.mubr.bf16.vlgmr.msra.gmra.mxu0 %v9006_v30  ;;  %v1545_v10 = vpop.f32.mrf.mxu0 }
 0x21f   : > { %5632 = vmatprep.mubr.bf16.mxu0 %v9007_v43  ;;  %v1546_v24 = vadd.f32 %v1545_v10, %v7294_v47  ;;  %v7437_v43 = vld [vmem:[#allocation5 + $0x8] sm:$0xff] }
 0x220   : > { %v1547_v13 = vpop.f32.mrf.mxu0 }
 0x221   : > { %v1548_v25 = vadd.f32 %v1547_v13, %v7289_v17  ;;  %v1607_v18 = vpack.c.bf16 %v1546_v24, %v1542_v9  ;;  %v1579_v24 = vld [vmem:[#allocation5 + $0x48] sm:$0xff] }
 0x222   : > { %v1551_v6 = vpop.f32.mrf.mxu0 }
 0x223   : > { %v7371_v15 = vpack.c.bf16 %v1548_v25, %v1544_v2  ;;  %v1552_v33 = vadd.f32 %v1551_v6, %v7294_v47  ;;  %v7449_v25 = vld [vmem:[#allocation5 + $0x20] sm:$0xff] }
 0x224   : > { %5569 = vmatmul.mubr.bf16.gmra.mxu1 %v9008_v21  ;;  %v1553_v31 = vpop.f32.mrf.mxu0 }
 0x225   : > { %5572 = vmatprep.mubr.bf16.mxu1 %v1590_v26  ;;  %v1554_v32 = vadd.f32 %v1553_v31, %v7289_v17  ;;  %v7455_v31 = vld [vmem:[#allocation5 + $0x30] sm:$0xff] }
 0x226   : > { %5633 = vmatmul.mubr.bf16.gmra.mxu0 %v9009_v14  ;;  %v1555_v39 = vpop.f32.mrf.mxu0 }
 0x227   : > { %5636 = vmatprep.mubr.bf16.mxu0 %v1984_v61  ;;  %v1556_v60 = vadd.f32 %v1555_v39, %v7294_v47 }
 0x228   : > { %v1557_v55 = vpop.f32.mrf.mxu0 }
 0x229   : > { %v1558_v40 = vadd.f32 %v1557_v55, %v7289_v17  ;;  %v1608_v56 = vpack.c.bf16 %v1556_v60, %v1552_v33  ;;  %v1575_v55 = vld [vmem:[#allocation5 + $0x28] sm:$0xff] }
 0x22a   : > { %v1561_v0 = vpop.f32.mrf.mxu0 }
 0x22b   : > { %v7387_v26 = vpack.c.bf16 %v1558_v40, %v1554_v32  ;;  %v1562_v38 = vadd.f32 %v1561_v0, %v7294_v47 }
 0x22c   : > { %5573 = vmatmul.mubr.bf16.gmra.mxu1 %v9010_v12  ;;  %v1563_v61 = vpop.f32.mrf.mxu0 }
 0x22d   : > { %5576 = vmatprep.mubr.bf16.mxu1 %v9011_v51  ;;  %v1564_v20 = vadd.f32 %v1563_v61, %v7289_v17  ;;  %v1578_v61 = vld [vmem:[#allocation5 + $0x40] sm:$0xff] }
 0x22e   : > { %5637 = vmatmul.mubr.bf16.gmra.mxu0 %v9012_v54  ;;  %v1565_v7 = vpop.f32.mrf.mxu0  ;;  %v1577_v54 = vld [vmem:[#allocation5 + $0x38] sm:$0xff] }
 0x22f   : > { %5640 = vmatprep.mubr.bf16.mxu0 %v9013_v52  ;;  %v1566_v4 = vadd.f32 %v1565_v7, %v7294_v47 }
 0x231   : > { %v1609_v29 = vpack.c.bf16 %v1566_v4, %v1562_v38  ;;  %v1580_v4 = vld [vmem:[#allocation5 + $0x50] sm:$0xff] }
 0x233   : > { %5580 = vmatprep.subr.bf16.mxu1 %v1609_v29 }
 0x234   : > { %5577 = vmatmul.mubr.bf16.gmra.mxu1 %v1593_v8  ;;  %v1522_v8 = vadd.f32 %v7334_v42, %v7294_v47  ;;  %v1567_v42 = vpop.f32.mrf.mxu0 }
 0x235   : > { %5581 = vmatpush3.bf16.msra.mxu1 %v1609_v29  ;;  %v1568_v46 = vadd.f32 %v1567_v42, %v7289_v17  ;;  %v1583_v42 = vld [vmem:[#allocation5 + $0x68] sm:$0xff] }
 0x236   : > { %5641 = vmatmul.mubr.bf16.gmra.mxu0 %v9014_v37  ;;  %5582 = vmatprep.subr.bf16.mxu1 %v1608_v56  ;;  %v1605_v19 = vpack.c.bf16 %v1526_v62, %v1522_v8  ;;  %v1582_v8 = vld [vmem:[#allocation5 + $0x60] sm:$0xff] }
 0x237   : > { %v7418_v47 = vpack.c.bf16 %v1568_v46, %v1564_v20 }
 0x239   : > { %5583 = vmatpush3.bf16.msra.mxu1 %v1608_v56 }
 0x23a   : > { %5584 = vmatprep.subr.bf16.mxu1 %v1607_v18 }
 0x23d   : > { %5585 = vmatpush3.bf16.msra.mxu1 %v1607_v18 }
 0x23e   : > { %5586 = vmatprep.subr.bf16.mxu1 %v1606_v11 }
 0x241   : > { %5587 = vmatpush3.bf16.msra.mxu1 %v1606_v11 }
 0x242   : > { %5588 = vmatprep.subr.bf16.mxu1 %v1605_v19 }
 0x245   : > { %5589 = vmatpush3.bf16.msra.mxu1 %v1605_v19  ;;  %v1584_v19 = vld [vmem:[#allocation5 + $0x70] sm:$0xff] }
 0x246   : > { %5590 = vmatprep.subr.bf16.mxu1 %v1604_v1 }
 0x249   : > { %5591 = vmatpush3.bf16.msra.mxu1 %v1604_v1 }
 0x24a   : > { %5592 = vmatprep.subr.bf16.mxu1 %v7316_v23 }
 0x24d   : > { %5593 = vmatpush3.bf16.msra.mxu1 %v7316_v23  ;;  %v7431_v23 = vld [vmem:[#allocation5 + $0x18] sm:$0xff] }
 0x24e   : > { %5594 = vmatprep.subr.bf16.mxu1 %v7303_v36 }
 0x251   : > { %5595 = vmatpush3.bf16.msra.mxu1 %v7303_v36 }
 0x252   : > { %5644 = vmatprep.subr.bf16.mxu1 %v7418_v47 }
 0x2dc   : > { %v5566_v5 = vpop.f32.mrf.mxu1 }
 0x2dd   : > { %v7427_v53 = vadd.f32 %v5566_v5, %v7422_v49 }
 0x2de   : > { %v1644_v58 = vpop.f32.mrf.mxu1  ;;  %v7429_v17 = vpop.f32.mrf.mxu0 }
 0x2df   : > { %v7434_v28 = vadd.f32 %v1644_v58, %v7424_v34  ;;  %1711 = vmax.xlane.f32.xlu1 %v7427_v53 }
 0x2e0   : > { %v5567_v36 = vpop.f32.mrf.mxu1  ;;  %v2038_v30 = vpop.f32.mrf.mxu0 }
 0x2e1   : > { %v7440_v63 = vadd.f32 %v5567_v36, %v7431_v23  ;;  %1707 = vmax.xlane.f32.xlu0 %v7434_v28  ;;  %v1585_v36 = vld [vmem:[#allocation5 + $0x78] sm:$0xff] }
 0x2e2   : > { %v1647_v2 = vpop.f32.mrf.mxu1  ;;  %v7447_v13 = vpop.f32.mrf.mxu0 }
 0x2e3   : > { %1713 = vmax.xlane.f32.xlu1 %v7440_v63  ;;  %v7445_v10 = vadd.f32 %v1647_v2, %v7437_v43  ;;  %v7490_v2 = vadd.f32 %v2038_v30, %v7424_v34  ;;  %v7507_v34 = vadd.f32 %v7447_v13, %v7431_v23 }
 0x2e4   : > { %v5570_v21 = vpop.f32.mrf.mxu1  ;;  %v2041_v32 = vpop.f32.mrf.mxu0 }
 0x2e5   : > { %1709 = vmax.xlane.f32.xlu0 %v7445_v10  ;;  %v7459_v40 = vadd.f32 %v5570_v21, %v7455_v31 }
 0x2e6   : > { %v1660_v6 = vpop.f32.mrf.mxu1  ;;  %v5634_v0 = vpop.f32.mrf.mxu0 }
 0x2e7   : > { %v7453_v14 = vadd.f32 %v1660_v6, %v7449_v25 }
 0x2e8   : > { %v5571_v39 = vpop.f32.mrf.mxu1  ;;  %v2054_v7 = vpop.f32.mrf.mxu0 }
 0x2e9   : > { %1715 = vmax.xlane.f32.xlu0 %v7453_v14  ;;  %v7465_v60 = vadd.f32 %v5571_v39, %v1577_v54  ;;  %v7498_v39 = vadd.f32 %v7429_v17, %v7422_v49  ;;  %v7510_v30 = vadd.f32 %v2054_v7, %v7449_v25  ;;  %v7515_v49 = vadd.f32 %v5634_v0, %v7455_v31 }
 0x2ea   : > { %v1663_v12 = vpop.f32.mrf.mxu1  ;;  %v5635_v27 = vpop.f32.mrf.mxu0 }
 0x2eb   : > { %v7461_v51 = vadd.f32 %v1663_v12, %v1575_v55  ;;  %v7501_v12 = vadd.f32 %v2041_v32, %v7437_v43  ;;  %v7521_v23 = vadd.f32 %v5635_v27, %v1577_v54 }
 0x2ec   : > { %v5574_v52 = vpop.f32.mrf.mxu1  ;;  %v2057_v16 = vpop.f32.mrf.mxu0 }
 0x2ed   : > { %1717 = vmax.xlane.f32.xlu1 %v7461_v51  ;;  %1719 = vmax.xlane.f32.xlu0 %v7459_v40  ;;  %v7471_v29 = vadd.f32 %v5574_v52, %v1580_v4  ;;  %v7517_v17 = vadd.f32 %v2057_v16, %v1575_v55 }
 0x2ee   : > { %v1676_v33 = vpop.f32.mrf.mxu1  ;;  %v5638_v58 = vpop.f32.mrf.mxu0 }
 0x2ef   : > { %v7467_v38 = vadd.f32 %v1676_v33, %v1578_v61  ;;  %v7527_v32 = vadd.f32 %v5638_v58, %v1580_v4 }
 0x2f0   : > { %v5575_v9 = vpop.f32.mrf.mxu1  ;;  %v2070_v6 = vpop.f32.mrf.mxu0 }
 0x2f1   : > { %1721 = vmax.xlane.f32.xlu1 %v7465_v60  ;;  %1723 = vmax.xlane.f32.xlu0 %v7467_v38  ;;  %v7477_v11 = vadd.f32 %v5575_v9, %v1581_v22  ;;  %v7523_v13 = vadd.f32 %v2070_v6, %v1578_v61 }
 0x2f2   : > { %v1679_v56 = vpop.f32.mrf.mxu1  ;;  %v5639_v52 = vpop.f32.mrf.mxu0 }
 0x2f3   : > { %v7473_v37 = vadd.f32 %v1679_v56, %v1579_v24  ;;  %v7533_v0 = vadd.f32 %v5639_v52, %v1581_v22 }
 0x2f4   : > { %v5578_v18 = vpop.f32.mrf.mxu1  ;;  %v2073_v33 = vpop.f32.mrf.mxu0 }
 0x2f5   : > { %1725 = vmax.xlane.f32.xlu1 %v7473_v37  ;;  %1727 = vmax.xlane.f32.xlu0 %v7471_v29  ;;  %v7483_v46 = vadd.f32 %v5578_v18, %v1584_v19  ;;  %v7529_v31 = vadd.f32 %v2073_v33, %v1579_v24 }
 0x2f6   : > { %v1692_v62 = vpop.f32.mrf.mxu1  ;;  %v5642_v43 = vpop.f32.mrf.mxu0 }
 0x2f7   : > { %v7479_v3 = vadd.f32 %v1692_v62, %v1582_v8  ;;  %v7539_v7 = vadd.f32 %v5642_v43, %v1584_v19 }
 0x2f8   : > { %v5579_v1 = vpop.f32.mrf.mxu1  ;;  %v2086_v25 = vpop.f32.mrf.mxu0 }
 0x2f9   : > { %1729 = vmax.xlane.f32.xlu1 %v7477_v11  ;;  %1731 = vmax.xlane.f32.xlu0 %v7479_v3  ;;  %v7492_v21 = vadd.f32 %v5579_v1, %v1585_v36  ;;  %v7535_v54 = vadd.f32 %v2086_v25, %v1582_v8 }
 0x2fa   : > { %v1695_v20 = vpop.f32.mrf.mxu1  ;;  %v5643_v55 = vpop.f32.mrf.mxu0 }
 0x2fb   : > { %v7485_v5 = vadd.f32 %v1695_v20, %v1583_v42  ;;  %v7545_v9 = vadd.f32 %v5643_v55, %v1585_v36 }
 0x2fc   : > { %v2089_v61 = vpop.f32.mrf.mxu0 }
 0x2fd   : > { %1733 = vmax.xlane.f32.xlu1 %v7485_v5  ;;  %1735 = vmax.xlane.f32.xlu0 %v7483_v46  ;;  %v7541_v4 = vadd.f32 %v2089_v61, %v1583_v42 }
 0x301   : > { %1737 = vmax.xlane.f32.xlu1 %v7492_v21  ;;  %2101 = vmax.xlane.f32.xlu0 %v7490_v2 }
 0x305   : > { %2103 = vmax.xlane.f32.xlu1 %v7501_v12  ;;  %2105 = vmax.xlane.f32.xlu0 %v7498_v39 }
 0x309   : > { %2107 = vmax.xlane.f32.xlu1 %v7507_v34  ;;  %2109 = vmax.xlane.f32.xlu0 %v7510_v30 }
 0x30d   : > { %2111 = vmax.xlane.f32.xlu1 %v7517_v17  ;;  %2113 = vmax.xlane.f32.xlu0 %v7515_v49 }
 0x311   : > { %2115 = vmax.xlane.f32.xlu1 %v7521_v23  ;;  %2117 = vmax.xlane.f32.xlu0 %v7523_v13 }
 0x315   : > { %2119 = vmax.xlane.f32.xlu1 %v7529_v31  ;;  %2121 = vmax.xlane.f32.xlu0 %v7527_v32 }
 0x319   : > { %2123 = vmax.xlane.f32.xlu1 %v7533_v0  ;;  %2125 = vmax.xlane.f32.xlu0 %v7535_v54 }
 0x31d   : > { %2127 = vmax.xlane.f32.xlu1 %v7541_v4  ;;  %2129 = vmax.xlane.f32.xlu0 %v7539_v7 }
 0x321   : > { %2131 = vmax.xlane.f32.xlu1 %v7545_v9 }
 0x368   : > { %v1712_v24 = vpop.xlane.xlu1 %1711 }
 0x369   : > { %v1741_v56 = vsub.f32 %v7427_v53, %v1712_v24 }
 0x36a   : > { %v1708_v27 = vpop.xlane.xlu0 %1707 }
 0x36b   : > { %v1739_v22 = vsub.f32 %v7434_v28, %v1708_v27  ;;  %v1759_v62 = vmul.f32 1.442695, %v1741_v56 }
 0x36c   : > { %v1714_v18 = vpop.xlane.xlu1 %1713 }
 0x36d   : > { %v1755_v8 = vmul.f32 1.442695, %v1739_v22  ;;  %v1742_v16 = vsub.f32 %v7440_v63, %v1714_v18 }
 0x36e   : > { %v1710_v19 = vpop.xlane.xlu0 %1709 }
 0x36f   : > { %6176 = vpow2.f32 %v1755_v8  ;;  %v1740_v1 = vsub.f32 %v7445_v10, %v1710_v19  ;;  %v1761_v20 = vmul.f32 1.442695, %v1742_v16 }
 0x370   : > { %6178 = vpow2.f32 %v1759_v62 }
 0x371   : > { %v1757_v42 = vmul.f32 1.442695, %v1740_v1 }
 0x372   : > { %v1716_v58 = vpop.xlane.xlu0 %1715 }
 0x373   : > { %6180 = vpow2.f32 %v1757_v42  ;;  %v1743_v36 = vsub.f32 %v7453_v14, %v1716_v58 }
 0x374   : > { %6182 = vpow2.f32 %v1761_v20 }
 0x375   : > { %v1763_v53 = vmul.f32 1.442695, %v1743_v36 }
 0x376   : > { %v1718_v6 = vpop.xlane.xlu1 %1717  ;;  %v1720_v28 = vpop.xlane.xlu0 %1719 }
 0x377   : > { %6184 = vpow2.f32 %v1763_v53  ;;  %v1744_v52 = vsub.f32 %v7461_v51, %v1718_v6  ;;  %v1745_v63 = vsub.f32 %v7459_v40, %v1720_v28 }
 0x379   : > { %v1765_v33 = vmul.f32 1.442695, %v1744_v52  ;;  %v1767_v43 = vmul.f32 1.442695, %v1745_v63 }
 0x37a   : > { %v1722_v25 = vpop.xlane.xlu1 %1721  ;;  %v1724_v10 = vpop.xlane.xlu0 %1723 }
 0x37b   : > { %6186 = vpow2.f32 %v1765_v33  ;;  %v1746_v55 = vsub.f32 %v7465_v60, %v1722_v25  ;;  %v1747_v61 = vsub.f32 %v7467_v38, %v1724_v10 }
 0x37c   : > { %v7557_v24 = vpop.eup %6176  ;;  %6188 = vpow2.f32 %v1767_v43 }
 0x37d   : > { %v1769_v14 = vmul.f32 1.442695, %v1746_v55  ;;  %v1771_v56 = vmul.f32 1.442695, %v1747_v61  ;;  %1787 = vadd.xlane.f32.xlu0 %v7557_v24  ;;  %v7560_v22 = vpop.eup %6178 }
 0x37e   : > { %v1726_v27 = vpop.xlane.xlu1 %1725  ;;  %v1728_v51 = vpop.xlane.xlu0 %1727 }
 0x37f   : > { %6190 = vpow2.f32 %v1769_v14  ;;  %v1748_v40 = vsub.f32 %v7473_v37, %v1726_v27  ;;  %v1749_v18 = vsub.f32 %v7471_v29, %v1728_v51 }
 0x380   : > { %v7564_v8 = vpop.eup %6180  ;;  %6192 = vpow2.f32 %v1771_v56 }
 0x381   : > { %v1773_v60 = vmul.f32 1.442695, %v1748_v40  ;;  %v1775_v38 = vmul.f32 1.442695, %v1749_v18  ;;  %1791 = vadd.xlane.f32.xlu0 %v7560_v22  ;;  %1789 = vadd.xlane.f32.xlu1 %v7564_v8  ;;  %v7568_v19 = vpop.eup %6182 }
 0x382   : > { %v1730_v62 = vpop.xlane.xlu1 %1729  ;;  %v1732_v16 = vpop.xlane.xlu0 %1731 }
 0x383   : > { %6194 = vpow2.f32 %v1773_v60  ;;  %v1750_v1 = vsub.f32 %v7477_v11, %v1730_v62  ;;  %v1751_v37 = vsub.f32 %v7479_v3, %v1732_v16 }
 0x384   : > { %v7572_v42 = vpop.eup %6184  ;;  %6196 = vpow2.f32 %v1775_v38 }
 0x385   : > { %v1777_v29 = vmul.f32 1.442695, %v1750_v1  ;;  %v1779_v20 = vmul.f32 1.442695, %v1751_v37  ;;  %1793 = vadd.xlane.f32.xlu1 %v7568_v19  ;;  %1795 = vadd.xlane.f32.xlu0 %v7572_v42 }
 0x386   : > { %v1734_v58 = vpop.xlane.xlu1 %1733  ;;  %v1736_v36 = vpop.xlane.xlu0 %1735 }
 0x387   : > { %6198 = vpow2.f32 %v1777_v29  ;;  %v1752_v53 = vsub.f32 %v7485_v5, %v1734_v58  ;;  %v1753_v6 = vsub.f32 %v7483_v46, %v1736_v36 }
 0x388   : > { %v7578_v28 = vpop.eup %6186  ;;  %6200 = vpow2.f32 %v1779_v20 }
 0x389   : > { %v7580_v11 = vpop.eup %6188  ;;  %v1781_v3 = vmul.f32 1.442695, %v1752_v53  ;;  %v1783_v52 = vmul.f32 1.442695, %v1753_v6  ;;  %1797 = vadd.xlane.f32.xlu1 %v7578_v28 }
 0x38a   : > { %1799 = vadd.xlane.f32.xlu0 %v7580_v11  ;;  %v1738_v63 = vpop.xlane.xlu1 %1737  ;;  %v2102_v33 = vpop.xlane.xlu0 %2101 }
 0x38b   : > { %6202 = vpow2.f32 %v1781_v3  ;;  %v1754_v43 = vsub.f32 %v7492_v21, %v1738_v63  ;;  %v2133_v5 = vsub.f32 %v7490_v2, %v2102_v33 }
 0x38c   : > { %v7586_v25 = vpop.eup %6190  ;;  %6204 = vpow2.f32 %v1783_v52 }
 0x38d   : > { %v7588_v46 = vpop.eup %6192  ;;  %v1785_v10 = vmul.f32 1.442695, %v1754_v43  ;;  %v2149_v55 = vmul.f32 1.442695, %v2133_v5  ;;  %1801 = vadd.xlane.f32.xlu1 %v7586_v25 }
 0x38e   : > { %1803 = vadd.xlane.f32.xlu0 %v7588_v46  ;;  %v2104_v61 = vpop.xlane.xlu1 %2103  ;;  %v2106_v14 = vpop.xlane.xlu0 %2105 }
 0x38f   : > { %6206 = vpow2.f32 %v1785_v10  ;;  %v2134_v56 = vsub.f32 %v7501_v12, %v2104_v61  ;;  %v2135_v21 = vsub.f32 %v7498_v39, %v2106_v14 }
 0x390   : > { %v7594_v27 = vpop.eup %6194  ;;  %6208 = vpow2.f32 %v2149_v55 }
 0x391   : > { %v7596_v2 = vpop.eup %6196  ;;  %v2151_v51 = vmul.f32 1.442695, %v2134_v56  ;;  %v2153_v40 = vmul.f32 1.442695, %v2135_v21  ;;  %1805 = vadd.xlane.f32.xlu1 %v7594_v27 }
 0x392   : > { %1807 = vadd.xlane.f32.xlu0 %v7596_v2  ;;  %v2108_v18 = vpop.xlane.xlu1 %2107  ;;  %v2110_v60 = vpop.xlane.xlu0 %2109 }
 0x393   : > { %6210 = vpow2.f32 %v2151_v51  ;;  %v2136_v38 = vsub.f32 %v7507_v34, %v2108_v18  ;;  %v2137_v12 = vsub.f32 %v7510_v30, %v2110_v60 }
 0x394   : > { %v7602_v62 = vpop.eup %6198  ;;  %6212 = vpow2.f32 %v2153_v40 }
 0x395   : > { %v7604_v39 = vpop.eup %6200  ;;  %v2155_v16 = vmul.f32 1.442695, %v2136_v38  ;;  %v2157_v1 = vmul.f32 1.442695, %v2137_v12  ;;  %1809 = vadd.xlane.f32.xlu1 %v7602_v62 }
 0x396   : > { %1811 = vadd.xlane.f32.xlu0 %v7604_v39  ;;  %v2112_v37 = vpop.xlane.xlu1 %2111  ;;  %v2114_v29 = vpop.xlane.xlu0 %2113 }
 0x397   : > { %6214 = vpow2.f32 %v2155_v16  ;;  %v2138_v20 = vsub.f32 %v7517_v17, %v2112_v37  ;;  %v2139_v34 = vsub.f32 %v7515_v49, %v2114_v29 }
 0x398   : > { %v7610_v58 = vpop.eup %6202  ;;  %6216 = vpow2.f32 %v2157_v1 }
 0x399   : > { %v7612_v30 = vpop.eup %6204  ;;  %v2159_v36 = vmul.f32 1.442695, %v2138_v20  ;;  %v2161_v53 = vmul.f32 1.442695, %v2139_v34  ;;  %1813 = vadd.xlane.f32.xlu1 %v7610_v58 }
 0x39a   : > { %1815 = vadd.xlane.f32.xlu0 %v7612_v30  ;;  %v2116_v6 = vpop.xlane.xlu1 %2115  ;;  %v2118_v3 = vpop.xlane.xlu0 %2117 }
 0x39b   : > { %6218 = vpow2.f32 %v2159_v36  ;;  %v2140_v52 = vsub.f32 %v7521_v23, %v2116_v6  ;;  %v2141_v17 = vsub.f32 %v7523_v13, %v2118_v3 }
 0x39c   : > { %v7618_v63 = vpop.eup %6206  ;;  %6220 = vpow2.f32 %v2161_v53 }
 0x39d   : > { %v7620_v49 = vpop.eup %6208  ;;  %v2163_v33 = vmul.f32 1.442695, %v2140_v52  ;;  %v2165_v43 = vmul.f32 1.442695, %v2141_v17  ;;  %1817 = vadd.xlane.f32.xlu1 %v7618_v63 }
 0x39e   : > { %2181 = vadd.xlane.f32.xlu0 %v7620_v49  ;;  %v2120_v5 = vpop.xlane.xlu1 %2119  ;;  %v2122_v10 = vpop.xlane.xlu0 %2121 }
 0x39f   : > { %6222 = vpow2.f32 %v2163_v33  ;;  %v2142_v55 = vsub.f32 %v7529_v31, %v2120_v5  ;;  %v2143_v23 = vsub.f32 %v7527_v32, %v2122_v10 }
 0x3a0   : > { %v7626_v61 = vpop.eup %6210  ;;  %6224 = vpow2.f32 %v2165_v43 }
 0x3a1   : > { %v7628_v13 = vpop.eup %6212  ;;  %v2167_v14 = vmul.f32 1.442695, %v2142_v55  ;;  %v2169_v56 = vmul.f32 1.442695, %v2143_v23  ;;  %2183 = vadd.xlane.f32.xlu1 %v7626_v61 }
 0x3a2   : > { %2185 = vadd.xlane.f32.xlu0 %v7628_v13  ;;  %v2124_v21 = vpop.xlane.xlu1 %2123  ;;  %v2126_v51 = vpop.xlane.xlu0 %2125 }
 0x3a3   : > { %6226 = vpow2.f32 %v2167_v14  ;;  %v2144_v40 = vsub.f32 %v7533_v0, %v2124_v21  ;;  %v2145_v31 = vsub.f32 %v7535_v54, %v2126_v51 }
 0x3a4   : > { %v7634_v18 = vpop.eup %6214  ;;  %6228 = vpow2.f32 %v2169_v56 }
 0x3a5   : > { %v7636_v32 = vpop.eup %6216  ;;  %v2171_v60 = vmul.f32 1.442695, %v2144_v40  ;;  %v2173_v38 = vmul.f32 1.442695, %v2145_v31  ;;  %2187 = vadd.xlane.f32.xlu1 %v7634_v18 }
 0x3a6   : > { %2189 = vadd.xlane.f32.xlu0 %v7636_v32  ;;  %v2128_v12 = vpop.xlane.xlu1 %2127  ;;  %v2130_v16 = vpop.xlane.xlu0 %2129 }
 0x3a7   : > { %6230 = vpow2.f32 %v2171_v60  ;;  %v2146_v1 = vsub.f32 %v7541_v4, %v2128_v12  ;;  %v2147_v0 = vsub.f32 %v7539_v7, %v2130_v16 }
 0x3a8   : > { %v7642_v37 = vpop.eup %6218  ;;  %6232 = vpow2.f32 %v2173_v38 }
 0x3a9   : > { %v7644_v54 = vpop.eup %6220  ;;  %v2175_v29 = vmul.f32 1.442695, %v2146_v1  ;;  %v2177_v20 = vmul.f32 1.442695, %v2147_v0  ;;  %2191 = vadd.xlane.f32.xlu1 %v7642_v37 }
 0x3aa   : > { %2193 = vadd.xlane.f32.xlu0 %v7644_v54  ;;  %v2132_v34 = vpop.xlane.xlu1 %2131 }
 0x3ab   : > { %6234 = vpow2.f32 %v2175_v29  ;;  %v2148_v36 = vsub.f32 %v7545_v9, %v2132_v34 }
 0x3ac   : > { %v7649_v53 = vpop.eup %6222  ;;  %6236 = vpow2.f32 %v2177_v20 }
 0x3ad   : > { %v7651_v4 = vpop.eup %6224  ;;  %v2179_v7 = vmul.f32 1.442695, %v2148_v36  ;;  %2195 = vadd.xlane.f32.xlu1 %v7649_v53 }
 0x3ae   : > { %2197 = vadd.xlane.f32.xlu0 %v7651_v4 }
 0x3af   : > { %6238 = vpow2.f32 %v2179_v7 }
 0x3b0   : > { %v7655_v6 = vpop.eup %6226 }
 0x3b1   : > { %v7657_v3 = vpop.eup %6228  ;;  %2199 = vadd.xlane.f32.xlu1 %v7655_v6 }
 0x3b2   : > { %2201 = vadd.xlane.f32.xlu0 %v7657_v3 }
 0x3b4   : > { %v7661_v9 = vpop.eup %6230 }
 0x3b5   : > { %v7663_v52 = vpop.eup %6232  ;;  %2203 = vadd.xlane.f32.xlu1 %v7661_v9 }
 0x3b6   : > { %2205 = vadd.xlane.f32.xlu0 %v7663_v52 }
 0x3b8   : > { %v7667_v17 = vpop.eup %6234 }
 0x3b9   : > { %v7669_v33 = vpop.eup %6236  ;;  %2207 = vadd.xlane.f32.xlu1 %v7667_v17 }
 0x3ba   : > { %2209 = vadd.xlane.f32.xlu0 %v7669_v33 }
 0x3bc   : > { %v7673_v43 = vpop.eup %6238 }
 0x3bd   : > { %2211 = vadd.xlane.f32.xlu1 %v7673_v43 }
 0x406   : > { %v1788_v5 = vpop.xlane.xlu0 %1787 }
 0x407   : > { %6240 = vrcp.f32 %v1788_v5 }
 0x40a   : > { %v1790_v10 = vpop.xlane.xlu1 %1789  ;;  %v1792_v55 = vpop.xlane.xlu0 %1791 }
 0x40b   : > { %6242 = vrcp.f32 %v1790_v10 }
 0x40c   : > { %6244 = vrcp.f32 %v1792_v55 }
 0x40e   : > { %v1794_v23 = vpop.xlane.xlu1 %1793  ;;  %v1796_v14 = vpop.xlane.xlu0 %1795 }
 0x40f   : > { %6246 = vrcp.f32 %v1794_v23 }
 0x410   : > { %6248 = vrcp.f32 %v1796_v14 }
 0x412   : > { %v1798_v56 = vpop.xlane.xlu1 %1797 }
 0x413   : > { %6250 = vrcp.f32 %v1798_v56  ;;  %v1800_v21 = vpop.xlane.xlu0 %1799 }
 0x414   : > { %6252 = vrcp.f32 %v1800_v21  ;;  %v6241_v51 = vpop.eup %6240 }
 0x415   : > { %v1835_v38 = vmul.f32 %v6241_v51, %v7557_v24 }
 0x416   : > { %v1802_v40 = vpop.xlane.xlu1 %1801 }
 0x417   : > { %6254 = vrcp.f32 %v1802_v40  ;;  %v1804_v31 = vpop.xlane.xlu0 %1803 }
 0x418   : > { %v6243_v60 = vpop.eup %6242  ;;  %6256 = vrcp.f32 %v1804_v31 }
 0x419   : > { %v1836_v12 = vmul.f32 %v6243_v60, %v7564_v8  ;;  %v6245_v16 = vpop.eup %6244 }
 0x41a   : > { %v1806_v1 = vpop.xlane.xlu1 %1805  ;;  %v1837_v34 = vmul.f32 %v6245_v16, %v7560_v22 }
 0x41b   : > { %6258 = vrcp.f32 %v1806_v1  ;;  %v1808_v0 = vpop.xlane.xlu0 %1807  ;;  %v1851_v29 = vpack.c.bf16 %v1836_v12, %v1835_v38 }
 0x41c   : > { %v6247_v20 = vpop.eup %6246  ;;  %6260 = vrcp.f32 %v1808_v0 }
 0x41d   : > { %5596 = vmatprep.mubr.bf16.mxu1 %v1851_v29  ;;  %v1838_v36 = vmul.f32 %v6247_v20, %v7568_v19  ;;  %v6249_v7 = vpop.eup %6248 }
 0x41e   : > { %v1810_v5 = vpop.xlane.xlu1 %1809  ;;  %v1839_v8 = vmul.f32 %v6249_v7, %v7572_v42 }
 0x41f   : > { %6262 = vrcp.f32 %v1810_v5  ;;  %v1812_v10 = vpop.xlane.xlu0 %1811  ;;  %v1852_v55 = vpack.c.bf16 %v1838_v36, %v1837_v34 }
 0x420   : > { %v6251_v24 = vpop.eup %6250  ;;  %6264 = vrcp.f32 %v1812_v10 }
 0x421   : > { %5597 = vmatmul.mubr.bf16.vlgmr.msra.gmra.mxu1 %v1852_v55  ;;  %v1840_v23 = vmul.f32 %v6251_v24, %v7578_v28  ;;  %v6253_v14 = vpop.eup %6252 }
 0x422   : > { %5645 = vmatpush3.bf16.msra.mxu1 %v7418_v47  ;;  %v1814_v56 = vpop.xlane.xlu1 %1813  ;;  %v1841_v51 = vmul.f32 %v6253_v14, %v7580_v11 }
 0x423   : > { %6266 = vrcp.f32 %v1814_v56  ;;  %5646 = vmatprep.subr.bf16.mxu1 %v7387_v26  ;;  %v1816_v22 = vpop.xlane.xlu0 %1815  ;;  %v1853_v19 = vpack.c.bf16 %v1840_v23, %v1839_v8 }
 0x424   : > { %v6255_v21 = vpop.eup %6254  ;;  %6268 = vrcp.f32 %v1816_v22 }
 0x425   : > { %5600 = vmatprep.mubr.bf16.mxu1 %v1853_v19  ;;  %v1842_v40 = vmul.f32 %v6255_v21, %v7586_v25  ;;  %v6257_v31 = vpop.eup %6256  ;;  %v5938_v19 = vld [vmem:[#allocation10 + $0x74] ss:$8 sps:$4 sm:$0xff]  }
 0x426   : > { %5647 = vmatpush3.bf16.msra.mxu1 %v7387_v26  ;;  %v1818_v42 = vpop.xlane.xlu1 %1817  ;;  %v1843_v38 = vmul.f32 %v6257_v31, %v7588_v46  ;;  %v5936_v31 = vld [vmem:[#allocation10 + $0x70] ss:$8 sps:$4 sm:$0xff]  }
 0x427   : > { %6270 = vrcp.f32 %v1818_v42  ;;  %5648 = vmatprep.subr.bf16.mxu1 %v7371_v15  ;;  %v2182_v47 = vpop.xlane.xlu0 %2181  ;;  %v1854_v28 = vpack.c.bf16 %v1842_v40, %v1841_v51 }
 0x428   : > { %v6259_v60 = vpop.eup %6258  ;;  %6272 = vrcp.f32 %v2182_v47  ;;  %v5941_v47 = vld [vmem:[#allocation10 + $0x64] ss:$8 sps:$4 sm:$0xff]  }
 0x429   : > { %5601 = vmatmul.mubr.bf16.gmra.mxu1 %v1854_v28  ;;  %v1844_v12 = vmul.f32 %v6259_v60, %v7594_v27  ;;  %v6261_v16 = vpop.eup %6260 }
 0x42a   : > { %5649 = vmatpush3.bf16.msra.mxu1 %v7371_v15  ;;  %v2184_v11 = vpop.xlane.xlu1 %2183  ;;  %v1845_v0 = vmul.f32 %v6261_v16, %v7596_v2 }
 0x42b   : > { %6274 = vrcp.f32 %v2184_v11  ;;  %5650 = vmatprep.subr.bf16.mxu1 %v7355_v57  ;;  %v2186_v26 = vpop.xlane.xlu0 %2185  ;;  %v1855_v25 = vpack.c.bf16 %v1844_v12, %v1843_v38  ;;  %v5944_v11 = vld [vmem:[#allocation10 + $0x54] ss:$8 sps:$4 sm:$0xff]  }
 0x42c   : > { %v6263_v1 = vpop.eup %6262  ;;  %6276 = vrcp.f32 %v2186_v26 }
 0x42d   : > { %5604 = vmatprep.mubr.bf16.mxu1 %v1855_v25  ;;  %v1846_v29 = vmul.f32 %v6263_v1, %v7602_v62  ;;  %v6265_v20 = vpop.eup %6264 }
 0x42e   : > { %5651 = vmatpush3.bf16.msra.mxu1 %v7355_v57  ;;  %v2188_v46 = vpop.xlane.xlu1 %2187  ;;  %v1847_v36 = vmul.f32 %v6265_v20, %v7604_v39  ;;  %v5947_v20 = vld [vmem:[#allocation10 + $0x44] ss:$8 sps:$4 sm:$0xff]  }
 0x42f   : > { %6278 = vrcp.f32 %v2188_v46  ;;  %5652 = vmatprep.subr.bf16.mxu1 %v7342_v35  ;;  %v2190_v15 = vpop.xlane.xlu0 %2189  ;;  %v1856_v27 = vpack.c.bf16 %v1846_v29, %v1845_v0 }
 0x430   : > { %v6267_v34 = vpop.eup %6266  ;;  %6280 = vrcp.f32 %v2190_v15 }
 0x431   : > { %5605 = vmatmul.mubr.bf16.gmra.mxu1 %v1856_v27  ;;  %v1848_v7 = vmul.f32 %v6267_v34, %v7610_v58  ;;  %v6269_v5 = vpop.eup %6268 }
 0x432   : > { %5653 = vmatpush3.bf16.msra.mxu1 %v7342_v35  ;;  %v2192_v2 = vpop.xlane.xlu1 %2191  ;;  %v1849_v55 = vmul.f32 %v6269_v5, %v7612_v30 }
 0x433   : > { %6282 = vrcp.f32 %v2192_v2  ;;  %5654 = vmatprep.subr.bf16.mxu1 %v7337_v48  ;;  %v2194_v57 = vpop.xlane.xlu0 %2193  ;;  %v1857_v62 = vpack.c.bf16 %v1848_v7, %v1847_v36  ;;  %v5945_v36 = vld [vmem:[#allocation10 + $0x40] ss:$8 sps:$4 sm:$0xff]  }
 0x434   : > { %v6271_v10 = vpop.eup %6270  ;;  %6284 = vrcp.f32 %v2194_v57 }
 0x435   : > { %5608 = vmatprep.mubr.bf16.mxu1 %v1857_v62  ;;  %v1850_v24 = vmul.f32 %v6271_v10, %v7618_v63  ;;  %v6273_v8 = vpop.eup %6272  ;;  %v5948_v62 = vld [vmem:[#allocation10 + $0x30] ss:$8 sps:$4 sm:$0xff]  }
 0x436   : > { %5655 = vmatpush3.bf16.msra.mxu1 %v7337_v48  ;;  %v2196_v39 = vpop.xlane.xlu1 %2195  ;;  %v2229_v14 = vmul.f32 %v6273_v8, %v7620_v49 }
 0x437   : > { %6286 = vrcp.f32 %v2196_v39  ;;  %5656 = vmatprep.subr.bf16.mxu1 %v7323_v50  ;;  %v2198_v35 = vpop.xlane.xlu0 %2197  ;;  %v1858_v58 = vpack.c.bf16 %v1850_v24, %v1849_v55  ;;  %v5951_v39 = vld [vmem:[#allocation10 + $0x20] ss:$8 sps:$4 sm:$0xff]  }
 0x438   : > { %v6275_v23 = vpop.eup %6274  ;;  %6288 = vrcp.f32 %v2198_v35 }
 0x439   : > { %5609 = vmatmul.mubr.bf16.gmra.mxu1 %v1858_v58  ;;  %v2230_v56 = vmul.f32 %v6275_v23, %v7626_v61  ;;  %v6277_v22 = vpop.eup %6276 }
 0x43a   : > { %5657 = vmatpush3.bf16.msra.mxu1 %v7323_v50  ;;  %v2200_v30 = vpop.xlane.xlu1 %2199  ;;  %v2231_v51 = vmul.f32 %v6277_v22, %v7628_v13  ;;  %v5960_v22 = vld [vmem:[#allocation10 + $0xf0] ss:$8 sps:$4 sm:$0xff]  }
 0x43b   : > { %6290 = vrcp.f32 %v2200_v30  ;;  %5658 = vmatprep.subr.bf16.mxu1 %v7307_v45  ;;  %v2202_v48 = vpop.xlane.xlu0 %2201  ;;  %v2245_v63 = vpack.c.bf16 %v2230_v56, %v2229_v14  ;;  %v5954_v14 = vld [vmem:[#allocation10 + $0x10] ss:$8 sps:$4 sm:$0xff]   ;;  %v5956_v56 = vld [vmem:[#allocation10 + $0x14] ss:$8 sps:$4 sm:$0xff]  }
 0x43c   : > { %v6279_v21 = vpop.eup %6278  ;;  %6292 = vrcp.f32 %v2202_v48  ;;  %v5962_v30 = vld [vmem:[#allocation10 + $0xf4] ss:$8 sps:$4 sm:$0xff]   ;;  %v6675_v48 = vmov 0  }
 0x43d   : > { %5660 = vmatprep.mubr.bf16.mxu1 %v2245_v63  ;;  %v2232_v40 = vmul.f32 %v6279_v21, %v7634_v18  ;;  %v6281_v49 = vpop.eup %6280  ;;  %v5939_v18 = vld [vmem:[#allocation10 + $0x60] ss:$8 sps:$4 sm:$0xff]   ;;  %2486 = vmatprep.mubr.bf16.mxu0 %v6675_v48  ;;  %v5966_v63 = vld [vmem:[#allocation10 + $0xd0] ss:$8 sps:$4 sm:$0xff]   ;;  %v5971_v21 = vld [vmem:[#allocation10 + $0xc4] ss:$8 sps:$4 sm:$0xff]  }
 0x43e   : > { %5659 = vmatpush3.bf16.msra.mxu1 %v7307_v45  ;;  %v2204_v61 = vpop.xlane.xlu1 %2203  ;;  %v2233_v60 = vmul.f32 %v6281_v49, %v7636_v32  ;;  %2454 = vmatprep.subr.bf16.mxu0 %v5962_v30  ;;  %v5974_v49 = vld [vmem:[#allocation10 + $0xb4] ss:$8 sps:$4 sm:$0xff]  }
 0x43f   : > { %6294 = vrcp.f32 %v2204_v61  ;;  %v2206_v50 = vpop.xlane.xlu0 %2205  ;;  %v2246_v42 = vpack.c.bf16 %v2232_v40, %v2231_v51  ;;  %2647 = vmatprep.subr.bf16.mxu1 %v5938_v19  ;;  %2455 = vmatpush1.bf16.msra.mxu0 %v5960_v22  ;;  %v5968_v19 = vld [vmem:[#allocation10 + $0xd4] ss:$8 sps:$4 sm:$0xff]   ;;  %v5969_v51 = vld [vmem:[#allocation10 + $0xc0] ss:$8 sps:$4 sm:$0xff]   ;;  %v5972_v40 = vld [vmem:[#allocation10 + $0xb0] ss:$8 sps:$4 sm:$0xff]  }
 0x440   : > { %v6283_v28 = vpop.eup %6282  ;;  %6296 = vrcp.f32 %v2206_v50  ;;  %v5977_v61 = vld [vmem:[#allocation10 + $0xa4] ss:$8 sps:$4 sm:$0xff]   ;;  %v5978_v50 = vld [vmem:[#allocation10 + $0x90] ss:$8 sps:$4 sm:$0xff]  }
 0x441   : > { %5661 = vmatmul.mubr.bf16.vlgmr.msra.gmra.mxu1 %v2246_v42  ;;  %v2234_v38 = vmul.f32 %v6283_v28, %v7642_v37  ;;  %v6285_v13 = vpop.eup %6284  ;;  %v5942_v37 = vld [vmem:[#allocation10 + $0x50] ss:$8 sps:$4 sm:$0xff]   ;;  %v5980_v42 = vld [vmem:[#allocation10 + $0x94] ss:$8 sps:$4 sm:$0xff]   ;;  %v5981_v28 = vld [vmem:[#allocation10 + $0x80] ss:$8 sps:$4 sm:$0xff]  }
 0x442   : > { %v2208_v12 = vpop.xlane.xlu1 %2207  ;;  %2648 = vmatpush1.bf16.msra.mxu1 %v5936_v31  ;;  %v2235_v25 = vmul.f32 %v6285_v13, %v7644_v54  ;;  %v5975_v31 = vld [vmem:[#allocation10 + $0xa0] ss:$8 sps:$4 sm:$0xff]  }
 0x443   : > { %6298 = vrcp.f32 %v2208_v12  ;;  %v2210_v45 = vpop.xlane.xlu0 %2209  ;;  %v2247_v16 = vpack.c.bf16 %v2234_v38, %v2233_v60  ;;  %2649 = vmatprep.subr.bf16.mxu1 %v5941_v47  ;;  %v5983_v47 = vld [vmem:[#allocation10 + $0x84] ss:$8 sps:$4 sm:$0xff]  }
 0x444   : > { %v6287_v26 = vpop.eup %6286  ;;  %6300 = vrcp.f32 %v2210_v45 }
 0x445   : > { %5664 = vmatprep.mubr.bf16.mxu1 %v2247_v16  ;;  %v2236_v1 = vmul.f32 %v6287_v26, %v7649_v53  ;;  %v6289_v0 = vpop.eup %6288  ;;  %v5950_v53 = vld [vmem:[#allocation10 + $0x34] ss:$8 sps:$4 sm:$0xff]  }
 0x446   : > { %v2212_v32 = vpop.xlane.xlu1 %2211  ;;  %2650 = vmatpush1.bf16.msra.mxu1 %v5939_v18  ;;  %v2237_v15 = vmul.f32 %v6289_v0, %v7651_v4  ;;  %v5953_v4 = vld [vmem:[#allocation10 + $0x24] ss:$8 sps:$4 sm:$0xff]  }
 0x447   : > { %6302 = vrcp.f32 %v2212_v32  ;;  %v2248_v29 = vpack.c.bf16 %v2236_v1, %v2235_v25  ;;  %2651 = vmatprep.subr.bf16.mxu1 %v5944_v11 }
 0x448   : > { %v6291_v46 = vpop.eup %6290 }
 0x449   : > { %5665 = vmatmul.mubr.bf16.gmra.mxu1 %v2248_v29  ;;  %v2238_v27 = vmul.f32 %v6291_v46, %v7655_v6  ;;  %v6293_v34 = vpop.eup %6292 }
 0x44a   : > { %2652 = vmatpush1.bf16.msra.mxu1 %v5942_v37  ;;  %v2239_v5 = vmul.f32 %v6293_v34, %v7657_v3 }
 0x44b   : > { %v2249_v54 = vpack.c.bf16 %v2238_v27, %v2237_v15  ;;  %2653 = vmatprep.subr.bf16.mxu1 %v5947_v20 }
 0x44c   : > { %v6295_v7 = vpop.eup %6294 }
 0x44d   : > { %5668 = vmatprep.mubr.bf16.mxu1 %v2249_v54  ;;  %v2240_v2 = vmul.f32 %v6295_v7, %v7661_v9  ;;  %v6297_v57 = vpop.eup %6296 }
 0x44e   : > { %2654 = vmatpush1.bf16.msra.mxu1 %v5945_v36  ;;  %v2241_v6 = vmul.f32 %v6297_v57, %v7663_v52  ;;  %v5959_v52 = vld [vmem:[#allocation10 + $0x4] ss:$8 sps:$4 sm:$0xff]  }
 0x44f   : > { %v2250_v10 = vpack.c.bf16 %v2240_v2, %v2239_v5  ;;  %2655 = vmatprep.subr.bf16.mxu1 %v5950_v53 }
 0x450   : > { %v6299_v55 = vpop.eup %6298 }
 0x451   : > { %5669 = vmatmul.mubr.bf16.gmra.mxu1 %v2250_v10  ;;  %v2242_v24 = vmul.f32 %v6299_v55, %v7667_v17  ;;  %v6301_v8 = vpop.eup %6300  ;;  %v5957_v17 = vld [vmem:[#allocation10] ss:$8 sps:$4 sm:$0xff]  }
 0x452   : > { %2656 = vmatpush1.bf16.msra.mxu1 %v5948_v62  ;;  %v2243_v9 = vmul.f32 %v6301_v8, %v7669_v33  ;;  %v5965_v33 = vld [vmem:[#allocation10 + $0xe4] ss:$8 sps:$4 sm:$0xff]  }
 0x453   : > { %v2251_v35 = vpack.c.bf16 %v2242_v24, %v2241_v6  ;;  %2657 = vmatprep.subr.bf16.mxu1 %v5953_v4  ;;  %2456 = vmatprep.subr.bf16.mxu0 %v5965_v33 }
 0x454   : > { %v6303_v3 = vpop.eup %6302 }
 0x455   : > { %5672 = vmatprep.mubr.bf16.mxu1 %v2251_v35  ;;  %v2244_v58 = vmul.f32 %v6303_v3, %v7673_v43  ;;  %v5963_v43 = vld [vmem:[#allocation10 + $0xe0] ss:$8 sps:$4 sm:$0xff]  }
 0x456   : > { %2658 = vmatpush1.bf16.msra.mxu1 %v5951_v39  ;;  %2457 = vmatpush1.bf16.msra.mxu0 %v5963_v43 }
 0x457   : > { %v2252_v23 = vpack.c.bf16 %v2244_v58, %v2243_v9  ;;  %2659 = vmatprep.subr.bf16.mxu1 %v5956_v56  ;;  %2458 = vmatprep.subr.bf16.mxu0 %v5968_v19  ;;  %v5986_v19 = vld [vmem:[#allocation11 + $0xe4] ss:$16 sps:$4 sm:$0xff]  }
 0x459   : > { %5673 = vmatmul.mubr.bf16.gmra.mxu1 %v2252_v23 }
 0x45a   : > { %2660 = vmatpush1.bf16.msra.mxu1 %v5954_v14  ;;  %2679 = vmatprep.mubr.bf16.mxu1 %v6675_v48 }
 0x45b   : > { %2661 = vmatprep.subr.bf16.mxu1 %v5959_v52  ;;  %2459 = vmatpush1.bf16.msra.mxu0 %v5966_v63  ;;  %v5984_v63 = vld [vmem:[#allocation11 + $0xe0] ss:$16 sps:$4 sm:$0xff]  }
 0x45c   : > { %2460 = vmatprep.subr.bf16.mxu0 %v5971_v21  ;;  %v5987_v21 = vld [vmem:[#allocation11 + $0xe8] ss:$16 sps:$4 sm:$0xff]  }
 0x45e   : > { %2662 = vmatpush1.bf16.msra.mxu1 %v5957_v17 }
 0x45f   : > { %2461 = vmatpush1.bf16.msra.mxu0 %v5969_v51  ;;  %v5989_v51 = vld [vmem:[#allocation11 + $0xec] ss:$16 sps:$4 sm:$0xff]  }
 0x460   : > { %2462 = vmatprep.subr.bf16.mxu0 %v5974_v49  ;;  %v5995_v49 = vld [vmem:[#allocation11 + $0xcc] ss:$16 sps:$4 sm:$0xff]   ;;  %3764 = vmatprep.subr.bf16.mxu1 %v5989_v51 }
 0x463   : > { %2463 = vmatpush1.bf16.msra.mxu0 %v5972_v40  ;;  %v5992_v40 = vld [vmem:[#allocation11 + $0xc4] ss:$16 sps:$4 sm:$0xff]  }
 0x464   : > { %2464 = vmatprep.subr.bf16.mxu0 %v5977_v61  ;;  %v5990_v61 = vld [vmem:[#allocation11 + $0xc0] ss:$16 sps:$4 sm:$0xff]  }
 0x467   : > { %2465 = vmatpush1.bf16.msra.mxu0 %v5975_v31  ;;  %v5993_v31 = vld [vmem:[#allocation11 + $0xc8] ss:$16 sps:$4 sm:$0xff]  }
 0x468   : > { %2466 = vmatprep.subr.bf16.mxu0 %v5980_v42  ;;  %v6001_v42 = vld [vmem:[#allocation11 + $0xac] ss:$16 sps:$4 sm:$0xff]  }
 0x46b   : > { %2467 = vmatpush1.bf16.msra.mxu0 %v5978_v50  ;;  %v5998_v50 = vld [vmem:[#allocation11 + $0xa4] ss:$16 sps:$4 sm:$0xff]  }
 0x46c   : > { %2468 = vmatprep.subr.bf16.mxu0 %v5983_v47  ;;  %v5999_v47 = vld [vmem:[#allocation11 + $0xa8] ss:$16 sps:$4 sm:$0xff]  }
 0x46f   : > { %2469 = vmatpush1.bf16.msra.mxu0 %v5981_v28  ;;  %v6004_v28 = vld [vmem:[#allocation11 + $0x84] ss:$16 sps:$4 sm:$0xff]  }
 0x470   : > { %3651 = vmatprep.subr.bf16.mxu0 %v5986_v19 }
 0x4e1   : > { %v5598_v60 = vpop.f32.mrf.mxu1 }
 0x4e3   : > { %v1893_v38 = vpop.f32.mrf.mxu1 }
 0x4e5   : > { %v5599_v13 = vpop.f32.mrf.mxu1 }
 0x4e6   : > { %v1957_v25 = vpack.c.bf16 %v5599_v13, %v5598_v60  ;;  %v6007_v60 = vld [vmem:[#allocation11 + $0x8c] ss:$16 sps:$4 sm:$0xff]   ;;  %v6005_v13 = vld [vmem:[#allocation11 + $0x88] ss:$16 sps:$4 sm:$0xff]  }
 0x4e7   : > { %v1896_v12 = vpop.f32.mrf.mxu1 }
 0x4e8   : > { %v1956_v18 = vpack.c.bf16 %v1896_v12, %v1893_v38  ;;  %v6002_v38 = vld [vmem:[#allocation11 + $0x80] ss:$16 sps:$4 sm:$0xff]   ;;  %v6010_v12 = vld [vmem:[#allocation11 + $0x64] ss:$16 sps:$4 sm:$0xff]  }
 0x4e9   : > { %v5602_v45 = vpop.f32.mrf.mxu1 }
 0x4ea   : > { %2680 = vmatmul.mubr.bf16.vlgmr.msra.gmra.mxu1 %v1956_v18  ;;  %v6013_v18 = vld [vmem:[#allocation11 + $0x6c] ss:$16 sps:$4 sm:$0xff]  }
 0x4eb   : > { %v1909_v16 = vpop.f32.mrf.mxu1  ;;  %2689 = vmatprep.mubr.bf16.mxu1 %v6675_v48  ;;  %3765 = vmatpush1.bf16.msra.mxu1 %v5987_v21 }
 0x4ec   : > { %3766 = vmatprep.subr.bf16.mxu1 %v5995_v49 }
 0x4ed   : > { %v5603_v11 = vpop.f32.mrf.mxu1 }
 0x4ee   : > { %v1959_v34 = vpack.c.bf16 %v5603_v11, %v5602_v45  ;;  %v6008_v45 = vld [vmem:[#allocation11 + $0x60] ss:$16 sps:$4 sm:$0xff]   ;;  %v6016_v11 = vld [vmem:[#allocation11 + $0x44] ss:$16 sps:$4 sm:$0xff]  }
 0x4ef   : > { %v1912_v26 = vpop.f32.mrf.mxu1  ;;  %3767 = vmatpush1.bf16.msra.mxu1 %v5993_v31  ;;  %v6370_v31 = vld [vmem:[%s6943_s3 + $0x10] sm:$0xff] }
 0x4f0   : > { %v1958_v29 = vpack.c.bf16 %v1912_v26, %v1909_v16  ;;  %3768 = vmatprep.subr.bf16.mxu1 %v6001_v42  ;;  %v6011_v16 = vld [vmem:[#allocation11 + $0x68] ss:$16 sps:$4 sm:$0xff]   ;;  %v6019_v26 = vld [vmem:[#allocation11 + $0x4c] ss:$16 sps:$4 sm:$0xff]  }
 0x4f1   : > { %v5606_v1 = vpop.f32.mrf.mxu1 }
 0x4f2   : > { %2690 = vmatmul.mubr.bf16.gmra.mxu1 %v1957_v25  ;;  %v6014_v25 = vld [vmem:[#allocation11 + $0x40] ss:$16 sps:$4 sm:$0xff]  }
 0x4f3   : > { %v1925_v0 = vpop.f32.mrf.mxu1  ;;  %2699 = vmatprep.mubr.bf16.mxu1 %v6675_v48  ;;  %3769 = vmatpush1.bf16.msra.mxu1 %v5999_v47 }
 0x4f4   : > { %3770 = vmatprep.subr.bf16.mxu1 %v6007_v60 }
 0x4f5   : > { %v5607_v32 = vpop.f32.mrf.mxu1 }
 0x4f6   : > { %v1961_v10 = vpack.c.bf16 %v5607_v32, %v5606_v1  ;;  %v6017_v1 = vld [vmem:[#allocation11 + $0x48] ss:$16 sps:$4 sm:$0xff]  }
 0x4f7   : > { %v1928_v37 = vpop.f32.mrf.mxu1  ;;  %3771 = vmatpush1.bf16.msra.mxu1 %v6005_v13 }
 0x4f8   : > { %v1960_v5 = vpack.c.bf16 %v1928_v37, %v1925_v0  ;;  %3772 = vmatprep.subr.bf16.mxu1 %v6013_v18  ;;  %v6022_v0 = vld [vmem:[#allocation11 + $0x24] ss:$16 sps:$4 sm:$0xff]   ;;  %v6025_v37 = vld [vmem:[#allocation11 + $0x2c] ss:$16 sps:$4 sm:$0xff]  }
 0x4f9   : > { %v5610_v20 = vpop.f32.mrf.mxu1 }
 0x4fa   : > { %2700 = vmatmul.mubr.bf16.gmra.mxu1 %v1958_v29 }
 0x4fb   : > { %v1941_v46 = vpop.f32.mrf.mxu1  ;;  %2709 = vmatprep.mubr.bf16.mxu1 %v6675_v48  ;;  %3773 = vmatpush1.bf16.msra.mxu1 %v6011_v16 }
 0x4fc   : > { %3774 = vmatprep.subr.bf16.mxu1 %v6019_v26 }
 0x4fd   : > { %v5611_v15 = vpop.f32.mrf.mxu1 }
 0x4fe   : > { %v1963_v3 = vpack.c.bf16 %v5611_v15, %v5610_v20  ;;  %v6020_v20 = vld [vmem:[#allocation11 + $0x20] ss:$16 sps:$4 sm:$0xff]  }
 0x4ff   : > { %v1944_v27 = vpop.f32.mrf.mxu1  ;;  %3775 = vmatpush1.bf16.msra.mxu1 %v6017_v1  ;;  %v6372_v1 = vld [vmem:[%s6943_s3 + $0x20] sm:$0xff] }
 0x500   : > { %v1962_v24 = vpack.c.bf16 %v1944_v27, %v1941_v46  ;;  %v6023_v46 = vld [vmem:[#allocation11 + $0x28] ss:$16 sps:$4 sm:$0xff]   ;;  %3776 = vmatprep.subr.bf16.mxu1 %v6025_v37 }
 0x501   : > { %v5662_v36 = vpop.f32.mrf.mxu1 }
 0x502   : > { %2710 = vmatmul.mubr.bf16.gmra.mxu1 %v1959_v34 }
 0x503   : > { %v2287_v54 = vpop.f32.mrf.mxu1  ;;  %2719 = vmatprep.mubr.bf16.mxu1 %v6675_v48  ;;  %3777 = vmatpush1.bf16.msra.mxu1 %v6023_v46 }
 0x505   : > { %v5663_v53 = vpop.f32.mrf.mxu1 }
 0x506   : > { %v2351_v4 = vpack.c.bf16 %v5663_v53, %v5662_v36 }
 0x507   : > { %v2290_v7 = vpop.f32.mrf.mxu1 }
 0x508   : > { %v2350_v2 = vpack.c.bf16 %v2290_v7, %v2287_v54 }
 0x509   : > { %v5666_v57 = vpop.f32.mrf.mxu1 }
 0x50a   : > { %2487 = vmatmul.mubr.bf16.vlgmr.msra.gmra.mxu0 %v2350_v2  ;;  %2720 = vmatmul.mubr.bf16.gmra.mxu1 %v1960_v5 }
 0x50b   : > { %2496 = vmatprep.mubr.bf16.mxu0 %v6675_v48  ;;  %2729 = vmatprep.mubr.bf16.mxu1 %v6675_v48  ;;  %v2303_v62 = vpop.f32.mrf.mxu1 }
 0x50c   : > { %3652 = vmatpush1.bf16.msra.mxu0 %v5984_v63 }
 0x50d   : > { %v5667_v55 = vpop.f32.mrf.mxu1  ;;  %3653 = vmatprep.subr.bf16.mxu0 %v5992_v40 }
 0x50e   : > { %v2353_v9 = vpack.c.bf16 %v5667_v55, %v5666_v57  ;;  %v2760_v55 = vld [vmem:[%s8944_s5] sm:$0x3] }
 0x50f   : > { %v2306_v6 = vpop.f32.mrf.mxu1 }
 0x510   : > { %v2352_v8 = vpack.c.bf16 %v2306_v6, %v2303_v62  ;;  %3654 = vmatpush1.bf16.msra.mxu0 %v5990_v61 }
 0x511   : > { %v5670_v39 = vpop.f32.mrf.mxu1  ;;  %3655 = vmatprep.subr.bf16.mxu0 %v5998_v50 }
 0x512   : > { %2497 = vmatmul.mubr.bf16.gmra.mxu0 %v2351_v4  ;;  %2730 = vmatmul.mubr.bf16.gmra.mxu1 %v1961_v10 }
 0x513   : > { %2506 = vmatprep.mubr.bf16.mxu0 %v6675_v48  ;;  %2739 = vmatprep.mubr.bf16.mxu1 %v6675_v48  ;;  %v2319_v35 = vpop.f32.mrf.mxu1 }
 0x515   : > { %v5671_v58 = vpop.f32.mrf.mxu1 }
 0x516   : > { %v2355_v17 = vpack.c.bf16 %v5671_v58, %v5670_v39 }
 0x517   : > { %v2322_v23 = vpop.f32.mrf.mxu1 }
 0x518   : > { %v2354_v14 = vpack.c.bf16 %v2322_v23, %v2319_v35  ;;  %v7760_v35 = vrot.slane %v2760_v55, %v7106_v44 }
 0x519   : > { %v5674_v56 = vpop.f32.mrf.mxu1 }
 0x51a   : > { %2507 = vmatmul.mubr.bf16.gmra.mxu0 %v2352_v8  ;;  %2740 = vmatmul.mubr.bf16.gmra.mxu1 %v1962_v24  ;;  %v7757_v24 = vrot.slane %v2760_v55, %v7099_v41 }
 0x51b   : > { %2516 = vmatprep.mubr.bf16.mxu0 %v6675_v48  ;;  %2749 = vmatprep.mubr.bf16.mxu1 %v6675_v48  ;;  %v2335_v52 = vpop.f32.mrf.mxu1 }
 0x51d   : > { %v5675_v22 = vpop.f32.mrf.mxu1 }
 0x51e   : > { %v2357_v43 = vpack.c.bf16 %v5675_v22, %v5674_v56 }
 0x51f   : > { %v2338_v30 = vpop.f32.mrf.mxu1 }
 0x520   : > { %v2356_v33 = vpack.c.bf16 %v2338_v30, %v2335_v52  ;;  %v6368_v30 = vld [vmem:[%s6943_s3] sm:$0xff] }
 0x522   : > { %2517 = vmatmul.mubr.bf16.gmra.mxu0 %v2353_v9  ;;  %2750 = vmatmul.mubr.bf16.gmra.mxu1 %v1963_v3 }
 0x523   : > { %2526 = vmatprep.mubr.bf16.mxu0 %v6675_v48 }
 0x52a   : > { %2527 = vmatmul.mubr.bf16.gmra.mxu0 %v2354_v14 }
 0x52b   : > { %2536 = vmatprep.mubr.bf16.mxu0 %v6675_v48 }
 0x532   : > { %2537 = vmatmul.mubr.bf16.gmra.mxu0 %v2355_v17 }
 0x533   : > { %2546 = vmatprep.mubr.bf16.mxu0 %v6675_v48 }
 0x53a   : > { %2547 = vmatmul.mubr.bf16.gmra.mxu0 %v2356_v33 }
 0x53b   : > { %2556 = vmatprep.mubr.bf16.mxu0 %v6675_v48  ;;  %v5996_v48 = vld [vmem:[#allocation11 + $0xa0] ss:$16 sps:$4 sm:$0xff]  }
 0x53c   : > { %3656 = vmatpush1.bf16.msra.mxu0 %v5996_v48 }
 0x53d   : > { %3657 = vmatprep.subr.bf16.mxu0 %v6004_v28  ;;  %v6371_v28 = vld [vmem:[%s6943_s3 + $0x18] sm:$0xff] }
 0x540   : > { %3658 = vmatpush1.bf16.msra.mxu0 %v6002_v38 }
 0x541   : > { %3659 = vmatprep.subr.bf16.mxu0 %v6010_v12 }
 0x542   : > { %2557 = vmatmul.mubr.bf16.gmra.mxu0 %v2357_v43  ;;  %v6369_v43 = vld [vmem:[%s6943_s3 + $0x8] sm:$0xff] }
 0x544   : > { %3660 = vmatpush1.bf16.msra.mxu0 %v6008_v45 }
 0x545   : > { %3661 = vmatprep.subr.bf16.mxu0 %v6016_v11 }
 0x548   : > { %3662 = vmatpush1.bf16.msra.mxu0 %v6014_v25 }
 0x549   : > { %3663 = vmatprep.subr.bf16.mxu0 %v6022_v0 }
 0x54c   : > { %3664 = vmatpush1.bf16.msra.mxu0 %v6020_v20  ;;  %v6373_v20 = vld [vmem:[%s6943_s3 + $0x28] sm:$0xff] }
 0x5aa   : > { %v2681_v32 = vpop.f32.mrf.mxu1 }
 0x5ac   : > { %v2683_v29 = vpop.f32.mrf.mxu1 }
 0x5ae   : > { %v2685_v15 = vpop.f32.mrf.mxu1 }
 0x5b0   : > { %v2687_v27 = vpop.f32.mrf.mxu1 }
 0x5b2   : > { %v2691_v34 = vpop.f32.mrf.mxu1 }
 0x5b4   : > { %v2693_v36 = vpop.f32.mrf.mxu1 }
 0x5b6   : > { %v2695_v54 = vpop.f32.mrf.mxu1 }
 0x5b8   : > { %v2697_v53 = vpop.f32.mrf.mxu1 }
 0x5ba   : > { %v2701_v7 = vpop.f32.mrf.mxu1 }
 0x5bc   : > { %v7739_v5 = vpop.f32.mrf.mxu1 }
 0x5be   : > { %v7741_v2 = vpop.f32.mrf.mxu1 }
 0x5c0   : > { %v7743_v57 = vpop.f32.mrf.mxu1 }
 0x5c2   : > { %v7745_v62 = vpop.f32.mrf.mxu1 }
 0x5c4   : > { %v7747_v10 = vpop.f32.mrf.mxu1 }
 0x5c6   : > { %v7749_v4 = vpop.f32.mrf.mxu1 }
 0x5c8   : > { %v7754_v6 = vpop.f32.mrf.mxu1 }
 0x5ca   : > { %v2488_v8 = vpop.f32.mrf.mxu0  ;;  %v7762_v3 = vpop.f32.mrf.mxu1 }
 0x5cb   : > { %v2682_v39 = vadd.f32 %v2681_v32, %v2488_v8 }
 0x5cc   : > { %v2490_v9 = vpop.f32.mrf.mxu0  ;;  %v7766_v17 = vpop.f32.mrf.mxu1 }
 0x5cd   : > { %v2772_v58 = vadd.f32 %v7757_v24, %v2682_v39  ;;  %v2684_v23 = vadd.f32 %v2683_v29, %v2490_v9  ;;  %v6374_v9 = vld [vmem:[%s6943_s3 + $0x30] sm:$0xff] }
 0x5ce   : > { %v2492_v14 = vpop.f32.mrf.mxu0  ;;  %v7781_v42 = vpop.f32.mrf.mxu1 }
 0x5cf   : > { %v2773_v56 = vadd.f32 %v7760_v35, %v2684_v23  ;;  %v2686_v52 = vadd.f32 %v2685_v15, %v2492_v14  ;;  %v7769_v33 = vadd.f32 %v6368_v30, %v2772_v58 }
 0x5d0   : > { %v2494_v22 = vpop.f32.mrf.mxu0  ;;  %v7794_v25 = vpop.f32.mrf.mxu1 }
 0x5d1   : > { %v7772_v63 = vadd.f32 %v6369_v43, %v2773_v56  ;;  %v2774_v19 = vadd.f32 %v7757_v24, %v2686_v52  ;;  %v2688_v21 = vadd.f32 %v2687_v27, %v2494_v22  ;;  %v2903_v12 = vmul.f32 %v7769_v33, %v7769_v33  ;;  %v6375_v56 = vld [vmem:[%s6943_s3 + $0x38] sm:$0xff] }
 0x5d2   : > { %v2498_v51 = vpop.f32.mrf.mxu0  ;;  %v7810_v39 = vpop.f32.mrf.mxu1 }
 0x5d3   : > { %v2775_v40 = vadd.f32 %v7760_v35, %v2688_v21  ;;  %v2692_v49 = vadd.f32 %v2691_v34, %v2498_v51  ;;  %v2838_v61 = vadd.f32 %v7772_v63, %v7769_v33  ;;  %v7779_v50 = vadd.f32 %v6370_v31, %v2774_v19 }
 0x5d4   : > { %v2500_v48 = vpop.f32.mrf.mxu0  ;;  %v2904_v47 = vmul.f32 %v7772_v63, %v7772_v63 }
 0x5d5   : > { %v7786_v60 = vadd.f32 %v6371_v28, %v2775_v40  ;;  %v2776_v38 = vadd.f32 %v7757_v24, %v2692_v49  ;;  %v2694_v13 = vadd.f32 %v2693_v36, %v2500_v48  ;;  %2839 = vadd.xlane.f32.xlu0 %v2838_v61  ;;  %v2905_v37 = vmul.f32 %v7779_v50, %v7779_v50  ;;  %v7828_v40 = vpop.f32.mrf.mxu1  ;;  %v6376_v49 = vld [vmem:[%s6943_s3 + $0x40] sm:$0xff] }
 0x5d6   : > { %v2502_v18 = vpop.f32.mrf.mxu0  ;;  %v2935_v26 = vadd.f32 %v2904_v47, %v2903_v12  ;;  %v6377_v47 = vld [vmem:[%s6943_s3 + $0x48] sm:$0xff] }
 0x5d7   : > { %v2777_v45 = vadd.f32 %v7760_v35, %v2694_v13  ;;  %v2696_v16 = vadd.f32 %v2695_v54, %v2502_v18  ;;  %v2841_v11 = vadd.f32 %v7786_v60, %v7779_v50  ;;  %v7797_v0 = vadd.f32 %v6372_v1, %v2776_v38  ;;  %v6026_v13 = vld [vmem:[#allocation11] ss:$16 sps:$4 sm:$0xff]   ;;  %v6028_v12 = vld [vmem:[#allocation11 + $0x4] ss:$16 sps:$4 sm:$0xff]  }
 0x5d8   : > { %v2504_v32 = vpop.f32.mrf.mxu0  ;;  %v2906_v29 = vmul.f32 %v7786_v60, %v7786_v60  ;;  %3665 = vmatprep.subr.bf16.mxu0 %v6028_v12 }
 0x5d9   : > { %v7804_v46 = vadd.f32 %v6373_v20, %v2777_v45  ;;  %v2778_v15 = vadd.f32 %v7757_v24, %v2696_v16  ;;  %v2698_v27 = vadd.f32 %v2697_v53, %v2504_v32  ;;  %2842 = vadd.xlane.f32.xlu1 %v2841_v11  ;;  %2936 = vadd.xlane.f32.xlu0 %v2935_v26  ;;  %v6029_v45 = vld [vmem:[#allocation11 + $0x8] ss:$16 sps:$4 sm:$0xff]   ;;  %v6031_v16 = vld [vmem:[#allocation11 + $0xc] ss:$16 sps:$4 sm:$0xff]  }
 0x5da   : > { %v2508_v34 = vpop.f32.mrf.mxu0  ;;  %v2938_v55 = vadd.f32 %v2906_v29, %v2905_v37  ;;  %v2907_v53 = vmul.f32 %v7797_v0, %v7797_v0  ;;  %v7846_v37 = vpop.f32.mrf.mxu1  ;;  %3778 = vmatprep.subr.bf16.mxu1 %v6031_v16  ;;  %3666 = vmatpush1.bf16.msra.mxu0 %v6026_v13  ;;  %v6041_v13 = vld [vmem:[#allocation11 + $0x1c8] ss:$16 sps:$4 sm:$0xff]  }
 0x5db   : > { %v2779_v36 = vadd.f32 %v7760_v35, %v2698_v27  ;;  %v2702_v54 = vadd.f32 %v2701_v7, %v2508_v34  ;;  %v2844_v8 = vadd.f32 %v7804_v46, %v7797_v0  ;;  %v7813_v58 = vadd.f32 %v6374_v9, %v2778_v15  ;;  %3779 = vmatpush1.bf16.msra.mxu1 %v6029_v45 }
 0x5dc   : > { %v2510_v23 = vpop.f32.mrf.mxu0  ;;  %v2908_v14 = vmul.f32 %v7804_v46, %v7804_v46 }
 0x5dd   : > { %v7820_v52 = vadd.f32 %v6375_v56, %v2779_v36  ;;  %v2780_v7 = vadd.f32 %v7757_v24, %v2702_v54  ;;  %v2704_v22 = vadd.f32 %v7739_v5, %v2510_v23  ;;  %2939 = vadd.xlane.f32.xlu1 %v2938_v55  ;;  %2845 = vadd.xlane.f32.xlu0 %v2844_v8  ;;  %v6034_v55 = vld [vmem:[#allocation11 + $0x1e4] ss:$16 sps:$4 sm:$0xff]   ;;  %v6037_v8 = vld [vmem:[#allocation11 + $0x1ec] ss:$16 sps:$4 sm:$0xff]   ;;  %v6032_v23 = vld [vmem:[#allocation11 + $0x1e0] ss:$16 sps:$4 sm:$0xff]  }
 0x5de   : > { %v2512_v30 = vpop.f32.mrf.mxu0  ;;  %v2941_v51 = vadd.f32 %v2908_v14, %v2907_v53  ;;  %v2909_v5 = vmul.f32 %v7813_v58, %v7813_v58  ;;  %v6035_v53 = vld [vmem:[#allocation11 + $0x1e8] ss:$16 sps:$4 sm:$0xff]   ;;  %3667 = vmatprep.subr.bf16.mxu0 %v6034_v55  ;;  %3780 = vmatprep.subr.bf16.mxu1 %v6037_v8  ;;  %v6044_v55 = vld [vmem:[#allocation11 + $0x1a0] ss:$16 sps:$4 sm:$0xff]  }
 0x5df   : > { %v2781_v43 = vadd.f32 %v7760_v35, %v2704_v22  ;;  %v2706_v19 = vadd.f32 %v7741_v2, %v2512_v30  ;;  %v2847_v21 = vadd.f32 %v7820_v52, %v7813_v58  ;;  %v7831_v61 = vadd.f32 %v6376_v49, %v2780_v7  ;;  %v7864_v30 = vpop.f32.mrf.mxu1  ;;  %3668 = vmatpush2.bf16.msra.mxu0 %v6032_v23  ;;  %v6047_v8 = vld [vmem:[#allocation11 + $0x1a8] ss:$16 sps:$4 sm:$0xff]  }
 0x5e0   : > { %v2514_v31 = vpop.f32.mrf.mxu0  ;;  %v2910_v48 = vmul.f32 %v7820_v52, %v7820_v52  ;;  %3781 = vmatpush2.bf16.msra.mxu1 %v6035_v53 }
 0x5e1   : > { %v7838_v28 = vadd.f32 %v6377_v47, %v2781_v43  ;;  %v2782_v2 = vadd.f32 %v7757_v24, %v2706_v19  ;;  %v2708_v38 = vadd.f32 %v7743_v57, %v2514_v31  ;;  %2848 = vadd.xlane.f32.xlu1 %v2847_v21  ;;  %2942 = vadd.xlane.f32.xlu0 %v2941_v51  ;;  %v6378_v57 = vld [vmem:[%s6943_s3 + $0x50] sm:$0xff] }
 0x5e2   : > { %v2518_v18 = vpop.f32.mrf.mxu0  ;;  %v2944_v1 = vadd.f32 %v2910_v48, %v2909_v5  ;;  %v2911_v15 = vmul.f32 %v7831_v61, %v7831_v61  ;;  %v6040_v48 = vld [vmem:[#allocation11 + $0x1c4] ss:$16 sps:$4 sm:$0xff]   ;;  %v6043_v47 = vld [vmem:[#allocation11 + $0x1cc] ss:$16 sps:$4 sm:$0xff]  }
 0x5e3   : > { %v2783_v11 = vadd.f32 %v7760_v35, %v2708_v38  ;;  %v2712_v26 = vadd.f32 %v7745_v62, %v2518_v18  ;;  %v2850_v32 = vadd.f32 %v7838_v28, %v7831_v61  ;;  %v7849_v29 = vadd.f32 %v6378_v57, %v2782_v2  ;;  %v6379_v62 = vld [vmem:[%s6943_s3 + $0x58] sm:$0xff]  ;;  %3669 = vmatprep.subr.bf16.mxu0 %v6040_v48 }
 0x5e4   : > { %v2520_v20 = vpop.f32.mrf.mxu0  ;;  %v2912_v27 = vmul.f32 %v7838_v28, %v7838_v28  ;;  %v6038_v38 = vld [vmem:[#allocation11 + $0x1c0] ss:$16 sps:$4 sm:$0xff]   ;;  %3782 = vmatprep.subr.bf16.mxu1 %v6043_v47 }
 0x5e5   : > { %v7856_v34 = vadd.f32 %v6379_v62, %v2783_v11  ;;  %v2784_v36 = vadd.f32 %v7757_v24, %v2712_v26  ;;  %v2714_v54 = vadd.f32 %v7747_v10, %v2520_v20  ;;  %2945 = vadd.xlane.f32.xlu1 %v2944_v1  ;;  %2851 = vadd.xlane.f32.xlu0 %v2850_v32  ;;  %v6380_v10 = vld [vmem:[%s6943_s3 + $0x60] sm:$0xff]  ;;  %v7882_v11 = vpop.f32.mrf.mxu1  ;;  %v6046_v62 = vld [vmem:[#allocation11 + $0x1a4] ss:$16 sps:$4 sm:$0xff]  }
 0x5e6   : > { %v2522_v9 = vpop.f32.mrf.mxu0  ;;  %v2947_v22 = vadd.f32 %v2912_v27, %v2911_v15  ;;  %v2913_v21 = vmul.f32 %v7849_v29, %v7849_v29  ;;  %3670 = vmatpush2.bf16.msra.mxu0 %v6038_v38  ;;  %3783 = vmatpush2.bf16.msra.mxu1 %v6041_v13  ;;  %v6050_v47 = vld [vmem:[#allocation11 + $0x180] ss:$16 sps:$4 sm:$0xff]  }
 0x5e7   : > { %v2785_v14 = vadd.f32 %v7760_v35, %v2714_v54  ;;  %v2716_v56 = vadd.f32 %v7749_v4, %v2522_v9  ;;  %v2853_v7 = vadd.f32 %v7856_v34, %v7849_v29  ;;  %v7867_v43 = vadd.f32 %v6380_v10, %v2784_v36  ;;  %v6381_v4 = vld [vmem:[%s6943_s3 + $0x68] sm:$0xff]  ;;  %v6049_v36 = vld [vmem:[#allocation11 + $0x1ac] ss:$16 sps:$4 sm:$0xff]   ;;  %3671 = vmatprep.subr.bf16.mxu0 %v6046_v62 }
 0x5e8   : > { %v2524_v19 = vpop.f32.mrf.mxu0  ;;  %v2914_v51 = vmul.f32 %v7856_v34, %v7856_v34  ;;  %3784 = vmatprep.subr.bf16.mxu1 %v6049_v36  ;;  %v6061_v62 = vld [vmem:[#allocation11 + $0x16c] ss:$16 sps:$4 sm:$0xff]  }
 0x5e9   : > { %v7874_v49 = vadd.f32 %v6381_v4, %v2785_v14  ;;  %v2786_v31 = vadd.f32 %v7757_v24, %v2716_v56  ;;  %v2718_v5 = vadd.f32 %v7754_v6, %v2524_v19  ;;  %2854 = vadd.xlane.f32.xlu1 %v2853_v7  ;;  %2948 = vadd.xlane.f32.xlu0 %v2947_v22  ;;  %v6382_v6 = vld [vmem:[%s6943_s3 + $0x70] sm:$0xff]  ;;  %v7900_v56 = vpop.f32.mrf.mxu1 }
 0x5ea   : > { %v2528_v2 = vpop.f32.mrf.mxu0  ;;  %v2950_v45 = vadd.f32 %v2914_v51, %v2913_v21  ;;  %v2915_v32 = vmul.f32 %v7867_v43, %v7867_v43  ;;  %3672 = vmatpush2.bf16.msra.mxu0 %v6044_v55  ;;  %3785 = vmatpush2.bf16.msra.mxu1 %v6047_v8  ;;  %v6059_v55 = vld [vmem:[#allocation11 + $0x168] ss:$16 sps:$4 sm:$0xff]  }
 0x5eb   : > { %v2787_v12 = vadd.f32 %v7760_v35, %v2718_v5  ;;  %v2722_v18 = vadd.f32 %v7762_v3, %v2528_v2  ;;  %v2856_v16 = vadd.f32 %v7874_v49, %v7867_v43  ;;  %v7885_v26 = vadd.f32 %v6382_v6, %v2786_v31  ;;  %v6383_v3 = vld [vmem:[%s6943_s3 + $0x78] sm:$0xff]  ;;  %v6055_v5 = vld [vmem:[#allocation11 + $0x18c] ss:$16 sps:$4 sm:$0xff]  }
 0x5ec   : > { %v2530_v1 = vpop.f32.mrf.mxu0  ;;  %v2916_v57 = vmul.f32 %v7874_v49, %v7874_v49  ;;  %v6052_v31 = vld [vmem:[#allocation11 + $0x184] ss:$16 sps:$4 sm:$0xff]   ;;  %v6053_v2 = vld [vmem:[#allocation11 + $0x188] ss:$16 sps:$4 sm:$0xff]   ;;  %3786 = vmatprep.subr.bf16.mxu1 %v6055_v5  ;;  %v6067_v5 = vld [vmem:[#allocation11 + $0x14c] ss:$16 sps:$4 sm:$0xff]  }
 0x5ed   : > { %v7892_v20 = vadd.f32 %v6383_v3, %v2787_v12  ;;  %v2788_v15 = vadd.f32 %v7757_v24, %v2722_v18  ;;  %v2724_v27 = vadd.f32 %v7766_v17, %v2530_v1  ;;  %2951 = vadd.xlane.f32.xlu1 %v2950_v45  ;;  %2857 = vadd.xlane.f32.xlu0 %v2856_v16  ;;  %v6384_v17 = vld [vmem:[%s6943_s3 + $0x80] sm:$0xff]  ;;  %v7918_v45 = vpop.f32.mrf.mxu1 }
 0x5ee   : > { %v2532_v54 = vpop.f32.mrf.mxu0  ;;  %v2953_v14 = vadd.f32 %v2916_v57, %v2915_v32  ;;  %v2917_v10 = vmul.f32 %v7885_v26, %v7885_v26  ;;  %3673 = vmatprep.subr.bf16.mxu0 %v6052_v31  ;;  %3787 = vmatpush2.bf16.msra.mxu1 %v6053_v2  ;;  %v6064_v31 = vld [vmem:[#allocation11 + $0x144] ss:$16 sps:$4 sm:$0xff]   ;;  %v6065_v2 = vld [vmem:[#allocation11 + $0x148] ss:$16 sps:$4 sm:$0xff]  }
 0x5ef   : > { %v2789_v9 = vadd.f32 %v7760_v35, %v2724_v27  ;;  %v2726_v23 = vadd.f32 %v7781_v42, %v2532_v54  ;;  %v2859_v53 = vadd.f32 %v7892_v20, %v7885_v26  ;;  %v7903_v7 = vadd.f32 %v6384_v17, %v2788_v15  ;;  %v6385_v42 = vld [vmem:[%s6943_s3 + $0x88] sm:$0xff]  ;;  %3674 = vmatpush2.bf16.msra.mxu0 %v6050_v47 }
 0x5f0   : > { %v2534_v22 = vpop.f32.mrf.mxu0  ;;  %v2918_v19 = vmul.f32 %v7892_v20, %v7892_v20  ;;  %v6058_v27 = vld [vmem:[#allocation11 + $0x164] ss:$16 sps:$4 sm:$0xff]   ;;  %v6056_v54 = vld [vmem:[#allocation11 + $0x160] ss:$16 sps:$4 sm:$0xff]   ;;  %3788 = vmatprep.subr.bf16.mxu1 %v6061_v62 }
 0x5f1   : > { %v7910_v21 = vadd.f32 %v6385_v42, %v2789_v9  ;;  %v2790_v51 = vadd.f32 %v7757_v24, %v2726_v23  ;;  %v2728_v4 = vadd.f32 %v7794_v25, %v2534_v22  ;;  %2860 = vadd.xlane.f32.xlu1 %v2859_v53  ;;  %2954 = vadd.xlane.f32.xlu0 %v2953_v14  ;;  %v6386_v25 = vld [vmem:[%s6943_s3 + $0x90] sm:$0xff]  ;;  %v2747_v14 = vpop.f32.mrf.mxu1  ;;  %v6389_v42 = vld [vmem:[%s6943_s3 + $0xa8] sm:$0xff] }
 0x5f2   : > { %v2538_v48 = vpop.f32.mrf.mxu0  ;;  %v2956_v12 = vadd.f32 %v2918_v19, %v2917_v10  ;;  %v2919_v1 = vmul.f32 %v7903_v7, %v7903_v7  ;;  %3675 = vmatprep.subr.bf16.mxu0 %v6058_v27  ;;  %3789 = vmatpush2.bf16.msra.mxu1 %v6059_v55  ;;  %v6062_v47 = vld [vmem:[#allocation11 + $0x140] ss:$16 sps:$4 sm:$0xff]   ;;  %v6070_v62 = vld [vmem:[#allocation11 + $0x124] ss:$16 sps:$4 sm:$0xff]  }
 0x5f3   : > { %v2791_v38 = vadd.f32 %v7760_v35, %v2728_v4  ;;  %v2732_v13 = vadd.f32 %v7810_v39, %v2538_v48  ;;  %v2862_v18 = vadd.f32 %v7910_v21, %v7903_v7  ;;  %v7921_v16 = vadd.f32 %v6386_v25, %v2790_v51  ;;  %v6387_v39 = vld [vmem:[%s6943_s3 + $0x98] sm:$0xff]  ;;  %3676 = vmatpush2.bf16.msra.mxu0 %v6056_v54  ;;  %v2751_v25 = vpop.f32.mrf.mxu1 }
 0x5f4   : > { %v2540_v6 = vpop.f32.mrf.mxu0  ;;  %v2920_v32 = vmul.f32 %v7910_v21, %v7910_v21  ;;  %3677 = vmatprep.subr.bf16.mxu0 %v6064_v31  ;;  %3790 = vmatprep.subr.bf16.mxu1 %v6067_v5  ;;  %v6068_v55 = vld [vmem:[#allocation11 + $0x120] ss:$16 sps:$4 sm:$0xff]  }
 0x5f5   : > { %v7928_v57 = vadd.f32 %v6387_v39, %v2791_v38  ;;  %v2792_v3 = vadd.f32 %v7757_v24, %v2732_v13  ;;  %v2734_v15 = vadd.f32 %v7828_v40, %v2540_v6  ;;  %2957 = vadd.xlane.f32.xlu1 %v2956_v12  ;;  %2863 = vadd.xlane.f32.xlu0 %v2862_v18  ;;  %v6388_v40 = vld [vmem:[%s6943_s3 + $0xa0] sm:$0xff] }
 0x5f6   : > { %v2542_v36 = vpop.f32.mrf.mxu0  ;;  %v2959_v53 = vadd.f32 %v2920_v32, %v2919_v1  ;;  %v2921_v10 = vmul.f32 %v7921_v16, %v7921_v16  ;;  %3791 = vmatpush2.bf16.msra.mxu1 %v6065_v2 }
 0x5f7   : > { %v2793_v8 = vadd.f32 %v7760_v35, %v2734_v15  ;;  %v2736_v9 = vadd.f32 %v7846_v37, %v2542_v36  ;;  %v2865_v23 = vadd.f32 %v7928_v57, %v7921_v16  ;;  %v7937_v17 = vadd.f32 %v6388_v40, %v2792_v3  ;;  %3678 = vmatpush2.bf16.msra.mxu0 %v6062_v47  ;;  %v6391_v3 = vld [vmem:[%s6943_s3 + $0xb8] sm:$0xff]  ;;  %v6073_v36 = vld [vmem:[#allocation11 + $0x12c] ss:$16 sps:$4 sm:$0xff]  }
 0x5f8   : > { %v2544_v22 = vpop.f32.mrf.mxu0  ;;  %v2922_v19 = vmul.f32 %v7928_v57, %v7928_v57  ;;  %3679 = vmatprep.subr.bf16.mxu0 %v6070_v62  ;;  %3792 = vmatprep.subr.bf16.mxu1 %v6073_v36  ;;  %v6079_v47 = vld [vmem:[#allocation11 + $0x10c] ss:$16 sps:$4 sm:$0xff]  }
 0x5f9   : > { %v7944_v37 = vadd.f32 %v6389_v42, %v2793_v8  ;;  %v2794_v51 = vadd.f32 %v7757_v24, %v2736_v9  ;;  %v2738_v4 = vadd.f32 %v7864_v30, %v2544_v22  ;;  %2866 = vadd.xlane.f32.xlu1 %v2865_v23  ;;  %2960 = vadd.xlane.f32.xlu0 %v2959_v53  ;;  %v6390_v30 = vld [vmem:[%s6943_s3 + $0xb0] sm:$0xff]  ;;  %v2753_v22 = vpop.f32.mrf.mxu1 }
 0x5fa   : > { %v2548_v48 = vpop.f32.mrf.mxu0  ;;  %v2962_v12 = vadd.f32 %v2922_v19, %v2921_v10  ;;  %v2923_v32 = vmul.f32 %v7937_v17, %v7937_v17  ;;  %v6071_v8 = vld [vmem:[#allocation11 + $0x128] ss:$16 sps:$4 sm:$0xff]  }
 0x5fb   : > { %v2795_v38 = vadd.f32 %v7760_v35, %v2738_v4  ;;  %v2742_v13 = vadd.f32 %v7882_v11, %v2548_v48  ;;  %v2868_v18 = vadd.f32 %v7944_v37, %v7937_v17  ;;  %v7953_v6 = vadd.f32 %v6390_v30, %v2794_v51  ;;  %3680 = vmatpush2.bf16.msra.mxu0 %v6068_v55  ;;  %v6393_v4 = vld [vmem:[%s6943_s3 + $0xc8] sm:$0xff] }
 0x5fc   : > { %v2550_v1 = vpop.f32.mrf.mxu0  ;;  %v2924_v39 = vmul.f32 %v7944_v37, %v7944_v37  ;;  %v6076_v48 = vld [vmem:[#allocation11 + $0x104] ss:$16 sps:$4 sm:$0xff]   ;;  %3793 = vmatpush2.bf16.msra.mxu1 %v6071_v8 }
 0x5fd   : > { %v7960_v11 = vadd.f32 %v6391_v3, %v2795_v38  ;;  %v2796_v15 = vadd.f32 %v7757_v24, %v2742_v13  ;;  %v2744_v27 = vadd.f32 %v7900_v56, %v2550_v1  ;;  %2963 = vadd.xlane.f32.xlu1 %v2962_v12  ;;  %2869 = vadd.xlane.f32.xlu0 %v2868_v18  ;;  %v6392_v56 = vld [vmem:[%s6943_s3 + $0xc0] sm:$0xff] }
 0x5fe   : > { %v2552_v54 = vpop.f32.mrf.mxu0  ;;  %v2965_v40 = vadd.f32 %v2924_v39, %v2923_v32  ;;  %v2925_v42 = vmul.f32 %v7953_v6, %v7953_v6  ;;  %v6074_v38 = vld [vmem:[#allocation11 + $0x100] ss:$16 sps:$4 sm:$0xff]   ;;  %v6077_v13 = vld [vmem:[#allocation11 + $0x108] ss:$16 sps:$4 sm:$0xff]   ;;  %3681 = vmatprep.subr.bf16.mxu0 %v6076_v48  ;;  %v2755_v32 = vpop.f32.mrf.mxu1  ;;  %3794 = vmatprep.subr.bf16.mxu1 %v6079_v47 }
 0x5ff   : > { %v2797_v9 = vadd.f32 %v7760_v35, %v2744_v27  ;;  %v2746_v23 = vadd.f32 %v7918_v45, %v2552_v54  ;;  %v2871_v53 = vadd.f32 %v7960_v11, %v7953_v6  ;;  %v7969_v10 = vadd.f32 %v6392_v56, %v2796_v15  ;;  %v6394_v39 = vld [vmem:[%s6943_s3 + $0xd0] sm:$0xff]  ;;  %3682 = vmatpush2.bf16.msra.mxu0 %v6074_v38  ;;  %v6396_v56 = vld [vmem:[%s6943_s3 + $0xe0] sm:$0xff] }
 0x600   : > { %v2554_v19 = vpop.f32.mrf.mxu0  ;;  %v2926_v51 = vmul.f32 %v7960_v11, %v7960_v11  ;;  %3795 = vmatpush2.bf16.msra.mxu1 %v6077_v13 }
 0x601   : > { %v7976_v45 = vadd.f32 %v6393_v4, %v2797_v9  ;;  %v2798_v31 = vadd.f32 %v7757_v24, %v2746_v23  ;;  %v2748_v5 = vadd.f32 %v2747_v14, %v2554_v19  ;;  %2872 = vadd.xlane.f32.xlu1 %v2871_v53  ;;  %2966 = vadd.xlane.f32.xlu0 %v2965_v40  ;;  %v2757_v40 = vpop.f32.mrf.mxu1  ;;  %v6397_v4 = vld [vmem:[%s6943_s3 + $0xe8] sm:$0xff] }
 0x602   : > { %v2558_v2 = vpop.f32.mrf.mxu0  ;;  %v2968_v30 = vadd.f32 %v2926_v51, %v2925_v42  ;;  %v2927_v15 = vmul.f32 %v7969_v10, %v7969_v10 }
 0x603   : > { %v2799_v12 = vadd.f32 %v7760_v35, %v2748_v5  ;;  %v2752_v18 = vadd.f32 %v2751_v25, %v2558_v2  ;;  %v2874_v1 = vadd.f32 %v7976_v45, %v7969_v10  ;;  %v7983_v14 = vadd.f32 %v6394_v39, %v2798_v31  ;;  %v6395_v25 = vld [vmem:[%s6943_s3 + $0xd8] sm:$0xff] }
 0x604   : > { %v2560_v3 = vpop.f32.mrf.mxu0  ;;  %v2928_v27 = vmul.f32 %v7976_v45, %v7976_v45 }
 0x605   : > { %v7990_v62 = vadd.f32 %v6395_v25, %v2799_v12  ;;  %v2800_v36 = vadd.f32 %v7757_v24, %v2752_v18  ;;  %v2754_v54 = vadd.f32 %v2753_v22, %v2560_v3  ;;  %2969 = vadd.xlane.f32.xlu1 %v2968_v30  ;;  %2875 = vadd.xlane.f32.xlu0 %v2874_v1  ;;  %v6398_v12 = vld [vmem:[%s6943_s3 + $0xf0] sm:$0xff]  ;;  %v6399_v30 = vld [vmem:[%s6943_s3 + $0xf8] sm:$0xff] }
 0x606   : > { %v2562_v55 = vpop.f32.mrf.mxu0  ;;  %v2971_v23 = vadd.f32 %v2928_v27, %v2927_v15  ;;  %v2929_v22 = vmul.f32 %v7983_v14, %v7983_v14  ;;  %v6082_v27 = vld [vmem:[#allocation13 + $0x74] ss:$8 sps:$4 sm:$0xff]  }
 0x607   : > { %v2801_v8 = vadd.f32 %v7760_v35, %v2754_v54  ;;  %v2756_v9 = vadd.f32 %v2755_v32, %v2562_v55  ;;  %v2877_v53 = vadd.f32 %v7990_v62, %v7983_v14  ;;  %v7997_v19 = vadd.f32 %v6396_v56, %v2800_v36  ;;  %v6085_v25 = vld [vmem:[#allocation13 + $0x174] ss:$8 sps:$4 sm:$0xff]   ;;  %4369 = vmatprep.subr.bf16.mxu0 %v6082_v27 }
 0x608   : > { %v2564_v42 = vpop.f32.mrf.mxu0  ;;  %v2930_v51 = vmul.f32 %v7990_v62, %v7990_v62  ;;  %4482 = vmatprep.subr.bf16.mxu1 %v6085_v25 }
 0x609   : > { %v8004_v31 = vadd.f32 %v6397_v4, %v2801_v8  ;;  %v2802_v5 = vadd.f32 %v7757_v24, %v2756_v9  ;;  %v2758_v48 = vadd.f32 %v2757_v40, %v2564_v42  ;;  %2972 = vadd.xlane.f32.xlu0 %v2971_v23  ;;  %2878 = vadd.xlane.f32.xlu1 %v2877_v53 }
 0x60a   : > { %v2974_v2 = vadd.f32 %v2930_v51, %v2929_v22  ;;  %v2931_v24 = vmul.f32 %v7997_v19, %v7997_v19 }
 0x60b   : > { %v2803_v47 = vadd.f32 %v7760_v35, %v2758_v48  ;;  %v2880_v38 = vadd.f32 %v8004_v31, %v7997_v19  ;;  %v2932_v13 = vmul.f32 %v8004_v31, %v8004_v31  ;;  %v8013_v18 = vadd.f32 %v6398_v12, %v2802_v5 }
 0x60d   : > { %v8016_v1 = vadd.f32 %v6399_v30, %v2803_v47  ;;  %2975 = vadd.xlane.f32.xlu1 %v2974_v2  ;;  %2881 = vadd.xlane.f32.xlu0 %v2880_v38  ;;  %v2977_v32 = vadd.f32 %v2932_v13, %v2931_v24  ;;  %v2933_v3 = vmul.f32 %v8013_v18, %v8013_v18 }
 0x60f   : > { %v2883_v35 = vadd.f32 %v8016_v1, %v8013_v18  ;;  %v2934_v39 = vmul.f32 %v8016_v1, %v8016_v1 }
 0x611   : > { %2978 = vadd.xlane.f32.xlu0 %v2977_v32  ;;  %2884 = vadd.xlane.f32.xlu1 %v2883_v35  ;;  %v2980_v15 = vadd.f32 %v2934_v39, %v2933_v3 }
 0x615   : > { %2981 = vadd.xlane.f32.xlu1 %v2980_v15 }
 0x65e   : > { %v2840_v36 = vpop.xlane.xlu0 %2839 }
 0x65f   : > { %v2887_v54 = vmul.f32 0.00390625, %v2840_v36 }
 0x661   : > { %v2999_v23 = vmul.f32 %v2887_v54, %v2887_v54 }
 0x662   : > { %v2843_v55 = vpop.xlane.xlu1 %2842  ;;  %v2937_v8 = vpop.xlane.xlu0 %2936 }
 0x663   : > { %v8026_v9 = vmul.f32 0.00390625, %v2843_v55  ;;  %v2983_v53 = vmul.f32 0.00390625, %v2937_v8 }
 0x665   : > { %v3015_v40 = vsub.f32 %v2983_v53, %v2999_v23  ;;  %v3000_v51 = vmul.f32 %v8026_v9, %v8026_v9 }
 0x666   : > { %v2940_v56 = vpop.xlane.xlu1 %2939  ;;  %v2846_v42 = vpop.xlane.xlu0 %2845 }
 0x667   : > { %v3031_v22 = vmax.f32 %v3015_v40, 0.0  ;;  %v2984_v4 = vmul.f32 0.00390625, %v2940_v56  ;;  %v8030_v5 = vmul.f32 0.00390625, %v2846_v42 }
 0x669   : > { %v3079_v48 = vadd.f32 1e-05, %v3031_v22  ;;  %v3016_v47 = vsub.f32 %v2984_v4, %v3000_v51  ;;  %v3001_v38 = vmul.f32 %v8030_v5, %v8030_v5  ;;  %v2836_v51 = vld [vmem:[%s8945_s6] sm:$0x3] }
 0x66a   : > { %v2849_v2 = vpop.xlane.xlu1 %2848  ;;  %v2943_v13 = vpop.xlane.xlu0 %2942 }
 0x66b   : > { %6304 = vrsqrt.f32 %v3079_v48  ;;  %v3032_v12 = vmax.f32 %v3016_v47, 0.0  ;;  %v8034_v30 = vmul.f32 0.00390625, %v2849_v2  ;;  %v2985_v24 = vmul.f32 0.00390625, %v2943_v13 }
 0x66c   : > { %v3047_v47 = vsub.f32 %v7769_v33, %v2887_v54 }
 0x66d   : > { %v3080_v32 = vadd.f32 1e-05, %v3032_v12  ;;  %v3017_v35 = vsub.f32 %v2985_v24, %v3001_v38  ;;  %v3002_v39 = vmul.f32 %v8034_v30, %v8034_v30 }
 0x66e   : > { %v2946_v3 = vpop.xlane.xlu1 %2945  ;;  %v2852_v15 = vpop.xlane.xlu0 %2851 }
 0x66f   : > { %6306 = vrsqrt.f32 %v3080_v32  ;;  %v3033_v27 = vmax.f32 %v3017_v35, 0.0  ;;  %v2986_v25 = vmul.f32 0.00390625, %v2946_v3  ;;  %v8038_v36 = vmul.f32 0.00390625, %v2852_v15  ;;  %v2837_v32 = vld [vmem:[%s8946_s7] sm:$0x3] }
 0x670   : > { %v8055_v3 = vrot.slane %v2836_v51, %v7099_v41 }
 0x671   : > { %v3081_v55 = vadd.f32 1e-05, %v3033_v27  ;;  %v3018_v8 = vsub.f32 %v2986_v25, %v3002_v39  ;;  %v3003_v53 = vmul.f32 %v8038_v36, %v8038_v36  ;;  %v3048_v39 = vsub.f32 %v7772_v63, %v2887_v54 }
 0x672   : > { %v2855_v23 = vpop.xlane.xlu1 %2854  ;;  %v2949_v40 = vpop.xlane.xlu0 %2948  ;;  %v3049_v63 = vsub.f32 %v7779_v50, %v8026_v9 }
 0x673   : > { %6308 = vrsqrt.f32 %v3081_v55  ;;  %v3034_v56 = vmax.f32 %v3018_v8, 0.0  ;;  %v8042_v42 = vmul.f32 0.00390625, %v2855_v23  ;;  %v2987_v22 = vmul.f32 0.00390625, %v2949_v40 }
 0x674   : > { %v8060_v55 = vrot.slane %v2836_v51, %v7106_v44  ;;  %v8063_v40 = vrot.slane %v2837_v32, %v7099_v41  ;;  %v3050_v51 = vsub.f32 %v7786_v60, %v8026_v9 }
 0x675   : > { %v3082_v4 = vadd.f32 1e-05, %v3034_v56  ;;  %v3019_v48 = vsub.f32 %v2987_v22, %v3003_v53  ;;  %v3004_v12 = vmul.f32 %v8042_v42, %v8042_v42  ;;  %v8070_v22 = vrot.slane %v2837_v32, %v7106_v44 }
 0x676   : > { %v2952_v2 = vpop.xlane.xlu1 %2951  ;;  %v2858_v38 = vpop.xlane.xlu0 %2857 }
 0x677   : > { %6310 = vrsqrt.f32 %v3082_v4  ;;  %v3035_v13 = vmax.f32 %v3019_v48, 0.0  ;;  %v2988_v24 = vmul.f32 0.00390625, %v2952_v2  ;;  %v8057_v15 = vmul.f32 0.00390625, %v2858_v38 }
 0x678   : > { %v6305_v35 = vpop.eup %6304 }
 0x679   : > { %v3111_v33 = vmul.f32 %v6305_v35, %v3047_v47  ;;  %v3083_v27 = vadd.f32 1e-05, %v3035_v13  ;;  %v3020_v25 = vsub.f32 %v2988_v24, %v3004_v12  ;;  %v3112_v53 = vmul.f32 %v6305_v35, %v3048_v39 }
 0x67a   : > { %v2861_v8 = vpop.xlane.xlu1 %2860  ;;  %v2955_v23 = vpop.xlane.xlu0 %2954  ;;  %v3005_v48 = vmul.f32 %v8057_v15, %v8057_v15  ;;  %v3051_v12 = vsub.f32 %v7797_v0, %v8030_v5  ;;  %v3053_v0 = vsub.f32 %v7813_v58, %v8034_v30 }
 0x67b   : > { %v3036_v54 = vmax.f32 %v3020_v25, 0.0  ;;  %v8067_v56 = vmul.f32 0.00390625, %v2861_v8  ;;  %6312 = vrsqrt.f32 %v3083_v27  ;;  %v2989_v47 = vmul.f32 0.00390625, %v2955_v23 }
 0x67c   : > { %v6307_v4 = vpop.eup %6306  ;;  %v3154_v2 = vmul.f32 %v8055_v3, %v3111_v33  ;;  %v3155_v50 = vmul.f32 %v8060_v55, %v3112_v53  ;;  %v3052_v8 = vsub.f32 %v7804_v46, %v8030_v5 }
 0x67d   : > { %v3113_v38 = vmul.f32 %v6307_v4, %v3049_v63  ;;  %v3084_v13 = vadd.f32 1e-05, %v3036_v54  ;;  %v3021_v24 = vsub.f32 %v2989_v47, %v3005_v48  ;;  %v3006_v32 = vmul.f32 %v8067_v56, %v8067_v56 }
 0x67e   : > { %v2958_v35 = vpop.xlane.xlu1 %2957  ;;  %v2864_v60 = vpop.xlane.xlu0 %2863  ;;  %v3114_v9 = vmul.f32 %v6307_v4, %v3050_v51  ;;  %v3054_v63 = vsub.f32 %v7820_v52, %v8034_v30  ;;  %v8093_v4 = vadd.f32 %v8070_v22, %v3155_v50  ;;  %v8096_v51 = vadd.f32 %v8063_v40, %v3154_v2 }
 0x67f   : > { %v3156_v39 = vmul.f32 %v8055_v3, %v3113_v38  ;;  %6314 = vrsqrt.f32 %v3084_v13  ;;  %v2990_v27 = vmul.f32 0.00390625, %v2958_v35  ;;  %v8083_v25 = vmul.f32 0.00390625, %v2864_v60  ;;  %v6080_v60 = vld [vmem:[#allocation13 + $0x70] ss:$8 sps:$4 sm:$0xff]  }
 0x680   : > { %v6309_v33 = vpop.eup %6308  ;;  %v3037_v23 = vmax.f32 %v3021_v24, 0.0  ;;  %v3157_v53 = vmul.f32 %v8060_v55, %v3114_v9  ;;  %v6083_v9 = vld [vmem:[#allocation13 + $0x170] ss:$8 sps:$4 sm:$0xff]  }
 0x681   : > { %v3022_v54 = vsub.f32 %v2990_v27, %v3006_v32  ;;  %v8102_v58 = vadd.f32 %v8063_v40, %v3156_v39  ;;  %v3116_v5 = vmul.f32 %v6309_v33, %v3052_v8  ;;  %v3007_v52 = vmul.f32 %v8083_v25, %v8083_v25 }
 0x682   : > { %v3085_v48 = vadd.f32 1e-05, %v3037_v23  ;;  %v2867_v47 = vpop.xlane.xlu1 %2866  ;;  %v2961_v38 = vpop.xlane.xlu0 %2960  ;;  %v8099_v46 = vadd.f32 %v8070_v22, %v3157_v53  ;;  %v3115_v35 = vmul.f32 %v6309_v33, %v3051_v12  ;;  %v3055_v39 = vsub.f32 %v7831_v61, %v8038_v36  ;;  %v6088_v53 = vld [vmem:[#allocation13 + $0x64] ss:$8 sps:$4 sm:$0xff]  }
 0x683   : > { %9016 = vst [vmem:[#allocation21_spill] sm:$0xff] %v8102_v58  ;;  %v3038_v13 = vmax.f32 %v3022_v54, 0.0  ;;  %v8104_v24 = vmul.f32 0.00390625, %v2867_v47  ;;  %v2991_v30 = vmul.f32 0.00390625, %v2961_v38  ;;  %v3229_v32 = vpack.c.bf16 %v8102_v58, %v8096_v51  ;;  %v6091_v54 = vld [vmem:[#allocation13 + $0x164] ss:$8 sps:$4 sm:$0xff]  }
 0x684   : > { %9015 = vst [vmem:[#allocation20_spill] sm:$0xff] %v8099_v46  ;;  %v6311_v50 = vpop.eup %6310  ;;  %6316 = vrsqrt.f32 %v3085_v48  ;;  %v3230_v2 = vpack.c.bf16 %v8099_v46, %v8093_v4  ;;  %v3056_v27 = vsub.f32 %v7838_v28, %v8038_v36  ;;  %v3159_v33 = vmul.f32 %v8060_v55, %v3116_v5 }
 0x685   : > { %v3086_v8 = vadd.f32 1e-05, %v3038_v13  ;;  %v3023_v23 = vsub.f32 %v2991_v30, %v3007_v52  ;;  %v3008_v48 = vmul.f32 %v8104_v24, %v8104_v24  ;;  %v3118_v12 = vmul.f32 %v6311_v50, %v3054_v63  ;;  %v6086_v52 = vld [vmem:[#allocation13 + $0x60] ss:$8 sps:$4 sm:$0xff]  }
 0x686   : > { %3683 = vmatprep.mubr.bf16.mxu0 %v3230_v2  ;;  %3796 = vmatprep.mubr.bf16.mxu1 %v3230_v2  ;;  %v2964_v47 = vpop.xlane.xlu1 %2963  ;;  %v2870_v38 = vpop.xlane.xlu0 %2869  ;;  %v3117_v36 = vmul.f32 %v6311_v50, %v3053_v0  ;;  %v3158_v13 = vmul.f32 %v8055_v3, %v3115_v35  ;;  %v3057_v63 = vsub.f32 %v7849_v29, %v8042_v42 }
 0x687   : > { %6318 = vrsqrt.f32 %v3086_v8  ;;  %v3039_v46 = vmax.f32 %v3023_v23, 0.0  ;;  %v2992_v61 = vmul.f32 0.00390625, %v2964_v47  ;;  %3797 = vmatmul.mubr.bf16.vlgmr.msra.gmra.mxu1 %v3229_v32  ;;  %v8119_v58 = vmul.f32 0.00390625, %v2870_v38  ;;  %3684 = vmatmul.mubr.bf16.vlgmr.msra.gmra.mxu0 %v3229_v32  ;;  %v6089_v23 = vld [vmem:[#allocation13 + $0x160] ss:$8 sps:$4 sm:$0xff]  }
 0x688   : > { %v3161_v28 = vmul.f32 %v8060_v55, %v3118_v12  ;;  %4370 = vmatpush1.bf16.msra.mxu0 %v6080_v60  ;;  %4483 = vmatpush1.bf16.msra.mxu1 %v6083_v9  ;;  %v6313_v30 = vpop.eup %6312  ;;  %v3058_v5 = vsub.f32 %v7856_v34, %v8042_v42  ;;  %v6094_v32 = vld [vmem:[#allocation13 + $0x54] ss:$8 sps:$4 sm:$0xff]   ;;  %v8130_v35 = vadd.f32 %v8070_v22, %v3159_v33 }
 0x689   : > { %v3087_v2 = vadd.f32 1e-05, %v3039_v46  ;;  %v3024_v8 = vsub.f32 %v2992_v61, %v3008_v48  ;;  %4371 = vmatprep.subr.bf16.mxu0 %v6088_v53  ;;  %4484 = vmatprep.subr.bf16.mxu1 %v6091_v54  ;;  %v3009_v0 = vmul.f32 %v8119_v58, %v8119_v58  ;;  %v3160_v29 = vmul.f32 %v8055_v3, %v3117_v36  ;;  %v6097_v53 = vld [vmem:[#allocation13 + $0x154] ss:$8 sps:$4 sm:$0xff]  }
 0x68a   : > { %v2873_v47 = vpop.xlane.xlu1 %2872  ;;  %v2967_v50 = vpop.xlane.xlu0 %2966  ;;  %v8133_v60 = vadd.f32 %v8070_v22, %v3161_v28  ;;  %v8139_v9 = vadd.f32 %v8063_v40, %v3158_v13  ;;  %v3120_v12 = vmul.f32 %v6313_v30, %v3056_v27  ;;  %v3119_v36 = vmul.f32 %v6313_v30, %v3055_v39  ;;  %v6092_v13 = vld [vmem:[#allocation13 + $0x50] ss:$8 sps:$4 sm:$0xff]   ;;  %v6103_v30 = vld [vmem:[#allocation13 + $0x144] ss:$8 sps:$4 sm:$0xff]  }
 0x68b   : > { %v3040_v34 = vmax.f32 %v3024_v8, 0.0  ;;  %v8136_v42 = vmul.f32 0.00390625, %v2873_v47  ;;  %v2993_v46 = vmul.f32 0.00390625, %v2967_v50  ;;  %6320 = vrsqrt.f32 %v3087_v2  ;;  %v6095_v8 = vld [vmem:[#allocation13 + $0x150] ss:$8 sps:$4 sm:$0xff]  }
 0x68c   : > { %9017 = vst [vmem:[#allocation22_spill] sm:$0xff] %v8133_v60  ;;  %v6315_v54 = vpop.eup %6314  ;;  %v3232_v48 = vpack.c.bf16 %v8133_v60, %v8130_v35  ;;  %v8144_v38 = vadd.f32 %v8063_v40, %v3160_v29  ;;  %4372 = vmatpush1.bf16.msra.mxu0 %v6086_v52  ;;  %4485 = vmatpush1.bf16.msra.mxu1 %v6089_v23  ;;  %v6100_v29 = vld [vmem:[#allocation13 + $0x44] ss:$8 sps:$4 sm:$0xff]  }
 0x68d   : > { %v3088_v61 = vadd.f32 1e-05, %v3040_v34  ;;  %v3025_v28 = vsub.f32 %v2993_v46, %v3009_v0  ;;  %4373 = vmatprep.subr.bf16.mxu0 %v6094_v32  ;;  %v3010_v2 = vmul.f32 %v8136_v42, %v8136_v42  ;;  %v3122_v50 = vmul.f32 %v6315_v54, %v3058_v5  ;;  %4486 = vmatprep.subr.bf16.mxu1 %v6097_v53  ;;  %v6098_v53 = vld [vmem:[#allocation13 + $0x40] ss:$8 sps:$4 sm:$0xff]  }
 0x68e   : > { %3693 = vmatprep.mubr.bf16.mxu0 %v3232_v48  ;;  %3806 = vmatprep.mubr.bf16.mxu1 %v3232_v48  ;;  %v2970_v47 = vpop.xlane.xlu1 %2969  ;;  %v3231_v27 = vpack.c.bf16 %v8144_v38, %v8139_v9  ;;  %v2876_v52 = vpop.xlane.xlu0 %2875  ;;  %v3163_v23 = vmul.f32 %v8060_v55, %v3120_v12  ;;  %v3121_v46 = vmul.f32 %v6315_v54, %v3057_v63 }
 0x68f   : > { %6322 = vrsqrt.f32 %v3088_v61  ;;  %v3041_v34 = vmax.f32 %v3025_v28, 0.0  ;;  %v2994_v0 = vmul.f32 0.00390625, %v2970_v47  ;;  %v8152_v39 = vmul.f32 0.00390625, %v2876_v52  ;;  %v6101_v47 = vld [vmem:[#allocation13 + $0x140] ss:$8 sps:$4 sm:$0xff]  }
 0x690   : > { %3694 = vmatmul.mubr.bf16.gmra.mxu0 %v3231_v27  ;;  %3807 = vmatmul.mubr.bf16.gmra.mxu1 %v3231_v27  ;;  %v3165_v32 = vmul.f32 %v8060_v55, %v3122_v50  ;;  %v3060_v33 = vsub.f32 %v7874_v49, %v8057_v15  ;;  %v8163_v63 = vadd.f32 %v8070_v22, %v3163_v23  ;;  %v6106_v50 = vld [vmem:[#allocation13 + $0x34] ss:$8 sps:$4 sm:$0xff]  }
 0x691   : > { %v6317_v48 = vpop.eup %6316  ;;  %v3089_v61 = vadd.f32 1e-05, %v3041_v34  ;;  %v3026_v28 = vsub.f32 %v2994_v0, %v3010_v2  ;;  %4374 = vmatpush1.bf16.msra.mxu0 %v6092_v13  ;;  %4487 = vmatpush1.bf16.msra.mxu1 %v6095_v8  ;;  %v3011_v27 = vmul.f32 %v8152_v39, %v8152_v39  ;;  %v3162_v49 = vmul.f32 %v8055_v3, %v3119_v36  ;;  %v6109_v34 = vld [vmem:[#allocation13 + $0x134] ss:$8 sps:$4 sm:$0xff]  }
 0x692   : > { %v2973_v12 = vpop.xlane.xlu0 %2972  ;;  %v2879_v52 = vpop.xlane.xlu1 %2878  ;;  %9018 = vst [vmem:[#allocation23_spill] sm:$0xff] %v8163_v63  ;;  %v8166_v54 = vadd.f32 %v8070_v22, %v3165_v32  ;;  %4375 = vmatprep.subr.bf16.mxu0 %v6100_v29  ;;  %4488 = vmatprep.subr.bf16.mxu1 %v6103_v30  ;;  %v3062_v5 = vsub.f32 %v7892_v20, %v8067_v56  ;;  %v6104_v30 = vld [vmem:[#allocation13 + $0x30] ss:$8 sps:$4 sm:$0xff]  }
 0x693   : > { %6324 = vrsqrt.f32 %v3089_v61  ;;  %v3042_v13 = vmax.f32 %v3026_v28, 0.0  ;;  %v2995_v8 = vmul.f32 0.00390625, %v2973_v12  ;;  %v8169_v2 = vmul.f32 0.00390625, %v2879_v52  ;;  %v6107_v12 = vld [vmem:[#allocation13 + $0x130] ss:$8 sps:$4 sm:$0xff]  }
 0x694   : > { %9019 = vst [vmem:[#allocation24_spill] sm:$0xff] %v8166_v54  ;;  %v6319_v0 = vpop.eup %6318  ;;  %v3234_v23 = vpack.c.bf16 %v8166_v54, %v8163_v63  ;;  %v3164_v32 = vmul.f32 %v8055_v3, %v3121_v46  ;;  %v3124_v60 = vmul.f32 %v6317_v48, %v3060_v33  ;;  %v8179_v28 = vadd.f32 %v8063_v40, %v3162_v49 }
 0x695   : > { %v3090_v29 = vadd.f32 1e-05, %v3042_v13  ;;  %v3027_v61 = vsub.f32 %v2995_v8, %v3011_v27  ;;  %4376 = vmatpush1.bf16.msra.mxu0 %v6098_v53  ;;  %4489 = vmatpush1.bf16.msra.mxu1 %v6101_v47  ;;  %v3012_v33 = vmul.f32 %v8169_v2, %v8169_v2  ;;  %v3126_v36 = vmul.f32 %v6319_v0, %v3062_v5  ;;  %v6112_v13 = vld [vmem:[#allocation13 + $0x24] ss:$8 sps:$4 sm:$0xff]  }
 0x696   : > { %3703 = vmatprep.mubr.bf16.mxu0 %v3234_v23  ;;  %3816 = vmatprep.mubr.bf16.mxu1 %v3234_v23  ;;  %v8182_v20 = vadd.f32 %v8063_v40, %v3164_v32  ;;  %v2976_v46 = vpop.xlane.xlu1 %2975  ;;  %v2882_v52 = vpop.xlane.xlu0 %2881  ;;  %v6115_v53 = vld [vmem:[#allocation13 + $0x124] ss:$8 sps:$4 sm:$0xff]   ;;  %v3167_v23 = vmul.f32 %v8060_v55, %v3124_v60  ;;  %v9020_v54 = vsub.f32 %v7867_v43, %v8057_v15 }
 0x697   : > { %6326 = vrsqrt.f32 %v3090_v29  ;;  %v3043_v27 = vmax.f32 %v3027_v61, 0.0  ;;  %v2996_v49 = vmul.f32 0.00390625, %v2976_v46  ;;  %v8186_v8 = vmul.f32 0.00390625, %v2882_v52  ;;  %4377 = vmatprep.subr.bf16.mxu0 %v6106_v50  ;;  %4490 = vmatprep.subr.bf16.mxu1 %v6109_v34  ;;  %v6110_v46 = vld [vmem:[#allocation13 + $0x20] ss:$8 sps:$4 sm:$0xff]  }
 0x698   : > { %v3233_v47 = vpack.c.bf16 %v8182_v20, %v8179_v28  ;;  %v3169_v32 = vmul.f32 %v8060_v55, %v3126_v36  ;;  %v3123_v5 = vmul.f32 %v6317_v48, %v9020_v54  ;;  %v6321_v63 = vpop.eup %6320  ;;  %v3064_v29 = vsub.f32 %v7910_v21, %v8083_v25  ;;  %v6113_v52 = vld [vmem:[#allocation13 + $0x120] ss:$8 sps:$4 sm:$0xff]  }
 0x699   : > { %v3065_v50 = vsub.f32 %v7921_v16, %v8104_v24  ;;  %v3091_v34 = vadd.f32 1e-05, %v3043_v27  ;;  %v3028_v61 = vsub.f32 %v2996_v49, %v3012_v33  ;;  %4378 = vmatpush1.bf16.msra.mxu0 %v6104_v30  ;;  %4491 = vmatpush1.bf16.msra.mxu1 %v6107_v12  ;;  %v3013_v60 = vmul.f32 %v8186_v8, %v8186_v8  ;;  %v6118_v16 = vld [vmem:[#allocation13 + $0x14] ss:$8 sps:$4 sm:$0xff]  }
 0x69a   : > { %3704 = vmatmul.mubr.bf16.gmra.mxu0 %v3233_v47  ;;  %3817 = vmatmul.mubr.bf16.gmra.mxu1 %v3233_v47  ;;  %v2979_v43 = vpop.xlane.xlu0 %2978  ;;  %v2885_v15 = vpop.xlane.xlu1 %2884  ;;  %v8202_v48 = vadd.f32 %v8070_v22, %v3167_v23  ;;  %v8205_v21 = vadd.f32 %v8070_v22, %v3169_v32  ;;  %v6121_v12 = vld [vmem:[#allocation13 + $0x114] ss:$8 sps:$4 sm:$0xff]   ;;  %v9021_v49 = vsub.f32 %v7885_v26, %v8067_v56 }
 0x69b   : > { %6328 = vrsqrt.f32 %v3091_v34  ;;  %v3044_v54 = vmax.f32 %v3028_v61, 0.0  ;;  %v2997_v36 = vmul.f32 0.00390625, %v2979_v43  ;;  %v8207_v30 = vmul.f32 0.00390625, %v2885_v15  ;;  %4379 = vmatprep.subr.bf16.mxu0 %v6112_v13  ;;  %4492 = vmatprep.subr.bf16.mxu1 %v6115_v53  ;;  %v6116_v43 = vld [vmem:[#allocation13 + $0x10] ss:$8 sps:$4 sm:$0xff]  }
 0x69c   : > { %v6323_v33 = vpop.eup %6322  ;;  %v3236_v27 = vpack.c.bf16 %v8205_v21, %v8202_v48  ;;  %v3125_v47 = vmul.f32 %v6319_v0, %v9021_v49  ;;  %v3166_v23 = vmul.f32 %v8055_v3, %v3123_v5  ;;  %v3128_v32 = vmul.f32 %v6321_v63, %v3064_v29  ;;  %v6119_v15 = vld [vmem:[#allocation13 + $0x110] ss:$8 sps:$4 sm:$0xff]  }
 0x69d   : > { %v3066_v34 = vsub.f32 %v7928_v57, %v8104_v24  ;;  %v3068_v61 = vsub.f32 %v7944_v37, %v8119_v58  ;;  %v3092_v13 = vadd.f32 1e-05, %v3044_v54  ;;  %v3029_v53 = vsub.f32 %v2997_v36, %v3013_v60  ;;  %4380 = vmatpush1.bf16.msra.mxu0 %v6110_v46  ;;  %4493 = vmatpush1.bf16.msra.mxu1 %v6113_v52  ;;  %v6124_v24 = vld [vmem:[#allocation13 + $0x4] ss:$8 sps:$4 sm:$0xff]  }
 0x69e   : > { %3713 = vmatprep.mubr.bf16.mxu0 %v3236_v27  ;;  %3826 = vmatprep.mubr.bf16.mxu1 %v3236_v27  ;;  %v3168_v26 = vmul.f32 %v8055_v3, %v3125_v47  ;;  %v8221_v56 = vadd.f32 %v8063_v40, %v3166_v23  ;;  %v3014_v0 = vmul.f32 %v8207_v30, %v8207_v30  ;;  %v2982_v57 = vpop.xlane.xlu1 %2981  ;;  %v6127_v46 = vld [vmem:[#allocation13 + $0x104] ss:$8 sps:$4 sm:$0xff]  }
 0x69f   : > { %6330 = vrsqrt.f32 %v3092_v13  ;;  %v3045_v37 = vmax.f32 %v3029_v53, 0.0  ;;  %v2998_v5 = vmul.f32 0.00390625, %v2982_v57  ;;  %v3130_v29 = vmul.f32 %v6323_v33, %v3066_v34  ;;  %4381 = vmatprep.subr.bf16.mxu0 %v6118_v16  ;;  %4494 = vmatprep.subr.bf16.mxu1 %v6121_v12  ;;  %v6122_v16 = vld [vmem:[#allocation13] ss:$8 sps:$4 sm:$0xff]  }
 0x6a0   : > { %v6325_v52 = vpop.eup %6324  ;;  %v8226_v60 = vadd.f32 %v8063_v40, %v3168_v26  ;;  %v3171_v54 = vmul.f32 %v8060_v55, %v3128_v32  ;;  %v9022_v36 = vsub.f32 %v7903_v7, %v8083_v25  ;;  %v3129_v49 = vmul.f32 %v6323_v33, %v3065_v50  ;;  %v6125_v12 = vld [vmem:[#allocation13 + $0x100] ss:$8 sps:$4 sm:$0xff]   ;;  %v6130_v25 = vld [vmem:[#allocation13 + $0xf4] ss:$8 sps:$4 sm:$0xff]  }
 0x6a1   : > { %v3093_v47 = vadd.f32 1e-05, %v3045_v37  ;;  %v3030_v23 = vsub.f32 %v2998_v5, %v3014_v0  ;;  %v3173_v13 = vmul.f32 %v8060_v55, %v3130_v29  ;;  %v3132_v53 = vmul.f32 %v6325_v52, %v3068_v61  ;;  %4382 = vmatpush1.bf16.msra.mxu0 %v6116_v43  ;;  %4495 = vmatpush1.bf16.msra.mxu1 %v6119_v15  ;;  %v6128_v29 = vld [vmem:[#allocation13 + $0xf0] ss:$8 sps:$4 sm:$0xff]  }
 0x6a2   : > { %v3127_v27 = vmul.f32 %v6321_v63, %v9022_v36  ;;  %v3070_v34 = vsub.f32 %v7960_v11, %v8136_v42  ;;  %v3235_v32 = vpack.c.bf16 %v8226_v60, %v8221_v56  ;;  %v3172_v7 = vmul.f32 %v8055_v3, %v3129_v49  ;;  %4383 = vmatprep.subr.bf16.mxu0 %v6124_v24  ;;  %v6133_v63 = vld [vmem:[#allocation13 + $0x1f4] ss:$8 sps:$4 sm:$0xff]  }
 0x6a3   : > { %6332 = vrsqrt.f32 %v3093_v47  ;;  %v3046_v50 = vmax.f32 %v3030_v23, 0.0  ;;  %v8240_v33 = vadd.f32 %v8070_v22, %v3171_v54  ;;  %v8243_v61 = vadd.f32 %v8070_v22, %v3173_v13  ;;  %4496 = vmatprep.subr.bf16.mxu1 %v6127_v46  ;;  %v6131_v46 = vld [vmem:[#allocation13 + $0x1f0] ss:$8 sps:$4 sm:$0xff]   ;;  %v6139_v54 = vld [vmem:[#allocation13 + $0x1e4] ss:$8 sps:$4 sm:$0xff]  }
 0x6a4   : > { %v3170_v26 = vmul.f32 %v8055_v3, %v3127_v27  ;;  %v6327_v11 = vpop.eup %6326  ;;  %v3067_v43 = vsub.f32 %v7937_v17, %v8119_v58  ;;  %v3069_v15 = vsub.f32 %v7953_v6, %v8136_v42  ;;  %3714 = vmatmul.mubr.bf16.gmra.mxu0 %v3235_v32  ;;  %3827 = vmatmul.mubr.bf16.gmra.mxu1 %v3235_v32  ;;  %v6136_v42 = vld [vmem:[#allocation13 + $0xe4] ss:$8 sps:$4 sm:$0xff]  }
 0x6a5   : > { %v8250_v0 = vadd.f32 %v8063_v40, %v3172_v7  ;;  %v3094_v57 = vadd.f32 1e-05, %v3046_v50  ;;  %v3238_v24 = vpack.c.bf16 %v8243_v61, %v8240_v33  ;;  %v3134_v37 = vmul.f32 %v6327_v11, %v3070_v34  ;;  %4384 = vmatpush1.bf16.msra.mxu0 %v6122_v16  ;;  %4497 = vmatpush1.bf16.msra.mxu1 %v6125_v12  ;;  %v6134_v16 = vld [vmem:[#allocation13 + $0xe0] ss:$8 sps:$4 sm:$0xff]   ;;  %v6142_v7 = vld [vmem:[#allocation13 + $0xd4] ss:$8 sps:$4 sm:$0xff]  }
 0x6a6   : > { %v3175_v5 = vmul.f32 %v8060_v55, %v3132_v53  ;;  %v8256_v17 = vadd.f32 %v8063_v40, %v3170_v26  ;;  %v3131_v6 = vmul.f32 %v6325_v52, %v3067_v43  ;;  %v3133_v58 = vmul.f32 %v6327_v11, %v3069_v15  ;;  %4385 = vmatprep.subr.bf16.mxu0 %v6130_v25  ;;  %v6137_v12 = vld [vmem:[#allocation13 + $0x1e0] ss:$8 sps:$4 sm:$0xff]   ;;  %v6145_v25 = vld [vmem:[#allocation13 + $0x1d4] ss:$8 sps:$4 sm:$0xff]  }
 0x6a7   : > { %4498 = vmatprep.subr.bf16.mxu1 %v6133_v63  ;;  %v3072_v36 = vsub.f32 %v7976_v45, %v8152_v39  ;;  %6334 = vrsqrt.f32 %v3094_v57  ;;  %3723 = vmatprep.mubr.bf16.mxu0 %v3238_v24  ;;  %v3177_v27 = vmul.f32 %v8060_v55, %v3134_v37  ;;  %v3073_v34 = vsub.f32 %v7983_v14, %v8169_v2  ;;  %v6140_v57 = vld [vmem:[#allocation13 + $0xd0] ss:$8 sps:$4 sm:$0xff]   ;;  %v6148_v37 = vld [vmem:[#allocation13 + $0xc4] ss:$8 sps:$4 sm:$0xff]  }
 0x6a8   : > { %3836 = vmatprep.mubr.bf16.mxu1 %v3238_v24  ;;  %v6329_v49 = vpop.eup %6328  ;;  %v3237_v47 = vpack.c.bf16 %v8250_v0, %v8256_v17  ;;  %v3176_v23 = vmul.f32 %v8055_v3, %v3133_v58  ;;  %v8265_v52 = vadd.f32 %v8070_v22, %v3175_v5  ;;  %v3174_v45 = vmul.f32 %v8055_v3, %v3131_v6  ;;  %v6143_v24 = vld [vmem:[#allocation13 + $0x1d0] ss:$8 sps:$4 sm:$0xff]  }
 0x6a9   : > { %v8268_v13 = vadd.f32 %v8070_v22, %v3177_v27  ;;  %v3136_v53 = vmul.f32 %v6329_v49, %v3072_v36  ;;  %4386 = vmatpush2.bf16.msra.mxu0 %v6128_v29  ;;  %4499 = vmatpush2.bf16.msra.mxu1 %v6131_v46  ;;  %v3074_v32 = vsub.f32 %v7990_v62, %v8169_v2  ;;  %v6151_v36 = vld [vmem:[#allocation13 + $0x1c4] ss:$8 sps:$4 sm:$0xff]  }
 0x6aa   : > { %4387 = vmatprep.subr.bf16.mxu0 %v6136_v42  ;;  %4500 = vmatprep.subr.bf16.mxu1 %v6139_v54  ;;  %v3071_v50 = vsub.f32 %v7969_v10, %v8152_v39  ;;  %v8280_v11 = vadd.f32 %v8063_v40, %v3176_v23  ;;  %v8284_v2 = vadd.f32 %v8063_v40, %v3174_v45  ;;  %v6146_v54 = vld [vmem:[#allocation13 + $0xc0] ss:$8 sps:$4 sm:$0xff]  }
 0x6ab   : > { %v3240_v26 = vpack.c.bf16 %v8268_v13, %v8265_v52  ;;  %v3179_v43 = vmul.f32 %v8060_v55, %v3136_v53  ;;  %v3076_v10 = vsub.f32 %v8004_v31, %v8186_v8  ;;  %v3077_v27 = vsub.f32 %v8013_v18, %v8207_v30  ;;  %v6149_v23 = vld [vmem:[#allocation13 + $0x1c0] ss:$8 sps:$4 sm:$0xff]   ;;  %v6154_v53 = vld [vmem:[#allocation13 + $0xb4] ss:$8 sps:$4 sm:$0xff]  }
 0x6ac   : > { %v6331_v63 = vpop.eup %6330  ;;  %3724 = vmatmul.mubr.bf16.gmra.mxu0 %v3237_v47  ;;  %3837 = vmatmul.mubr.bf16.gmra.mxu1 %v3237_v47  ;;  %v3135_v15 = vmul.f32 %v6329_v49, %v3071_v50  ;;  %v3239_v29 = vpack.c.bf16 %v8280_v11, %v8284_v2  ;;  %v3078_v49 = vsub.f32 %v8016_v1, %v8207_v30 }
 0x6ad   : > { %3733 = vmatprep.mubr.bf16.mxu0 %v3240_v26  ;;  %3846 = vmatprep.mubr.bf16.mxu1 %v3240_v26  ;;  %v3138_v14 = vmul.f32 %v6331_v63, %v3074_v32  ;;  %v3137_v62 = vmul.f32 %v6331_v63, %v3073_v34  ;;  %v8293_v6 = vadd.f32 %v8070_v22, %v3179_v43  ;;  %v6157_v34 = vld [vmem:[#allocation13 + $0x1b4] ss:$8 sps:$4 sm:$0xff]  }
 0x6ae   : > { %4388 = vmatpush2.bf16.msra.mxu0 %v6134_v16  ;;  %4501 = vmatpush2.bf16.msra.mxu1 %v6137_v12  ;;  %v3178_v31 = vmul.f32 %v8055_v3, %v3135_v15  ;;  %v3075_v16 = vsub.f32 %v7997_v19, %v8186_v8  ;;  %v6155_v8 = vld [vmem:[#allocation13 + $0x1b0] ss:$8 sps:$4 sm:$0xff]  }
 0x6af   : > { %v3181_v39 = vmul.f32 %v8060_v55, %v3138_v14  ;;  %4389 = vmatprep.subr.bf16.mxu0 %v6142_v7  ;;  %4502 = vmatprep.subr.bf16.mxu1 %v6145_v25  ;;  %v3180_v46 = vmul.f32 %v8055_v3, %v3137_v62  ;;  %v6152_v7 = vld [vmem:[#allocation13 + $0xb0] ss:$8 sps:$4 sm:$0xff]  }
 0x6b0   : > { %v6333_v5 = vpop.eup %6332  ;;  %v8312_v32 = vadd.f32 %v8063_v40, %v3178_v31  ;;  %v6175_v31 = vld [vmem:[#allocation13 + $0x184] ss:$8 sps:$4 sm:$0xff]  }
 0x6b1   : > { %v8296_v58 = vadd.f32 %v8070_v22, %v3181_v39  ;;  %v3140_v42 = vmul.f32 %v6333_v5, %v3076_v10  ;;  %v8308_v12 = vadd.f32 %v8063_v40, %v3180_v46  ;;  %v3139_v26 = vmul.f32 %v6333_v5, %v3075_v16  ;;  %v6163_v10 = vld [vmem:[#allocation13 + $0x1a4] ss:$8 sps:$4 sm:$0xff]   ;;  %v6164_v39 = vld [vmem:[#allocation13 + $0x90] ss:$8 sps:$4 sm:$0xff]  }
 0x6b2   : > { %4390 = vmatpush2.bf16.msra.mxu0 %v6140_v57  ;;  %4503 = vmatpush2.bf16.msra.mxu1 %v6143_v24  ;;  %v6160_v57 = vld [vmem:[#allocation13 + $0xa4] ss:$8 sps:$4 sm:$0xff]   ;;  %v6161_v24 = vld [vmem:[#allocation13 + $0x1a0] ss:$8 sps:$4 sm:$0xff]   ;;  %v6167_v5 = vld [vmem:[#allocation13 + $0x190] ss:$8 sps:$4 sm:$0xff]  }
 0x6b3   : > { %v3242_v47 = vpack.c.bf16 %v8296_v58, %v8293_v6  ;;  %4391 = vmatprep.subr.bf16.mxu0 %v6148_v37  ;;  %v3183_v1 = vmul.f32 %v8060_v55, %v3140_v42  ;;  %4504 = vmatprep.subr.bf16.mxu1 %v6151_v36  ;;  %v3241_v25 = vpack.c.bf16 %v8308_v12, %v8312_v32  ;;  %v6166_v37 = vld [vmem:[#allocation13 + $0x94] ss:$8 sps:$4 sm:$0xff]   ;;  %v6172_v46 = vld [vmem:[#allocation13 + $0x84] ss:$8 sps:$4 sm:$0xff]   ;;  %v6173_v42 = vld [vmem:[#allocation13 + $0x180] ss:$8 sps:$4 sm:$0xff]  }
 0x6b4   : > { %v6335_v45 = vpop.eup %6334  ;;  %3734 = vmatmul.mubr.bf16.gmra.mxu0 %v3239_v29  ;;  %3847 = vmatmul.mubr.bf16.gmra.mxu1 %v3239_v29  ;;  %v3182_v43 = vmul.f32 %v8055_v3, %v3139_v26  ;;  %v6169_v29 = vld [vmem:[#allocation13 + $0x194] ss:$8 sps:$4 sm:$0xff]  }
 0x6b5   : > { %3743 = vmatprep.mubr.bf16.mxu0 %v3242_v47  ;;  %3856 = vmatprep.mubr.bf16.mxu1 %v3242_v47  ;;  %v3142_v18 = vmul.f32 %v6335_v45, %v3078_v49  ;;  %v3141_v30 = vmul.f32 %v6335_v45, %v3077_v27  ;;  %v8319_v50 = vadd.f32 %v8070_v22, %v3183_v1  ;;  %v9023_v47 = vsub.s32 3, %v7068_v59 }
 0x6b6   : > { %4392 = vmatpush2.bf16.msra.mxu0 %v6146_v54  ;;  %4505 = vmatpush2.bf16.msra.mxu1 %v6149_v23  ;;  %v8331_v15 = vadd.f32 %v8063_v40, %v3182_v43  ;;  %v3309_v54 = vld [vmem:[%s8948_s9] sm:$0xf]  ;;  %v9024_v45 = vsub.s32 2, %v7068_v59 }
 0x6b7   : > { %v3185_v19 = vmul.f32 %v8060_v55, %v3142_v18  ;;  %4393 = vmatprep.subr.bf16.mxu0 %v6154_v53  ;;  %v3184_v63 = vmul.f32 %v8055_v3, %v3141_v30  ;;  %4506 = vmatprep.subr.bf16.mxu1 %v6157_v34  ;;  %v6158_v3 = vld [vmem:[#allocation13 + $0xa0] ss:$8 sps:$4 sm:$0xff]   ;;  %v8339_v49 = vrot.slane %v3309_v54, %v7106_v44 }
 0x6b8   : > { %v8343_v23 = vrot.slane %v3309_v54, %v9023_v47  ;;  %v8346_v53 = vrot.slane %v3309_v54, %v7099_v41  ;;  %v8350_v16 = vrot.slane %v3309_v54, %v9024_v45 }
 0x6b9   : > { %v8322_v14 = vadd.f32 %v8070_v22, %v3185_v19  ;;  %v8328_v62 = vadd.f32 %v8063_v40, %v3184_v63  ;;  %v6170_v40 = vld [vmem:[#allocation13 + $0x80] ss:$8 sps:$4 sm:$0xff]  }
 0x6ba   : > { %4394 = vmatpush2.bf16.msra.mxu0 %v6152_v7  ;;  %4507 = vmatpush2.bf16.msra.mxu1 %v6155_v8 }
 0x6bb   : > { %v3244_v55 = vpack.c.bf16 %v8322_v14, %v8319_v50  ;;  %v3243_v22 = vpack.c.bf16 %v8328_v62, %v8331_v15  ;;  %4395 = vmatprep.subr.bf16.mxu0 %v6160_v57  ;;  %4508 = vmatprep.subr.bf16.mxu1 %v6163_v10 }
 0x6bc   : > { %3744 = vmatmul.mubr.bf16.gmra.mxu0 %v3241_v25  ;;  %3857 = vmatmul.mubr.bf16.gmra.mxu1 %v3241_v25 }
 0x6bd   : > { %3753 = vmatprep.mubr.bf16.mxu0 %v3244_v55  ;;  %3866 = vmatprep.mubr.bf16.mxu1 %v3244_v55 }
 0x6be   : > { %4396 = vmatpush2.bf16.msra.mxu0 %v6158_v3  ;;  %4509 = vmatpush2.bf16.msra.mxu1 %v6161_v24 }
 0x6bf   : > { %4397 = vmatprep.subr.bf16.mxu0 %v6166_v37  ;;  %4510 = vmatprep.subr.bf16.mxu1 %v6169_v29 }
 0x6c2   : > { %4398 = vmatpush2.bf16.msra.mxu0 %v6164_v39  ;;  %4511 = vmatpush2.bf16.msra.mxu1 %v6167_v5 }
 0x6c3   : > { %4399 = vmatprep.subr.bf16.mxu0 %v6172_v46  ;;  %4512 = vmatprep.subr.bf16.mxu1 %v6175_v31 }
 0x6c4   : > { %3754 = vmatmul.mubr.bf16.gmra.mxu0 %v3243_v22  ;;  %3867 = vmatmul.mubr.bf16.gmra.mxu1 %v3243_v22 }
 0x6c6   : > { %4400 = vmatpush2.bf16.msra.mxu0 %v6170_v40  ;;  %4513 = vmatpush2.bf16.msra.mxu1 %v6173_v42 }
 0x747   : > { %v3685_v36 = vpop.f32.mrf.mxu0  ;;  %v3798_v27 = vpop.f32.mrf.mxu1 }
 0x748   : > { %v3686_v25 = vadd.f32 %v3685_v36, %v8346_v53  ;;  %v3799_v63 = vadd.f32 %v3798_v27, %v8350_v16 }
 0x749   : > { %v3687_v34 = vpop.f32.mrf.mxu0  ;;  %v3800_v18 = vpop.f32.mrf.mxu1 }
 0x74a   : > { %v3688_v26 = vadd.f32 %v3687_v34, %v8339_v49  ;;  %v3801_v7 = vadd.f32 %v3800_v18, %v8343_v23  ;;  %v3877_v40 = vmax.f32 %v3686_v25, 0.0  ;;  %v3879_v46 = vmax.f32 %v3799_v63, 0.0 }
 0x74b   : > { %v3689_v1 = vpop.f32.mrf.mxu0  ;;  %v3802_v30 = vpop.f32.mrf.mxu1 }
 0x74c   : > { %v3690_v19 = vadd.f32 %v3689_v1, %v8346_v53  ;;  %v3803_v8 = vadd.f32 %v3802_v30, %v8350_v16  ;;  %v3878_v24 = vmax.f32 %v3688_v26, 0.0  ;;  %v3880_v10 = vmax.f32 %v3801_v7, 0.0 }
 0x74d   : > { %v3691_v43 = vpop.f32.mrf.mxu0  ;;  %v3804_v59 = vpop.f32.mrf.mxu1 }
 0x74e   : > { %v3692_v55 = vadd.f32 %v3691_v43, %v8339_v49  ;;  %v3805_v22 = vadd.f32 %v3804_v59, %v8343_v23  ;;  %v3881_v3 = vmax.f32 %v3690_v19, 0.0  ;;  %v3883_v57 = vmax.f32 %v3803_v8, 0.0 }
 0x750   : > { %v3882_v39 = vmax.f32 %v3692_v55, 0.0  ;;  %v3884_v37 = vmax.f32 %v3805_v22, 0.0  ;;  %v3695_v5 = vpop.f32.mrf.mxu0  ;;  %v3808_v29 = vpop.f32.mrf.mxu1  ;;  %v3941_v27 = vpack.c.bf16 %v3881_v3, %v3877_v40  ;;  %v3943_v47 = vpack.c.bf16 %v3883_v57, %v3879_v46 }
 0x751   : > { %v3696_v7 = vadd.f32 %v3695_v5, %v8346_v53  ;;  %v3809_v19 = vadd.f32 %v3808_v29, %v8350_v16 }
 0x752   : > { %v3942_v42 = vpack.c.bf16 %v3882_v39, %v3878_v24  ;;  %v3944_v31 = vpack.c.bf16 %v3884_v37, %v3880_v10  ;;  %v3697_v54 = vpop.f32.mrf.mxu0  ;;  %v3810_v36 = vpop.f32.mrf.mxu1 }
 0x753   : > { %v3698_v45 = vadd.f32 %v3697_v54, %v8339_v49  ;;  %v3811_v1 = vadd.f32 %v3810_v36, %v8343_v23  ;;  %v3885_v10 = vmax.f32 %v3696_v7, 0.0  ;;  %v3887_v39 = vmax.f32 %v3809_v19, 0.0 }
 0x754   : > { %v3699_v34 = vpop.f32.mrf.mxu0  ;;  %v3812_v18 = vpop.f32.mrf.mxu1  ;;  %4401 = vmatprep.mubr.bf16.mxu0 %v3942_v42  ;;  %4514 = vmatprep.mubr.bf16.mxu1 %v3944_v31 }
 0x755   : > { %v3700_v30 = vadd.f32 %v3699_v34, %v8346_v53  ;;  %v3813_v26 = vadd.f32 %v3812_v18, %v8350_v16  ;;  %4402 = vmatmul.mubr.bf16.vlgmr.msra.gmra.mxu0 %v3941_v27  ;;  %4515 = vmatmul.mubr.bf16.vlgmr.msra.gmra.mxu1 %v3943_v47  ;;  %v3886_v22 = vmax.f32 %v3698_v45, 0.0  ;;  %v3888_v3 = vmax.f32 %v3811_v1, 0.0 }
 0x756   : > { %v3701_v8 = vpop.f32.mrf.mxu0  ;;  %v3814_v25 = vpop.f32.mrf.mxu1 }
 0x757   : > { %v3702_v63 = vadd.f32 %v3701_v8, %v8339_v49  ;;  %v3815_v43 = vadd.f32 %v3814_v25, %v8343_v23  ;;  %v3889_v59 = vmax.f32 %v3700_v30, 0.0  ;;  %v3891_v55 = vmax.f32 %v3813_v26, 0.0 }
 0x759   : > { %v3890_v57 = vmax.f32 %v3702_v63, 0.0  ;;  %v3892_v24 = vmax.f32 %v3815_v43, 0.0  ;;  %v3945_v42 = vpack.c.bf16 %v3889_v59, %v3885_v10  ;;  %v3947_v29 = vpack.c.bf16 %v3891_v55, %v3887_v39 }
 0x75a   : > { %v3705_v37 = vpop.f32.mrf.mxu0  ;;  %v3818_v40 = vpop.f32.mrf.mxu1 }
 0x75b   : > { %v3946_v46 = vpack.c.bf16 %v3890_v57, %v3886_v22  ;;  %v3948_v5 = vpack.c.bf16 %v3892_v24, %v3888_v3  ;;  %v3706_v1 = vadd.f32 %v3705_v37, %v8346_v53  ;;  %v3819_v30 = vadd.f32 %v3818_v40, %v8350_v16 }
 0x75c   : > { %v3707_v31 = vpop.f32.mrf.mxu0  ;;  %v3820_v54 = vpop.f32.mrf.mxu1 }
 0x75d   : > { %4411 = vmatprep.mubr.bf16.mxu0 %v3946_v46  ;;  %4524 = vmatprep.mubr.bf16.mxu1 %v3948_v5  ;;  %v3708_v47 = vadd.f32 %v3707_v31, %v8339_v49  ;;  %v3821_v45 = vadd.f32 %v3820_v54, %v8343_v23  ;;  %v3893_v3 = vmax.f32 %v3706_v1, 0.0  ;;  %v3895_v57 = vmax.f32 %v3819_v30, 0.0 }
 0x75e   : > { %v3709_v36 = vpop.f32.mrf.mxu0  ;;  %v3822_v27 = vpop.f32.mrf.mxu1  ;;  %4412 = vmatmul.mubr.bf16.gmra.mxu0 %v3945_v42  ;;  %4525 = vmatmul.mubr.bf16.gmra.mxu1 %v3947_v29 }
 0x75f   : > { %v3710_v34 = vadd.f32 %v3709_v36, %v8346_v53  ;;  %v3823_v18 = vadd.f32 %v3822_v27, %v8350_v16  ;;  %v3894_v43 = vmax.f32 %v3708_v47, 0.0  ;;  %v3896_v59 = vmax.f32 %v3821_v45, 0.0 }
 0x760   : > { %v3711_v26 = vpop.f32.mrf.mxu0  ;;  %v3824_v7 = vpop.f32.mrf.mxu1 }
 0x761   : > { %v3712_v19 = vadd.f32 %v3711_v26, %v8339_v49  ;;  %v3825_v8 = vadd.f32 %v3824_v7, %v8343_v23  ;;  %v3897_v25 = vmax.f32 %v3710_v34, 0.0  ;;  %v3899_v63 = vmax.f32 %v3823_v18, 0.0 }
 0x763   : > { %v3898_v55 = vmax.f32 %v3712_v19, 0.0  ;;  %v3900_v22 = vmax.f32 %v3825_v8, 0.0  ;;  %v3949_v46 = vpack.c.bf16 %v3897_v25, %v3893_v3  ;;  %v3951_v40 = vpack.c.bf16 %v3899_v63, %v3895_v57 }
 0x764   : > { %v3715_v24 = vpop.f32.mrf.mxu0  ;;  %v3828_v10 = vpop.f32.mrf.mxu1 }
 0x765   : > { %v3950_v39 = vpack.c.bf16 %v3898_v55, %v3894_v43  ;;  %v3952_v37 = vpack.c.bf16 %v3900_v22, %v3896_v59  ;;  %v3716_v45 = vadd.f32 %v3715_v24, %v8346_v53  ;;  %v3829_v34 = vadd.f32 %v3828_v10, %v8350_v16 }
 0x766   : > { %v3717_v5 = vpop.f32.mrf.mxu0  ;;  %v3830_v42 = vpop.f32.mrf.mxu1 }
 0x767   : > { %4421 = vmatprep.mubr.bf16.mxu0 %v3950_v39  ;;  %4534 = vmatprep.mubr.bf16.mxu1 %v3952_v37  ;;  %v3718_v54 = vadd.f32 %v3717_v5, %v8339_v49  ;;  %v3831_v36 = vadd.f32 %v3830_v42, %v8343_v23  ;;  %v3901_v22 = vmax.f32 %v3716_v45, 0.0  ;;  %v3903_v3 = vmax.f32 %v3829_v34, 0.0 }
 0x768   : > { %v3719_v29 = vpop.f32.mrf.mxu0  ;;  %v3832_v31 = vpop.f32.mrf.mxu1  ;;  %4422 = vmatmul.mubr.bf16.gmra.mxu0 %v3949_v46  ;;  %4535 = vmatmul.mubr.bf16.gmra.mxu1 %v3951_v40 }
 0x769   : > { %v3720_v27 = vadd.f32 %v3719_v29, %v8346_v53  ;;  %v3833_v47 = vadd.f32 %v3832_v31, %v8350_v16  ;;  %v3902_v63 = vmax.f32 %v3718_v54, 0.0  ;;  %v3904_v43 = vmax.f32 %v3831_v36, 0.0 }
 0x76a   : > { %v3721_v18 = vpop.f32.mrf.mxu0  ;;  %v3834_v1 = vpop.f32.mrf.mxu1 }
 0x76b   : > { %v3722_v30 = vadd.f32 %v3721_v18, %v8339_v49  ;;  %v3835_v26 = vadd.f32 %v3834_v1, %v8343_v23  ;;  %v3905_v7 = vmax.f32 %v3720_v27, 0.0  ;;  %v3907_v19 = vmax.f32 %v3833_v47, 0.0 }
 0x76c   : > { %v3725_v8 = vpop.f32.mrf.mxu0  ;;  %v3838_v25 = vpop.f32.mrf.mxu1 }
 0x76d   : > { %v3906_v59 = vmax.f32 %v3722_v30, 0.0  ;;  %v3908_v55 = vmax.f32 %v3835_v26, 0.0  ;;  %v3953_v37 = vpack.c.bf16 %v3905_v7, %v3901_v22  ;;  %v3955_v46 = vpack.c.bf16 %v3907_v19, %v3903_v3 }
 0x76e   : > { %v3727_v57 = vpop.f32.mrf.mxu0  ;;  %v3840_v24 = vpop.f32.mrf.mxu1  ;;  %v3726_v36 = vadd.f32 %v3725_v8, %v8346_v53  ;;  %v3839_v27 = vadd.f32 %v3838_v25, %v8350_v16 }
 0x76f   : > { %v3954_v39 = vpack.c.bf16 %v3906_v59, %v3902_v63  ;;  %v3956_v10 = vpack.c.bf16 %v3908_v55, %v3904_v43  ;;  %v3728_v40 = vadd.f32 %v3727_v57, %v8339_v49  ;;  %v3841_v29 = vadd.f32 %v3840_v24, %v8343_v23 }
 0x770   : > { %v3729_v5 = vpop.f32.mrf.mxu0  ;;  %v3842_v42 = vpop.f32.mrf.mxu1  ;;  %v3909_v55 = vmax.f32 %v3726_v36, 0.0  ;;  %v3911_v8 = vmax.f32 %v3839_v27, 0.0 }
 0x771   : > { %v3730_v31 = vadd.f32 %v3729_v5, %v8346_v53  ;;  %v3843_v54 = vadd.f32 %v3842_v42, %v8350_v16  ;;  %4431 = vmatprep.mubr.bf16.mxu0 %v3954_v39  ;;  %4544 = vmatprep.mubr.bf16.mxu1 %v3956_v10  ;;  %v3910_v19 = vmax.f32 %v3728_v40, 0.0  ;;  %v3912_v63 = vmax.f32 %v3841_v29, 0.0 }
 0x772   : > { %v3731_v47 = vpop.f32.mrf.mxu0  ;;  %v3844_v45 = vpop.f32.mrf.mxu1  ;;  %4432 = vmatmul.mubr.bf16.gmra.mxu0 %v3953_v37  ;;  %4545 = vmatmul.mubr.bf16.gmra.mxu1 %v3955_v46 }
 0x773   : > { %v3732_v34 = vadd.f32 %v3731_v47, %v8339_v49  ;;  %v3845_v18 = vadd.f32 %v3844_v45, %v8343_v23  ;;  %v3913_v1 = vmax.f32 %v3730_v31, 0.0  ;;  %v3915_v30 = vmax.f32 %v3843_v54, 0.0 }
 0x774   : > { %v3735_v26 = vpop.f32.mrf.mxu0  ;;  %v3848_v7 = vpop.f32.mrf.mxu1 }
 0x775   : > { %v3914_v43 = vmax.f32 %v3732_v34, 0.0  ;;  %v3916_v59 = vmax.f32 %v3845_v18, 0.0  ;;  %v3957_v24 = vpack.c.bf16 %v3913_v1, %v3909_v55  ;;  %v3959_v39 = vpack.c.bf16 %v3915_v30, %v3911_v8 }
 0x776   : > { %v3737_v22 = vpop.f32.mrf.mxu0  ;;  %v3850_v25 = vpop.f32.mrf.mxu1  ;;  %v3736_v29 = vadd.f32 %v3735_v26, %v8346_v53  ;;  %v3849_v31 = vadd.f32 %v3848_v7, %v8350_v16 }
 0x777   : > { %v3958_v3 = vpack.c.bf16 %v3914_v43, %v3910_v19  ;;  %v3960_v57 = vpack.c.bf16 %v3916_v59, %v3912_v63  ;;  %v3738_v10 = vadd.f32 %v3737_v22, %v8339_v49  ;;  %v3851_v5 = vadd.f32 %v3850_v25, %v8343_v23 }
 0x778   : > { %v3739_v37 = vpop.f32.mrf.mxu0  ;;  %v3852_v46 = vpop.f32.mrf.mxu1  ;;  %v3917_v59 = vmax.f32 %v3736_v29, 0.0  ;;  %v3919_v26 = vmax.f32 %v3849_v31, 0.0 }
 0x779   : > { %v3740_v42 = vadd.f32 %v3739_v37, %v8346_v53  ;;  %v3853_v40 = vadd.f32 %v3852_v46, %v8350_v16  ;;  %4441 = vmatprep.mubr.bf16.mxu0 %v3958_v3  ;;  %4554 = vmatprep.mubr.bf16.mxu1 %v3960_v57  ;;  %v3918_v30 = vmax.f32 %v3738_v10, 0.0  ;;  %v3920_v19 = vmax.f32 %v3851_v5, 0.0 }
 0x77a   : > { %v3741_v54 = vpop.f32.mrf.mxu0  ;;  %v3854_v36 = vpop.f32.mrf.mxu1  ;;  %4442 = vmatmul.mubr.bf16.gmra.mxu0 %v3957_v24  ;;  %4555 = vmatmul.mubr.bf16.gmra.mxu1 %v3959_v39 }
 0x77b   : > { %v3742_v27 = vadd.f32 %v3741_v54, %v8339_v49  ;;  %v3855_v47 = vadd.f32 %v3854_v36, %v8343_v23  ;;  %v3921_v45 = vmax.f32 %v3740_v42, 0.0  ;;  %v3923_v34 = vmax.f32 %v3853_v40, 0.0 }
 0x77c   : > { %v3745_v18 = vpop.f32.mrf.mxu0  ;;  %v3858_v1 = vpop.f32.mrf.mxu1 }
 0x77d   : > { %v3922_v63 = vmax.f32 %v3742_v27, 0.0  ;;  %v3924_v43 = vmax.f32 %v3855_v47, 0.0  ;;  %v3961_v25 = vpack.c.bf16 %v3921_v45, %v3917_v59  ;;  %v3963_v3 = vpack.c.bf16 %v3923_v34, %v3919_v26 }
 0x77e   : > { %v3747_v55 = vpop.f32.mrf.mxu0  ;;  %v3860_v7 = vpop.f32.mrf.mxu1  ;;  %v3746_v5 = vadd.f32 %v3745_v18, %v8346_v53  ;;  %v3859_v42 = vadd.f32 %v3858_v1, %v8350_v16 }
 0x77f   : > { %v3962_v8 = vpack.c.bf16 %v3922_v63, %v3918_v30  ;;  %v3964_v22 = vpack.c.bf16 %v3924_v43, %v3920_v19  ;;  %v3748_v57 = vadd.f32 %v3747_v55, %v8339_v49  ;;  %v3861_v37 = vadd.f32 %v3860_v7, %v8343_v23 }
 0x780   : > { %v3749_v24 = vpop.f32.mrf.mxu0  ;;  %v3862_v39 = vpop.f32.mrf.mxu1  ;;  %v3925_v43 = vmax.f32 %v3746_v5, 0.0  ;;  %v3927_v18 = vmax.f32 %v3859_v42, 0.0 }
 0x781   : > { %v3750_v46 = vadd.f32 %v3749_v24, %v8346_v53  ;;  %v3863_v10 = vadd.f32 %v3862_v39, %v8350_v16  ;;  %4451 = vmatprep.mubr.bf16.mxu0 %v3962_v8  ;;  %4564 = vmatprep.mubr.bf16.mxu1 %v3964_v22  ;;  %v3926_v34 = vmax.f32 %v3748_v57, 0.0  ;;  %v3928_v30 = vmax.f32 %v3861_v37, 0.0 }
 0x782   : > { %v3751_v40 = vpop.f32.mrf.mxu0  ;;  %v3864_v29 = vpop.f32.mrf.mxu1  ;;  %4452 = vmatmul.mubr.bf16.gmra.mxu0 %v3961_v25  ;;  %4565 = vmatmul.mubr.bf16.gmra.mxu1 %v3963_v3 }
 0x783   : > { %v3752_v31 = vadd.f32 %v3751_v40, %v8339_v49  ;;  %v3865_v54 = vadd.f32 %v3864_v29, %v8343_v23  ;;  %v3929_v36 = vmax.f32 %v3750_v46, 0.0  ;;  %v3931_v27 = vmax.f32 %v3863_v10, 0.0 }
 0x784   : > { %v3755_v47 = vpop.f32.mrf.mxu0  ;;  %v3868_v45 = vpop.f32.mrf.mxu1 }
 0x785   : > { %v3930_v19 = vmax.f32 %v3752_v31, 0.0  ;;  %v3932_v63 = vmax.f32 %v3865_v54, 0.0  ;;  %v3965_v7 = vpack.c.bf16 %v3929_v36, %v3925_v43  ;;  %v3967_v8 = vpack.c.bf16 %v3931_v27, %v3927_v18 }
 0x786   : > { %v3757_v59 = vpop.f32.mrf.mxu0  ;;  %v3870_v1 = vpop.f32.mrf.mxu1  ;;  %v3756_v37 = vadd.f32 %v3755_v47, %v8346_v53  ;;  %v3869_v46 = vadd.f32 %v3868_v45, %v8350_v16 }
 0x787   : > { %v3966_v26 = vpack.c.bf16 %v3930_v19, %v3926_v34  ;;  %v3968_v55 = vpack.c.bf16 %v3932_v63, %v3928_v30  ;;  %v3758_v22 = vadd.f32 %v3757_v59, %v8339_v49  ;;  %v3871_v24 = vadd.f32 %v3870_v1, %v8343_v23 }
 0x788   : > { %v3759_v25 = vpop.f32.mrf.mxu0  ;;  %v3872_v3 = vpop.f32.mrf.mxu1  ;;  %v3933_v30 = vmax.f32 %v3756_v37, 0.0  ;;  %v3935_v19 = vmax.f32 %v3869_v46, 0.0 }
 0x789   : > { %v3760_v39 = vadd.f32 %v3759_v25, %v8346_v53  ;;  %v3873_v57 = vadd.f32 %v3872_v3, %v8350_v16  ;;  %4461 = vmatprep.mubr.bf16.mxu0 %v3966_v26  ;;  %4574 = vmatprep.mubr.bf16.mxu1 %v3968_v55  ;;  %v3934_v54 = vmax.f32 %v3758_v22, 0.0  ;;  %v3936_v36 = vmax.f32 %v3871_v24, 0.0 }
 0x78a   : > { %v3761_v10 = vpop.f32.mrf.mxu0  ;;  %v3874_v5 = vpop.f32.mrf.mxu1  ;;  %4462 = vmatmul.mubr.bf16.gmra.mxu0 %v3965_v7  ;;  %4575 = vmatmul.mubr.bf16.gmra.mxu1 %v3967_v8 }
 0x78b   : > { %v3762_v42 = vadd.f32 %v3761_v10, %v8339_v49  ;;  %v3875_v40 = vadd.f32 %v3874_v5, %v8343_v23  ;;  %v3937_v29 = vmax.f32 %v3760_v39, 0.0  ;;  %v3939_v31 = vmax.f32 %v3873_v57, 0.0  ;;  %v4037_v49 = vld [vmem:[%s8950_s11] sm:$0x3] }
 0x78c   : > { %v8420_v23 = vrot.slane %v4037_v49, %v7099_v41  ;;  %v8423_v45 = vrot.slane %v4037_v49, %v7106_v44 }
 0x78d   : > { %v3938_v27 = vmax.f32 %v3762_v42, 0.0  ;;  %v3940_v34 = vmax.f32 %v3875_v40, 0.0  ;;  %v3969_v47 = vpack.c.bf16 %v3937_v29, %v3933_v30  ;;  %v3971_v16 = vpack.c.bf16 %v3939_v31, %v3935_v19 }
 0x78f   : > { %v3970_v63 = vpack.c.bf16 %v3938_v27, %v3934_v54  ;;  %v3972_v53 = vpack.c.bf16 %v3940_v34, %v3936_v36  ;;  %v9025_v36 = vld [vmem:[#allocation21_spill] sm:$0xff]  ;;  %v9026_v27 = vld [vmem:[#allocation20_spill] sm:$0xff] }
 0x791   : > { %4471 = vmatprep.mubr.bf16.mxu0 %v3970_v63  ;;  %4584 = vmatprep.mubr.bf16.mxu1 %v3972_v53 }
 0x792   : > { %4472 = vmatmul.mubr.bf16.gmra.mxu0 %v3969_v47  ;;  %4585 = vmatmul.mubr.bf16.gmra.mxu1 %v3971_v16 }
 0x815   : > { %v4403_v43 = vpop.f32.mrf.mxu0  ;;  %v4516_v18 = vpop.f32.mrf.mxu1 }
 0x816   : > { %v4404_v59 = vadd.f32 %v4403_v43, %v8420_v23 }
 0x817   : > { %v4405_v1 = vpop.f32.mrf.mxu0  ;;  %v4518_v26 = vpop.f32.mrf.mxu1 }
 0x818   : > { %v4517_v55 = vadd.f32 %v4516_v18, %v4404_v59  ;;  %v4406_v7 = vadd.f32 %v4405_v1, %v8423_v45 }
 0x819   : > { %v4407_v8 = vpop.f32.mrf.mxu0  ;;  %v4520_v22 = vpop.f32.mrf.mxu1 }
 0x81a   : > { %v4519_v25 = vadd.f32 %v4518_v26, %v4406_v7  ;;  %v4408_v3 = vadd.f32 %v4407_v8, %v8420_v23  ;;  %v8429_v57 = vadd.f32 %v4517_v55, %v8096_v51 }
 0x81b   : > { %v4409_v24 = vpop.f32.mrf.mxu0  ;;  %v4522_v39 = vpop.f32.mrf.mxu1 }
 0x81c   : > { %v8432_v37 = vadd.f32 %v4519_v25, %v8093_v4  ;;  %v4521_v46 = vadd.f32 %v4520_v22, %v4408_v3  ;;  %v4410_v10 = vadd.f32 %v4409_v24, %v8423_v45  ;;  %v4693_v19 = vmul.f32 %v8429_v57, %v8429_v57 }
 0x81e   : > { %v4523_v5 = vadd.f32 %v4522_v39, %v4410_v10  ;;  %v4413_v42 = vpop.f32.mrf.mxu0  ;;  %v4526_v40 = vpop.f32.mrf.mxu1  ;;  %v4629_v29 = vadd.f32 %v8432_v37, %v8429_v57  ;;  %v4694_v31 = vmul.f32 %v8432_v37, %v8432_v37  ;;  %v8441_v51 = vadd.f32 %v4521_v46, %v9025_v36 }
 0x81f   : > { %v4414_v54 = vadd.f32 %v4413_v42, %v8420_v23 }
 0x820   : > { %v8444_v4 = vadd.f32 %v4523_v5, %v9026_v27  ;;  %v4415_v34 = vpop.f32.mrf.mxu0  ;;  %v4528_v30 = vpop.f32.mrf.mxu1  ;;  %4630 = vadd.xlane.f32.xlu0 %v4629_v29  ;;  %v4725_v43 = vadd.f32 %v4694_v31, %v4693_v19  ;;  %v4695_v8 = vmul.f32 %v8441_v51, %v8441_v51 }
 0x821   : > { %v4527_v63 = vadd.f32 %v4526_v40, %v4414_v54  ;;  %v4416_v53 = vadd.f32 %v4415_v34, %v8423_v45  ;;  %v9027_v40 = vld [vmem:[#allocation22_spill] sm:$0xff] }
 0x822   : > { %v4417_v47 = vpop.f32.mrf.mxu0  ;;  %v4530_v16 = vpop.f32.mrf.mxu1  ;;  %v4632_v49 = vadd.f32 %v8444_v4, %v8441_v51  ;;  %v4696_v18 = vmul.f32 %v8444_v4, %v8444_v4 }
 0x823   : > { %v4529_v59 = vadd.f32 %v4528_v30, %v4416_v53  ;;  %v4418_v1 = vadd.f32 %v4417_v47, %v8420_v23  ;;  %v8455_v26 = vadd.f32 %v4527_v63, %v8139_v9 }
 0x824   : > { %v4419_v55 = vpop.f32.mrf.mxu0  ;;  %v4532_v7 = vpop.f32.mrf.mxu1  ;;  %4633 = vadd.xlane.f32.xlu1 %v4632_v49  ;;  %4726 = vadd.xlane.f32.xlu0 %v4725_v43  ;;  %v4728_v24 = vadd.f32 %v4696_v18, %v4695_v8 }
 0x825   : > { %v8460_v22 = vadd.f32 %v4529_v59, %v8130_v35  ;;  %v4531_v25 = vadd.f32 %v4530_v16, %v4418_v1  ;;  %v4420_v3 = vadd.f32 %v4419_v55, %v8423_v45  ;;  %v4697_v42 = vmul.f32 %v8455_v26, %v8455_v26  ;;  %v9028_v1 = vld [vmem:[#allocation23_spill] sm:$0xff] }
 0x827   : > { %v4533_v39 = vadd.f32 %v4532_v7, %v4420_v3  ;;  %v4635_v46 = vadd.f32 %v8460_v22, %v8455_v26  ;;  %v4698_v9 = vmul.f32 %v8460_v22, %v8460_v22  ;;  %v8470_v35 = vadd.f32 %v4531_v25, %v8144_v38 }
 0x828   : > { %v4423_v10 = vpop.f32.mrf.mxu0  ;;  %v4536_v5 = vpop.f32.mrf.mxu1  ;;  %4729 = vadd.xlane.f32.xlu1 %v4728_v24 }
 0x829   : > { %v8473_v29 = vadd.f32 %v4533_v39, %v9027_v40  ;;  %v4424_v31 = vadd.f32 %v4423_v10, %v8420_v23  ;;  %4636 = vadd.xlane.f32.xlu0 %v4635_v46  ;;  %v4731_v27 = vadd.f32 %v4698_v9, %v4697_v42  ;;  %v4699_v49 = vmul.f32 %v8470_v35, %v8470_v35 }
 0x82a   : > { %v4425_v54 = vpop.f32.mrf.mxu0  ;;  %v4538_v36 = vpop.f32.mrf.mxu1 }
 0x82b   : > { %v4537_v34 = vadd.f32 %v4536_v5, %v4424_v31  ;;  %v4426_v30 = vadd.f32 %v4425_v54, %v8423_v45  ;;  %v4638_v19 = vadd.f32 %v8473_v29, %v8470_v35  ;;  %v4700_v63 = vmul.f32 %v8473_v29, %v8473_v29  ;;  %v9029_v5 = vld [vmem:[#allocation24_spill] sm:$0xff] }
 0x82c   : > { %v4427_v38 = vpop.f32.mrf.mxu0  ;;  %v4540_v53 = vpop.f32.mrf.mxu1 }
 0x82d   : > { %v4539_v47 = vadd.f32 %v4538_v36, %v4426_v30  ;;  %v4428_v16 = vadd.f32 %v4427_v38, %v8420_v23  ;;  %4639 = vadd.xlane.f32.xlu1 %v4638_v19  ;;  %4732 = vadd.xlane.f32.xlu0 %v4731_v27  ;;  %v8485_v43 = vadd.f32 %v4537_v34, %v8179_v28 }
 0x82e   : > { %v4429_v18 = vpop.f32.mrf.mxu0  ;;  %v4542_v59 = vpop.f32.mrf.mxu1  ;;  %v4734_v25 = vadd.f32 %v4700_v63, %v4699_v49 }
 0x82f   : > { %v8488_v55 = vadd.f32 %v4539_v47, %v9028_v1  ;;  %v4541_v7 = vadd.f32 %v4540_v53, %v4428_v16  ;;  %v4430_v8 = vadd.f32 %v4429_v18, %v8423_v45  ;;  %v4701_v9 = vmul.f32 %v8485_v43, %v8485_v43 }
 0x831   : > { %v4543_v3 = vadd.f32 %v4542_v59, %v4430_v8  ;;  %4735 = vadd.xlane.f32.xlu1 %v4734_v25  ;;  %v4641_v24 = vadd.f32 %v8488_v55, %v8485_v43  ;;  %v4702_v39 = vmul.f32 %v8488_v55, %v8488_v55  ;;  %v8498_v10 = vadd.f32 %v4541_v7, %v8182_v20 }
 0x832   : > { %v4433_v46 = vpop.f32.mrf.mxu0  ;;  %v4546_v28 = vpop.f32.mrf.mxu1 }
 0x833   : > { %v8501_v42 = vadd.f32 %v4543_v3, %v9029_v5  ;;  %v4434_v40 = vadd.f32 %v4433_v46, %v8420_v23  ;;  %4642 = vadd.xlane.f32.xlu0 %v4641_v24  ;;  %v4737_v36 = vadd.f32 %v4702_v39, %v4701_v9  ;;  %v4703_v47 = vmul.f32 %v8498_v10, %v8498_v10 }
 0x834   : > { %v4435_v31 = vpop.f32.mrf.mxu0  ;;  %v4548_v54 = vpop.f32.mrf.mxu1 }
 0x835   : > { %v4547_v27 = vadd.f32 %v4546_v28, %v4434_v40  ;;  %v4436_v34 = vadd.f32 %v4435_v31, %v8423_v45  ;;  %v4644_v30 = vadd.f32 %v8501_v42, %v8498_v10  ;;  %v4704_v19 = vmul.f32 %v8501_v42, %v8501_v42 }
 0x836   : > { %v4437_v20 = vpop.f32.mrf.mxu0  ;;  %v4550_v63 = vpop.f32.mrf.mxu1 }
 0x837   : > { %v4549_v38 = vadd.f32 %v4548_v54, %v4436_v34  ;;  %v4438_v53 = vadd.f32 %v4437_v20, %v8420_v23  ;;  %4645 = vadd.xlane.f32.xlu1 %v4644_v30  ;;  %4738 = vadd.xlane.f32.xlu0 %v4737_v36  ;;  %v8513_v16 = vadd.f32 %v4547_v27, %v8221_v56 }
 0x838   : > { %v4439_v49 = vpop.f32.mrf.mxu0  ;;  %v4552_v18 = vpop.f32.mrf.mxu1  ;;  %v4740_v8 = vadd.f32 %v4704_v19, %v4703_v47 }
 0x839   : > { %v8516_v59 = vadd.f32 %v4549_v38, %v8202_v48  ;;  %v4551_v1 = vadd.f32 %v4550_v63, %v4438_v53  ;;  %v4440_v7 = vadd.f32 %v4439_v49, %v8423_v45  ;;  %v4705_v54 = vmul.f32 %v8513_v16, %v8513_v16 }
 0x83a   : > { %v4443_v25 = vpop.f32.mrf.mxu0  ;;  %v4556_v3 = vpop.f32.mrf.mxu1 }
 0x83b   : > { %v4553_v24 = vadd.f32 %v4552_v18, %v4440_v7  ;;  %v4444_v39 = vadd.f32 %v4443_v25, %v8420_v23  ;;  %4741 = vadd.xlane.f32.xlu1 %v4740_v8  ;;  %v4647_v46 = vadd.f32 %v8516_v59, %v8513_v16  ;;  %v8523_v56 = vadd.f32 %v4551_v1, %v8226_v60 }
 0x83c   : > { %v4445_v28 = vpop.f32.mrf.mxu0  ;;  %v4558_v9 = vpop.f32.mrf.mxu1  ;;  %v4706_v48 = vmul.f32 %v8516_v59, %v8516_v59 }
 0x83d   : > { %v8528_v5 = vadd.f32 %v4553_v24, %v8205_v21  ;;  %v4557_v40 = vadd.f32 %v4556_v3, %v4444_v39  ;;  %v4446_v31 = vadd.f32 %v4445_v28, %v8423_v45  ;;  %4648 = vadd.xlane.f32.xlu0 %v4647_v46  ;;  %v4707_v38 = vmul.f32 %v8523_v56, %v8523_v56 }
 0x83e   : > { %v4447_v36 = vpop.f32.mrf.mxu0  ;;  %v4560_v27 = vpop.f32.mrf.mxu1  ;;  %v4743_v19 = vadd.f32 %v4706_v48, %v4705_v54 }
 0x83f   : > { %v4559_v34 = vadd.f32 %v4558_v9, %v4446_v31  ;;  %v4448_v60 = vadd.f32 %v4447_v36, %v8420_v23  ;;  %v4650_v30 = vadd.f32 %v8528_v5, %v8523_v56  ;;  %v8537_v20 = vadd.f32 %v4557_v40, %v8256_v17 }
 0x840   : > { %v4449_v21 = vpop.f32.mrf.mxu0  ;;  %v4562_v63 = vpop.f32.mrf.mxu1  ;;  %v4708_v53 = vmul.f32 %v8528_v5, %v8528_v5 }
 0x841   : > { %v8544_v47 = vadd.f32 %v4559_v34, %v8240_v33  ;;  %v4561_v49 = vadd.f32 %v4560_v27, %v4448_v60  ;;  %v4450_v18 = vadd.f32 %v4449_v21, %v8423_v45  ;;  %4651 = vadd.xlane.f32.xlu1 %v4650_v30  ;;  %4744 = vadd.xlane.f32.xlu0 %v4743_v19 }
 0x842   : > { %v4453_v1 = vpop.f32.mrf.mxu0  ;;  %v4566_v7 = vpop.f32.mrf.mxu1  ;;  %v4746_v25 = vadd.f32 %v4708_v53, %v4707_v38  ;;  %v4709_v46 = vmul.f32 %v8537_v20, %v8537_v20 }
 0x843   : > { %v4563_v17 = vadd.f32 %v4562_v63, %v4450_v18  ;;  %v4454_v8 = vadd.f32 %v4453_v1, %v8420_v23  ;;  %v4653_v3 = vadd.f32 %v8544_v47, %v8537_v20  ;;  %v8551_v24 = vadd.f32 %v4561_v49, %v8250_v0 }
 0x844   : > { %v4455_v39 = vpop.f32.mrf.mxu0  ;;  %v4568_v33 = vpop.f32.mrf.mxu1  ;;  %v4710_v28 = vmul.f32 %v8544_v47, %v8544_v47 }
 0x845   : > { %v8558_v9 = vadd.f32 %v4563_v17, %v8243_v61  ;;  %v4567_v48 = vadd.f32 %v4566_v7, %v4454_v8  ;;  %v4456_v40 = vadd.f32 %v4455_v39, %v8423_v45  ;;  %4747 = vadd.xlane.f32.xlu1 %v4746_v25  ;;  %4654 = vadd.xlane.f32.xlu0 %v4653_v3 }
 0x846   : > { %v4457_v31 = vpop.f32.mrf.mxu0  ;;  %v4570_v54 = vpop.f32.mrf.mxu1  ;;  %v4749_v34 = vadd.f32 %v4710_v28, %v4709_v46  ;;  %v4711_v19 = vmul.f32 %v8551_v24, %v8551_v24 }
 0x847   : > { %v4569_v0 = vadd.f32 %v4568_v33, %v4456_v40  ;;  %v4458_v36 = vadd.f32 %v4457_v31, %v8420_v23  ;;  %v4656_v27 = vadd.f32 %v8558_v9, %v8551_v24  ;;  %v8565_v60 = vadd.f32 %v4567_v48, %v8284_v2 }
 0x848   : > { %v4459_v30 = vpop.f32.mrf.mxu0  ;;  %v4572_v61 = vpop.f32.mrf.mxu1  ;;  %v4712_v21 = vmul.f32 %v8558_v9, %v8558_v9 }
 0x849   : > { %v8572_v63 = vadd.f32 %v4569_v0, %v8265_v52  ;;  %v4571_v38 = vadd.f32 %v4570_v54, %v4458_v36  ;;  %v4460_v53 = vadd.f32 %v4459_v30, %v8423_v45  ;;  %4657 = vadd.xlane.f32.xlu1 %v4656_v27  ;;  %4750 = vadd.xlane.f32.xlu0 %v4749_v34 }
 0x84a   : > { %v4463_v49 = vpop.f32.mrf.mxu0  ;;  %v4576_v18 = vpop.f32.mrf.mxu1  ;;  %v4752_v7 = vadd.f32 %v4712_v21, %v4711_v19  ;;  %v4713_v3 = vmul.f32 %v8565_v60, %v8565_v60 }
 0x84b   : > { %v4573_v2 = vadd.f32 %v4572_v61, %v4460_v53  ;;  %v4464_v1 = vadd.f32 %v4463_v49, %v8420_v23  ;;  %v4659_v17 = vadd.f32 %v8572_v63, %v8565_v60  ;;  %v8579_v8 = vadd.f32 %v4571_v38, %v8280_v11 }
 0x84c   : > { %v4465_v25 = vpop.f32.mrf.mxu0  ;;  %v4578_v52 = vpop.f32.mrf.mxu1  ;;  %v4714_v39 = vmul.f32 %v8572_v63, %v8572_v63 }
 0x84d   : > { %v8586_v33 = vadd.f32 %v4573_v2, %v8268_v13  ;;  %v4577_v46 = vadd.f32 %v4576_v18, %v4464_v1  ;;  %v4466_v28 = vadd.f32 %v4465_v25, %v8423_v45  ;;  %4753 = vadd.xlane.f32.xlu1 %v4752_v7  ;;  %4660 = vadd.xlane.f32.xlu0 %v4659_v17 }
 0x84e   : > { %v4467_v48 = vpop.f32.mrf.mxu0  ;;  %v4580_v40 = vpop.f32.mrf.mxu1  ;;  %v4755_v0 = vadd.f32 %v4714_v39, %v4713_v3  ;;  %v4715_v34 = vmul.f32 %v8579_v8, %v8579_v8 }
 0x84f   : > { %v4579_v11 = vadd.f32 %v4578_v52, %v4466_v28  ;;  %v4468_v31 = vadd.f32 %v4467_v48, %v8420_v23  ;;  %v4662_v54 = vadd.f32 %v8586_v33, %v8579_v8  ;;  %v8593_v36 = vadd.f32 %v4577_v46, %v8312_v32 }
 0x850   : > { %v4469_v27 = vpop.f32.mrf.mxu0  ;;  %v4582_v13 = vpop.f32.mrf.mxu1  ;;  %v4716_v30 = vmul.f32 %v8586_v33, %v8586_v33 }
 0x851   : > { %v8600_v61 = vadd.f32 %v4579_v11, %v8293_v6  ;;  %v4581_v19 = vadd.f32 %v4580_v40, %v4468_v31  ;;  %v4470_v21 = vadd.f32 %v4469_v27, %v8423_v45  ;;  %4663 = vadd.xlane.f32.xlu1 %v4662_v54  ;;  %4756 = vadd.xlane.f32.xlu0 %v4755_v0 }
 0x852   : > { %v4473_v38 = vpop.f32.mrf.mxu0  ;;  %v4586_v53 = vpop.f32.mrf.mxu1  ;;  %v4758_v18 = vadd.f32 %v4716_v30, %v4715_v34  ;;  %v4717_v17 = vmul.f32 %v8593_v36, %v8593_v36 }
 0x853   : > { %v4583_v32 = vadd.f32 %v4582_v13, %v4470_v21  ;;  %v4474_v49 = vadd.f32 %v4473_v38, %v8420_v23  ;;  %v4665_v2 = vadd.f32 %v8600_v61, %v8593_v36  ;;  %v8607_v1 = vadd.f32 %v4581_v19, %v8308_v12 }
 0x854   : > { %v4475_v7 = vpop.f32.mrf.mxu0  ;;  %v4588_v6 = vpop.f32.mrf.mxu1  ;;  %v4718_v25 = vmul.f32 %v8600_v61, %v8600_v61 }
 0x855   : > { %v8614_v52 = vadd.f32 %v4583_v32, %v8296_v58  ;;  %v4587_v3 = vadd.f32 %v4586_v53, %v4474_v49  ;;  %v4476_v39 = vadd.f32 %v4475_v7, %v8423_v45  ;;  %4759 = vadd.xlane.f32.xlu1 %v4758_v18  ;;  %4666 = vadd.xlane.f32.xlu0 %v4665_v2 }
 0x856   : > { %v4477_v46 = vpop.f32.mrf.mxu0  ;;  %v4590_v28 = vpop.f32.mrf.mxu1  ;;  %v4761_v11 = vadd.f32 %v4718_v25, %v4717_v17  ;;  %v4719_v58 = vmul.f32 %v8607_v1, %v8607_v1 }
 0x857   : > { %v4589_v12 = vadd.f32 %v4588_v6, %v4476_v39  ;;  %v4478_v48 = vadd.f32 %v4477_v46, %v8420_v23  ;;  %v4668_v40 = vadd.f32 %v8614_v52, %v8607_v1  ;;  %v8621_v31 = vadd.f32 %v4587_v3, %v8331_v15 }
 0x858   : > { %v4479_v54 = vpop.f32.mrf.mxu0  ;;  %v4720_v0 = vmul.f32 %v8614_v52, %v8614_v52  ;;  %v4592_v34 = vpop.f32.mrf.mxu1 }
 0x859   : > { %v8628_v27 = vadd.f32 %v4589_v12, %v8319_v50  ;;  %v4591_v13 = vadd.f32 %v4590_v28, %v4478_v48  ;;  %v4480_v23 = vadd.f32 %v4479_v54, %v8423_v45  ;;  %4669 = vadd.xlane.f32.xlu1 %v4668_v40  ;;  %4762 = vadd.xlane.f32.xlu0 %v4761_v11 }
 0x85a   : > { %v4764_v19 = vadd.f32 %v4720_v0, %v4719_v58  ;;  %v4721_v45 = vmul.f32 %v8621_v31, %v8621_v31 }
 0x85b   : > { %v4593_v30 = vadd.f32 %v4592_v34, %v4480_v23  ;;  %v4671_v15 = vadd.f32 %v8628_v27, %v8621_v31  ;;  %v4722_v21 = vmul.f32 %v8628_v27, %v8628_v27  ;;  %v8636_v38 = vadd.f32 %v4591_v13, %v8328_v62 }
 0x85d   : > { %v8639_v50 = vadd.f32 %v4593_v30, %v8322_v14  ;;  %4765 = vadd.xlane.f32.xlu1 %v4764_v19  ;;  %4672 = vadd.xlane.f32.xlu0 %v4671_v15  ;;  %v4767_v32 = vadd.f32 %v4722_v21, %v4721_v45  ;;  %v4723_v62 = vmul.f32 %v8636_v38, %v8636_v38 }
 0x85f   : > { %v4674_v53 = vadd.f32 %v8639_v50, %v8636_v38  ;;  %v4724_v49 = vmul.f32 %v8639_v50, %v8639_v50 }
 0x861   : > { %4675 = vadd.xlane.f32.xlu1 %v4674_v53  ;;  %4768 = vadd.xlane.f32.xlu0 %v4767_v32  ;;  %v4770_v18 = vadd.f32 %v4724_v49, %v4723_v62 }
 0x865   : > { %4771 = vadd.xlane.f32.xlu1 %v4770_v18 }
 0x8a9   : > { %v4631_v14 = vpop.xlane.xlu0 %4630 }
 0x8aa   : > { %v4677_v2 = vmul.f32 0.00390625, %v4631_v14 }
 0x8ac   : > { %v4789_v25 = vmul.f32 %v4677_v2, %v4677_v2 }
 0x8ad   : > { %v4634_v7 = vpop.xlane.xlu1 %4633  ;;  %v4727_v6 = vpop.xlane.xlu0 %4726 }
 0x8ae   : > { %v8649_v17 = vmul.f32 0.00390625, %v4634_v7  ;;  %v4773_v3 = vmul.f32 0.00390625, %v4727_v6  ;;  %v4627_v6 = vld [vmem:[%s8951_s12] sm:$0x3] }
 0x8b0   : > { %v4805_v39 = vsub.f32 %v4773_v3, %v4789_v25  ;;  %v4790_v12 = vmul.f32 %v8649_v17, %v8649_v17 }
 0x8b1   : > { %v4730_v46 = vpop.xlane.xlu1 %4729 }
 0x8b2   : > { %v4821_v28 = vmax.f32 %v4805_v39, 0.0  ;;  %v4774_v48 = vmul.f32 0.00390625, %v4730_v46  ;;  %v4637_v40 = vpop.xlane.xlu0 %4636  ;;  %v4628_v46 = vld [vmem:[%s9030_s4] sm:$0x3] }
 0x8b3   : > { %v8653_v11 = vmul.f32 0.00390625, %v4637_v40 }
 0x8b4   : > { %v4869_v54 = vadd.f32 1e-05, %v4821_v28  ;;  %v4806_v58 = vsub.f32 %v4774_v48, %v4790_v12 }
 0x8b5   : > { %v4791_v30 = vmul.f32 %v8653_v11, %v8653_v11 }
 0x8b6   : > { %6336 = vrsqrt.f32 %v4869_v54  ;;  %v4822_v0 = vmax.f32 %v4806_v58, 0.0  ;;  %v4640_v13 = vpop.xlane.xlu1 %4639  ;;  %v4733_v23 = vpop.xlane.xlu0 %4732  ;;  %v4837_v54 = vsub.f32 %v8429_v57, %v4677_v2  ;;  %v4838_v58 = vsub.f32 %v8432_v37, %v4677_v2 }
 0x8b7   : > { %v8655_v34 = vmul.f32 0.00390625, %v4640_v13  ;;  %v4775_v19 = vmul.f32 0.00390625, %v4733_v23  ;;  %v8679_v13 = vrot.slane %v4627_v6, %v7106_v44 }
 0x8b8   : > { %v4870_v15 = vadd.f32 1e-05, %v4822_v0  ;;  %v8676_v0 = vrot.slane %v4627_v6, %v7099_v41 }
 0x8b9   : > { %v4807_v21 = vsub.f32 %v4775_v19, %v4791_v30  ;;  %v4792_v32 = vmul.f32 %v8655_v34, %v8655_v34  ;;  %v8682_v19 = vrot.slane %v4628_v46, %v7099_v41 }
 0x8ba   : > { %6338 = vrsqrt.f32 %v4870_v15  ;;  %v4736_v45 = vpop.xlane.xlu1 %4735  ;;  %v8685_v15 = vrot.slane %v4628_v46, %v7106_v44 }
 0x8bb   : > { %v4823_v53 = vmax.f32 %v4807_v21, 0.0  ;;  %v4776_v49 = vmul.f32 0.00390625, %v4736_v45 }
 0x8bc   : > { %v4643_v62 = vpop.xlane.xlu0 %4642 }
 0x8bd   : > { %v4871_v18 = vadd.f32 1e-05, %v4823_v53  ;;  %v4808_v14 = vsub.f32 %v4776_v49, %v4792_v32  ;;  %v8661_v7 = vmul.f32 0.00390625, %v4643_v62  ;;  %v4839_v32 = vsub.f32 %v8441_v51, %v8649_v17 }
 0x8be   : > { %v4840_v49 = vsub.f32 %v8444_v4, %v8649_v17 }
 0x8bf   : > { %6340 = vrsqrt.f32 %v4871_v18  ;;  %v4824_v25 = vmax.f32 %v4808_v14, 0.0  ;;  %v4793_v48 = vmul.f32 %v8661_v7, %v8661_v7 }
 0x8c0   : > { %v4646_v3 = vpop.xlane.xlu1 %4645  ;;  %v4739_v39 = vpop.xlane.xlu0 %4738 }
 0x8c1   : > { %v4872_v28 = vadd.f32 1e-05, %v4824_v25  ;;  %v8669_v12 = vmul.f32 0.00390625, %v4646_v3  ;;  %v4777_v40 = vmul.f32 0.00390625, %v4739_v39 }
 0x8c3   : > { %v6337_v23 = vpop.eup %6336  ;;  %6342 = vrsqrt.f32 %v4872_v28  ;;  %v4809_v30 = vsub.f32 %v4777_v40, %v4793_v48  ;;  %v4794_v37 = vmul.f32 %v8669_v12, %v8669_v12 }
 0x8c4   : > { %v4901_v21 = vmul.f32 %v6337_v23, %v4837_v54  ;;  %v4902_v45 = vmul.f32 %v6337_v23, %v4838_v58  ;;  %v4742_v57 = vpop.xlane.xlu1 %4741  ;;  %v4841_v54 = vsub.f32 %v8455_v26, %v8653_v11  ;;  %v4842_v58 = vsub.f32 %v8460_v22, %v8653_v11 }
 0x8c5   : > { %v4825_v53 = vmax.f32 %v4809_v30, 0.0  ;;  %v4778_v2 = vmul.f32 0.00390625, %v4742_v57  ;;  %v4843_v26 = vsub.f32 %v8470_v35, %v8655_v34 }
 0x8c6   : > { %v4944_v41 = vmul.f32 %v8676_v0, %v4901_v21  ;;  %v4945_v44 = vmul.f32 %v8679_v13, %v4902_v45  ;;  %v4649_v62 = vpop.xlane.xlu0 %4648 }
 0x8c7   : > { %v6339_v18 = vpop.eup %6338  ;;  %v4873_v14 = vadd.f32 1e-05, %v4825_v53  ;;  %v4810_v6 = vsub.f32 %v4778_v2, %v4794_v37  ;;  %v8695_v25 = vmul.f32 0.00390625, %v4649_v62 }
 0x8c8   : > { %v4987_v3 = vadd.f32 %v8682_v19, %v4944_v41  ;;  %v4988_v39 = vadd.f32 %v8685_v15, %v4945_v44  ;;  %v4903_v46 = vmul.f32 %v6339_v18, %v4839_v32  ;;  %v4904_v28 = vmul.f32 %v6339_v18, %v4840_v49 }
 0x8c9   : > { %6344 = vrsqrt.f32 %v4873_v14  ;;  %v4826_v51 = vmax.f32 %v4810_v6, 0.0  ;;  %v4795_v37 = vmul.f32 %v8695_v25, %v8695_v25  ;;  %v4844_v41 = vsub.f32 %v8473_v29, %v8655_v34 }
 0x8ca   : > { %5019 = vst [vmem:[%s8701_s20] sm:$0xff] %v4987_v3  ;;  %5020 = vst [vmem:[%s8701_s20 + $0x8] sm:$0xff] %v4988_v39  ;;  %v4946_v4 = vmul.f32 %v8676_v0, %v4903_v46  ;;  %v4947_v17 = vmul.f32 %v8679_v13, %v4904_v28  ;;  %v4652_v48 = vpop.xlane.xlu1 %4651  ;;  %v4745_v40 = vpop.xlane.xlu0 %4744 }
 0x8cb   : > { %v4874_v23 = vadd.f32 1e-05, %v4826_v51  ;;  %v4779_v30 = vmul.f32 0.00390625, %v4745_v40  ;;  %v8713_v53 = vmul.f32 0.00390625, %v4652_v48 }
 0x8cc   : > { %v6341_v21 = vpop.eup %6340  ;;  %v4989_v45 = vadd.f32 %v8682_v19, %v4946_v4  ;;  %v4990_v57 = vadd.f32 %v8685_v15, %v4947_v17 }
 0x8cd   : > { %v4905_v2 = vmul.f32 %v6341_v21, %v4841_v54  ;;  %v4906_v32 = vmul.f32 %v6341_v21, %v4842_v58  ;;  %6346 = vrsqrt.f32 %v4874_v23  ;;  %v4811_v22 = vsub.f32 %v4779_v30, %v4795_v37 }
 0x8ce   : > { %5021 = vst [vmem:[%s8701_s20 + $0x10] sm:$0xff] %v4989_v45  ;;  %5022 = vst [vmem:[%s8701_s20 + $0x18] sm:$0xff] %v4990_v57  ;;  %v4748_v11 = vpop.xlane.xlu1 %4747  ;;  %v4655_v49 = vpop.xlane.xlu0 %4654  ;;  %v4796_v3 = vmul.f32 %v8713_v53, %v8713_v53  ;;  %v4845_v57 = vsub.f32 %v8485_v43, %v8661_v7  ;;  %v4846_v37 = vsub.f32 %v8488_v55, %v8661_v7 }
 0x8cf   : > { %v4948_v44 = vmul.f32 %v8676_v0, %v4905_v2  ;;  %v4949_v62 = vmul.f32 %v8679_v13, %v4906_v32  ;;  %v4780_v18 = vmul.f32 0.00390625, %v4748_v11  ;;  %v4827_v6 = vmax.f32 %v4811_v22, 0.0 }
 0x8d0   : > { %v6343_v14 = vpop.eup %6342  ;;  %v8727_v39 = vmul.f32 0.00390625, %v4655_v49  ;;  %v4847_v43 = vsub.f32 %v8498_v10, %v8669_v12  ;;  %v4848_v7 = vsub.f32 %v8501_v42, %v8669_v12 }
 0x8d1   : > { %v4991_v35 = vadd.f32 %v8682_v19, %v4948_v44  ;;  %v4992_v46 = vadd.f32 %v8685_v15, %v4949_v62  ;;  %v4907_v28 = vmul.f32 %v6343_v14, %v4843_v26  ;;  %v4908_v29 = vmul.f32 %v6343_v14, %v4844_v41 }
 0x8d2   : > { %v4875_v34 = vadd.f32 1e-05, %v4827_v6  ;;  %v4812_v51 = vsub.f32 %v4780_v18, %v4796_v3  ;;  %v4658_v4 = vpop.xlane.xlu1 %4657  ;;  %v4751_v17 = vpop.xlane.xlu0 %4750  ;;  %v4797_v23 = vmul.f32 %v8727_v39, %v8727_v39 }
 0x8d3   : > { %5023 = vst [vmem:[%s8701_s20 + $0x20] sm:$0xff] %v4991_v35  ;;  %5024 = vst [vmem:[%s8701_s20 + $0x28] sm:$0xff] %v4992_v46  ;;  %v4950_v48 = vmul.f32 %v8676_v0, %v4907_v28  ;;  %v4951_v40 = vmul.f32 %v8679_v13, %v4908_v29  ;;  %v8735_v54 = vmul.f32 0.00390625, %v4658_v4  ;;  %v4781_v30 = vmul.f32 0.00390625, %v4751_v17 }
 0x8d4   : > { %6348 = vrsqrt.f32 %v4875_v34  ;;  %v4828_v58 = vmax.f32 %v4812_v51, 0.0 }
 0x8d5   : > { %v4993_v21 = vadd.f32 %v8682_v19, %v4950_v48  ;;  %v4994_v45 = vadd.f32 %v8685_v15, %v4951_v40  ;;  %v4813_v26 = vsub.f32 %v4781_v30, %v4797_v23  ;;  %v4798_v22 = vmul.f32 %v8735_v54, %v8735_v54 }
 0x8d6   : > { %v6345_v2 = vpop.eup %6344  ;;  %v4876_v32 = vadd.f32 1e-05, %v4828_v58  ;;  %v4754_v11 = vpop.xlane.xlu1 %4753 }
 0x8d7   : > { %v4661_v49 = vpop.xlane.xlu0 %4660  ;;  %5025 = vst [vmem:[%s8701_s20 + $0x30] sm:$0xff] %v4993_v21  ;;  %5026 = vst [vmem:[%s8701_s20 + $0x38] sm:$0xff] %v4994_v45  ;;  %v4909_v41 = vmul.f32 %v6345_v2, %v4845_v57  ;;  %v4910_v44 = vmul.f32 %v6345_v2, %v4846_v37  ;;  %v4782_v62 = vmul.f32 0.00390625, %v4754_v11  ;;  %v4829_v55 = vmax.f32 %v4813_v26, 0.0 }
 0x8d8   : > { %v8749_v18 = vmul.f32 0.00390625, %v4661_v49  ;;  %6350 = vrsqrt.f32 %v4876_v32  ;;  %v4849_v26 = vsub.f32 %v8513_v16, %v8695_v25  ;;  %v4852_v16 = vsub.f32 %v8528_v5, %v8713_v53 }
 0x8d9   : > { %v4952_v14 = vmul.f32 %v8676_v0, %v4909_v41  ;;  %v4953_v6 = vmul.f32 %v8679_v13, %v4910_v44  ;;  %v4814_v3 = vsub.f32 %v4782_v62, %v4798_v22  ;;  %v4877_v46 = vadd.f32 1e-05, %v4829_v55 }
 0x8da   : > { %v6347_v35 = vpop.eup %6346  ;;  %v4664_v28 = vpop.xlane.xlu1 %4663  ;;  %v4799_v29 = vmul.f32 %v8749_v18, %v8749_v18  ;;  %v4850_v22 = vsub.f32 %v8516_v59, %v8695_v25 }
 0x8db   : > { %v4757_v34 = vpop.xlane.xlu0 %4756  ;;  %v4995_v10 = vadd.f32 %v8682_v19, %v4952_v14  ;;  %v4996_v51 = vadd.f32 %v8685_v15, %v4953_v6  ;;  %v4911_v4 = vmul.f32 %v6347_v35, %v4847_v43  ;;  %v4912_v42 = vmul.f32 %v6347_v35, %v4848_v7 }
 0x8dc   : > { %6352 = vrsqrt.f32 %v4877_v46  ;;  %v4830_v12 = vmax.f32 %v4814_v3, 0.0  ;;  %v8761_v17 = vmul.f32 0.00390625, %v4664_v28  ;;  %v4783_v48 = vmul.f32 0.00390625, %v4757_v34 }
 0x8dd   : > { %5027 = vst [vmem:[%s8701_s20 + $0x40] sm:$0xff] %v4995_v10  ;;  %5028 = vst [vmem:[%s8701_s20 + $0x48] sm:$0xff] %v4996_v51  ;;  %v4954_v40 = vmul.f32 %v8676_v0, %v4911_v4  ;;  %v4955_v58 = vmul.f32 %v8679_v13, %v4912_v42  ;;  %v4851_v6 = vsub.f32 %v8523_v56, %v8713_v53 }
 0x8de   : > { %v4878_v23 = vadd.f32 1e-05, %v4830_v12  ;;  %v4815_v30 = vsub.f32 %v4783_v48, %v4799_v29  ;;  %v4760_v21 = vpop.xlane.xlu1 %4759  ;;  %v4800_v2 = vmul.f32 %v8761_v17, %v8761_v17 }
 0x8df   : > { %v4667_v45 = vpop.xlane.xlu0 %4666  ;;  %v4997_v57 = vadd.f32 %v8682_v19, %v4954_v40  ;;  %v4998_v37 = vadd.f32 %v8685_v15, %v4955_v58  ;;  %v4784_v32 = vmul.f32 0.00390625, %v4760_v21 }
 0x8e0   : > { %6354 = vrsqrt.f32 %v4878_v23  ;;  %v4831_v11 = vmax.f32 %v4815_v30, 0.0  ;;  %v8777_v44 = vmul.f32 0.00390625, %v4667_v45  ;;  %v4853_v23 = vsub.f32 %v8537_v20, %v8727_v39 }
 0x8e1   : > { %v6349_v49 = vpop.eup %6348  ;;  %5029 = vst [vmem:[%s8701_s20 + $0x50] sm:$0xff] %v4997_v57  ;;  %5030 = vst [vmem:[%s8701_s20 + $0x58] sm:$0xff] %v4998_v37  ;;  %v4816_v41 = vsub.f32 %v4784_v32, %v4800_v2  ;;  %v4854_v30 = vsub.f32 %v8544_v47, %v8727_v39  ;;  %v4855_v20 = vsub.f32 %v8551_v24, %v8735_v54 }
 0x8e2   : > { %v4913_v62 = vmul.f32 %v6349_v49, %v4849_v26  ;;  %v4914_v43 = vmul.f32 %v6349_v49, %v4850_v22  ;;  %v4879_v55 = vadd.f32 1e-05, %v4831_v11  ;;  %v4670_v7 = vpop.xlane.xlu1 %4669  ;;  %v4801_v34 = vmul.f32 %v8777_v44, %v8777_v44 }
 0x8e3   : > { %v4763_v14 = vpop.xlane.xlu0 %4762  ;;  %v4832_v59 = vmax.f32 %v4816_v41, 0.0  ;;  %v8783_v25 = vmul.f32 0.00390625, %v4670_v7  ;;  %v4856_v39 = vsub.f32 %v8558_v9, %v8735_v54 }
 0x8e4   : > { %v4956_v3 = vmul.f32 %v8676_v0, %v4913_v62  ;;  %v4957_v35 = vmul.f32 %v8679_v13, %v4914_v43  ;;  %6356 = vrsqrt.f32 %v4879_v55  ;;  %v4785_v46 = vmul.f32 0.00390625, %v4763_v14 }
 0x8e5   : > { %v6351_v28 = vpop.eup %6350  ;;  %v4880_v29 = vadd.f32 1e-05, %v4832_v59  ;;  %v4802_v12 = vmul.f32 %v8783_v25, %v8783_v25 }
 0x8e6   : > { %v4999_v56 = vadd.f32 %v8682_v19, %v4956_v3  ;;  %v5000_v5 = vadd.f32 %v8685_v15, %v4957_v35  ;;  %v4915_v53 = vmul.f32 %v6351_v28, %v4851_v6  ;;  %v4916_v10 = vmul.f32 %v6351_v28, %v4852_v16  ;;  %v4766_v51 = vpop.xlane.xlu1 %4765 }
 0x8e7   : > { %v4673_v4 = vpop.xlane.xlu0 %4672  ;;  %6358 = vrsqrt.f32 %v4880_v29  ;;  %v4817_v42 = vsub.f32 %v4785_v46, %v4801_v34  ;;  %v4786_v48 = vmul.f32 0.00390625, %v4766_v51 }
 0x8e8   : > { %5031 = vst [vmem:[%s8701_s20 + $0x60] sm:$0xff] %v4999_v56  ;;  %5032 = vst [vmem:[%s8701_s20 + $0x68] sm:$0xff] %v5000_v5  ;;  %v4958_v40 = vmul.f32 %v8676_v0, %v4915_v53  ;;  %v4959_v58 = vmul.f32 %v8679_v13, %v4916_v10  ;;  %v8801_v37 = vmul.f32 0.00390625, %v4673_v4  ;;  %v4857_v56 = vsub.f32 %v8565_v60, %v8749_v18 }
 0x8e9   : > { %v6353_v21 = vpop.eup %6352  ;;  %v4833_v45 = vmax.f32 %v4817_v42, 0.0  ;;  %v4818_v57 = vsub.f32 %v4786_v48, %v4802_v12  ;;  %v4858_v5 = vsub.f32 %v8572_v63, %v8749_v18 }
 0x8ea   : > { %v5001_v2 = vadd.f32 %v8682_v19, %v4958_v40  ;;  %v5002_v32 = vadd.f32 %v8685_v15, %v4959_v58  ;;  %v4917_v26 = vmul.f32 %v6353_v21, %v4853_v23  ;;  %v4918_v22 = vmul.f32 %v6353_v21, %v4854_v30  ;;  %v4676_v11 = vpop.xlane.xlu1 %4675 }
 0x8eb   : > { %v4769_v49 = vpop.xlane.xlu0 %4768  ;;  %v4881_v41 = vadd.f32 1e-05, %v4833_v45  ;;  %v4834_v62 = vmax.f32 %v4818_v57, 0.0  ;;  %v8807_v47 = vmul.f32 0.00390625, %v4676_v11  ;;  %v4803_v24 = vmul.f32 %v8801_v37, %v8801_v37 }
 0x8ec   : > { %5033 = vst [vmem:[%s8701_s20 + $0x70] sm:$0xff] %v5001_v2  ;;  %5034 = vst [vmem:[%s8701_s20 + $0x78] sm:$0xff] %v5002_v32  ;;  %v4960_v43 = vmul.f32 %v8676_v0, %v4917_v26  ;;  %v4961_v55 = vmul.f32 %v8679_v13, %v4918_v22  ;;  %v4787_v7 = vmul.f32 0.00390625, %v4769_v49  ;;  %v4859_v40 = vsub.f32 %v8579_v8, %v8761_v17 }
 0x8ed   : > { %v6355_v14 = vpop.eup %6354  ;;  %6360 = vrsqrt.f32 %v4881_v41  ;;  %v4882_v6 = vadd.f32 1e-05, %v4834_v62  ;;  %v4804_v46 = vmul.f32 %v8807_v47, %v8807_v47  ;;  %v4860_v58 = vsub.f32 %v8586_v33, %v8761_v17 }
 0x8ee   : > { %v5003_v16 = vadd.f32 %v8682_v19, %v4960_v43  ;;  %v5004_v59 = vadd.f32 %v8685_v15, %v4961_v55  ;;  %v4919_v3 = vmul.f32 %v6355_v14, %v4855_v20  ;;  %v4920_v35 = vmul.f32 %v6355_v14, %v4856_v39  ;;  %v4772_v9 = vpop.xlane.xlu1 %4771 }
 0x8ef   : > { %6362 = vrsqrt.f32 %v4882_v6  ;;  %v4819_v54 = vsub.f32 %v4787_v7, %v4803_v24  ;;  %v4788_v28 = vmul.f32 0.00390625, %v4772_v9  ;;  %v4861_v22 = vsub.f32 %v8593_v36, %v8777_v44 }
 0x8f0   : > { %5035 = vst [vmem:[%s8701_s20 + $0x80] sm:$0xff] %v5003_v16  ;;  %5036 = vst [vmem:[%s8701_s20 + $0x88] sm:$0xff] %v5004_v59  ;;  %v4962_v29 = vmul.f32 %v8676_v0, %v4919_v3  ;;  %v4963_v34 = vmul.f32 %v8679_v13, %v4920_v35  ;;  %v4862_v11 = vsub.f32 %v8600_v61, %v8777_v44 }
 0x8f1   : > { %v6357_v53 = vpop.eup %6356  ;;  %v4835_v10 = vmax.f32 %v4819_v54, 0.0  ;;  %v4820_v51 = vsub.f32 %v4788_v28, %v4804_v46  ;;  %v4863_v20 = vsub.f32 %v8607_v1, %v8783_v25  ;;  %v4864_v41 = vsub.f32 %v8614_v52, %v8783_v25 }
 0x8f2   : > { %v5005_v4 = vadd.f32 %v8682_v19, %v4962_v29  ;;  %v5006_v42 = vadd.f32 %v8685_v15, %v4963_v34  ;;  %v4921_v12 = vmul.f32 %v6357_v53, %v4857_v56  ;;  %v4922_v48 = vmul.f32 %v6357_v53, %v4858_v5 }
 0x8f3   : > { %v4883_v23 = vadd.f32 1e-05, %v4835_v10  ;;  %v4836_v60 = vmax.f32 %v4820_v51, 0.0  ;;  %v4865_v24 = vsub.f32 %v8621_v31, %v8801_v37  ;;  %v4866_v16 = vsub.f32 %v8628_v27, %v8801_v37 }
 0x8f4   : > { %v6359_v63 = vpop.eup %6358  ;;  %5037 = vst [vmem:[%s8701_s20 + $0x90] sm:$0xff] %v5005_v4  ;;  %5038 = vst [vmem:[%s8701_s20 + $0x98] sm:$0xff] %v5006_v42  ;;  %v4964_v18 = vmul.f32 %v8676_v0, %v4921_v12  ;;  %v4965_v30 = vmul.f32 %v8679_v13, %v4922_v48  ;;  %v4867_v3 = vsub.f32 %v8636_v38, %v8807_v47 }
 0x8f5   : > { %v4923_v21 = vmul.f32 %v6359_v63, %v4859_v40  ;;  %v4924_v45 = vmul.f32 %v6359_v63, %v4860_v58  ;;  %6364 = vrsqrt.f32 %v4883_v23  ;;  %v4884_v8 = vadd.f32 1e-05, %v4836_v60 }
 0x8f6   : > { %v5007_v57 = vadd.f32 %v8682_v19, %v4964_v18  ;;  %v5008_v33 = vadd.f32 %v8685_v15, %v4965_v30  ;;  %v4868_v35 = vsub.f32 %v8639_v50, %v8807_v47 }
 0x8f7   : > { %v4966_v17 = vmul.f32 %v8676_v0, %v4923_v21  ;;  %v4967_v2 = vmul.f32 %v8679_v13, %v4924_v45  ;;  %6366 = vrsqrt.f32 %v4884_v8 }
 0x8f8   : > { %5039 = vst [vmem:[%s8701_s20 + $0xa0] sm:$0xff] %v5007_v57  ;;  %5040 = vst [vmem:[%s8701_s20 + $0xa8] sm:$0xff] %v5008_v33 }
 0x8f9   : > { %v5009_v32 = vadd.f32 %v8682_v19, %v4966_v17  ;;  %v5010_v26 = vadd.f32 %v8685_v15, %v4967_v2 }
 0x8fa   : > { %v6361_v49 = vpop.eup %6360 }
 0x8fb   : > { %5041 = vst [vmem:[%s8701_s20 + $0xb0] sm:$0xff] %v5009_v32  ;;  %5042 = vst [vmem:[%s8701_s20 + $0xb8] sm:$0xff] %v5010_v26  ;;  %v4925_v62 = vmul.f32 %v6361_v49, %v4861_v22  ;;  %v4926_v39 = vmul.f32 %v6361_v49, %v4862_v11 }
 0x8fc   : > { %v6363_v43 = vpop.eup %6362 }
 0x8fd   : > { %v4968_v36 = vmul.f32 %v8676_v0, %v4925_v62  ;;  %v4969_v61 = vmul.f32 %v8679_v13, %v4926_v39  ;;  %v4927_v44 = vmul.f32 %v6363_v43, %v4863_v20  ;;  %v4928_v55 = vmul.f32 %v6363_v43, %v4864_v41 }
 0x8ff   : > { %v5011_v7 = vadd.f32 %v8682_v19, %v4968_v36  ;;  %v5012_v14 = vadd.f32 %v8685_v15, %v4969_v61  ;;  %v4970_v1 = vmul.f32 %v8676_v0, %v4927_v44  ;;  %v4971_v6 = vmul.f32 %v8679_v13, %v4928_v55 }
 0x901   : > { %5043 = vst [vmem:[%s8701_s20 + $0xc0] sm:$0xff] %v5011_v7  ;;  %5044 = vst [vmem:[%s8701_s20 + $0xc8] sm:$0xff] %v5012_v14  ;;  %v5013_v52 = vadd.f32 %v8682_v19, %v4970_v1  ;;  %v5014_v25 = vadd.f32 %v8685_v15, %v4971_v6 }
 0x902   : > { %v6365_v59 = vpop.eup %6364 }
 0x903   : > { %5045 = vst [vmem:[%s8701_s20 + $0xd0] sm:$0xff] %v5013_v52  ;;  %5046 = vst [vmem:[%s8701_s20 + $0xd8] sm:$0xff] %v5014_v25  ;;  %v4929_v9 = vmul.f32 %v6365_v59, %v4865_v24  ;;  %v4930_v54 = vmul.f32 %v6365_v59, %v4866_v16 }
 0x904   : > { %v6367_v46 = vpop.eup %6366 }
 0x905   : > { %v4972_v28 = vmul.f32 %v8676_v0, %v4929_v9  ;;  %v4973_v31 = vmul.f32 %v8679_v13, %v4930_v54  ;;  %v4931_v27 = vmul.f32 %v6367_v46, %v4867_v3  ;;  %v4932_v37 = vmul.f32 %v6367_v46, %v4868_v35 }
 0x907   : > { %v5015_v38 = vadd.f32 %v8682_v19, %v4972_v28  ;;  %v5016_v50 = vadd.f32 %v8685_v15, %v4973_v31  ;;  %v4974_v47 = vmul.f32 %v8676_v0, %v4931_v27  ;;  %v4975_v29 = vmul.f32 %v8679_v13, %v4932_v37 }
 0x909   : > { %5047 = vst [vmem:[%s8701_s20 + $0xe0] sm:$0xff] %v5015_v38  ;;  %5048 = vst [vmem:[%s8701_s20 + $0xe8] sm:$0xff] %v5016_v50  ;;  %v5017_v34 = vadd.f32 %v8682_v19, %v4974_v47  ;;  %v5018_v56 = vadd.f32 %v8685_v15, %v4975_v29 }
 0x90b   : > { %5049 = vst [vmem:[%s8701_s20 + $0xf0] sm:$0xff] %v5017_v34  ;;  %5050 = vst [vmem:[%s8701_s20 + $0xf8] sm:$0xff] %v5018_v56 }
 0x90c   : > { %6597 = shalt.err (!%p6594_p3)
}
 0x90d   : > { %s6598_s3 = scalar_lea.hbm %s8888_s18, 4096  ;;  %s6602_s20 = scalar_lea.hbm %s9031_s17, 8192 }
 0x90e   : > { %p6599_p6 = scmp.ne.s32.totalorder %s8888_s18, %s6598_s3  ;;  %p6603_p11 = scmp.lt.s32.totalorder %s8888_s18, %s9031_s17 }
 0x90f   : > { %p6604_p7 = scmp.lt.s32.totalorder %s6602_s20, %s6598_s3 }
 0x910   : > { %p6600_p10 = pnand %p6599_p6, %p9032_p5 }
 0x911   : > { %p6605_p0 = por %p6604_p7, %p6603_p11 }
 0x912   : > { %p6601_p12 = pneg %p6600_p10 }
 0x914   : > { %p6606_p2 = pnand %p6605_p0, %p6601_p12 }
 0x916   : > { %6609 = shalt.err (!%p6606_p2)
}
 0x917   : > { %s6677_s23 = smov 256   ;;  %s6678_s1 = smov 16  }
 0x918   : > { %5702 = dma.vmem_to_hbm [thread:$0]  (%p9032_p5), %s8890_s13, 4096, %s8888_s18, %s5052_s19, %s6677_s23, %s6677_s23, %s6678_s1  }
 0x919 PF: > { %s5081_s8 = sand.u32 1, %s6648_s29   ;;  %p9033_p9 = scmp.ne.s32.totalorder %s8994_s27, 0 }
 0x91a   : > { %p9034_p8 = scmp.ge.s32.totalorder %s6660_s16, 2  ;;  %s5082_s22 = scalar_lea.sflag [#allocation4], %s5081_s8 }
 0x91c   : > { %p5728_p4 = pnand %p9034_p8, %p9033_p9 }
 0x91e   : > { %p5729_p13 = pneg %p5728_p4 }
 0x920   : > { %6643 = dma.done.wait (%p5729_p13), %s5082_s22, 4096  }
 0x921   : > { %6645 = vsyncadd (%p5729_p13), %s5082_s22, 4294963200  ;;  %p30_p1 = scmp.ge.s32.totalorder %s6862_s26, 4   ;;  %s9035_s29 = smov %s6652_s30 }
 0x922   : > { %s9036_s30 = smov %s6656_s15  ;;  %s9037_s15 = smov %s6873_s24 }
 0x923   : > { %s9038_s16 = smov %s6862_s26  ;;  %32 = sbr.rel (!%p30_p1) target bundleno = 17 (0x11), region = 145 }
 0x928   :  { %5087 = vsyncpa [#allocation3], 1 }
 0x929   :  { %5089 = vsyncpa [#allocation3 + $0x1], 1 }
 0x92a   :  { %5090 = vsyncpa [#allocation6], 1 }
 0x92b   :  { %5091 = vsyncpa [#allocation9], 1 }
 0x92c   :  { %5092 = vsyncpa [#allocation12], 1 }
 0x92d   :  { %5093 = vsyncpa [#allocation4], 1 }
 0x92e   :  { %5095 = vsyncpa [#allocation4 + $0x1], 1 }

// kernel: tpu_custom_call.1
= control target key start
LH: loop header
LB: loop body
LE: loop exit
PB: predicated region body
PF: predicated region fallthrough
CT: control target
= control target key end

     0   :  { %s8939_s0 = inlined_call_operand.hbm [shape: f32[256,256], index: 0, kind: input, shape index: {}]   ;;  %s8940_s1 = inlined_call_operand.hbm [shape: f32[128,128], index: 1, kind: input, shape index: {}]   ;;  %s8941_s2 = inlined_call_operand.hbm [shape: bf16[256,768], index: 2, kind: input, shape index: {}]   ;;  %s8942_s3 = inlined_call_operand.hbm [shape: f32[1,768], index: 3, kind: input, shape index: {}]   ;;  %s8943_s4 = inlined_call_operand.hbm [shape: bf16[256,256], index: 4, kind: input, shape index: {}]   ;;  %s8944_s5 = inlined_call_operand.vmem [shape: f32[1,256], index: 5, kind: input, shape index: {}]   ;;  %s8945_s6 = inlined_call_operand.vmem [shape: f32[1,256], index: 6, kind: input, shape index: {}]   ;;  %s8946_s7 = inlined_call_operand.vmem [shape: f32[1,256], index: 7, kind: input, shape index: {}]   ;;  %s8947_s8 = inlined_call_operand.hbm [shape: bf16[256,512], index: 8, kind: input, shape index: {}]   ;;  %s8948_s9 = inlined_call_operand.vmem [shape: f32[1,512], index: 9, kind: input, shape index: {}]   ;;  %s8949_s10 = inlined_call_operand.hbm [shape: bf16[512,256], index: 10, kind: input, shape index: {}]   ;;  %s8950_s11 = inlined_call_operand.vmem [shape: f32[1,256], index: 11, kind: input, shape index: {}]   ;;  %s8951_s12 = inlined_call_operand.vmem [shape: f32[1,256], index: 12, kind: input, shape index: {}]   ;;  %s8952_s13 = inlined_call_operand.vmem [shape: f32[1,256], index: 13, kind: input, shape index: {}]   ;;  %s8953_s14 = inlined_call_operand.hbm [shape: f32[256,256], index: 14, kind: output, shape index: {}]  }
   0x1   :  { %8972 = sst [smem:[#allocation25_spill]] %s8940_s1 }
   0x2   :  { %8973 = sst [smem:[#allocation26_spill]] %s8941_s2 }
   0x3   :  { %8974 = sst [smem:[#allocation27_spill]] %s8942_s3 }
   0x4   :  { %8975 = sst [smem:[#allocation28_spill]] %s8943_s4 }
   0x5   :  { %8976 = sst [smem:[#allocation29_spill]] %s8947_s8 }
   0x6   :  { %8977 = sst [smem:[#allocation30_spill]] %s8949_s10 }
   0x7   :  { %8978 = sst [smem:[#allocation31_spill]] %s8952_s13 }
   0x8   :  { %8979 = sst [smem:[#allocation32_spill]] %s8953_s14 }
   0x9   :  { %19 = vsyncpa [#allocation3], 0 }
   0xa   :  { %21 = vsyncpa [#allocation3 + $0x1], 0 }
   0xb   :  { %22 = vsyncpa [#allocation6], 0 }
   0xc   :  { %23 = vsyncpa [#allocation9], 0 }
   0xd   :  { %24 = vsyncpa [#allocation12], 0 }
   0xe   :  { %25 = vsyncpa [#allocation4], 0 }
   0xf   :  { %27 = vsyncpa [#allocation4 + $0x1], 0  ;;  %s6754_s29 = smov 0   ;;  %s6756_s30 = smov 0  }
  0x10   :  { %s6758_s15 = smov 0   ;;  %s6760_s16 = smov 0  }
  0x11 LB: > { %s6662_s17 = smov [#allocation5]   ;;  %s6775_s19 = sadd.s32 4294967295, %s6660_s16   ;;  %s6660_s16 = sphi %s6760_s16, %s9038_s16   ;;  %s6656_s15 = sphi %s6758_s15, %s9037_s15   ;;  %s6652_s30 = sphi %s6756_s30, %s9036_s30   ;;  %s6648_s29 = sphi %s6754_s29, %s9035_s29  }
  0x12   : > { %s375_s18 = sshll.u32 %s6662_s17, 4  ;;  %p5197_p0 = scmp.ge.s32.totalorder %s6660_s16, 1  ;;  %s376_s18 = int_to_ptr.vmem [resolvable:$true] %s375_s18 }
  0x13   : > { %p8961_p1 = scmp.eq.s32.totalorder %s6775_s19, 0  ;;  %p363_p2 = scmp.lt.s32.totalorder %s6660_s16, 3 }
  0x14   : > { %s6663_s21 = smov [#allocation8]   ;;  %s6664_s24 = smov [#allocation11]  }
  0x15   : > { %p6780_p3 = pnand %p5197_p0, %p363_p2  ;;  %s402_s22 = sshll.u32 %s6663_s21, 4  ;;  %s403_s22 = int_to_ptr.vmem [resolvable:$true] %s402_s22 }
  0x16   : > { %s434_s25 = sshll.u32 %s6664_s24, 4  ;;  %s6411_s27 = scalar_lea.vmem %s376_s18, 2048  ;;  %s6793_s25 = int_to_ptr.vmem [resolvable:$true] %s434_s25 }
  0x17   : > { %s8980_s20 = scalar_select %p6780_p3, 1, 0 }
  0x18   : > { %p5704_p5 = pneg %p6780_p3  ;;  %p6412_p8 = scmp.ne.s32.totalorder %s376_s18, %s6411_s27 }
  0x19   : > { %p6419_p11 = scmp.lt.s32.totalorder %s376_s18, %s376_s18  ;;  %p6420_p12 = scmp.lt.s32.totalorder %s6411_s27, %s6411_s27 }
  0x1a   : > { %p6789_p6 = pnand %p5704_p5, %p8961_p1 }
  0x1b   : > { %p6421_p13 = por %p6420_p12, %p6419_p11 }
  0x1c   : > { %p6797_p7 = pneg %p6789_p6 }
  0x1e   : > { %p6414_p9 = pnand %p6412_p8, %p6797_p7 }
  0x20   : > { %p6415_p10 = pneg %p6414_p9 }
  0x22   : > { %p6422_p0 = pnand %p6421_p13, %p6415_p10 }
  0x24   : > { %6425 = shalt.err (!%p6422_p0)
}
  0x25   : > { %s8955_s28 = smov 128   ;;  %s8957_s17 = smov 8  }
  0x26   : > { %s8983_s1 = sld [smem:[#allocation25_spill]]  ;;  %s6437_s14 = scalar_lea.vmem %s403_s22, 96 }
  0x27   : > { %p6438_p2 = scmp.ne.s32.totalorder %s403_s22, %s6437_s14  ;;  %p6445_p9 = scmp.lt.s32.totalorder %s403_s22, %s403_s22 }
  0x28   : > { %p6446_p10 = scmp.lt.s32.totalorder %s6437_s14, %s6437_s14 }
  0x29   : > { %p6440_p5 = pnand %p6438_p2, %p6797_p7 }
  0x2a   : > { %p6447_p11 = por %p6446_p10, %p6445_p9 }
  0x2b   : > { %p6441_p8 = pneg %p6440_p5 }
  0x2c   : > { %5707 = dma.hbm_to_vmem [thread:$0]  (!%p6789_p6), %s8983_s1, 2048, %s376_s18, [#allocation6], %s8955_s28, %s8955_s28, %s8957_s17  }
  0x2d   : > { %p6448_p12 = pnand %p6447_p11, %p6441_p8 }
  0x2f   : > { %6451 = shalt.err (!%p6448_p12)
}
  0x30   : > { %s8984_s3 = sld [smem:[#allocation27_spill]]  ;;  %s6463_s18 = scalar_lea.vmem %s6793_s25, 8192 }
  0x31   : > { %p6464_p13 = scmp.ne.s32.totalorder %s6793_s25, %s6463_s18  ;;  %p6471_p5 = scmp.lt.s32.totalorder %s6793_s25, %s6793_s25 }
  0x32   : > { %p6472_p9 = scmp.lt.s32.totalorder %s6463_s18, %s6463_s18 }
  0x33   : > { %p6466_p0 = pnand %p6464_p13, %p6797_p7 }
  0x34   : > { %p6473_p8 = por %p6472_p9, %p6471_p5 }
  0x35   : > { %p6467_p2 = pneg %p6466_p0 }
  0x36   : > { %5713 = dma.hbm_to_vmem [thread:$0]  (!%p6789_p6), %s8984_s3, 96, %s403_s22, [#allocation9]  }
  0x37   : > { %p6474_p10 = pnand %p6473_p8, %p6467_p2 }
  0x39   : > { %6477 = shalt.err (!%p6474_p10)
}
  0x3a   : > { %s8959_s14 = smov 256   ;;  %s8960_s13 = smov 16  }
  0x3b   : > { %s8985_s8 = sld [smem:[#allocation29_spill]]  ;;  %s6669_s24 = smov [#allocation7]  }
  0x3c   : > { %s388_s27 = sshll.u32 %s6669_s24, 4  ;;  %s389_s27 = int_to_ptr.vmem [resolvable:$true] %s388_s27 }
  0x3d   : > { %s6489_s18 = scalar_lea.vmem %s389_s27, 12288  ;;  %p6497_p0 = scmp.lt.s32.totalorder %s389_s27, %s389_s27 }
  0x3e   : > { %p6490_p11 = scmp.ne.s32.totalorder %s389_s27, %s6489_s18  ;;  %p6498_p2 = scmp.lt.s32.totalorder %s6489_s18, %s6489_s18 }
  0x40   : > { %p6492_p12 = pnand %p6490_p11, %p6797_p7  ;;  %p6499_p5 = por %p6498_p2, %p6497_p0 }
  0x41   : > { %5719 = dma.hbm_to_vmem [thread:$0]  (!%p6789_p6), %s8985_s8, 8192, %s6793_s25, [#allocation12], %s8959_s14, %s8959_s14, %s8960_s13  }
  0x42   : > { %p6493_p13 = pneg %p6492_p12 }
  0x44   : > { %p6500_p9 = pnand %p6499_p5, %p6493_p13 }
  0x46   : > { %6503 = shalt.err (!%p6500_p9)
}
  0x47   : > { %s6670_s28 = smov 384   ;;  %s6671_s17 = smov 24  }
  0x48   : > { %s8986_s2 = sld [smem:[#allocation26_spill]]  ;;  %s6672_s21 = smov [#allocation10]  }
  0x49   : > { %s412_s24 = sshll.u32 %s6672_s21, 4  ;;  %s6673_s14 = smov [#allocation13]   ;;  %s413_s24 = int_to_ptr.vmem [resolvable:$true] %s412_s24 }
  0x4a   : > { %s450_s13 = sshll.u32 %s6673_s14, 4  ;;  %s6515_s1 = scalar_lea.vmem %s413_s24, 4096  ;;  %s451_s13 = int_to_ptr.vmem [resolvable:$true] %s450_s13 }
  0x4b   : > { %p6516_p8 = scmp.ne.s32.totalorder %s413_s24, %s6515_s1  ;;  %p6523_p12 = scmp.lt.s32.totalorder %s413_s24, %s413_s24 }
  0x4c   : > { %p6524_p13 = scmp.lt.s32.totalorder %s6515_s1, %s6515_s1 }
  0x4d   : > { %p6518_p10 = pnand %p6516_p8, %p6797_p7 }
  0x4e   : > { %5710 = dma.hbm_to_vmem [thread:$0]  (!%p6789_p6), %s8986_s2, 12288, %s389_s27, [#allocation6], %s6670_s28, %s6670_s28, %s6671_s17  }
  0x4f   : > { %p6519_p11 = pneg %p6518_p10  ;;  %p6525_p0 = por %p6524_p13, %p6523_p12 }
  0x51   : > { %p6526_p2 = pnand %p6525_p0, %p6519_p11 }
  0x53   : > { %6529 = shalt.err (!%p6526_p2)
}
  0x54   : > { %s8987_s18 = smov 8   ;;  %s8988_s28 = smov 128  }
  0x55   : > { %s8989_s4 = sld [smem:[#allocation28_spill]]  ;;  %s6541_s14 = scalar_lea.vmem %s451_s13, 8192 }
  0x56   : > { %p6542_p5 = scmp.ne.s32.totalorder %s451_s13, %s6541_s14  ;;  %p6549_p10 = scmp.lt.s32.totalorder %s451_s13, %s451_s13 }
  0x57   : > { %p6550_p4 = scmp.lt.s32.totalorder %s6541_s14, %s6541_s14 }
  0x58   : > { %p6544_p9 = pnand %p6542_p5, %p6797_p7 }
  0x59   : > { %p6551_p12 = por %p6550_p4, %p6549_p10 }
  0x5a   : > { %p6545_p8 = pneg %p6544_p9 }
  0x5b   : > { %5716 = dma.hbm_to_vmem [thread:$0]  (!%p6789_p6), %s8989_s4, 4096, %s413_s24, [#allocation9], %s8988_s28, %s8988_s28, %s8987_s18  }
  0x5c   : > { %p6552_p11 = pnand %p6551_p12, %p6545_p8 }
  0x5e   : > { %6555 = shalt.err (!%p6552_p11)
}
  0x5f   : > { %s8990_s10 = sld [smem:[#allocation30_spill]]  ;;  %s5196_s23 = sadd.s32 4294967294, %s6660_s16  }
  0x60   : > { %s6862_s26 = sadd.s32 1, %s6660_s16   ;;  %s40_s21 = sadd.s32 1, %s6656_s15 }
  0x61   : > { %s37_s25 = ssub.s32 %s6660_s16, %s6862_s26  ;;  %p47_p7 = scmp.ne.s32.totalorder %s6656_s15, %s6652_s30 }
  0x62   : > { %p38_p4 = scmp.eq.s32.totalorder %s37_s25, 0  ;;  %p48_p13 = scmp.eq.s32.totalorder %s6660_s16, 0 }
  0x63   : > { %p53_p0 = scmp.ne.s32.totalorder %s6652_s30, %s6648_s29  ;;  %p350_p5 = scmp.eq.s32.totalorder %s6775_s19, 1 }
  0x64   : > { %s6873_s24 = scalar_select %p38_p4, %s6656_s15, %s40_s21  }
  0x65   : > { %5722 = dma.hbm_to_vmem [thread:$0]  (!%p6789_p6), %s8990_s10, 8192, %s451_s13, [#allocation12], %s8988_s28, %s8988_s28, %s8987_s18  }
  0x66   : > { %p6875_p2 = por %p48_p13, %p47_p7  ;;  %p6881_p6 = por %p8961_p1, %p53_p0 }
  0x67   : > { %p356_p9 = scmp.eq.s32.totalorder %s5196_s23, 1  ;;  %p5737_p8 = scmp.lt.s32.totalorder %s6660_s16, 2 }
  0x68   : > { %s8992_s13 = scalar_select %p6881_p6, 1, 0 }
  0x69   : > { %s473_s18 = sand.u32 1, %s6656_s15   ;;  %p6888_p10 = por %p350_p5, %p47_p7 }
  0x6a   : > { %p6892_p12 = por %p356_p9, %p53_p0  ;;  %s5205_s14 = sshll.u32 %s473_s18, 8 }
  0x6b   : > { %s8993_s28 = scalar_select %p6888_p10, 1, 0 }
  0x6c   : > { %s8994_s27 = scalar_select %p6892_p12, 1, 0 }
  0x6d   : > { %s5481_s1 = sshll.u32 %s6660_s16, 12  ;;  %s477_s23 = scalar_lea.vmem [#allocation2], %s5205_s14 }
  0x6e   : > { %s6900_s21 = scalar_lea.hbm %s8939_s0, %s5481_s1  ;;  %s485_s2 = sshll.u32 %s477_s23, 4  ;;  %s6902_s2 = int_to_ptr.vmem [resolvable:$true] %s485_s2 }
  0x6f   : > { %p6906_p11 = pnand %p5737_p8, %p6875_p2  ;;  %s6910_s4 = scalar_lea.sflag [#allocation3], %s473_s18 }
  0x70   : > { %s6556_s8 = scalar_lea.hbm %s6900_s21, 4096  ;;  %s6561_s14 = scalar_lea.hbm %s8939_s0, 8192 }
  0x71   : > { %p6557_p4 = scmp.ne.s32.totalorder %s6900_s21, %s6556_s8  ;;  %p6558_p7 = pneg %p6906_p11 }
  0x72   : > { %p6562_p2 = scmp.lt.s32.totalorder %s6900_s21, %s8939_s0  ;;  %p6563_p5 = scmp.lt.s32.totalorder %s6561_s14, %s6556_s8 }
  0x73   : > { %p6559_p13 = pnand %p6558_p7, %p6557_p4 }
  0x74   : > { %p6564_p9 = por %p6563_p5, %p6562_p2 }
  0x75   : > { %p6560_p0 = pneg %p6559_p13 }
  0x77   : > { %p6565_p8 = pnand %p6564_p9, %p6560_p0 }
  0x79   : > { %6568 = shalt.err (!%p6565_p8)
}
  0x7a   : > { %s6569_s17 = scalar_lea.vmem %s6902_s2, 4096  ;;  %s6674_s18 = smov [#allocation2]  }
  0x7b   : > { %p6570_p1 = scmp.ne.s32.totalorder %s6902_s2, %s6569_s17  ;;  %s6574_s10 = sshll.u32 %s6674_s18, 4  ;;  %s6575_s10 = int_to_ptr.vmem [resolvable:$false] %s6574_s10 }
  0x7c   : > { %s6576_s1 = scalar_lea.vmem %s6575_s10, 8192  ;;  %p6577_p13 = scmp.lt.s32.totalorder %s6902_s2, %s6575_s10 }
  0x7d   : > { %p6572_p12 = pnand %p6570_p1, %p6558_p7  ;;  %p6578_p10 = scmp.lt.s32.totalorder %s6576_s1, %s6569_s17 }
  0x7f   : > { %p6573_p4 = pneg %p6572_p12  ;;  %p6579_p6 = por %p6578_p10, %p6577_p13 }
  0x81   : > { %p6580_p3 = pnand %p6579_p6, %p6573_p4 }
  0x83   : > { %6583 = shalt.err (!%p6580_p3)
}
  0x84   : > { %s8996_s8 = smov 16   ;;  %s8997_s22 = smov 256  }
  0x85   : > { %5726 = dma.hbm_to_vmem [thread:$0]  (!%p6906_p11), %s6900_s21, 4096, %s6902_s2, %s6910_s4, %s8997_s22, %s8997_s22, %s8996_s8  }
  0x86   : > { %p8998_p1 = scmp.ne.s32.totalorder %s8980_s20, 0 }
  0x88   : > { %497 = sbr.rel (%p8998_p1) target bundleno = 2329 (0x919), region = 76 }
  0x8d   : > { %s6937_s14 = sand.u32 1, %s6652_s30   ;;  %p8999_p3 = scmp.ne.s32.totalorder %s8992_s13, 0 }
  0x8e   : > { %s5210_s10 = sshll.u32 %s6937_s14, 8  ;;  %s500_s25 = scalar_lea.sflag [#allocation3], %s6937_s14 }
  0x8f   : > { %s6943_s3 = scalar_lea.vmem [#allocation2], %s5210_s10 }
  0x90   : > { %6627 = dma.done.wait (%p8999_p3), %s500_s25, 4096  }
  0x91   : > { %6629 = vsyncadd (%p8999_p3), %s500_s25, 4294963200  ;;  %p9000_p6 = scmp.eq.s32.totalorder %s6775_s19, 0 }
  0x93   : > { %6631 = dma.done.wait (%p9000_p6), [#allocation6], 14336   ;;  %p9001_p10 = pmov %p9000_p6 }
  0x94   : > { %p9002_p12 = pmov %p9000_p6 }
  0x95   : > { %6633 = vsyncadd (%p9001_p10), [#allocation6], 4294952960 }
  0x96   : > { %6635 = dma.done.wait (%p9002_p12), [#allocation9], 4192   ;;  %p9003_p11 = pmov %p9000_p6 }
  0x97   : > { %p9004_p7 = pmov %p9000_p6 }
  0x98   : > { %6637 = vsyncadd (%p9003_p11), [#allocation9], 4294963104 }
  0x99   : > { %6639 = dma.done.wait (%p9004_p7), [#allocation12], 16384   ;;  %p9005_p0 = pmov %p9000_p6 }
  0x9a   : > { %v5792_v0 = vld [vmem:[#allocation7 + $0x15c] ss:$24 sps:$4 sm:$0xff]   ;;  %v5794_v1 = vld [vmem:[#allocation7 + $0x158] ss:$24 sps:$4 sm:$0xff]   ;;  %v5795_v2 = vld [vmem:[#allocation7 + $0x12c] ss:$24 sps:$4 sm:$0xff]  }
  0x9b   : > { %6641 = vsyncadd (%p9005_p0), [#allocation12], 4294950912  ;;  %1344 = vmatprep.subr.bf16.mxu1 %v5792_v0  ;;  %v5797_v3 = vld [vmem:[#allocation7 + $0x128] ss:$24 sps:$4 sm:$0xff]   ;;  %v5798_v4 = vld [vmem:[#allocation7 + $0xfc] ss:$24 sps:$4 sm:$0xff]  }
  0x9c   : > { %1345 = vmatpush1.bf16.msra.mxu1 %v5794_v1  ;;  %v5800_v5 = vld [vmem:[#allocation7 + $0xf8] ss:$24 sps:$4 sm:$0xff]   ;;  %v5801_v6 = vld [vmem:[#allocation7 + $0xcc] ss:$24 sps:$4 sm:$0xff]   ;;  %v5803_v7 = vld [vmem:[#allocation7 + $0xc8] ss:$24 sps:$4 sm:$0xff]  }
  0x9d   : > { %1346 = vmatprep.subr.bf16.mxu1 %v5795_v2  ;;  %v5804_v8 = vld [vmem:[#allocation7 + $0x9c] ss:$24 sps:$4 sm:$0xff]   ;;  %v5806_v9 = vld [vmem:[#allocation7 + $0x98] ss:$24 sps:$4 sm:$0xff]   ;;  %v5807_v10 = vld [vmem:[#allocation7 + $0x6c] ss:$24 sps:$4 sm:$0xff]  }
  0x9e   : > { %v5809_v11 = vld [vmem:[#allocation7 + $0x68] ss:$24 sps:$4 sm:$0xff]   ;;  %v5810_v12 = vld [vmem:[#allocation7 + $0x3c] ss:$24 sps:$4 sm:$0xff]   ;;  %v5812_v16 = vld [vmem:[#allocation7 + $0x38] ss:$24 sps:$4 sm:$0xff]  }
  0x9f   : > { %v576_v13 = vld [vmem:[%s6943_s3 + $0x8] sm:$0xff]  ;;  %v578_v14 = vld [vmem:[%s6943_s3 + $0x18] sm:$0xff]  ;;  %v575_v53 = vld [vmem:[%s6943_s3] sm:$0xff]  ;;  %s9030_s4 = sld [smem:[#allocation31_spill]]  ;;  %s8701_s20 = scalar_lea.vmem [#allocation14], %s5210_s10 }
  0xa0   : > { %1347 = vmatpush1.bf16.msra.mxu1 %v5797_v3  ;;  %v6963_v15 = vpack.c.bf16 %v578_v14, %v576_v13  ;;  %v5813_v17 = vld [vmem:[#allocation7 + $0xc] ss:$24 sps:$4 sm:$0xff]   ;;  %v5842_v19 = vld [vmem:[#allocation7 + $0x150] ss:$24 sps:$4 sm:$0xff]   ;;  %v5816_v22 = vld [vmem:[#allocation7 + $0x2dc] ss:$24 sps:$4 sm:$0xff]  }
  0xa1   : > { %1348 = vmatprep.subr.bf16.mxu1 %v5798_v4  ;;  %v5840_v18 = vld [vmem:[#allocation7 + $0x154] ss:$24 sps:$4 sm:$0xff]   ;;  %v5815_v20 = vld [vmem:[#allocation7 + $0x8] ss:$24 sps:$4 sm:$0xff]   ;;  %v5843_v21 = vld [vmem:[#allocation7 + $0x124] ss:$24 sps:$4 sm:$0xff]  }
  0xa2   : > { %1376 = vmatprep.mubr.bf16.mxu1 %v6963_v15  ;;  %1263 = vmatprep.mubr.bf16.mxu0 %v6963_v15  ;;  %v5845_v23 = vld [vmem:[#allocation7 + $0x120] ss:$24 sps:$4 sm:$0xff]   ;;  %v5846_v24 = vld [vmem:[#allocation7 + $0xf4] ss:$24 sps:$4 sm:$0xff]   ;;  %v5848_v27 = vld [vmem:[#allocation7 + $0xf0] ss:$24 sps:$4 sm:$0xff]  }
  0xa3   : > { %1231 = vmatprep.subr.bf16.mxu0 %v5840_v18  ;;  %v5818_v25 = vld [vmem:[#allocation7 + $0x2d8] ss:$24 sps:$4 sm:$0xff]   ;;  %v5819_v26 = vld [vmem:[#allocation7 + $0x2ac] ss:$24 sps:$4 sm:$0xff]   ;;  %v5821_v29 = vld [vmem:[#allocation7 + $0x2a8] ss:$24 sps:$4 sm:$0xff]  }
  0xa4   : > { %1349 = vmatpush1.bf16.msra.mxu1 %v5800_v5  ;;  %1232 = vmatpush1.bf16.msra.mxu0 %v5842_v19  ;;  %v5849_v28 = vld [vmem:[#allocation7 + $0xc4] ss:$24 sps:$4 sm:$0xff]   ;;  %v5851_v31 = vld [vmem:[#allocation7 + $0xc0] ss:$24 sps:$4 sm:$0xff]   ;;  %v5852_v32 = vld [vmem:[#allocation7 + $0x94] ss:$24 sps:$4 sm:$0xff]  }
  0xa5   : > { %1350 = vmatprep.subr.bf16.mxu1 %v5801_v6  ;;  %1233 = vmatprep.subr.bf16.mxu0 %v5843_v21  ;;  %v5822_v30 = vld [vmem:[#allocation7 + $0x27c] ss:$24 sps:$4 sm:$0xff]   ;;  %v5824_v33 = vld [vmem:[#allocation7 + $0x278] ss:$24 sps:$4 sm:$0xff]   ;;  %v5825_v34 = vld [vmem:[#allocation7 + $0x24c] ss:$24 sps:$4 sm:$0xff]  }
  0xa6   : > { %v5854_v35 = vld [vmem:[#allocation7 + $0x90] ss:$24 sps:$4 sm:$0xff]   ;;  %v5855_v36 = vld [vmem:[#allocation7 + $0x64] ss:$24 sps:$4 sm:$0xff]   ;;  %v5857_v39 = vld [vmem:[#allocation7 + $0x60] ss:$24 sps:$4 sm:$0xff]  }
  0xa7   : > { %v5827_v37 = vld [vmem:[#allocation7 + $0x248] ss:$24 sps:$4 sm:$0xff]   ;;  %v5828_v38 = vld [vmem:[#allocation7 + $0x21c] ss:$24 sps:$4 sm:$0xff]   ;;  %v5830_v41 = vld [vmem:[#allocation7 + $0x218] ss:$24 sps:$4 sm:$0xff]  }
  0xa8   : > { %1351 = vmatpush1.bf16.msra.mxu1 %v5803_v7  ;;  %1234 = vmatpush1.bf16.msra.mxu0 %v5845_v23  ;;  %v5858_v40 = vld [vmem:[#allocation7 + $0x34] ss:$24 sps:$4 sm:$0xff]   ;;  %v5860_v43 = vld [vmem:[#allocation7 + $0x30] ss:$24 sps:$4 sm:$0xff]   ;;  %v5861_v44 = vld [vmem:[#allocation7 + $0x4] ss:$24 sps:$4 sm:$0xff]  }
  0xa9   : > { %1352 = vmatprep.subr.bf16.mxu1 %v5804_v8  ;;  %1235 = vmatprep.subr.bf16.mxu0 %v5846_v24  ;;  %v5831_v42 = vld [vmem:[#allocation7 + $0x1ec] ss:$24 sps:$4 sm:$0xff]   ;;  %v5833_v45 = vld [vmem:[#allocation7 + $0x1e8] ss:$24 sps:$4 sm:$0xff]   ;;  %v5834_v46 = vld [vmem:[#allocation7 + $0x1bc] ss:$24 sps:$4 sm:$0xff]  }
  0xaa   : > { %v5863_v47 = vld [vmem:[#allocation7] ss:$24 sps:$4 sm:$0xff]   ;;  %v5864_v48 = vld [vmem:[#allocation7 + $0x2d4] ss:$24 sps:$4 sm:$0xff]   ;;  %v5866_v52 = vld [vmem:[#allocation7 + $0x2d0] ss:$24 sps:$4 sm:$0xff]  }
  0xab   : > { %v5836_v49 = vld [vmem:[#allocation7 + $0x1b8] ss:$24 sps:$4 sm:$0xff]   ;;  %v5837_v50 = vld [vmem:[#allocation7 + $0x18c] ss:$24 sps:$4 sm:$0xff]   ;;  %v5839_v51 = vld [vmem:[#allocation7 + $0x188] ss:$24 sps:$4 sm:$0xff]  }
  0xac   : > { %1353 = vmatpush1.bf16.msra.mxu1 %v5806_v9  ;;  %1236 = vmatpush1.bf16.msra.mxu0 %v5848_v27  ;;  %v5867_v54 = vld [vmem:[#allocation7 + $0x2a4] ss:$24 sps:$4 sm:$0xff]   ;;  %v577_v55 = vld [vmem:[%s6943_s3 + $0x10] sm:$0xff]  ;;  %v580_v56 = vld [vmem:[%s6943_s3 + $0x28] sm:$0xff]  ;;  %s5483_s10 = sshll.u32 %s6775_s19, 12  ;;  %s5066_s13 = sshll.u32 %s8701_s20, 4  ;;  %s8890_s13 = int_to_ptr.vmem [resolvable:$true] %s5066_s13 }
  0xad   : > { %1354 = vmatprep.subr.bf16.mxu1 %v5807_v10  ;;  %1237 = vmatprep.subr.bf16.mxu0 %v5849_v28  ;;  %v582_v57 = vld [vmem:[%s6943_s3 + $0x38] sm:$0xff]  ;;  %v6971_v59 = vpack.c.bf16 %v577_v55, %v575_v53  ;;  %v5870_v60 = vld [vmem:[#allocation7 + $0x274] ss:$24 sps:$4 sm:$0xff]   ;;  %v5872_v62 = vld [vmem:[#allocation7 + $0x270] ss:$24 sps:$4 sm:$0xff]   ;;  %s9031_s17 = sld [smem:[#allocation32_spill]] }
  0xae   : > { %v5869_v58 = vld [vmem:[#allocation7 + $0x2a0] ss:$24 sps:$4 sm:$0xff]   ;;  %v6973_v61 = vpack.c.bf16 %v582_v57, %v580_v56  ;;  %v5873_v0 = vld [vmem:[#allocation7 + $0x244] ss:$24 sps:$4 sm:$0xff]   ;;  %v581_v1 = vld [vmem:[%s6943_s3 + $0x30] sm:$0xff]  ;;  %s5052_s19 = scalar_lea.sflag [#allocation4], %s6937_s14 }
  0xaf   : > { %v579_v63 = vld [vmem:[%s6943_s3 + $0x20] sm:$0xff]  ;;  %v584_v2 = vld [vmem:[%s6943_s3 + $0x48] sm:$0xff]  ;;  %v586_v3 = vld [vmem:[%s6943_s3 + $0x58] sm:$0xff]  ;;  %s6584_s1 = scalar_lea.vmem %s8890_s13, 4096  ;;  %p9032_p5 = scmp.ne.s32.totalorder %s8993_s28, 0 }
  0xb0   : > { %1355 = vmatpush1.bf16.msra.mxu1 %v5809_v11  ;;  %1238 = vmatpush1.bf16.msra.mxu0 %v5851_v31  ;;  %v5875_v4 = vld [vmem:[#allocation7 + $0x240] ss:$24 sps:$4 sm:$0xff]   ;;  %v6981_v5 = vpack.c.bf16 %v581_v1, %v579_v63  ;;  %v5876_v6 = vld [vmem:[#allocation7 + $0x214] ss:$24 sps:$4 sm:$0xff]   ;;  %v6983_v7 = vpack.c.bf16 %v586_v3, %v584_v2  ;;  %v5878_v8 = vld [vmem:[#allocation7 + $0x210] ss:$24 sps:$4 sm:$0xff]   ;;  %p6585_p2 = scmp.ne.s32.totalorder %s8890_s13, %s6584_s1 }
  0xb1   : > { %1356 = vmatprep.subr.bf16.mxu1 %v5810_v12  ;;  %1239 = vmatprep.subr.bf16.mxu0 %v5852_v32  ;;  %v5879_v9 = vld [vmem:[#allocation7 + $0x1e4] ss:$24 sps:$4 sm:$0xff]   ;;  %v585_v11 = vld [vmem:[%s6943_s3 + $0x50] sm:$0xff]  ;;  %v588_v12 = vld [vmem:[%s6943_s3 + $0x68] sm:$0xff]  ;;  %s6676_s8 = smov [#allocation14]  }
  0xb2   : > { %v583_v10 = vld [vmem:[%s6943_s3 + $0x40] sm:$0xff]  ;;  %v590_v13 = vld [vmem:[%s6943_s3 + $0x78] sm:$0xff]  ;;  %v5884_v19 = vld [vmem:[#allocation7 + $0x1b0] ss:$24 sps:$4 sm:$0xff]   ;;  %p6586_p9 = pnand %p6585_p2, %p9032_p5  ;;  %s6588_s22 = sshll.u32 %s6676_s8, 4  ;;  %s6589_s22 = int_to_ptr.vmem [resolvable:$false] %s6588_s22 }
  0xb3   : > { %v5881_v14 = vld [vmem:[#allocation7 + $0x1e0] ss:$24 sps:$4 sm:$0xff]   ;;  %v6993_v18 = vpack.c.bf16 %v590_v13, %v588_v12  ;;  %v592_v23 = vld [vmem:[%s6943_s3 + $0x88] sm:$0xff]  ;;  %v593_v32 = vld [vmem:[%s6943_s3 + $0x90] sm:$0xff]  ;;  %s8888_s18 = scalar_lea.hbm %s9031_s17, %s5483_s10  ;;  %s6590_s25 = scalar_lea.vmem %s6589_s22, 8192 }
  0xb4   : > { %1357 = vmatpush1.bf16.msra.mxu1 %v5812_v16  ;;  %1240 = vmatpush1.bf16.msra.mxu0 %v5854_v35  ;;  %v5882_v16 = vld [vmem:[#allocation7 + $0x1b4] ss:$24 sps:$4 sm:$0xff]   ;;  %v587_v21 = vld [vmem:[%s6943_s3 + $0x60] sm:$0xff]  ;;  %v594_v24 = vld [vmem:[%s6943_s3 + $0x98] sm:$0xff]  ;;  %p6587_p8 = pneg %p6586_p9  ;;  %p6591_p4 = scmp.lt.s32.totalorder %s8890_s13, %s6589_s22 }
  0xb5   : > { %1358 = vmatprep.subr.bf16.mxu1 %v5813_v17  ;;  %1241 = vmatprep.subr.bf16.mxu0 %v5855_v36  ;;  %v6991_v17 = vpack.c.bf16 %v585_v11, %v583_v10  ;;  %v7003_v28 = vpack.c.bf16 %v594_v24, %v592_v23  ;;  %v591_v31 = vld [vmem:[%s6943_s3 + $0x80] sm:$0xff]  ;;  %v5891_v35 = vld [vmem:[#allocation7 + $0x130] ss:$24 sps:$4 sm:$0xff]   ;;  %v5923_v11 = vld [vmem:[#allocation7 + $0x254] ss:$24 sps:$4 sm:$0xff]   ;;  %p6592_p13 = scmp.lt.s32.totalorder %s6590_s25, %s6584_s1 }
  0xb6   : > { %v5896_v36 = vld [vmem:[#allocation7 + $0x104] ss:$24 sps:$4 sm:$0xff]   ;;  %v604_v53 = vld [vmem:[%s6943_s3 + $0xe8] sm:$0xff]  ;;  %v5918_v10 = vld [vmem:[#allocation7 + $0x280] ss:$24 sps:$4 sm:$0xff]  }
  0xb7   : > { %v5903_v55 = vld [vmem:[#allocation7 + $0x70] ss:$24 sps:$4 sm:$0xff]   ;;  %v5908_v56 = vld [vmem:[#allocation7 + $0x44] ss:$24 sps:$4 sm:$0xff]   ;;  %p6593_p1 = por %p6592_p13, %p6591_p4 }
  0xb8   : > { %1359 = vmatpush1.bf16.msra.mxu1 %v5815_v20  ;;  %1242 = vmatpush1.bf16.msra.mxu0 %v5857_v39  ;;  %v5885_v20 = vld [vmem:[#allocation7 + $0x184] ss:$24 sps:$4 sm:$0xff]   ;;  %v5894_v39 = vld [vmem:[#allocation7 + $0x100] ss:$24 sps:$4 sm:$0xff]   ;;  %v5909_v1 = vld [vmem:[#allocation7 + $0x10] ss:$24 sps:$4 sm:$0xff]  }
  0xb9   : > { %1360 = vmatprep.subr.bf16.mxu1 %v5816_v22  ;;  %1243 = vmatprep.subr.bf16.mxu0 %v5858_v40  ;;  %v589_v22 = vld [vmem:[%s6943_s3 + $0x70] sm:$0xff]  ;;  %v603_v63 = vld [vmem:[%s6943_s3 + $0xe0] sm:$0xff]  ;;  %p6594_p3 = pnand %p6593_p1, %p6587_p8 }
  0xba   : > { %v7001_v27 = vpack.c.bf16 %v589_v22, %v587_v21  ;;  %v5899_v40 = vld [vmem:[#allocation7 + $0xd4] ss:$24 sps:$4 sm:$0xff]   ;;  %v5914_v2 = vld [vmem:[#allocation7 + $0x2e4] ss:$24 sps:$4 sm:$0xff]   ;;  %v5921_v12 = vld [vmem:[#allocation7 + $0x250] ss:$24 sps:$4 sm:$0xff]  }
  0xbb   : > { %v5926_v13 = vld [vmem:[#allocation7 + $0x224] ss:$24 sps:$4 sm:$0xff]   ;;  %v5930_v21 = vld [vmem:[#allocation7 + $0x1c0] ss:$24 sps:$4 sm:$0xff]   ;;  %v5935_v22 = vld [vmem:[#allocation7 + $0x194] ss:$24 sps:$4 sm:$0xff]  }
  0xbc   : > { %1361 = vmatpush2.bf16.msra.mxu1 %v5818_v25  ;;  %1244 = vmatpush1.bf16.msra.mxu0 %v5860_v43  ;;  %v5887_v25 = vld [vmem:[#allocation7 + $0x180] ss:$24 sps:$4 sm:$0xff]   ;;  %v600_v43 = vld [vmem:[%s6943_s3 + $0xc8] sm:$0xff] }
  0xbd   : > { %1362 = vmatprep.subr.bf16.mxu1 %v5819_v26  ;;  %1245 = vmatprep.subr.bf16.mxu0 %v5861_v44  ;;  %v5890_v26 = vld [vmem:[#allocation7 + $0x164] ss:$24 sps:$4 sm:$0xff]   ;;  %v5933_v23 = vld [vmem:[#allocation7 + $0x190] ss:$24 sps:$4 sm:$0xff]  }
  0xbe   : > { %v602_v44 = vld [vmem:[%s6943_s3 + $0xd8] sm:$0xff] }
  0xc0   : > { %1363 = vmatpush2.bf16.msra.mxu1 %v5821_v29  ;;  %1246 = vmatpush1.bf16.msra.mxu0 %v5863_v47  ;;  %v5888_v29 = vld [vmem:[#allocation7 + $0x160] ss:$24 sps:$4 sm:$0xff]  }
  0xc1   : > { %1364 = vmatprep.subr.bf16.mxu1 %v5822_v30  ;;  %1247 = vmatprep.subr.bf16.mxu0 %v5864_v48  ;;  %v5893_v30 = vld [vmem:[#allocation7 + $0x134] ss:$24 sps:$4 sm:$0xff]   ;;  %v7027_v48 = vpack.c.bf16 %v602_v44, %v600_v43 }
  0xc4   : > { %1365 = vmatpush2.bf16.msra.mxu1 %v5824_v33  ;;  %1248 = vmatpush2.bf16.msra.mxu0 %v5866_v52  ;;  %v596_v33 = vld [vmem:[%s6943_s3 + $0xa8] sm:$0xff]  ;;  %v601_v52 = vld [vmem:[%s6943_s3 + $0xd0] sm:$0xff] }
  0xc5   : > { %1366 = vmatprep.subr.bf16.mxu1 %v5825_v34  ;;  %1249 = vmatprep.subr.bf16.mxu0 %v5867_v54  ;;  %v598_v34 = vld [vmem:[%s6943_s3 + $0xb8] sm:$0xff] }
  0xc6   : > { %v606_v54 = vld [vmem:[%s6943_s3 + $0xf8] sm:$0xff] }
  0xc8   : > { %1367 = vmatpush2.bf16.msra.mxu1 %v5827_v37  ;;  %1250 = vmatpush2.bf16.msra.mxu0 %v5869_v58  ;;  %v7013_v37 = vpack.c.bf16 %v593_v32, %v591_v31  ;;  %v7039_v58 = vpack.c.bf16 %v606_v54, %v604_v53 }
  0xc9   : > { %1368 = vmatprep.subr.bf16.mxu1 %v5828_v38  ;;  %1251 = vmatprep.subr.bf16.mxu0 %v5870_v60  ;;  %v7015_v38 = vpack.c.bf16 %v598_v34, %v596_v33  ;;  %v5906_v60 = vld [vmem:[#allocation7 + $0x40] ss:$24 sps:$4 sm:$0xff]  }
  0xcc   : > { %1369 = vmatpush2.bf16.msra.mxu1 %v5830_v41  ;;  %1252 = vmatpush2.bf16.msra.mxu0 %v5872_v62  ;;  %v595_v41 = vld [vmem:[%s6943_s3 + $0xa0] sm:$0xff]  ;;  %v5911_v62 = vld [vmem:[#allocation7 + $0x14] ss:$24 sps:$4 sm:$0xff]  }
  0xcd   : > { %1370 = vmatprep.subr.bf16.mxu1 %v5831_v42  ;;  %1253 = vmatprep.subr.bf16.mxu0 %v5873_v0  ;;  %v597_v42 = vld [vmem:[%s6943_s3 + $0xb0] sm:$0xff] }
  0xce   : > { %v7025_v47 = vpack.c.bf16 %v597_v42, %v595_v41  ;;  %v605_v0 = vld [vmem:[%s6943_s3 + $0xf0] sm:$0xff] }
  0xcf   : > { %v621_v3 = vpack.c.bf16 %v605_v0, %v603_v63 }
  0xd0   : > { %1371 = vmatpush2.bf16.msra.mxu1 %v5833_v45  ;;  %1254 = vmatpush2.bf16.msra.mxu0 %v5875_v4  ;;  %v5897_v45 = vld [vmem:[#allocation7 + $0xd0] ss:$24 sps:$4 sm:$0xff]   ;;  %v5912_v4 = vld [vmem:[#allocation7 + $0x2e0] ss:$24 sps:$4 sm:$0xff]  }
  0xd1   : > { %1372 = vmatprep.subr.bf16.mxu1 %v5834_v46  ;;  %1255 = vmatprep.subr.bf16.mxu0 %v5876_v6  ;;  %v5902_v46 = vld [vmem:[#allocation7 + $0xa4] ss:$24 sps:$4 sm:$0xff]   ;;  %v5917_v6 = vld [vmem:[#allocation7 + $0x2b4] ss:$24 sps:$4 sm:$0xff]  }
  0xd4   : > { %1373 = vmatpush2.bf16.msra.mxu1 %v5836_v49  ;;  %1256 = vmatpush2.bf16.msra.mxu0 %v5878_v8  ;;  %v5900_v49 = vld [vmem:[#allocation7 + $0xa0] ss:$24 sps:$4 sm:$0xff]   ;;  %v5915_v8 = vld [vmem:[#allocation7 + $0x2b0] ss:$24 sps:$4 sm:$0xff]  }
  0xd5   : > { %1374 = vmatprep.subr.bf16.mxu1 %v5837_v50  ;;  %1257 = vmatprep.subr.bf16.mxu0 %v5879_v9  ;;  %v5905_v50 = vld [vmem:[#allocation7 + $0x74] ss:$24 sps:$4 sm:$0xff]   ;;  %v5920_v9 = vld [vmem:[#allocation7 + $0x284] ss:$24 sps:$4 sm:$0xff]  }
  0xd8   : > { %1375 = vmatpush2.bf16.msra.mxu1 %v5839_v51  ;;  %1258 = vmatpush2.bf16.msra.mxu0 %v5881_v14  ;;  %v599_v51 = vld [vmem:[%s6943_s3 + $0xc0] sm:$0xff] }
  0xd9   : > { %1259 = vmatprep.subr.bf16.mxu0 %v5882_v16  ;;  %v7037_v57 = vpack.c.bf16 %v601_v52, %v599_v51  ;;  %v5924_v14 = vld [vmem:[#allocation7 + $0x220] ss:$24 sps:$4 sm:$0xff]   ;;  %v5929_v16 = vld [vmem:[#allocation7 + $0x1f4] ss:$24 sps:$4 sm:$0xff]  }
  0xdb   : > { %1377 = vmatmul.mubr.bf16.vlgmr.msra.gmra.mxu1 %v6971_v59 }
  0xdc   : > { %1386 = vmatprep.mubr.bf16.mxu1 %v6973_v61  ;;  %1260 = vmatpush2.bf16.msra.mxu0 %v5884_v19  ;;  %v5927_v19 = vld [vmem:[#allocation7 + $0x1f0] ss:$24 sps:$4 sm:$0xff]  }
  0xdd   : > { %1261 = vmatprep.subr.bf16.mxu0 %v5885_v20  ;;  %v5932_v20 = vld [vmem:[#allocation7 + $0x1c4] ss:$24 sps:$4 sm:$0xff]  }
  0xe0   : > { %1262 = vmatpush2.bf16.msra.mxu0 %v5887_v25 }
  0xe1   : > { %1457 = vmatprep.subr.bf16.mxu0 %v5890_v26 }
  0xe3   : > { %1387 = vmatmul.mubr.bf16.gmra.mxu1 %v6981_v5  ;;  %1264 = vmatmul.mubr.bf16.vlgmr.msra.gmra.mxu0 %v6971_v59 }
  0xe4   : > { %1396 = vmatprep.mubr.bf16.mxu1 %v6983_v7  ;;  %1273 = vmatprep.mubr.bf16.mxu0 %v6973_v61 }
  0xe5   : > { %1458 = vmatpush1.bf16.msra.mxu0 %v5888_v29 }
  0xe6   : > { %1459 = vmatprep.subr.bf16.mxu0 %v5893_v30 }
  0xe9   : > { %1460 = vmatpush1.bf16.msra.mxu0 %v5891_v35 }
  0xea   : > { %1461 = vmatprep.subr.bf16.mxu0 %v5896_v36 }
  0xeb   : > { %1397 = vmatmul.mubr.bf16.gmra.mxu1 %v6991_v17  ;;  %1274 = vmatmul.mubr.bf16.gmra.mxu0 %v6981_v5 }
  0xec   : > { %1406 = vmatprep.mubr.bf16.mxu1 %v6993_v18  ;;  %1283 = vmatprep.mubr.bf16.mxu0 %v6983_v7 }
  0xed   : > { %1462 = vmatpush1.bf16.msra.mxu0 %v5894_v39 }
  0xee   : > { %1463 = vmatprep.subr.bf16.mxu0 %v5899_v40 }
  0xf1   : > { %1464 = vmatpush1.bf16.msra.mxu0 %v5897_v45 }
  0xf2   : > { %1465 = vmatprep.subr.bf16.mxu0 %v5902_v46 }
  0xf3   : > { %1407 = vmatmul.mubr.bf16.gmra.mxu1 %v7001_v27  ;;  %1284 = vmatmul.mubr.bf16.gmra.mxu0 %v6991_v17 }
  0xf4   : > { %1416 = vmatprep.mubr.bf16.mxu1 %v7003_v28  ;;  %1293 = vmatprep.mubr.bf16.mxu0 %v6993_v18 }
  0xf5   : > { %1466 = vmatpush1.bf16.msra.mxu0 %v5900_v49 }
  0xf6   : > { %1467 = vmatprep.subr.bf16.mxu0 %v5905_v50 }
  0xf9   : > { %1468 = vmatpush1.bf16.msra.mxu0 %v5903_v55 }
  0xfa   : > { %1469 = vmatprep.subr.bf16.mxu0 %v5908_v56 }
  0xfb   : > { %1417 = vmatmul.mubr.bf16.gmra.mxu1 %v7013_v37  ;;  %1294 = vmatmul.mubr.bf16.gmra.mxu0 %v7001_v27 }
  0xfc   : > { %1426 = vmatprep.mubr.bf16.mxu1 %v7015_v38  ;;  %1303 = vmatprep.mubr.bf16.mxu0 %v7003_v28 }
  0xfd   : > { %1470 = vmatpush1.bf16.msra.mxu0 %v5906_v60 }
  0xfe   : > { %1471 = vmatprep.subr.bf16.mxu0 %v5911_v62 }
 0x101   : > { %1472 = vmatpush1.bf16.msra.mxu0 %v5909_v1 }
 0x102   : > { %1473 = vmatprep.subr.bf16.mxu0 %v5914_v2 }
 0x103   : > { %1427 = vmatmul.mubr.bf16.gmra.mxu1 %v7025_v47  ;;  %1304 = vmatmul.mubr.bf16.gmra.mxu0 %v7013_v37 }
 0x104   : > { %1436 = vmatprep.mubr.bf16.mxu1 %v7027_v48  ;;  %1313 = vmatprep.mubr.bf16.mxu0 %v7015_v38 }
 0x105   : > { %1474 = vmatpush2.bf16.msra.mxu0 %v5912_v4 }
 0x106   : > { %1475 = vmatprep.subr.bf16.mxu0 %v5917_v6 }
 0x109   : > { %1476 = vmatpush2.bf16.msra.mxu0 %v5915_v8 }
 0x10a   : > { %1477 = vmatprep.subr.bf16.mxu0 %v5920_v9 }
 0x10b   : > { %1437 = vmatmul.mubr.bf16.gmra.mxu1 %v7037_v57  ;;  %1314 = vmatmul.mubr.bf16.gmra.mxu0 %v7025_v47 }
 0x10c   : > { %1446 = vmatprep.mubr.bf16.mxu1 %v7039_v58  ;;  %1323 = vmatprep.mubr.bf16.mxu0 %v7027_v48 }
 0x10d   : > { %1478 = vmatpush2.bf16.msra.mxu0 %v5918_v10 }
 0x10e   : > { %1479 = vmatprep.subr.bf16.mxu0 %v5923_v11 }
 0x111   : > { %1480 = vmatpush2.bf16.msra.mxu0 %v5921_v12 }
 0x112   : > { %1481 = vmatprep.subr.bf16.mxu0 %v5926_v13 }
 0x113   : > { %1447 = vmatmul.mubr.bf16.gmra.mxu1 %v621_v3  ;;  %1324 = vmatmul.mubr.bf16.gmra.mxu0 %v7037_v57 }
 0x114   : > { %1333 = vmatprep.mubr.bf16.mxu0 %v7039_v58 }
 0x115   : > { %1482 = vmatpush2.bf16.msra.mxu0 %v5924_v14 }
 0x116   : > { %1483 = vmatprep.subr.bf16.mxu0 %v5929_v16 }
 0x119   : > { %1484 = vmatpush2.bf16.msra.mxu0 %v5927_v19 }
 0x11a   : > { %1485 = vmatprep.subr.bf16.mxu0 %v5932_v20 }
 0x11b   : > { %1334 = vmatmul.mubr.bf16.gmra.mxu0 %v621_v3 }
 0x11c   : > { %1489 = vmatprep.mubr.bf16.mxu0 %v6963_v15  ;;  %v721_v15 = vlaneseq }
 0x11d   : > { %1486 = vmatpush2.bf16.msra.mxu0 %v5930_v21 }
 0x11e   : > { %1487 = vmatprep.subr.bf16.mxu0 %v5935_v22 }
 0x121   : > { %1488 = vmatpush2.bf16.msra.mxu0 %v5933_v23 }
 0x124   : > { %1490 = vmatmul.mubr.bf16.vlgmr.msra.gmra.mxu0 %v6971_v59  ;;  %v7068_v59 = vshrl.u32 %v721_v15, 7 }
 0x125   : > { %1499 = vmatprep.mubr.bf16.mxu0 %v6973_v61 }
 0x126   : > { %v8965_v61 = vsub.s32 2, %v7068_v59  ;;  %v7099_v41 = vsub.s32 0, %v7068_v59  ;;  %v7106_v44 = vsub.s32 1, %v7068_v59 }
 0x12c   : > { %1500 = vmatmul.mubr.bf16.gmra.mxu0 %v6981_v5  ;;  %v7071_v5 = vld [vmem:[#allocation8] sm:$0x3f] }
 0x12d   : > { %1509 = vmatprep.mubr.bf16.mxu0 %v6983_v7  ;;  %v7112_v46 = vrot.slane %v7071_v5, %v7099_v41  ;;  %v7118_v49 = vrot.slane %v7071_v5, %v7106_v44 }
 0x134   : > { %1510 = vmatmul.mubr.bf16.gmra.mxu0 %v6991_v17  ;;  %v7076_v17 = vrot.slane %v7071_v5, %v8965_v61 }
 0x135   : > { %1519 = vmatprep.mubr.bf16.mxu0 %v6993_v18 }
 0x13c   : > { %1520 = vmatmul.mubr.bf16.gmra.mxu0 %v7001_v27 }
 0x13d   : > { %1529 = vmatprep.mubr.bf16.mxu0 %v7003_v28 }
 0x144   : > { %1530 = vmatmul.mubr.bf16.gmra.mxu0 %v7013_v37 }
 0x145   : > { %1539 = vmatprep.mubr.bf16.mxu0 %v7015_v38 }
 0x14c   : > { %1540 = vmatmul.mubr.bf16.gmra.mxu0 %v7025_v47 }
 0x14d   : > { %1549 = vmatprep.mubr.bf16.mxu0 %v7027_v48 }
 0x154   : > { %1550 = vmatmul.mubr.bf16.gmra.mxu0 %v7037_v57 }
 0x155   : > { %1559 = vmatprep.mubr.bf16.mxu0 %v7039_v58 }
 0x15c   : > { %1560 = vmatmul.mubr.bf16.gmra.mxu0 %v621_v3 }
 0x19b   : > { %v1378_v7 = vpop.f32.mrf.mxu1 }
 0x19c   : > { %v1379_v25 = vadd.f32 %v1378_v7, %v7076_v17 }
 0x19d   : > { %v7078_v18 = vpop.f32.mrf.mxu1 }
 0x19f   : > { %v1382_v24 = vpop.f32.mrf.mxu1 }
 0x1a0   : > { %v1383_v26 = vadd.f32 %v1382_v24, %v7076_v17 }
 0x1a1   : > { %v7082_v27 = vpop.f32.mrf.mxu1 }
 0x1a2   : > { %v7084_v28 = vpack.c.bf16 %v1383_v26, %v1379_v25 }
 0x1a3   : > { %v1388_v29 = vpop.f32.mrf.mxu1  ;;  %v1265_v48 = vpop.f32.mrf.mxu0 }
 0x1a4   : > { %v1389_v32 = vadd.f32 %v1388_v29, %v7076_v17  ;;  %v1266_v52 = vadd.f32 %v1265_v48, %v7112_v46 }
 0x1a5   : > { %v7086_v30 = vpop.f32.mrf.mxu1  ;;  %v1267_v51 = vpop.f32.mrf.mxu0 }
 0x1a6   : > { %v1268_v55 = vadd.f32 %v1267_v51, %v7118_v49 }
 0x1a7   : > { %v1392_v31 = vpop.f32.mrf.mxu1  ;;  %v1269_v54 = vpop.f32.mrf.mxu0 }
 0x1a8   : > { %v1393_v33 = vadd.f32 %v1392_v31, %v7076_v17  ;;  %v1270_v56 = vadd.f32 %v1269_v54, %v7112_v46 }
 0x1a9   : > { %v7090_v34 = vpop.f32.mrf.mxu1  ;;  %v1271_v58 = vpop.f32.mrf.mxu0 }
 0x1aa   : > { %v7092_v35 = vpack.c.bf16 %v1393_v33, %v1389_v32  ;;  %v1586_v60 = vpack.c.bf16 %v1270_v56, %v1266_v52  ;;  %v1272_v62 = vadd.f32 %v1271_v58, %v7118_v49  ;;  %v8966_v56 = vsub.s32 3, %v7068_v59 }
 0x1ab   : > { %v1398_v36 = vpop.f32.mrf.mxu1  ;;  %v1275_v0 = vpop.f32.mrf.mxu0 }
 0x1ac   : > { %v1399_v39 = vadd.f32 %v1398_v36, %v7076_v17  ;;  %v1980_v1 = vpack.c.bf16 %v1272_v62, %v1268_v55  ;;  %v7133_v2 = vadd.f32 %v1275_v0, %v7112_v46  ;;  %5564 = vmatprep.mubr.bf16.mxu1 %v1586_v60 }
 0x1ad   : > { %v7094_v37 = vpop.f32.mrf.mxu1  ;;  %v1277_v4 = vpop.f32.mrf.mxu0 }
 0x1ae   : > { %v7138_v6 = vadd.f32 %v1277_v4, %v7118_v49  ;;  %5628 = vmatprep.mubr.bf16.mxu0 %v1980_v1 }
 0x1af   : > { %v1402_v38 = vpop.f32.mrf.mxu1  ;;  %v1279_v9 = vpop.f32.mrf.mxu0 }
 0x1b0   : > { %v1403_v40 = vadd.f32 %v1402_v38, %v7076_v17  ;;  %v7143_v10 = vadd.f32 %v1279_v9, %v7112_v46 }
 0x1b1   : > { %v7101_v42 = vpop.f32.mrf.mxu1  ;;  %v1281_v12 = vpop.f32.mrf.mxu0 }
 0x1b2   : > { %v7103_v43 = vpack.c.bf16 %v1403_v40, %v1399_v39  ;;  %v1587_v13 = vpack.c.bf16 %v7143_v10, %v7133_v2  ;;  %v7150_v14 = vadd.f32 %v1281_v12, %v7118_v49 }
 0x1b3   : > { %v7108_v45 = vpop.f32.mrf.mxu1  ;;  %v1285_v19 = vpop.f32.mrf.mxu0 }
 0x1b4   : > { %v7157_v21 = vadd.f32 %v1285_v19, %v7112_v46  ;;  %v7195_v19 = vrot.slane %v7071_v5, %v8966_v56 }
 0x1b5   : > { %v7114_v47 = vpop.f32.mrf.mxu1  ;;  %v1287_v23 = vpop.f32.mrf.mxu0 }
 0x1b6   : > { %v7160_v15 = vadd.f32 %v1287_v23, %v7118_v49 }
 0x1b7   : > { %v7120_v50 = vpop.f32.mrf.mxu1  ;;  %v1289_v24 = vpop.f32.mrf.mxu0 }
 0x1b8   : > { %v7163_v25 = vadd.f32 %v1289_v24, %v7112_v46 }
 0x1b9   : > { %v7123_v53 = vpop.f32.mrf.mxu1  ;;  %v1291_v29 = vpop.f32.mrf.mxu0 }
 0x1ba   : > { %v1588_v31 = vpack.c.bf16 %v7163_v25, %v7157_v21  ;;  %v7168_v32 = vadd.f32 %v1291_v29, %v7118_v49 }
 0x1bb   : > { %v7127_v57 = vpop.f32.mrf.mxu1  ;;  %v1295_v36 = vpop.f32.mrf.mxu0 }
 0x1bc   : > { %v7173_v39 = vadd.f32 %v1295_v36, %v7112_v46 }
 0x1bd   : > { %v7130_v63 = vpop.f32.mrf.mxu1  ;;  %v1297_v48 = vpop.f32.mrf.mxu0 }
 0x1be   : > { %v7176_v51 = vadd.f32 %v1297_v48, %v7118_v49 }
 0x1bf   : > { %v7135_v3 = vpop.f32.mrf.mxu1  ;;  %v1299_v54 = vpop.f32.mrf.mxu0 }
 0x1c0   : > { %v7179_v55 = vadd.f32 %v1299_v54, %v7112_v46 }
 0x1c1   : > { %v7140_v8 = vpop.f32.mrf.mxu1  ;;  %v1301_v60 = vpop.f32.mrf.mxu0 }
 0x1c2   : > { %v7185_v0 = vadd.f32 %v1301_v60, %v7118_v49  ;;  %v9008_v21 = vpack.c.bf16 %v7179_v55, %v7173_v39 }
 0x1c3   : > { %v7145_v11 = vpop.f32.mrf.mxu1  ;;  %v1305_v4 = vpop.f32.mrf.mxu0 }
 0x1c4   : > { %v7190_v12 = vadd.f32 %v1305_v4, %v7112_v46 }
 0x1c5   : > { %v7152_v16 = vpop.f32.mrf.mxu1  ;;  %v1307_v24 = vpop.f32.mrf.mxu0 }
 0x1c6   : > { %v7201_v54 = vadd.f32 %v1307_v24, %v7118_v49 }
 0x1c7   : > { %v1432_v22 = vpop.f32.mrf.mxu1  ;;  %v1309_v9 = vpop.f32.mrf.mxu0 }
 0x1c9   : > { %v1434_v7 = vpop.f32.mrf.mxu1 }
 0x1cb   : > { %v1438_v26 = vpop.f32.mrf.mxu1 }
 0x1cc   : > { %v1439_v60 = vadd.f32 %v1438_v26, %v7076_v17 }
 0x1cd   : > { %v1440_v33 = vpop.f32.mrf.mxu1 }
 0x1cf   : > { %v1442_v40 = vpop.f32.mrf.mxu1 }
 0x1d0   : > { %v1443_v29 = vadd.f32 %v1442_v40, %v7076_v17  ;;  %v7208_v40 = vadd.f32 %v1309_v9, %v7112_v46 }
 0x1d1   : > { %v1444_v52 = vpop.f32.mrf.mxu1 }
 0x1d2   : > { %v1445_v4 = vadd.f32 %v1444_v52, %v7195_v19  ;;  %v1600_v20 = vpack.c.bf16 %v1443_v29, %v1439_v60  ;;  %v1590_v26 = vpack.c.bf16 %v7208_v40, %v7190_v12 }
 0x1d3   : > { %v1448_v58 = vpop.f32.mrf.mxu1 }
 0x1d4   : > { %v1449_v36 = vadd.f32 %v1448_v58, %v7076_v17  ;;  %v1441_v58 = vadd.f32 %v1440_v33, %v7195_v19 }
 0x1d5   : > { %v1450_v1 = vpop.f32.mrf.mxu1 }
 0x1d6   : > { %v1451_v56 = vadd.f32 %v1450_v1, %v7195_v19 }
 0x1d7   : > { %v1452_v23 = vpop.f32.mrf.mxu1 }
 0x1d8   : > { %v1453_v48 = vadd.f32 %v1452_v23, %v7076_v17  ;;  %v1311_v23 = vpop.f32.mrf.mxu0 }
 0x1d9   : > { %v1454_v61 = vpop.f32.mrf.mxu1  ;;  %v7214_v52 = vadd.f32 %v1311_v23, %v7118_v49 }
 0x1da   : > { %v1601_v62 = vpack.c.bf16 %v1453_v48, %v1449_v36  ;;  %v1455_v38 = vadd.f32 %v1454_v61, %v7195_v19  ;;  %v1315_v1 = vpop.f32.mrf.mxu0  ;;  %v1994_v36 = vpack.c.bf16 %v1445_v4, %v1441_v58  ;;  %v1435_v48 = vadd.f32 %v1434_v7, %v7195_v19 }
 0x1db   : > { %v1984_v61 = vpack.c.bf16 %v7214_v52, %v7201_v54  ;;  %v7219_v33 = vadd.f32 %v1315_v1, %v7112_v46  ;;  %v1431_v58 = vadd.f32 %v7152_v16, %v7195_v19  ;;  %v1423_v16 = vadd.f32 %v7135_v3, %v7076_v17 }
 0x1dc   : > { %v1995_v24 = vpack.c.bf16 %v1455_v38, %v1451_v56  ;;  %5548 = vmatprep.subr.bf16.mxu1 %v1601_v62  ;;  %v1317_v38 = vpop.f32.mrf.mxu0  ;;  %v1433_v56 = vadd.f32 %v1432_v22, %v7076_v17 }
 0x1dd   : > { %5549 = vmatpush3.bf16.xpose.msra.mxu1 %v1601_v62  ;;  %v7223_v9 = vadd.f32 %v1317_v38, %v7118_v49  ;;  %v1429_v62 = vadd.f32 %v7145_v11, %v7076_v17  ;;  %v1993_v38 = vpack.c.bf16 %v1435_v48, %v1431_v58  ;;  %v1425_v48 = vadd.f32 %v7140_v8, %v7195_v19 }
 0x1de   : > { %5550 = vmatprep.subr.bf16.mxu1 %v1600_v20  ;;  %5612 = vmatprep.subr.bf16.mxu0 %v1995_v24  ;;  %v1319_v29 = vpop.f32.mrf.mxu0 }
 0x1df   : > { %5613 = vmatpush3.bf16.xpose.msra.mxu0 %v1995_v24  ;;  %v7229_v60 = vadd.f32 %v1319_v29, %v7112_v46  ;;  %v1599_v23 = vpack.c.bf16 %v1433_v56, %v1429_v62 }
 0x1e0   : > { %5614 = vmatprep.subr.bf16.mxu0 %v1994_v36  ;;  %v1321_v4 = vpop.f32.mrf.mxu0 }
 0x1e1   : > { %v7236_v24 = vadd.f32 %v1321_v4, %v7118_v49  ;;  %v9010_v12 = vpack.c.bf16 %v7229_v60, %v7219_v33 }
 0x1e2   : > { %v1325_v1 = vpop.f32.mrf.mxu0 }
 0x1e3   : > { %v7241_v7 = vadd.f32 %v1325_v1, %v7112_v46  ;;  %v9012_v54 = vpack.c.bf16 %v7236_v24, %v7223_v9 }
 0x1e4   : > { %v1327_v29 = vpop.f32.mrf.mxu0 }
 0x1e5   : > { %5551 = vmatpush3.bf16.xpose.msra.mxu1 %v1600_v20  ;;  %v7246_v56 = vadd.f32 %v1327_v29, %v7118_v49  ;;  %v1419_v20 = vadd.f32 %v7127_v57, %v7076_v17 }
 0x1e6   : > { %5552 = vmatprep.subr.bf16.mxu1 %v1599_v23  ;;  %v1329_v62 = vpop.f32.mrf.mxu0 }
 0x1e7   : > { %5615 = vmatpush3.bf16.xpose.msra.mxu0 %v1994_v36  ;;  %v7253_v4 = vadd.f32 %v1329_v62, %v7112_v46  ;;  %v1421_v36 = vadd.f32 %v7130_v63, %v7195_v19  ;;  %v1598_v1 = vpack.c.bf16 %v1423_v16, %v1419_v20  ;;  %v1413_v63 = vadd.f32 %v7120_v50, %v7076_v17 }
 0x1e8   : > { %5616 = vmatprep.subr.bf16.mxu0 %v1993_v38  ;;  %v1331_v58 = vpop.f32.mrf.mxu0  ;;  %v1411_v50 = vadd.f32 %v7114_v47, %v7195_v19 }
 0x1e9   : > { %v7260_v29 = vadd.f32 %v1331_v58, %v7118_v49  ;;  %v1992_v57 = vpack.c.bf16 %v1425_v48, %v1421_v36  ;;  %v1409_v48 = vadd.f32 %v7108_v45, %v7076_v17  ;;  %v1415_v58 = vadd.f32 %v7123_v53, %v7195_v19 }
 0x1ea   : > { %v1335_v11 = vpop.f32.mrf.mxu0 }
 0x1eb   : > { %v7265_v62 = vadd.f32 %v1335_v11, %v7112_v46  ;;  %v9013_v52 = vpack.c.bf16 %v7260_v29, %v7246_v56 }
 0x1ec   : > { %v1337_v22 = vpop.f32.mrf.mxu0 }
 0x1ed   : > { %5553 = vmatpush3.bf16.xpose.msra.mxu1 %v1599_v23  ;;  %v7270_v16 = vadd.f32 %v1337_v22, %v7118_v49  ;;  %v743_v23 = vsub.s32 5, %v7068_v59  ;;  %v1597_v22 = vpack.c.bf16 %v1413_v63, %v1409_v48 }
 0x1ee   : > { %5554 = vmatprep.subr.bf16.mxu1 %v1598_v1  ;;  %v1339_v20 = vpop.f32.mrf.mxu0 }
 0x1ef   : > { %5617 = vmatpush3.bf16.xpose.msra.mxu0 %v1993_v38  ;;  %v7278_v11 = vadd.f32 %v1339_v20, %v7112_v46  ;;  %v739_v38 = vsub.s32 4, %v7068_v59  ;;  %v7289_v17 = vrot.slane %v7071_v5, %v743_v23  ;;  %v1991_v46 = vpack.c.bf16 %v1415_v58, %v1411_v50 }
 0x1f0   : > { %5618 = vmatprep.subr.bf16.mxu0 %v1992_v57  ;;  %v1341_v36 = vpop.f32.mrf.mxu0  ;;  %v1401_v50 = vadd.f32 %v7094_v37, %v7195_v19  ;;  %v1395_v37 = vadd.f32 %v7090_v34, %v7195_v19 }
 0x1f1   : > { %v1593_v8 = vpack.c.bf16 %v7278_v11, %v7265_v62  ;;  %v7286_v3 = vadd.f32 %v1341_v36, %v7118_v49  ;;  %v7294_v47 = vrot.slane %v7071_v5, %v739_v38 }
 0x1f2   : > { %v1491_v45 = vpop.f32.mrf.mxu0 }
 0x1f3   : > { %v1492_v20 = vadd.f32 %v1491_v45, %v7294_v47 }
 0x1f4   : > { %v1493_v63 = vpop.f32.mrf.mxu0 }
 0x1f5   : > { %5555 = vmatpush3.bf16.xpose.msra.mxu1 %v1598_v1  ;;  %v1494_v49 = vadd.f32 %v1493_v63, %v7289_v17  ;;  %v1405_v1 = vadd.f32 %v7101_v42, %v7195_v19 }
 0x1f6   : > { %5556 = vmatprep.subr.bf16.mxu1 %v1597_v22  ;;  %v1495_v48 = vpop.f32.mrf.mxu0 }
 0x1f7   : > { %5619 = vmatpush3.bf16.xpose.msra.mxu0 %v1992_v57  ;;  %v1496_v23 = vadd.f32 %v1495_v48, %v7294_v47  ;;  %v1990_v38 = vpack.c.bf16 %v1405_v1, %v1401_v50  ;;  %v1391_v1 = vadd.f32 %v7086_v30, %v7195_v19  ;;  %v1385_v30 = vadd.f32 %v7082_v27, %v7195_v19 }
 0x1f8   : > { %5620 = vmatprep.subr.bf16.mxu0 %v1991_v46  ;;  %v1497_v58 = vpop.f32.mrf.mxu0 }
 0x1f9   : > { %v7303_v36 = vpack.c.bf16 %v1496_v23, %v1492_v20  ;;  %v1498_v5 = vadd.f32 %v1497_v58, %v7289_v17  ;;  %v1989_v58 = vpack.c.bf16 %v1395_v37, %v1391_v1 }
 0x1fa   : > { %v1501_v57 = vpop.f32.mrf.mxu0 }
 0x1fb   : > { %v7307_v45 = vpack.c.bf16 %v1498_v5, %v1494_v49  ;;  %v1502_v42 = vadd.f32 %v1501_v57, %v7294_v47 }
 0x1fc   : > { %v1503_v63 = vpop.f32.mrf.mxu0 }
 0x1fd   : > { %5557 = vmatpush3.bf16.xpose.msra.mxu1 %v1597_v22  ;;  %v1504_v48 = vadd.f32 %v1503_v63, %v7289_v17 }
 0x1fe   : > { %5558 = vmatprep.subr.bf16.mxu1 %v7103_v43  ;;  %v1505_v53 = vpop.f32.mrf.mxu0 }
 0x1ff   : > { %5621 = vmatpush3.bf16.xpose.msra.mxu0 %v1991_v46  ;;  %v1506_v20 = vadd.f32 %v1505_v53, %v7294_v47 }
 0x200   : > { %5622 = vmatprep.subr.bf16.mxu0 %v1990_v38  ;;  %v1507_v22 = vpop.f32.mrf.mxu0 }
 0x201   : > { %v7316_v23 = vpack.c.bf16 %v1506_v20, %v1502_v42  ;;  %v1508_v46 = vadd.f32 %v1507_v22, %v7289_v17 }
 0x202   : > { %v7320_v49 = vpop.f32.mrf.mxu0 }
 0x203   : > { %v7323_v50 = vpack.c.bf16 %v1508_v46, %v1504_v48 }
 0x204   : > { %v1513_v34 = vpop.f32.mrf.mxu0 }
 0x205   : > { %5559 = vmatpush3.bf16.xpose.msra.mxu1 %v7103_v43  ;;  %v1514_v53 = vadd.f32 %v1513_v34, %v7289_v17  ;;  %v1381_v43 = vadd.f32 %v7078_v18, %v7195_v19 }
 0x206   : > { %5560 = vmatprep.subr.bf16.mxu1 %v7092_v35  ;;  %v7326_v5 = vpop.f32.mrf.mxu0 }
 0x207   : > { %5623 = vmatpush3.bf16.xpose.msra.mxu0 %v1990_v38  ;;  %v1988_v38 = vpack.c.bf16 %v1385_v30, %v1381_v43  ;;  %v9006_v30 = vpack.c.bf16 %v7150_v14, %v7138_v6  ;;  %v9007_v43 = vpack.c.bf16 %v7168_v32, %v7160_v15  ;;  %v9009_v14 = vpack.c.bf16 %v7185_v0, %v7176_v51 }
 0x208   : > { %5624 = vmatprep.subr.bf16.mxu0 %v1989_v58  ;;  %v1517_v57 = vpop.f32.mrf.mxu0  ;;  %v9011_v51 = vpack.c.bf16 %v7253_v4, %v7241_v7 }
 0x209   : > { %v1518_v63 = vadd.f32 %v1517_v57, %v7289_v17 }
 0x20a   : > { %v7334_v42 = vpop.f32.mrf.mxu0 }
 0x20b   : > { %v7337_v48 = vpack.c.bf16 %v1518_v63, %v1514_v53 }
 0x20c   : > { %v1523_v37 = vpop.f32.mrf.mxu0 }
 0x20d   : > { %5561 = vmatpush3.bf16.xpose.msra.mxu1 %v7092_v35  ;;  %v1524_v27 = vadd.f32 %v1523_v37, %v7289_v17  ;;  %v9014_v37 = vpack.c.bf16 %v7286_v3, %v7270_v16  ;;  %v1512_v3 = vadd.f32 %v7320_v49, %v7294_v47  ;;  %v1516_v16 = vadd.f32 %v7326_v5, %v7294_v47  ;;  %v7422_v49 = vld [vmem:[#allocation5 + $0x10] sm:$0xff] }
 0x20e   : > { %5562 = vmatprep.subr.bf16.mxu1 %v7084_v28  ;;  %v1525_v20 = vpop.f32.mrf.mxu0 }
 0x20f   : > { %5625 = vmatpush3.bf16.xpose.msra.mxu0 %v1989_v58  ;;  %v1526_v62 = vadd.f32 %v1525_v20, %v7294_v47 }
 0x210   : > { %5626 = vmatprep.subr.bf16.mxu0 %v1988_v38  ;;  %v1527_v22 = vpop.f32.mrf.mxu0 }
 0x211   : > { %v1528_v18 = vadd.f32 %v1527_v22, %v7289_v17 }
 0x212   : > { %v1531_v19 = vpop.f32.mrf.mxu0 }
 0x213   : > { %v7342_v35 = vpack.c.bf16 %v1528_v18, %v1524_v27  ;;  %v1532_v27 = vadd.f32 %v1531_v19, %v7294_v47 }
 0x214   : > { %v1533_v1 = vpop.f32.mrf.mxu0 }
 0x215   : > { %5563 = vmatpush3.bf16.xpose.msra.mxu1 %v7084_v28  ;;  %v1534_v46 = vadd.f32 %v1533_v1, %v7289_v17  ;;  %v1604_v1 = vpack.c.bf16 %v1516_v16, %v1512_v3 }
 0x216   : > { %v1535_v34 = vpop.f32.mrf.mxu0 }
 0x217   : > { %5627 = vmatpush3.bf16.xpose.msra.mxu0 %v1988_v38  ;;  %v1536_v22 = vadd.f32 %v1535_v34, %v7294_v47  ;;  %v7424_v34 = vld [vmem:[#allocation5] sm:$0xff] }
 0x218   : > { %v1537_v53 = vpop.f32.mrf.mxu0 }
 0x219   : > { %v1538_v58 = vadd.f32 %v1537_v53, %v7289_v17  ;;  %v1606_v11 = vpack.c.bf16 %v1536_v22, %v1532_v27  ;;  %v1581_v22 = vld [vmem:[#allocation5 + $0x58] sm:$0xff] }
 0x21a   : > { %v1541_v28 = vpop.f32.mrf.mxu0 }
 0x21b   : > { %v7355_v57 = vpack.c.bf16 %v1538_v58, %v1534_v46  ;;  %v1542_v9 = vadd.f32 %v1541_v28, %v7294_v47 }
 0x21c   : > { %5565 = vmatmul.mubr.bf16.vlgmr.msra.gmra.mxu1 %v1587_v13  ;;  %v1543_v63 = vpop.f32.mrf.mxu0 }
 0x21d   : > { %5568 = vmatprep.mubr.bf16.mxu1 %v1588_v31  ;;  %v1544_v2 = vadd.f32 %v1543_v63, %v7289_v17 }
 0x21e   : > { %5629 = vmatmul.mubr.bf16.vlgmr.msra.gmra.mxu0 %v9006_v30  ;;  %v1545_v10 = vpop.f32.mrf.mxu0 }
 0x21f   : > { %5632 = vmatprep.mubr.bf16.mxu0 %v9007_v43  ;;  %v1546_v24 = vadd.f32 %v1545_v10, %v7294_v47  ;;  %v7437_v43 = vld [vmem:[#allocation5 + $0x8] sm:$0xff] }
 0x220   : > { %v1547_v13 = vpop.f32.mrf.mxu0 }
 0x221   : > { %v1548_v25 = vadd.f32 %v1547_v13, %v7289_v17  ;;  %v1607_v18 = vpack.c.bf16 %v1546_v24, %v1542_v9  ;;  %v1579_v24 = vld [vmem:[#allocation5 + $0x48] sm:$0xff] }
 0x222   : > { %v1551_v6 = vpop.f32.mrf.mxu0 }
 0x223   : > { %v7371_v15 = vpack.c.bf16 %v1548_v25, %v1544_v2  ;;  %v1552_v33 = vadd.f32 %v1551_v6, %v7294_v47  ;;  %v7449_v25 = vld [vmem:[#allocation5 + $0x20] sm:$0xff] }
 0x224   : > { %5569 = vmatmul.mubr.bf16.gmra.mxu1 %v9008_v21  ;;  %v1553_v31 = vpop.f32.mrf.mxu0 }
 0x225   : > { %5572 = vmatprep.mubr.bf16.mxu1 %v1590_v26  ;;  %v1554_v32 = vadd.f32 %v1553_v31, %v7289_v17  ;;  %v7455_v31 = vld [vmem:[#allocation5 + $0x30] sm:$0xff] }
 0x226   : > { %5633 = vmatmul.mubr.bf16.gmra.mxu0 %v9009_v14  ;;  %v1555_v39 = vpop.f32.mrf.mxu0 }
 0x227   : > { %5636 = vmatprep.mubr.bf16.mxu0 %v1984_v61  ;;  %v1556_v60 = vadd.f32 %v1555_v39, %v7294_v47 }
 0x228   : > { %v1557_v55 = vpop.f32.mrf.mxu0 }
 0x229   : > { %v1558_v40 = vadd.f32 %v1557_v55, %v7289_v17  ;;  %v1608_v56 = vpack.c.bf16 %v1556_v60, %v1552_v33  ;;  %v1575_v55 = vld [vmem:[#allocation5 + $0x28] sm:$0xff] }
 0x22a   : > { %v1561_v0 = vpop.f32.mrf.mxu0 }
 0x22b   : > { %v7387_v26 = vpack.c.bf16 %v1558_v40, %v1554_v32  ;;  %v1562_v38 = vadd.f32 %v1561_v0, %v7294_v47 }
 0x22c   : > { %5573 = vmatmul.mubr.bf16.gmra.mxu1 %v9010_v12  ;;  %v1563_v61 = vpop.f32.mrf.mxu0 }
 0x22d   : > { %5576 = vmatprep.mubr.bf16.mxu1 %v9011_v51  ;;  %v1564_v20 = vadd.f32 %v1563_v61, %v7289_v17  ;;  %v1578_v61 = vld [vmem:[#allocation5 + $0x40] sm:$0xff] }
 0x22e   : > { %5637 = vmatmul.mubr.bf16.gmra.mxu0 %v9012_v54  ;;  %v1565_v7 = vpop.f32.mrf.mxu0  ;;  %v1577_v54 = vld [vmem:[#allocation5 + $0x38] sm:$0xff] }
 0x22f   : > { %5640 = vmatprep.mubr.bf16.mxu0 %v9013_v52  ;;  %v1566_v4 = vadd.f32 %v1565_v7, %v7294_v47 }
 0x231   : > { %v1609_v29 = vpack.c.bf16 %v1566_v4, %v1562_v38  ;;  %v1580_v4 = vld [vmem:[#allocation5 + $0x50] sm:$0xff] }
 0x233   : > { %5580 = vmatprep.subr.bf16.mxu1 %v1609_v29 }
 0x234   : > { %5577 = vmatmul.mubr.bf16.gmra.mxu1 %v1593_v8  ;;  %v1522_v8 = vadd.f32 %v7334_v42, %v7294_v47  ;;  %v1567_v42 = vpop.f32.mrf.mxu0 }
 0x235   : > { %5581 = vmatpush3.bf16.msra.mxu1 %v1609_v29  ;;  %v1568_v46 = vadd.f32 %v1567_v42, %v7289_v17  ;;  %v1583_v42 = vld [vmem:[#allocation5 + $0x68] sm:$0xff] }
 0x236   : > { %5641 = vmatmul.mubr.bf16.gmra.mxu0 %v9014_v37  ;;  %5582 = vmatprep.subr.bf16.mxu1 %v1608_v56  ;;  %v1605_v19 = vpack.c.bf16 %v1526_v62, %v1522_v8  ;;  %v1582_v8 = vld [vmem:[#allocation5 + $0x60] sm:$0xff] }
 0x237   : > { %v7418_v47 = vpack.c.bf16 %v1568_v46, %v1564_v20 }
 0x239   : > { %5583 = vmatpush3.bf16.msra.mxu1 %v1608_v56 }
 0x23a   : > { %5584 = vmatprep.subr.bf16.mxu1 %v1607_v18 }
 0x23d   : > { %5585 = vmatpush3.bf16.msra.mxu1 %v1607_v18 }
 0x23e   : > { %5586 = vmatprep.subr.bf16.mxu1 %v1606_v11 }
 0x241   : > { %5587 = vmatpush3.bf16.msra.mxu1 %v1606_v11 }
 0x242   : > { %5588 = vmatprep.subr.bf16.mxu1 %v1605_v19 }
 0x245   : > { %5589 = vmatpush3.bf16.msra.mxu1 %v1605_v19  ;;  %v1584_v19 = vld [vmem:[#allocation5 + $0x70] sm:$0xff] }
 0x246   : > { %5590 = vmatprep.subr.bf16.mxu1 %v1604_v1 }
 0x249   : > { %5591 = vmatpush3.bf16.msra.mxu1 %v1604_v1 }
 0x24a   : > { %5592 = vmatprep.subr.bf16.mxu1 %v7316_v23 }
 0x24d   : > { %5593 = vmatpush3.bf16.msra.mxu1 %v7316_v23  ;;  %v7431_v23 = vld [vmem:[#allocation5 + $0x18] sm:$0xff] }
 0x24e   : > { %5594 = vmatprep.subr.bf16.mxu1 %v7303_v36 }
 0x251   : > { %5595 = vmatpush3.bf16.msra.mxu1 %v7303_v36 }
 0x252   : > { %5644 = vmatprep.subr.bf16.mxu1 %v7418_v47 }
 0x2dc   : > { %v5566_v5 = vpop.f32.mrf.mxu1 }
 0x2dd   : > { %v7427_v53 = vadd.f32 %v5566_v5, %v7422_v49 }
 0x2de   : > { %v1644_v58 = vpop.f32.mrf.mxu1  ;;  %v7429_v17 = vpop.f32.mrf.mxu0 }
 0x2df   : > { %v7434_v28 = vadd.f32 %v1644_v58, %v7424_v34  ;;  %1711 = vmax.xlane.f32.xlu1 %v7427_v53 }
 0x2e0   : > { %v5567_v36 = vpop.f32.mrf.mxu1  ;;  %v2038_v30 = vpop.f32.mrf.mxu0 }
 0x2e1   : > { %v7440_v63 = vadd.f32 %v5567_v36, %v7431_v23  ;;  %1707 = vmax.xlane.f32.xlu0 %v7434_v28  ;;  %v1585_v36 = vld [vmem:[#allocation5 + $0x78] sm:$0xff] }
 0x2e2   : > { %v1647_v2 = vpop.f32.mrf.mxu1  ;;  %v7447_v13 = vpop.f32.mrf.mxu0 }
 0x2e3   : > { %1713 = vmax.xlane.f32.xlu1 %v7440_v63  ;;  %v7445_v10 = vadd.f32 %v1647_v2, %v7437_v43  ;;  %v7490_v2 = vadd.f32 %v2038_v30, %v7424_v34  ;;  %v7507_v34 = vadd.f32 %v7447_v13, %v7431_v23 }
 0x2e4   : > { %v5570_v21 = vpop.f32.mrf.mxu1  ;;  %v2041_v32 = vpop.f32.mrf.mxu0 }
 0x2e5   : > { %1709 = vmax.xlane.f32.xlu0 %v7445_v10  ;;  %v7459_v40 = vadd.f32 %v5570_v21, %v7455_v31 }
 0x2e6   : > { %v1660_v6 = vpop.f32.mrf.mxu1  ;;  %v5634_v0 = vpop.f32.mrf.mxu0 }
 0x2e7   : > { %v7453_v14 = vadd.f32 %v1660_v6, %v7449_v25 }
 0x2e8   : > { %v5571_v39 = vpop.f32.mrf.mxu1  ;;  %v2054_v7 = vpop.f32.mrf.mxu0 }
 0x2e9   : > { %1715 = vmax.xlane.f32.xlu0 %v7453_v14  ;;  %v7465_v60 = vadd.f32 %v5571_v39, %v1577_v54  ;;  %v7498_v39 = vadd.f32 %v7429_v17, %v7422_v49  ;;  %v7510_v30 = vadd.f32 %v2054_v7, %v7449_v25  ;;  %v7515_v49 = vadd.f32 %v5634_v0, %v7455_v31 }
 0x2ea   : > { %v1663_v12 = vpop.f32.mrf.mxu1  ;;  %v5635_v27 = vpop.f32.mrf.mxu0 }
 0x2eb   : > { %v7461_v51 = vadd.f32 %v1663_v12, %v1575_v55  ;;  %v7501_v12 = vadd.f32 %v2041_v32, %v7437_v43  ;;  %v7521_v23 = vadd.f32 %v5635_v27, %v1577_v54 }
 0x2ec   : > { %v5574_v52 = vpop.f32.mrf.mxu1  ;;  %v2057_v16 = vpop.f32.mrf.mxu0 }
 0x2ed   : > { %1717 = vmax.xlane.f32.xlu1 %v7461_v51  ;;  %1719 = vmax.xlane.f32.xlu0 %v7459_v40  ;;  %v7471_v29 = vadd.f32 %v5574_v52, %v1580_v4  ;;  %v7517_v17 = vadd.f32 %v2057_v16, %v1575_v55 }
 0x2ee   : > { %v1676_v33 = vpop.f32.mrf.mxu1  ;;  %v5638_v58 = vpop.f32.mrf.mxu0 }
 0x2ef   : > { %v7467_v38 = vadd.f32 %v1676_v33, %v1578_v61  ;;  %v7527_v32 = vadd.f32 %v5638_v58, %v1580_v4 }
 0x2f0   : > { %v5575_v9 = vpop.f32.mrf.mxu1  ;;  %v2070_v6 = vpop.f32.mrf.mxu0 }
 0x2f1   : > { %1721 = vmax.xlane.f32.xlu1 %v7465_v60  ;;  %1723 = vmax.xlane.f32.xlu0 %v7467_v38  ;;  %v7477_v11 = vadd.f32 %v5575_v9, %v1581_v22  ;;  %v7523_v13 = vadd.f32 %v2070_v6, %v1578_v61 }
 0x2f2   : > { %v1679_v56 = vpop.f32.mrf.mxu1  ;;  %v5639_v52 = vpop.f32.mrf.mxu0 }
 0x2f3   : > { %v7473_v37 = vadd.f32 %v1679_v56, %v1579_v24  ;;  %v7533_v0 = vadd.f32 %v5639_v52, %v1581_v22 }
 0x2f4   : > { %v5578_v18 = vpop.f32.mrf.mxu1  ;;  %v2073_v33 = vpop.f32.mrf.mxu0 }
 0x2f5   : > { %1725 = vmax.xlane.f32.xlu1 %v7473_v37  ;;  %1727 = vmax.xlane.f32.xlu0 %v7471_v29  ;;  %v7483_v46 = vadd.f32 %v5578_v18, %v1584_v19  ;;  %v7529_v31 = vadd.f32 %v2073_v33, %v1579_v24 }
 0x2f6   : > { %v1692_v62 = vpop.f32.mrf.mxu1  ;;  %v5642_v43 = vpop.f32.mrf.mxu0 }
 0x2f7   : > { %v7479_v3 = vadd.f32 %v1692_v62, %v1582_v8  ;;  %v7539_v7 = vadd.f32 %v5642_v43, %v1584_v19 }
 0x2f8   : > { %v5579_v1 = vpop.f32.mrf.mxu1  ;;  %v2086_v25 = vpop.f32.mrf.mxu0 }
 0x2f9   : > { %1729 = vmax.xlane.f32.xlu1 %v7477_v11  ;;  %1731 = vmax.xlane.f32.xlu0 %v7479_v3  ;;  %v7492_v21 = vadd.f32 %v5579_v1, %v1585_v36  ;;  %v7535_v54 = vadd.f32 %v2086_v25, %v1582_v8 }
 0x2fa   : > { %v1695_v20 = vpop.f32.mrf.mxu1  ;;  %v5643_v55 = vpop.f32.mrf.mxu0 }
 0x2fb   : > { %v7485_v5 = vadd.f32 %v1695_v20, %v1583_v42  ;;  %v7545_v9 = vadd.f32 %v5643_v55, %v1585_v36 }
 0x2fc   : > { %v2089_v61 = vpop.f32.mrf.mxu0 }
 0x2fd   : > { %1733 = vmax.xlane.f32.xlu1 %v7485_v5  ;;  %1735 = vmax.xlane.f32.xlu0 %v7483_v46  ;;  %v7541_v4 = vadd.f32 %v2089_v61, %v1583_v42 }
 0x301   : > { %1737 = vmax.xlane.f32.xlu1 %v7492_v21  ;;  %2101 = vmax.xlane.f32.xlu0 %v7490_v2 }
 0x305   : > { %2103 = vmax.xlane.f32.xlu1 %v7501_v12  ;;  %2105 = vmax.xlane.f32.xlu0 %v7498_v39 }
 0x309   : > { %2107 = vmax.xlane.f32.xlu1 %v7507_v34  ;;  %2109 = vmax.xlane.f32.xlu0 %v7510_v30 }
 0x30d   : > { %2111 = vmax.xlane.f32.xlu1 %v7517_v17  ;;  %2113 = vmax.xlane.f32.xlu0 %v7515_v49 }
 0x311   : > { %2115 = vmax.xlane.f32.xlu1 %v7521_v23  ;;  %2117 = vmax.xlane.f32.xlu0 %v7523_v13 }
 0x315   : > { %2119 = vmax.xlane.f32.xlu1 %v7529_v31  ;;  %2121 = vmax.xlane.f32.xlu0 %v7527_v32 }
 0x319   : > { %2123 = vmax.xlane.f32.xlu1 %v7533_v0  ;;  %2125 = vmax.xlane.f32.xlu0 %v7535_v54 }
 0x31d   : > { %2127 = vmax.xlane.f32.xlu1 %v7541_v4  ;;  %2129 = vmax.xlane.f32.xlu0 %v7539_v7 }
 0x321   : > { %2131 = vmax.xlane.f32.xlu1 %v7545_v9 }
 0x368   : > { %v1712_v24 = vpop.xlane.xlu1 %1711 }
 0x369   : > { %v1741_v56 = vsub.f32 %v7427_v53, %v1712_v24 }
 0x36a   : > { %v1708_v27 = vpop.xlane.xlu0 %1707 }
 0x36b   : > { %v1739_v22 = vsub.f32 %v7434_v28, %v1708_v27  ;;  %v1759_v62 = vmul.f32 1.442695, %v1741_v56 }
 0x36c   : > { %v1714_v18 = vpop.xlane.xlu1 %1713 }
 0x36d   : > { %v1755_v8 = vmul.f32 1.442695, %v1739_v22  ;;  %v1742_v16 = vsub.f32 %v7440_v63, %v1714_v18 }
 0x36e   : > { %v1710_v19 = vpop.xlane.xlu0 %1709 }
 0x36f   : > { %6176 = vpow2.f32 %v1755_v8  ;;  %v1740_v1 = vsub.f32 %v7445_v10, %v1710_v19  ;;  %v1761_v20 = vmul.f32 1.442695, %v1742_v16 }
 0x370   : > { %6178 = vpow2.f32 %v1759_v62 }
 0x371   : > { %v1757_v42 = vmul.f32 1.442695, %v1740_v1 }
 0x372   : > { %v1716_v58 = vpop.xlane.xlu0 %1715 }
 0x373   : > { %6180 = vpow2.f32 %v1757_v42  ;;  %v1743_v36 = vsub.f32 %v7453_v14, %v1716_v58 }
 0x374   : > { %6182 = vpow2.f32 %v1761_v20 }
 0x375   : > { %v1763_v53 = vmul.f32 1.442695, %v1743_v36 }
 0x376   : > { %v1718_v6 = vpop.xlane.xlu1 %1717  ;;  %v1720_v28 = vpop.xlane.xlu0 %1719 }
 0x377   : > { %6184 = vpow2.f32 %v1763_v53  ;;  %v1744_v52 = vsub.f32 %v7461_v51, %v1718_v6  ;;  %v1745_v63 = vsub.f32 %v7459_v40, %v1720_v28 }
 0x379   : > { %v1765_v33 = vmul.f32 1.442695, %v1744_v52  ;;  %v1767_v43 = vmul.f32 1.442695, %v1745_v63 }
 0x37a   : > { %v1722_v25 = vpop.xlane.xlu1 %1721  ;;  %v1724_v10 = vpop.xlane.xlu0 %1723 }
 0x37b   : > { %6186 = vpow2.f32 %v1765_v33  ;;  %v1746_v55 = vsub.f32 %v7465_v60, %v1722_v25  ;;  %v1747_v61 = vsub.f32 %v7467_v38, %v1724_v10 }
 0x37c   : > { %v7557_v24 = vpop.eup %6176  ;;  %6188 = vpow2.f32 %v1767_v43 }
 0x37d   : > { %v1769_v14 = vmul.f32 1.442695, %v1746_v55  ;;  %v1771_v56 = vmul.f32 1.442695, %v1747_v61  ;;  %1787 = vadd.xlane.f32.xlu0 %v7557_v24  ;;  %v7560_v22 = vpop.eup %6178 }
 0x37e   : > { %v1726_v27 = vpop.xlane.xlu1 %1725  ;;  %v1728_v51 = vpop.xlane.xlu0 %1727 }
 0x37f   : > { %6190 = vpow2.f32 %v1769_v14  ;;  %v1748_v40 = vsub.f32 %v7473_v37, %v1726_v27  ;;  %v1749_v18 = vsub.f32 %v7471_v29, %v1728_v51 }
 0x380   : > { %v7564_v8 = vpop.eup %6180  ;;  %6192 = vpow2.f32 %v1771_v56 }
 0x381   : > { %v1773_v60 = vmul.f32 1.442695, %v1748_v40  ;;  %v1775_v38 = vmul.f32 1.442695, %v1749_v18  ;;  %1791 = vadd.xlane.f32.xlu0 %v7560_v22  ;;  %1789 = vadd.xlane.f32.xlu1 %v7564_v8  ;;  %v7568_v19 = vpop.eup %6182 }
 0x382   : > { %v1730_v62 = vpop.xlane.xlu1 %1729  ;;  %v1732_v16 = vpop.xlane.xlu0 %1731 }
 0x383   : > { %6194 = vpow2.f32 %v1773_v60  ;;  %v1750_v1 = vsub.f32 %v7477_v11, %v1730_v62  ;;  %v1751_v37 = vsub.f32 %v7479_v3, %v1732_v16 }
 0x384   : > { %v7572_v42 = vpop.eup %6184  ;;  %6196 = vpow2.f32 %v1775_v38 }
 0x385   : > { %v1777_v29 = vmul.f32 1.442695, %v1750_v1  ;;  %v1779_v20 = vmul.f32 1.442695, %v1751_v37  ;;  %1793 = vadd.xlane.f32.xlu1 %v7568_v19  ;;  %1795 = vadd.xlane.f32.xlu0 %v7572_v42 }
 0x386   : > { %v1734_v58 = vpop.xlane.xlu1 %1733  ;;  %v1736_v36 = vpop.xlane.xlu0 %1735 }
 0x387   : > { %6198 = vpow2.f32 %v1777_v29  ;;  %v1752_v53 = vsub.f32 %v7485_v5, %v1734_v58  ;;  %v1753_v6 = vsub.f32 %v7483_v46, %v1736_v36 }
 0x388   : > { %v7578_v28 = vpop.eup %6186  ;;  %6200 = vpow2.f32 %v1779_v20 }
 0x389   : > { %v7580_v11 = vpop.eup %6188  ;;  %v1781_v3 = vmul.f32 1.442695, %v1752_v53  ;;  %v1783_v52 = vmul.f32 1.442695, %v1753_v6  ;;  %1797 = vadd.xlane.f32.xlu1 %v7578_v28 }
 0x38a   : > { %1799 = vadd.xlane.f32.xlu0 %v7580_v11  ;;  %v1738_v63 = vpop.xlane.xlu1 %1737  ;;  %v2102_v33 = vpop.xlane.xlu0 %2101 }
 0x38b   : > { %6202 = vpow2.f32 %v1781_v3  ;;  %v1754_v43 = vsub.f32 %v7492_v21, %v1738_v63  ;;  %v2133_v5 = vsub.f32 %v7490_v2, %v2102_v33 }
 0x38c   : > { %v7586_v25 = vpop.eup %6190  ;;  %6204 = vpow2.f32 %v1783_v52 }
 0x38d   : > { %v7588_v46 = vpop.eup %6192  ;;  %v1785_v10 = vmul.f32 1.442695, %v1754_v43  ;;  %v2149_v55 = vmul.f32 1.442695, %v2133_v5  ;;  %1801 = vadd.xlane.f32.xlu1 %v7586_v25 }
 0x38e   : > { %1803 = vadd.xlane.f32.xlu0 %v7588_v46  ;;  %v2104_v61 = vpop.xlane.xlu1 %2103  ;;  %v2106_v14 = vpop.xlane.xlu0 %2105 }
 0x38f   : > { %6206 = vpow2.f32 %v1785_v10  ;;  %v2134_v56 = vsub.f32 %v7501_v12, %v2104_v61  ;;  %v2135_v21 = vsub.f32 %v7498_v39, %v2106_v14 }
 0x390   : > { %v7594_v27 = vpop.eup %6194  ;;  %6208 = vpow2.f32 %v2149_v55 }
 0x391   : > { %v7596_v2 = vpop.eup %6196  ;;  %v2151_v51 = vmul.f32 1.442695, %v2134_v56  ;;  %v2153_v40 = vmul.f32 1.442695, %v2135_v21  ;;  %1805 = vadd.xlane.f32.xlu1 %v7594_v27 }
 0x392   : > { %1807 = vadd.xlane.f32.xlu0 %v7596_v2  ;;  %v2108_v18 = vpop.xlane.xlu1 %2107  ;;  %v2110_v60 = vpop.xlane.xlu0 %2109 }
 0x393   : > { %6210 = vpow2.f32 %v2151_v51  ;;  %v2136_v38 = vsub.f32 %v7507_v34, %v2108_v18  ;;  %v2137_v12 = vsub.f32 %v7510_v30, %v2110_v60 }
 0x394   : > { %v7602_v62 = vpop.eup %6198  ;;  %6212 = vpow2.f32 %v2153_v40 }
 0x395   : > { %v7604_v39 = vpop.eup %6200  ;;  %v2155_v16 = vmul.f32 1.442695, %v2136_v38  ;;  %v2157_v1 = vmul.f32 1.442695, %v2137_v12  ;;  %1809 = vadd.xlane.f32.xlu1 %v7602_v62 }
 0x396   : > { %1811 = vadd.xlane.f32.xlu0 %v7604_v39  ;;  %v2112_v37 = vpop.xlane.xlu1 %2111  ;;  %v2114_v29 = vpop.xlane.xlu0 %2113 }
 0x397   : > { %6214 = vpow2.f32 %v2155_v16  ;;  %v2138_v20 = vsub.f32 %v7517_v17, %v2112_v37  ;;  %v2139_v34 = vsub.f32 %v7515_v49, %v2114_v29 }
 0x398   : > { %v7610_v58 = vpop.eup %6202  ;;  %6216 = vpow2.f32 %v2157_v1 }
 0x399   : > { %v7612_v30 = vpop.eup %6204  ;;  %v2159_v36 = vmul.f32 1.442695, %v2138_v20  ;;  %v2161_v53 = vmul.f32 1.442695, %v2139_v34  ;;  %1813 = vadd.xlane.f32.xlu1 %v7610_v58 }
 0x39a   : > { %1815 = vadd.xlane.f32.xlu0 %v7612_v30  ;;  %v2116_v6 = vpop.xlane.xlu1 %2115  ;;  %v2118_v3 = vpop.xlane.xlu0 %2117 }
 0x39b   : > { %6218 = vpow2.f32 %v2159_v36  ;;  %v2140_v52 = vsub.f32 %v7521_v23, %v2116_v6  ;;  %v2141_v17 = vsub.f32 %v7523_v13, %v2118_v3 }
 0x39c   : > { %v7618_v63 = vpop.eup %6206  ;;  %6220 = vpow2.f32 %v2161_v53 }
 0x39d   : > { %v7620_v49 = vpop.eup %6208  ;;  %v2163_v33 = vmul.f32 1.442695, %v2140_v52  ;;  %v2165_v43 = vmul.f32 1.442695, %v2141_v17  ;;  %1817 = vadd.xlane.f32.xlu1 %v7618_v63 }
 0x39e   : > { %2181 = vadd.xlane.f32.xlu0 %v7620_v49  ;;  %v2120_v5 = vpop.xlane.xlu1 %2119  ;;  %v2122_v10 = vpop.xlane.xlu0 %2121 }
 0x39f   : > { %6222 = vpow2.f32 %v2163_v33  ;;  %v2142_v55 = vsub.f32 %v7529_v31, %v2120_v5  ;;  %v2143_v23 = vsub.f32 %v7527_v32, %v2122_v10 }
 0x3a0   : > { %v7626_v61 = vpop.eup %6210  ;;  %6224 = vpow2.f32 %v2165_v43 }
 0x3a1   : > { %v7628_v13 = vpop.eup %6212  ;;  %v2167_v14 = vmul.f32 1.442695, %v2142_v55  ;;  %v2169_v56 = vmul.f32 1.442695, %v2143_v23  ;;  %2183 = vadd.xlane.f32.xlu1 %v7626_v61 }
 0x3a2   : > { %2185 = vadd.xlane.f32.xlu0 %v7628_v13  ;;  %v2124_v21 = vpop.xlane.xlu1 %2123  ;;  %v2126_v51 = vpop.xlane.xlu0 %2125 }
 0x3a3   : > { %6226 = vpow2.f32 %v2167_v14  ;;  %v2144_v40 = vsub.f32 %v7533_v0, %v2124_v21  ;;  %v2145_v31 = vsub.f32 %v7535_v54, %v2126_v51 }
 0x3a4   : > { %v7634_v18 = vpop.eup %6214  ;;  %6228 = vpow2.f32 %v2169_v56 }
 0x3a5   : > { %v7636_v32 = vpop.eup %6216  ;;  %v2171_v60 = vmul.f32 1.442695, %v2144_v40  ;;  %v2173_v38 = vmul.f32 1.442695, %v2145_v31  ;;  %2187 = vadd.xlane.f32.xlu1 %v7634_v18 }
 0x3a6   : > { %2189 = vadd.xlane.f32.xlu0 %v7636_v32  ;;  %v2128_v12 = vpop.xlane.xlu1 %2127  ;;  %v2130_v16 = vpop.xlane.xlu0 %2129 }
 0x3a7   : > { %6230 = vpow2.f32 %v2171_v60  ;;  %v2146_v1 = vsub.f32 %v7541_v4, %v2128_v12  ;;  %v2147_v0 = vsub.f32 %v7539_v7, %v2130_v16 }
 0x3a8   : > { %v7642_v37 = vpop.eup %6218  ;;  %6232 = vpow2.f32 %v2173_v38 }
 0x3a9   : > { %v7644_v54 = vpop.eup %6220  ;;  %v2175_v29 = vmul.f32 1.442695, %v2146_v1  ;;  %v2177_v20 = vmul.f32 1.442695, %v2147_v0  ;;  %2191 = vadd.xlane.f32.xlu1 %v7642_v37 }
 0x3aa   : > { %2193 = vadd.xlane.f32.xlu0 %v7644_v54  ;;  %v2132_v34 = vpop.xlane.xlu1 %2131 }
 0x3ab   : > { %6234 = vpow2.f32 %v2175_v29  ;;  %v2148_v36 = vsub.f32 %v7545_v9, %v2132_v34 }
 0x3ac   : > { %v7649_v53 = vpop.eup %6222  ;;  %6236 = vpow2.f32 %v2177_v20 }
 0x3ad   : > { %v7651_v4 = vpop.eup %6224  ;;  %v2179_v7 = vmul.f32 1.442695, %v2148_v36  ;;  %2195 = vadd.xlane.f32.xlu1 %v7649_v53 }
 0x3ae   : > { %2197 = vadd.xlane.f32.xlu0 %v7651_v4 }
 0x3af   : > { %6238 = vpow2.f32 %v2179_v7 }
 0x3b0   : > { %v7655_v6 = vpop.eup %6226 }
 0x3b1   : > { %v7657_v3 = vpop.eup %6228  ;;  %2199 = vadd.xlane.f32.xlu1 %v7655_v6 }
 0x3b2   : > { %2201 = vadd.xlane.f32.xlu0 %v7657_v3 }
 0x3b4   : > { %v7661_v9 = vpop.eup %6230 }
 0x3b5   : > { %v7663_v52 = vpop.eup %6232  ;;  %2203 = vadd.xlane.f32.xlu1 %v7661_v9 }
 0x3b6   : > { %2205 = vadd.xlane.f32.xlu0 %v7663_v52 }
 0x3b8   : > { %v7667_v17 = vpop.eup %6234 }
 0x3b9   : > { %v7669_v33 = vpop.eup %6236  ;;  %2207 = vadd.xlane.f32.xlu1 %v7667_v17 }
 0x3ba   : > { %2209 = vadd.xlane.f32.xlu0 %v7669_v33 }
 0x3bc   : > { %v7673_v43 = vpop.eup %6238 }
 0x3bd   : > { %2211 = vadd.xlane.f32.xlu1 %v7673_v43 }
 0x406   : > { %v1788_v5 = vpop.xlane.xlu0 %1787 }
 0x407   : > { %6240 = vrcp.f32 %v1788_v5 }
 0x40a   : > { %v1790_v10 = vpop.xlane.xlu1 %1789  ;;  %v1792_v55 = vpop.xlane.xlu0 %1791 }
 0x40b   : > { %6242 = vrcp.f32 %v1790_v10 }
 0x40c   : > { %6244 = vrcp.f32 %v1792_v55 }
 0x40e   : > { %v1794_v23 = vpop.xlane.xlu1 %1793  ;;  %v1796_v14 = vpop.xlane.xlu0 %1795 }
 0x40f   : > { %6246 = vrcp.f32 %v1794_v23 }
 0x410   : > { %6248 = vrcp.f32 %v1796_v14 }
 0x412   : > { %v1798_v56 = vpop.xlane.xlu1 %1797 }
 0x413   : > { %6250 = vrcp.f32 %v1798_v56  ;;  %v1800_v21 = vpop.xlane.xlu0 %1799 }
 0x414   : > { %6252 = vrcp.f32 %v1800_v21  ;;  %v6241_v51 = vpop.eup %6240 }
 0x415   : > { %v1835_v38 = vmul.f32 %v6241_v51, %v7557_v24 }
 0x416   : > { %v1802_v40 = vpop.xlane.xlu1 %1801 }
 0x417   : > { %6254 = vrcp.f32 %v1802_v40  ;;  %v1804_v31 = vpop.xlane.xlu0 %1803 }
 0x418   : > { %v6243_v60 = vpop.eup %6242  ;;  %6256 = vrcp.f32 %v1804_v31 }
 0x419   : > { %v1836_v12 = vmul.f32 %v6243_v60, %v7564_v8  ;;  %v6245_v16 = vpop.eup %6244 }
 0x41a   : > { %v1806_v1 = vpop.xlane.xlu1 %1805  ;;  %v1837_v34 = vmul.f32 %v6245_v16, %v7560_v22 }
 0x41b   : > { %6258 = vrcp.f32 %v1806_v1  ;;  %v1808_v0 = vpop.xlane.xlu0 %1807  ;;  %v1851_v29 = vpack.c.bf16 %v1836_v12, %v1835_v38 }
 0x41c   : > { %v6247_v20 = vpop.eup %6246  ;;  %6260 = vrcp.f32 %v1808_v0 }
 0x41d   : > { %5596 = vmatprep.mubr.bf16.mxu1 %v1851_v29  ;;  %v1838_v36 = vmul.f32 %v6247_v20, %v7568_v19  ;;  %v6249_v7 = vpop.eup %6248 }
 0x41e   : > { %v1810_v5 = vpop.xlane.xlu1 %1809  ;;  %v1839_v8 = vmul.f32 %v6249_v7, %v7572_v42 }
 0x41f   : > { %6262 = vrcp.f32 %v1810_v5  ;;  %v1812_v10 = vpop.xlane.xlu0 %1811  ;;  %v1852_v55 = vpack.c.bf16 %v1838_v36, %v1837_v34 }
 0x420   : > { %v6251_v24 = vpop.eup %6250  ;;  %6264 = vrcp.f32 %v1812_v10 }
 0x421   : > { %5597 = vmatmul.mubr.bf16.vlgmr.msra.gmra.mxu1 %v1852_v55  ;;  %v1840_v23 = vmul.f32 %v6251_v24, %v7578_v28  ;;  %v6253_v14 = vpop.eup %6252 }
 0x422   : > { %5645 = vmatpush3.bf16.msra.mxu1 %v7418_v47  ;;  %v1814_v56 = vpop.xlane.xlu1 %1813  ;;  %v1841_v51 = vmul.f32 %v6253_v14, %v7580_v11 }
 0x423   : > { %6266 = vrcp.f32 %v1814_v56  ;;  %5646 = vmatprep.subr.bf16.mxu1 %v7387_v26  ;;  %v1816_v22 = vpop.xlane.xlu0 %1815  ;;  %v1853_v19 = vpack.c.bf16 %v1840_v23, %v1839_v8 }
 0x424   : > { %v6255_v21 = vpop.eup %6254  ;;  %6268 = vrcp.f32 %v1816_v22 }
 0x425   : > { %5600 = vmatprep.mubr.bf16.mxu1 %v1853_v19  ;;  %v1842_v40 = vmul.f32 %v6255_v21, %v7586_v25  ;;  %v6257_v31 = vpop.eup %6256  ;;  %v5938_v19 = vld [vmem:[#allocation10 + $0x74] ss:$8 sps:$4 sm:$0xff]  }
 0x426   : > { %5647 = vmatpush3.bf16.msra.mxu1 %v7387_v26  ;;  %v1818_v42 = vpop.xlane.xlu1 %1817  ;;  %v1843_v38 = vmul.f32 %v6257_v31, %v7588_v46  ;;  %v5936_v31 = vld [vmem:[#allocation10 + $0x70] ss:$8 sps:$4 sm:$0xff]  }
 0x427   : > { %6270 = vrcp.f32 %v1818_v42  ;;  %5648 = vmatprep.subr.bf16.mxu1 %v7371_v15  ;;  %v2182_v47 = vpop.xlane.xlu0 %2181  ;;  %v1854_v28 = vpack.c.bf16 %v1842_v40, %v1841_v51 }
 0x428   : > { %v6259_v60 = vpop.eup %6258  ;;  %6272 = vrcp.f32 %v2182_v47  ;;  %v5941_v47 = vld [vmem:[#allocation10 + $0x64] ss:$8 sps:$4 sm:$0xff]  }
 0x429   : > { %5601 = vmatmul.mubr.bf16.gmra.mxu1 %v1854_v28  ;;  %v1844_v12 = vmul.f32 %v6259_v60, %v7594_v27  ;;  %v6261_v16 = vpop.eup %6260 }
 0x42a   : > { %5649 = vmatpush3.bf16.msra.mxu1 %v7371_v15  ;;  %v2184_v11 = vpop.xlane.xlu1 %2183  ;;  %v1845_v0 = vmul.f32 %v6261_v16, %v7596_v2 }
 0x42b   : > { %6274 = vrcp.f32 %v2184_v11  ;;  %5650 = vmatprep.subr.bf16.mxu1 %v7355_v57  ;;  %v2186_v26 = vpop.xlane.xlu0 %2185  ;;  %v1855_v25 = vpack.c.bf16 %v1844_v12, %v1843_v38  ;;  %v5944_v11 = vld [vmem:[#allocation10 + $0x54] ss:$8 sps:$4 sm:$0xff]  }
 0x42c   : > { %v6263_v1 = vpop.eup %6262  ;;  %6276 = vrcp.f32 %v2186_v26 }
 0x42d   : > { %5604 = vmatprep.mubr.bf16.mxu1 %v1855_v25  ;;  %v1846_v29 = vmul.f32 %v6263_v1, %v7602_v62  ;;  %v6265_v20 = vpop.eup %6264 }
 0x42e   : > { %5651 = vmatpush3.bf16.msra.mxu1 %v7355_v57  ;;  %v2188_v46 = vpop.xlane.xlu1 %2187  ;;  %v1847_v36 = vmul.f32 %v6265_v20, %v7604_v39  ;;  %v5947_v20 = vld [vmem:[#allocation10 + $0x44] ss:$8 sps:$4 sm:$0xff]  }
 0x42f   : > { %6278 = vrcp.f32 %v2188_v46  ;;  %5652 = vmatprep.subr.bf16.mxu1 %v7342_v35  ;;  %v2190_v15 = vpop.xlane.xlu0 %2189  ;;  %v1856_v27 = vpack.c.bf16 %v1846_v29, %v1845_v0 }
 0x430   : > { %v6267_v34 = vpop.eup %6266  ;;  %6280 = vrcp.f32 %v2190_v15 }
 0x431   : > { %5605 = vmatmul.mubr.bf16.gmra.mxu1 %v1856_v27  ;;  %v1848_v7 = vmul.f32 %v6267_v34, %v7610_v58  ;;  %v6269_v5 = vpop.eup %6268 }
 0x432   : > { %5653 = vmatpush3.bf16.msra.mxu1 %v7342_v35  ;;  %v2192_v2 = vpop.xlane.xlu1 %2191  ;;  %v1849_v55 = vmul.f32 %v6269_v5, %v7612_v30 }
 0x433   : > { %6282 = vrcp.f32 %v2192_v2  ;;  %5654 = vmatprep.subr.bf16.mxu1 %v7337_v48  ;;  %v2194_v57 = vpop.xlane.xlu0 %2193  ;;  %v1857_v62 = vpack.c.bf16 %v1848_v7, %v1847_v36  ;;  %v5945_v36 = vld [vmem:[#allocation10 + $0x40] ss:$8 sps:$4 sm:$0xff]  }
 0x434   : > { %v6271_v10 = vpop.eup %6270  ;;  %6284 = vrcp.f32 %v2194_v57 }
 0x435   : > { %5608 = vmatprep.mubr.bf16.mxu1 %v1857_v62  ;;  %v1850_v24 = vmul.f32 %v6271_v10, %v7618_v63  ;;  %v6273_v8 = vpop.eup %6272  ;;  %v5948_v62 = vld [vmem:[#allocation10 + $0x30] ss:$8 sps:$4 sm:$0xff]  }
 0x436   : > { %5655 = vmatpush3.bf16.msra.mxu1 %v7337_v48  ;;  %v2196_v39 = vpop.xlane.xlu1 %2195  ;;  %v2229_v14 = vmul.f32 %v6273_v8, %v7620_v49 }
 0x437   : > { %6286 = vrcp.f32 %v2196_v39  ;;  %5656 = vmatprep.subr.bf16.mxu1 %v7323_v50  ;;  %v2198_v35 = vpop.xlane.xlu0 %2197  ;;  %v1858_v58 = vpack.c.bf16 %v1850_v24, %v1849_v55  ;;  %v5951_v39 = vld [vmem:[#allocation10 + $0x20] ss:$8 sps:$4 sm:$0xff]  }
 0x438   : > { %v6275_v23 = vpop.eup %6274  ;;  %6288 = vrcp.f32 %v2198_v35 }
 0x439   : > { %5609 = vmatmul.mubr.bf16.gmra.mxu1 %v1858_v58  ;;  %v2230_v56 = vmul.f32 %v6275_v23, %v7626_v61  ;;  %v6277_v22 = vpop.eup %6276 }
 0x43a   : > { %5657 = vmatpush3.bf16.msra.mxu1 %v7323_v50  ;;  %v2200_v30 = vpop.xlane.xlu1 %2199  ;;  %v2231_v51 = vmul.f32 %v6277_v22, %v7628_v13  ;;  %v5960_v22 = vld [vmem:[#allocation10 + $0xf0] ss:$8 sps:$4 sm:$0xff]  }
 0x43b   : > { %6290 = vrcp.f32 %v2200_v30  ;;  %5658 = vmatprep.subr.bf16.mxu1 %v7307_v45  ;;  %v2202_v48 = vpop.xlane.xlu0 %2201  ;;  %v2245_v63 = vpack.c.bf16 %v2230_v56, %v2229_v14  ;;  %v5954_v14 = vld [vmem:[#allocation10 + $0x10] ss:$8 sps:$4 sm:$0xff]   ;;  %v5956_v56 = vld [vmem:[#allocation10 + $0x14] ss:$8 sps:$4 sm:$0xff]  }
 0x43c   : > { %v6279_v21 = vpop.eup %6278  ;;  %6292 = vrcp.f32 %v2202_v48  ;;  %v5962_v30 = vld [vmem:[#allocation10 + $0xf4] ss:$8 sps:$4 sm:$0xff]   ;;  %v6675_v48 = vmov 0  }
 0x43d   : > { %5660 = vmatprep.mubr.bf16.mxu1 %v2245_v63  ;;  %v2232_v40 = vmul.f32 %v6279_v21, %v7634_v18  ;;  %v6281_v49 = vpop.eup %6280  ;;  %v5939_v18 = vld [vmem:[#allocation10 + $0x60] ss:$8 sps:$4 sm:$0xff]   ;;  %2486 = vmatprep.mubr.bf16.mxu0 %v6675_v48  ;;  %v5966_v63 = vld [vmem:[#allocation10 + $0xd0] ss:$8 sps:$4 sm:$0xff]   ;;  %v5971_v21 = vld [vmem:[#allocation10 + $0xc4] ss:$8 sps:$4 sm:$0xff]  }
 0x43e   : > { %5659 = vmatpush3.bf16.msra.mxu1 %v7307_v45  ;;  %v2204_v61 = vpop.xlane.xlu1 %2203  ;;  %v2233_v60 = vmul.f32 %v6281_v49, %v7636_v32  ;;  %2454 = vmatprep.subr.bf16.mxu0 %v5962_v30  ;;  %v5974_v49 = vld [vmem:[#allocation10 + $0xb4] ss:$8 sps:$4 sm:$0xff]  }
 0x43f   : > { %6294 = vrcp.f32 %v2204_v61  ;;  %v2206_v50 = vpop.xlane.xlu0 %2205  ;;  %v2246_v42 = vpack.c.bf16 %v2232_v40, %v2231_v51  ;;  %2647 = vmatprep.subr.bf16.mxu1 %v5938_v19  ;;  %2455 = vmatpush1.bf16.msra.mxu0 %v5960_v22  ;;  %v5968_v19 = vld [vmem:[#allocation10 + $0xd4] ss:$8 sps:$4 sm:$0xff]   ;;  %v5969_v51 = vld [vmem:[#allocation10 + $0xc0] ss:$8 sps:$4 sm:$0xff]   ;;  %v5972_v40 = vld [vmem:[#allocation10 + $0xb0] ss:$8 sps:$4 sm:$0xff]  }
 0x440   : > { %v6283_v28 = vpop.eup %6282  ;;  %6296 = vrcp.f32 %v2206_v50  ;;  %v5977_v61 = vld [vmem:[#allocation10 + $0xa4] ss:$8 sps:$4 sm:$0xff]   ;;  %v5978_v50 = vld [vmem:[#allocation10 + $0x90] ss:$8 sps:$4 sm:$0xff]  }
 0x441   : > { %5661 = vmatmul.mubr.bf16.vlgmr.msra.gmra.mxu1 %v2246_v42  ;;  %v2234_v38 = vmul.f32 %v6283_v28, %v7642_v37  ;;  %v6285_v13 = vpop.eup %6284  ;;  %v5942_v37 = vld [vmem:[#allocation10 + $0x50] ss:$8 sps:$4 sm:$0xff]   ;;  %v5980_v42 = vld [vmem:[#allocation10 + $0x94] ss:$8 sps:$4 sm:$0xff]   ;;  %v5981_v28 = vld [vmem:[#allocation10 + $0x80] ss:$8 sps:$4 sm:$0xff]  }
 0x442   : > { %v2208_v12 = vpop.xlane.xlu1 %2207  ;;  %2648 = vmatpush1.bf16.msra.mxu1 %v5936_v31  ;;  %v2235_v25 = vmul.f32 %v6285_v13, %v7644_v54  ;;  %v5975_v31 = vld [vmem:[#allocation10 + $0xa0] ss:$8 sps:$4 sm:$0xff]  }
 0x443   : > { %6298 = vrcp.f32 %v2208_v12  ;;  %v2210_v45 = vpop.xlane.xlu0 %2209  ;;  %v2247_v16 = vpack.c.bf16 %v2234_v38, %v2233_v60  ;;  %2649 = vmatprep.subr.bf16.mxu1 %v5941_v47  ;;  %v5983_v47 = vld [vmem:[#allocation10 + $0x84] ss:$8 sps:$4 sm:$0xff]  }
 0x444   : > { %v6287_v26 = vpop.eup %6286  ;;  %6300 = vrcp.f32 %v2210_v45 }
 0x445   : > { %5664 = vmatprep.mubr.bf16.mxu1 %v2247_v16  ;;  %v2236_v1 = vmul.f32 %v6287_v26, %v7649_v53  ;;  %v6289_v0 = vpop.eup %6288  ;;  %v5950_v53 = vld [vmem:[#allocation10 + $0x34] ss:$8 sps:$4 sm:$0xff]  }
 0x446   : > { %v2212_v32 = vpop.xlane.xlu1 %2211  ;;  %2650 = vmatpush1.bf16.msra.mxu1 %v5939_v18  ;;  %v2237_v15 = vmul.f32 %v6289_v0, %v7651_v4  ;;  %v5953_v4 = vld [vmem:[#allocation10 + $0x24] ss:$8 sps:$4 sm:$0xff]  }
 0x447   : > { %6302 = vrcp.f32 %v2212_v32  ;;  %v2248_v29 = vpack.c.bf16 %v2236_v1, %v2235_v25  ;;  %2651 = vmatprep.subr.bf16.mxu1 %v5944_v11 }
 0x448   : > { %v6291_v46 = vpop.eup %6290 }
 0x449   : > { %5665 = vmatmul.mubr.bf16.gmra.mxu1 %v2248_v29  ;;  %v2238_v27 = vmul.f32 %v6291_v46, %v7655_v6  ;;  %v6293_v34 = vpop.eup %6292 }
 0x44a   : > { %2652 = vmatpush1.bf16.msra.mxu1 %v5942_v37  ;;  %v2239_v5 = vmul.f32 %v6293_v34, %v7657_v3 }
 0x44b   : > { %v2249_v54 = vpack.c.bf16 %v2238_v27, %v2237_v15  ;;  %2653 = vmatprep.subr.bf16.mxu1 %v5947_v20 }
 0x44c   : > { %v6295_v7 = vpop.eup %6294 }
 0x44d   : > { %5668 = vmatprep.mubr.bf16.mxu1 %v2249_v54  ;;  %v2240_v2 = vmul.f32 %v6295_v7, %v7661_v9  ;;  %v6297_v57 = vpop.eup %6296 }
 0x44e   : > { %2654 = vmatpush1.bf16.msra.mxu1 %v5945_v36  ;;  %v2241_v6 = vmul.f32 %v6297_v57, %v7663_v52  ;;  %v5959_v52 = vld [vmem:[#allocation10 + $0x4] ss:$8 sps:$4 sm:$0xff]  }
 0x44f   : > { %v2250_v10 = vpack.c.bf16 %v2240_v2, %v2239_v5  ;;  %2655 = vmatprep.subr.bf16.mxu1 %v5950_v53 }
 0x450   : > { %v6299_v55 = vpop.eup %6298 }
 0x451   : > { %5669 = vmatmul.mubr.bf16.gmra.mxu1 %v2250_v10  ;;  %v2242_v24 = vmul.f32 %v6299_v55, %v7667_v17  ;;  %v6301_v8 = vpop.eup %6300  ;;  %v5957_v17 = vld [vmem:[#allocation10] ss:$8 sps:$4 sm:$0xff]  }
 0x452   : > { %2656 = vmatpush1.bf16.msra.mxu1 %v5948_v62  ;;  %v2243_v9 = vmul.f32 %v6301_v8, %v7669_v33  ;;  %v5965_v33 = vld [vmem:[#allocation10 + $0xe4] ss:$8 sps:$4 sm:$0xff]  }
 0x453   : > { %v2251_v35 = vpack.c.bf16 %v2242_v24, %v2241_v6  ;;  %2657 = vmatprep.subr.bf16.mxu1 %v5953_v4  ;;  %2456 = vmatprep.subr.bf16.mxu0 %v5965_v33 }
 0x454   : > { %v6303_v3 = vpop.eup %6302 }
 0x455   : > { %5672 = vmatprep.mubr.bf16.mxu1 %v2251_v35  ;;  %v2244_v58 = vmul.f32 %v6303_v3, %v7673_v43  ;;  %v5963_v43 = vld [vmem:[#allocation10 + $0xe0] ss:$8 sps:$4 sm:$0xff]  }
 0x456   : > { %2658 = vmatpush1.bf16.msra.mxu1 %v5951_v39  ;;  %2457 = vmatpush1.bf16.msra.mxu0 %v5963_v43 }
 0x457   : > { %v2252_v23 = vpack.c.bf16 %v2244_v58, %v2243_v9  ;;  %2659 = vmatprep.subr.bf16.mxu1 %v5956_v56  ;;  %2458 = vmatprep.subr.bf16.mxu0 %v5968_v19  ;;  %v5986_v19 = vld [vmem:[#allocation11 + $0xe4] ss:$16 sps:$4 sm:$0xff]  }
 0x459   : > { %5673 = vmatmul.mubr.bf16.gmra.mxu1 %v2252_v23 }
 0x45a   : > { %2660 = vmatpush1.bf16.msra.mxu1 %v5954_v14  ;;  %2679 = vmatprep.mubr.bf16.mxu1 %v6675_v48 }
 0x45b   : > { %2661 = vmatprep.subr.bf16.mxu1 %v5959_v52  ;;  %2459 = vmatpush1.bf16.msra.mxu0 %v5966_v63  ;;  %v5984_v63 = vld [vmem:[#allocation11 + $0xe0] ss:$16 sps:$4 sm:$0xff]  }
 0x45c   : > { %2460 = vmatprep.subr.bf16.mxu0 %v5971_v21  ;;  %v5987_v21 = vld [vmem:[#allocation11 + $0xe8] ss:$16 sps:$4 sm:$0xff]  }
 0x45e   : > { %2662 = vmatpush1.bf16.msra.mxu1 %v5957_v17 }
 0x45f   : > { %2461 = vmatpush1.bf16.msra.mxu0 %v5969_v51  ;;  %v5989_v51 = vld [vmem:[#allocation11 + $0xec] ss:$16 sps:$4 sm:$0xff]  }
 0x460   : > { %2462 = vmatprep.subr.bf16.mxu0 %v5974_v49  ;;  %v5995_v49 = vld [vmem:[#allocation11 + $0xcc] ss:$16 sps:$4 sm:$0xff]   ;;  %3764 = vmatprep.subr.bf16.mxu1 %v5989_v51 }
 0x463   : > { %2463 = vmatpush1.bf16.msra.mxu0 %v5972_v40  ;;  %v5992_v40 = vld [vmem:[#allocation11 + $0xc4] ss:$16 sps:$4 sm:$0xff]  }
 0x464   : > { %2464 = vmatprep.subr.bf16.mxu0 %v5977_v61  ;;  %v5990_v61 = vld [vmem:[#allocation11 + $0xc0] ss:$16 sps:$4 sm:$0xff]  }
 0x467   : > { %2465 = vmatpush1.bf16.msra.mxu0 %v5975_v31  ;;  %v5993_v31 = vld [vmem:[#allocation11 + $0xc8] ss:$16 sps:$4 sm:$0xff]  }
 0x468   : > { %2466 = vmatprep.subr.bf16.mxu0 %v5980_v42  ;;  %v6001_v42 = vld [vmem:[#allocation11 + $0xac] ss:$16 sps:$4 sm:$0xff]  }
 0x46b   : > { %2467 = vmatpush1.bf16.msra.mxu0 %v5978_v50  ;;  %v5998_v50 = vld [vmem:[#allocation11 + $0xa4] ss:$16 sps:$4 sm:$0xff]  }
 0x46c   : > { %2468 = vmatprep.subr.bf16.mxu0 %v5983_v47  ;;  %v5999_v47 = vld [vmem:[#allocation11 + $0xa8] ss:$16 sps:$4 sm:$0xff]  }
 0x46f   : > { %2469 = vmatpush1.bf16.msra.mxu0 %v5981_v28  ;;  %v6004_v28 = vld [vmem:[#allocation11 + $0x84] ss:$16 sps:$4 sm:$0xff]  }
 0x470   : > { %3651 = vmatprep.subr.bf16.mxu0 %v5986_v19 }
 0x4e1   : > { %v5598_v60 = vpop.f32.mrf.mxu1 }
 0x4e3   : > { %v1893_v38 = vpop.f32.mrf.mxu1 }
 0x4e5   : > { %v5599_v13 = vpop.f32.mrf.mxu1 }
 0x4e6   : > { %v1957_v25 = vpack.c.bf16 %v5599_v13, %v5598_v60  ;;  %v6007_v60 = vld [vmem:[#allocation11 + $0x8c] ss:$16 sps:$4 sm:$0xff]   ;;  %v6005_v13 = vld [vmem:[#allocation11 + $0x88] ss:$16 sps:$4 sm:$0xff]  }
 0x4e7   : > { %v1896_v12 = vpop.f32.mrf.mxu1 }
 0x4e8   : > { %v1956_v18 = vpack.c.bf16 %v1896_v12, %v1893_v38  ;;  %v6002_v38 = vld [vmem:[#allocation11 + $0x80] ss:$16 sps:$4 sm:$0xff]   ;;  %v6010_v12 = vld [vmem:[#allocation11 + $0x64] ss:$16 sps:$4 sm:$0xff]  }
 0x4e9   : > { %v5602_v45 = vpop.f32.mrf.mxu1 }
 0x4ea   : > { %2680 = vmatmul.mubr.bf16.vlgmr.msra.gmra.mxu1 %v1956_v18  ;;  %v6013_v18 = vld [vmem:[#allocation11 + $0x6c] ss:$16 sps:$4 sm:$0xff]  }
 0x4eb   : > { %v1909_v16 = vpop.f32.mrf.mxu1  ;;  %2689 = vmatprep.mubr.bf16.mxu1 %v6675_v48  ;;  %3765 = vmatpush1.bf16.msra.mxu1 %v5987_v21 }
 0x4ec   : > { %3766 = vmatprep.subr.bf16.mxu1 %v5995_v49 }
 0x4ed   : > { %v5603_v11 = vpop.f32.mrf.mxu1 }
 0x4ee   : > { %v1959_v34 = vpack.c.bf16 %v5603_v11, %v5602_v45  ;;  %v6008_v45 = vld [vmem:[#allocation11 + $0x60] ss:$16 sps:$4 sm:$0xff]   ;;  %v6016_v11 = vld [vmem:[#allocation11 + $0x44] ss:$16 sps:$4 sm:$0xff]  }
 0x4ef   : > { %v1912_v26 = vpop.f32.mrf.mxu1  ;;  %3767 = vmatpush1.bf16.msra.mxu1 %v5993_v31  ;;  %v6370_v31 = vld [vmem:[%s6943_s3 + $0x10] sm:$0xff] }
 0x4f0   : > { %v1958_v29 = vpack.c.bf16 %v1912_v26, %v1909_v16  ;;  %3768 = vmatprep.subr.bf16.mxu1 %v6001_v42  ;;  %v6011_v16 = vld [vmem:[#allocation11 + $0x68] ss:$16 sps:$4 sm:$0xff]   ;;  %v6019_v26 = vld [vmem:[#allocation11 + $0x4c] ss:$16 sps:$4 sm:$0xff]  }
 0x4f1   : > { %v5606_v1 = vpop.f32.mrf.mxu1 }
 0x4f2   : > { %2690 = vmatmul.mubr.bf16.gmra.mxu1 %v1957_v25  ;;  %v6014_v25 = vld [vmem:[#allocation11 + $0x40] ss:$16 sps:$4 sm:$0xff]  }
 0x4f3   : > { %v1925_v0 = vpop.f32.mrf.mxu1  ;;  %2699 = vmatprep.mubr.bf16.mxu1 %v6675_v48  ;;  %3769 = vmatpush1.bf16.msra.mxu1 %v5999_v47 }
 0x4f4   : > { %3770 = vmatprep.subr.bf16.mxu1 %v6007_v60 }
 0x4f5   : > { %v5607_v32 = vpop.f32.mrf.mxu1 }
 0x4f6   : > { %v1961_v10 = vpack.c.bf16 %v5607_v32, %v5606_v1  ;;  %v6017_v1 = vld [vmem:[#allocation11 + $0x48] ss:$16 sps:$4 sm:$0xff]  }
 0x4f7   : > { %v1928_v37 = vpop.f32.mrf.mxu1  ;;  %3771 = vmatpush1.bf16.msra.mxu1 %v6005_v13 }
 0x4f8   : > { %v1960_v5 = vpack.c.bf16 %v1928_v37, %v1925_v0  ;;  %3772 = vmatprep.subr.bf16.mxu1 %v6013_v18  ;;  %v6022_v0 = vld [vmem:[#allocation11 + $0x24] ss:$16 sps:$4 sm:$0xff]   ;;  %v6025_v37 = vld [vmem:[#allocation11 + $0x2c] ss:$16 sps:$4 sm:$0xff]  }
 0x4f9   : > { %v5610_v20 = vpop.f32.mrf.mxu1 }
 0x4fa   : > { %2700 = vmatmul.mubr.bf16.gmra.mxu1 %v1958_v29 }
 0x4fb   : > { %v1941_v46 = vpop.f32.mrf.mxu1  ;;  %2709 = vmatprep.mubr.bf16.mxu1 %v6675_v48  ;;  %3773 = vmatpush1.bf16.msra.mxu1 %v6011_v16 }
 0x4fc   : > { %3774 = vmatprep.subr.bf16.mxu1 %v6019_v26 }
 0x4fd   : > { %v5611_v15 = vpop.f32.mrf.mxu1 }
 0x4fe   : > { %v1963_v3 = vpack.c.bf16 %v5611_v15, %v5610_v20  ;;  %v6020_v20 = vld [vmem:[#allocation11 + $0x20] ss:$16 sps:$4 sm:$0xff]  }
 0x4ff   : > { %v1944_v27 = vpop.f32.mrf.mxu1  ;;  %3775 = vmatpush1.bf16.msra.mxu1 %v6017_v1  ;;  %v6372_v1 = vld [vmem:[%s6943_s3 + $0x20] sm:$0xff] }
 0x500   : > { %v1962_v24 = vpack.c.bf16 %v1944_v27, %v1941_v46  ;;  %v6023_v46 = vld [vmem:[#allocation11 + $0x28] ss:$16 sps:$4 sm:$0xff]   ;;  %3776 = vmatprep.subr.bf16.mxu1 %v6025_v37 }
 0x501   : > { %v5662_v36 = vpop.f32.mrf.mxu1 }
 0x502   : > { %2710 = vmatmul.mubr.bf16.gmra.mxu1 %v1959_v34 }
 0x503   : > { %v2287_v54 = vpop.f32.mrf.mxu1  ;;  %2719 = vmatprep.mubr.bf16.mxu1 %v6675_v48  ;;  %3777 = vmatpush1.bf16.msra.mxu1 %v6023_v46 }
 0x505   : > { %v5663_v53 = vpop.f32.mrf.mxu1 }
 0x506   : > { %v2351_v4 = vpack.c.bf16 %v5663_v53, %v5662_v36 }
 0x507   : > { %v2290_v7 = vpop.f32.mrf.mxu1 }
 0x508   : > { %v2350_v2 = vpack.c.bf16 %v2290_v7, %v2287_v54 }
 0x509   : > { %v5666_v57 = vpop.f32.mrf.mxu1 }
 0x50a   : > { %2487 = vmatmul.mubr.bf16.vlgmr.msra.gmra.mxu0 %v2350_v2  ;;  %2720 = vmatmul.mubr.bf16.gmra.mxu1 %v1960_v5 }
 0x50b   : > { %2496 = vmatprep.mubr.bf16.mxu0 %v6675_v48  ;;  %2729 = vmatprep.mubr.bf16.mxu1 %v6675_v48  ;;  %v2303_v62 = vpop.f32.mrf.mxu1 }
 0x50c   : > { %3652 = vmatpush1.bf16.msra.mxu0 %v5984_v63 }
 0x50d   : > { %v5667_v55 = vpop.f32.mrf.mxu1  ;;  %3653 = vmatprep.subr.bf16.mxu0 %v5992_v40 }
 0x50e   : > { %v2353_v9 = vpack.c.bf16 %v5667_v55, %v5666_v57  ;;  %v2760_v55 = vld [vmem:[%s8944_s5] sm:$0x3] }
 0x50f   : > { %v2306_v6 = vpop.f32.mrf.mxu1 }
 0x510   : > { %v2352_v8 = vpack.c.bf16 %v2306_v6, %v2303_v62  ;;  %3654 = vmatpush1.bf16.msra.mxu0 %v5990_v61 }
 0x511   : > { %v5670_v39 = vpop.f32.mrf.mxu1  ;;  %3655 = vmatprep.subr.bf16.mxu0 %v5998_v50 }
 0x512   : > { %2497 = vmatmul.mubr.bf16.gmra.mxu0 %v2351_v4  ;;  %2730 = vmatmul.mubr.bf16.gmra.mxu1 %v1961_v10 }
 0x513   : > { %2506 = vmatprep.mubr.bf16.mxu0 %v6675_v48  ;;  %2739 = vmatprep.mubr.bf16.mxu1 %v6675_v48  ;;  %v2319_v35 = vpop.f32.mrf.mxu1 }
 0x515   : > { %v5671_v58 = vpop.f32.mrf.mxu1 }
 0x516   : > { %v2355_v17 = vpack.c.bf16 %v5671_v58, %v5670_v39 }
 0x517   : > { %v2322_v23 = vpop.f32.mrf.mxu1 }
 0x518   : > { %v2354_v14 = vpack.c.bf16 %v2322_v23, %v2319_v35  ;;  %v7760_v35 = vrot.slane %v2760_v55, %v7106_v44 }
 0x519   : > { %v5674_v56 = vpop.f32.mrf.mxu1 }
 0x51a   : > { %2507 = vmatmul.mubr.bf16.gmra.mxu0 %v2352_v8  ;;  %2740 = vmatmul.mubr.bf16.gmra.mxu1 %v1962_v24  ;;  %v7757_v24 = vrot.slane %v2760_v55, %v7099_v41 }
 0x51b   : > { %2516 = vmatprep.mubr.bf16.mxu0 %v6675_v48  ;;  %2749 = vmatprep.mubr.bf16.mxu1 %v6675_v48  ;;  %v2335_v52 = vpop.f32.mrf.mxu1 }
 0x51d   : > { %v5675_v22 = vpop.f32.mrf.mxu1 }
 0x51e   : > { %v2357_v43 = vpack.c.bf16 %v5675_v22, %v5674_v56 }
 0x51f   : > { %v2338_v30 = vpop.f32.mrf.mxu1 }
 0x520   : > { %v2356_v33 = vpack.c.bf16 %v2338_v30, %v2335_v52  ;;  %v6368_v30 = vld [vmem:[%s6943_s3] sm:$0xff] }
 0x522   : > { %2517 = vmatmul.mubr.bf16.gmra.mxu0 %v2353_v9  ;;  %2750 = vmatmul.mubr.bf16.gmra.mxu1 %v1963_v3 }
 0x523   : > { %2526 = vmatprep.mubr.bf16.mxu0 %v6675_v48 }
 0x52a   : > { %2527 = vmatmul.mubr.bf16.gmra.mxu0 %v2354_v14 }
 0x52b   : > { %2536 = vmatprep.mubr.bf16.mxu0 %v6675_v48 }
 0x532   : > { %2537 = vmatmul.mubr.bf16.gmra.mxu0 %v2355_v17 }
 0x533   : > { %2546 = vmatprep.mubr.bf16.mxu0 %v6675_v48 }
 0x53a   : > { %2547 = vmatmul.mubr.bf16.gmra.mxu0 %v2356_v33 }
 0x53b   : > { %2556 = vmatprep.mubr.bf16.mxu0 %v6675_v48  ;;  %v5996_v48 = vld [vmem:[#allocation11 + $0xa0] ss:$16 sps:$4 sm:$0xff]  }
 0x53c   : > { %3656 = vmatpush1.bf16.msra.mxu0 %v5996_v48 }
 0x53d   : > { %3657 = vmatprep.subr.bf16.mxu0 %v6004_v28  ;;  %v6371_v28 = vld [vmem:[%s6943_s3 + $0x18] sm:$0xff] }
 0x540   : > { %3658 = vmatpush1.bf16.msra.mxu0 %v6002_v38 }
 0x541   : > { %3659 = vmatprep.subr.bf16.mxu0 %v6010_v12 }
 0x542   : > { %2557 = vmatmul.mubr.bf16.gmra.mxu0 %v2357_v43  ;;  %v6369_v43 = vld [vmem:[%s6943_s3 + $0x8] sm:$0xff] }
 0x544   : > { %3660 = vmatpush1.bf16.msra.mxu0 %v6008_v45 }
 0x545   : > { %3661 = vmatprep.subr.bf16.mxu0 %v6016_v11 }
 0x548   : > { %3662 = vmatpush1.bf16.msra.mxu0 %v6014_v25 }
 0x549   : > { %3663 = vmatprep.subr.bf16.mxu0 %v6022_v0 }
 0x54c   : > { %3664 = vmatpush1.bf16.msra.mxu0 %v6020_v20  ;;  %v6373_v20 = vld [vmem:[%s6943_s3 + $0x28] sm:$0xff] }
 0x5aa   : > { %v2681_v32 = vpop.f32.mrf.mxu1 }
 0x5ac   : > { %v2683_v29 = vpop.f32.mrf.mxu1 }
 0x5ae   : > { %v2685_v15 = vpop.f32.mrf.mxu1 }
 0x5b0   : > { %v2687_v27 = vpop.f32.mrf.mxu1 }
 0x5b2   : > { %v2691_v34 = vpop.f32.mrf.mxu1 }
 0x5b4   : > { %v2693_v36 = vpop.f32.mrf.mxu1 }
 0x5b6   : > { %v2695_v54 = vpop.f32.mrf.mxu1 }
 0x5b8   : > { %v2697_v53 = vpop.f32.mrf.mxu1 }
 0x5ba   : > { %v2701_v7 = vpop.f32.mrf.mxu1 }
 0x5bc   : > { %v7739_v5 = vpop.f32.mrf.mxu1 }
 0x5be   : > { %v7741_v2 = vpop.f32.mrf.mxu1 }
 0x5c0   : > { %v7743_v57 = vpop.f32.mrf.mxu1 }
 0x5c2   : > { %v7745_v62 = vpop.f32.mrf.mxu1 }
 0x5c4   : > { %v7747_v10 = vpop.f32.mrf.mxu1 }
 0x5c6   : > { %v7749_v4 = vpop.f32.mrf.mxu1 }
 0x5c8   : > { %v7754_v6 = vpop.f32.mrf.mxu1 }
 0x5ca   : > { %v2488_v8 = vpop.f32.mrf.mxu0  ;;  %v7762_v3 = vpop.f32.mrf.mxu1 }
 0x5cb   : > { %v2682_v39 = vadd.f32 %v2681_v32, %v2488_v8 }
 0x5cc   : > { %v2490_v9 = vpop.f32.mrf.mxu0  ;;  %v7766_v17 = vpop.f32.mrf.mxu1 }
 0x5cd   : > { %v2772_v58 = vadd.f32 %v7757_v24, %v2682_v39  ;;  %v2684_v23 = vadd.f32 %v2683_v29, %v2490_v9  ;;  %v6374_v9 = vld [vmem:[%s6943_s3 + $0x30] sm:$0xff] }
 0x5ce   : > { %v2492_v14 = vpop.f32.mrf.mxu0  ;;  %v7781_v42 = vpop.f32.mrf.mxu1 }
 0x5cf   : > { %v2773_v56 = vadd.f32 %v7760_v35, %v2684_v23  ;;  %v2686_v52 = vadd.f32 %v2685_v15, %v2492_v14  ;;  %v7769_v33 = vadd.f32 %v6368_v30, %v2772_v58 }
 0x5d0   : > { %v2494_v22 = vpop.f32.mrf.mxu0  ;;  %v7794_v25 = vpop.f32.mrf.mxu1 }
 0x5d1   : > { %v7772_v63 = vadd.f32 %v6369_v43, %v2773_v56  ;;  %v2774_v19 = vadd.f32 %v7757_v24, %v2686_v52  ;;  %v2688_v21 = vadd.f32 %v2687_v27, %v2494_v22  ;;  %v2903_v12 = vmul.f32 %v7769_v33, %v7769_v33  ;;  %v6375_v56 = vld [vmem:[%s6943_s3 + $0x38] sm:$0xff] }
 0x5d2   : > { %v2498_v51 = vpop.f32.mrf.mxu0  ;;  %v7810_v39 = vpop.f32.mrf.mxu1 }
 0x5d3   : > { %v2775_v40 = vadd.f32 %v7760_v35, %v2688_v21  ;;  %v2692_v49 = vadd.f32 %v2691_v34, %v2498_v51  ;;  %v2838_v61 = vadd.f32 %v7772_v63, %v7769_v33  ;;  %v7779_v50 = vadd.f32 %v6370_v31, %v2774_v19 }
 0x5d4   : > { %v2500_v48 = vpop.f32.mrf.mxu0  ;;  %v2904_v47 = vmul.f32 %v7772_v63, %v7772_v63 }
 0x5d5   : > { %v7786_v60 = vadd.f32 %v6371_v28, %v2775_v40  ;;  %v2776_v38 = vadd.f32 %v7757_v24, %v2692_v49  ;;  %v2694_v13 = vadd.f32 %v2693_v36, %v2500_v48  ;;  %2839 = vadd.xlane.f32.xlu0 %v2838_v61  ;;  %v2905_v37 = vmul.f32 %v7779_v50, %v7779_v50  ;;  %v7828_v40 = vpop.f32.mrf.mxu1  ;;  %v6376_v49 = vld [vmem:[%s6943_s3 + $0x40] sm:$0xff] }
 0x5d6   : > { %v2502_v18 = vpop.f32.mrf.mxu0  ;;  %v2935_v26 = vadd.f32 %v2904_v47, %v2903_v12  ;;  %v6377_v47 = vld [vmem:[%s6943_s3 + $0x48] sm:$0xff] }
 0x5d7   : > { %v2777_v45 = vadd.f32 %v7760_v35, %v2694_v13  ;;  %v2696_v16 = vadd.f32 %v2695_v54, %v2502_v18  ;;  %v2841_v11 = vadd.f32 %v7786_v60, %v7779_v50  ;;  %v7797_v0 = vadd.f32 %v6372_v1, %v2776_v38  ;;  %v6026_v13 = vld [vmem:[#allocation11] ss:$16 sps:$4 sm:$0xff]   ;;  %v6028_v12 = vld [vmem:[#allocation11 + $0x4] ss:$16 sps:$4 sm:$0xff]  }
 0x5d8   : > { %v2504_v32 = vpop.f32.mrf.mxu0  ;;  %v2906_v29 = vmul.f32 %v7786_v60, %v7786_v60  ;;  %3665 = vmatprep.subr.bf16.mxu0 %v6028_v12 }
 0x5d9   : > { %v7804_v46 = vadd.f32 %v6373_v20, %v2777_v45  ;;  %v2778_v15 = vadd.f32 %v7757_v24, %v2696_v16  ;;  %v2698_v27 = vadd.f32 %v2697_v53, %v2504_v32  ;;  %2842 = vadd.xlane.f32.xlu1 %v2841_v11  ;;  %2936 = vadd.xlane.f32.xlu0 %v2935_v26  ;;  %v6029_v45 = vld [vmem:[#allocation11 + $0x8] ss:$16 sps:$4 sm:$0xff]   ;;  %v6031_v16 = vld [vmem:[#allocation11 + $0xc] ss:$16 sps:$4 sm:$0xff]  }
 0x5da   : > { %v2508_v34 = vpop.f32.mrf.mxu0  ;;  %v2938_v55 = vadd.f32 %v2906_v29, %v2905_v37  ;;  %v2907_v53 = vmul.f32 %v7797_v0, %v7797_v0  ;;  %v7846_v37 = vpop.f32.mrf.mxu1  ;;  %3778 = vmatprep.subr.bf16.mxu1 %v6031_v16  ;;  %3666 = vmatpush1.bf16.msra.mxu0 %v6026_v13  ;;  %v6041_v13 = vld [vmem:[#allocation11 + $0x1c8] ss:$16 sps:$4 sm:$0xff]  }
 0x5db   : > { %v2779_v36 = vadd.f32 %v7760_v35, %v2698_v27  ;;  %v2702_v54 = vadd.f32 %v2701_v7, %v2508_v34  ;;  %v2844_v8 = vadd.f32 %v7804_v46, %v7797_v0  ;;  %v7813_v58 = vadd.f32 %v6374_v9, %v2778_v15  ;;  %3779 = vmatpush1.bf16.msra.mxu1 %v6029_v45 }
 0x5dc   : > { %v2510_v23 = vpop.f32.mrf.mxu0  ;;  %v2908_v14 = vmul.f32 %v7804_v46, %v7804_v46 }
 0x5dd   : > { %v7820_v52 = vadd.f32 %v6375_v56, %v2779_v36  ;;  %v2780_v7 = vadd.f32 %v7757_v24, %v2702_v54  ;;  %v2704_v22 = vadd.f32 %v7739_v5, %v2510_v23  ;;  %2939 = vadd.xlane.f32.xlu1 %v2938_v55  ;;  %2845 = vadd.xlane.f32.xlu0 %v2844_v8  ;;  %v6034_v55 = vld [vmem:[#allocation11 + $0x1e4] ss:$16 sps:$4 sm:$0xff]   ;;  %v6037_v8 = vld [vmem:[#allocation11 + $0x1ec] ss:$16 sps:$4 sm:$0xff]   ;;  %v6032_v23 = vld [vmem:[#allocation11 + $0x1e0] ss:$16 sps:$4 sm:$0xff]  }
 0x5de   : > { %v2512_v30 = vpop.f32.mrf.mxu0  ;;  %v2941_v51 = vadd.f32 %v2908_v14, %v2907_v53  ;;  %v2909_v5 = vmul.f32 %v7813_v58, %v7813_v58  ;;  %v6035_v53 = vld [vmem:[#allocation11 + $0x1e8] ss:$16 sps:$4 sm:$0xff]   ;;  %3667 = vmatprep.subr.bf16.mxu0 %v6034_v55  ;;  %3780 = vmatprep.subr.bf16.mxu1 %v6037_v8  ;;  %v6044_v55 = vld [vmem:[#allocation11 + $0x1a0] ss:$16 sps:$4 sm:$0xff]  }
 0x5df   : > { %v2781_v43 = vadd.f32 %v7760_v35, %v2704_v22  ;;  %v2706_v19 = vadd.f32 %v7741_v2, %v2512_v30  ;;  %v2847_v21 = vadd.f32 %v7820_v52, %v7813_v58  ;;  %v7831_v61 = vadd.f32 %v6376_v49, %v2780_v7  ;;  %v7864_v30 = vpop.f32.mrf.mxu1  ;;  %3668 = vmatpush2.bf16.msra.mxu0 %v6032_v23  ;;  %v6047_v8 = vld [vmem:[#allocation11 + $0x1a8] ss:$16 sps:$4 sm:$0xff]  }
 0x5e0   : > { %v2514_v31 = vpop.f32.mrf.mxu0  ;;  %v2910_v48 = vmul.f32 %v7820_v52, %v7820_v52  ;;  %3781 = vmatpush2.bf16.msra.mxu1 %v6035_v53 }
 0x5e1   : > { %v7838_v28 = vadd.f32 %v6377_v47, %v2781_v43  ;;  %v2782_v2 = vadd.f32 %v7757_v24, %v2706_v19  ;;  %v2708_v38 = vadd.f32 %v7743_v57, %v2514_v31  ;;  %2848 = vadd.xlane.f32.xlu1 %v2847_v21  ;;  %2942 = vadd.xlane.f32.xlu0 %v2941_v51  ;;  %v6378_v57 = vld [vmem:[%s6943_s3 + $0x50] sm:$0xff] }
 0x5e2   : > { %v2518_v18 = vpop.f32.mrf.mxu0  ;;  %v2944_v1 = vadd.f32 %v2910_v48, %v2909_v5  ;;  %v2911_v15 = vmul.f32 %v7831_v61, %v7831_v61  ;;  %v6040_v48 = vld [vmem:[#allocation11 + $0x1c4] ss:$16 sps:$4 sm:$0xff]   ;;  %v6043_v47 = vld [vmem:[#allocation11 + $0x1cc] ss:$16 sps:$4 sm:$0xff]  }
 0x5e3   : > { %v2783_v11 = vadd.f32 %v7760_v35, %v2708_v38  ;;  %v2712_v26 = vadd.f32 %v7745_v62, %v2518_v18  ;;  %v2850_v32 = vadd.f32 %v7838_v28, %v7831_v61  ;;  %v7849_v29 = vadd.f32 %v6378_v57, %v2782_v2  ;;  %v6379_v62 = vld [vmem:[%s6943_s3 + $0x58] sm:$0xff]  ;;  %3669 = vmatprep.subr.bf16.mxu0 %v6040_v48 }
 0x5e4   : > { %v2520_v20 = vpop.f32.mrf.mxu0  ;;  %v2912_v27 = vmul.f32 %v7838_v28, %v7838_v28  ;;  %v6038_v38 = vld [vmem:[#allocation11 + $0x1c0] ss:$16 sps:$4 sm:$0xff]   ;;  %3782 = vmatprep.subr.bf16.mxu1 %v6043_v47 }
 0x5e5   : > { %v7856_v34 = vadd.f32 %v6379_v62, %v2783_v11  ;;  %v2784_v36 = vadd.f32 %v7757_v24, %v2712_v26  ;;  %v2714_v54 = vadd.f32 %v7747_v10, %v2520_v20  ;;  %2945 = vadd.xlane.f32.xlu1 %v2944_v1  ;;  %2851 = vadd.xlane.f32.xlu0 %v2850_v32  ;;  %v6380_v10 = vld [vmem:[%s6943_s3 + $0x60] sm:$0xff]  ;;  %v7882_v11 = vpop.f32.mrf.mxu1  ;;  %v6046_v62 = vld [vmem:[#allocation11 + $0x1a4] ss:$16 sps:$4 sm:$0xff]  }
 0x5e6   : > { %v2522_v9 = vpop.f32.mrf.mxu0  ;;  %v2947_v22 = vadd.f32 %v2912_v27, %v2911_v15  ;;  %v2913_v21 = vmul.f32 %v7849_v29, %v7849_v29  ;;  %3670 = vmatpush2.bf16.msra.mxu0 %v6038_v38  ;;  %3783 = vmatpush2.bf16.msra.mxu1 %v6041_v13  ;;  %v6050_v47 = vld [vmem:[#allocation11 + $0x180] ss:$16 sps:$4 sm:$0xff]  }
 0x5e7   : > { %v2785_v14 = vadd.f32 %v7760_v35, %v2714_v54  ;;  %v2716_v56 = vadd.f32 %v7749_v4, %v2522_v9  ;;  %v2853_v7 = vadd.f32 %v7856_v34, %v7849_v29  ;;  %v7867_v43 = vadd.f32 %v6380_v10, %v2784_v36  ;;  %v6381_v4 = vld [vmem:[%s6943_s3 + $0x68] sm:$0xff]  ;;  %v6049_v36 = vld [vmem:[#allocation11 + $0x1ac] ss:$16 sps:$4 sm:$0xff]   ;;  %3671 = vmatprep.subr.bf16.mxu0 %v6046_v62 }
 0x5e8   : > { %v2524_v19 = vpop.f32.mrf.mxu0  ;;  %v2914_v51 = vmul.f32 %v7856_v34, %v7856_v34  ;;  %3784 = vmatprep.subr.bf16.mxu1 %v6049_v36  ;;  %v6061_v62 = vld [vmem:[#allocation11 + $0x16c] ss:$16 sps:$4 sm:$0xff]  }
 0x5e9   : > { %v7874_v49 = vadd.f32 %v6381_v4, %v2785_v14  ;;  %v2786_v31 = vadd.f32 %v7757_v24, %v2716_v56  ;;  %v2718_v5 = vadd.f32 %v7754_v6, %v2524_v19  ;;  %2854 = vadd.xlane.f32.xlu1 %v2853_v7  ;;  %2948 = vadd.xlane.f32.xlu0 %v2947_v22  ;;  %v6382_v6 = vld [vmem:[%s6943_s3 + $0x70] sm:$0xff]  ;;  %v7900_v56 = vpop.f32.mrf.mxu1 }
 0x5ea   : > { %v2528_v2 = vpop.f32.mrf.mxu0  ;;  %v2950_v45 = vadd.f32 %v2914_v51, %v2913_v21  ;;  %v2915_v32 = vmul.f32 %v7867_v43, %v7867_v43  ;;  %3672 = vmatpush2.bf16.msra.mxu0 %v6044_v55  ;;  %3785 = vmatpush2.bf16.msra.mxu1 %v6047_v8  ;;  %v6059_v55 = vld [vmem:[#allocation11 + $0x168] ss:$16 sps:$4 sm:$0xff]  }
 0x5eb   : > { %v2787_v12 = vadd.f32 %v7760_v35, %v2718_v5  ;;  %v2722_v18 = vadd.f32 %v7762_v3, %v2528_v2  ;;  %v2856_v16 = vadd.f32 %v7874_v49, %v7867_v43  ;;  %v7885_v26 = vadd.f32 %v6382_v6, %v2786_v31  ;;  %v6383_v3 = vld [vmem:[%s6943_s3 + $0x78] sm:$0xff]  ;;  %v6055_v5 = vld [vmem:[#allocation11 + $0x18c] ss:$16 sps:$4 sm:$0xff]  }
 0x5ec   : > { %v2530_v1 = vpop.f32.mrf.mxu0  ;;  %v2916_v57 = vmul.f32 %v7874_v49, %v7874_v49  ;;  %v6052_v31 = vld [vmem:[#allocation11 + $0x184] ss:$16 sps:$4 sm:$0xff]   ;;  %v6053_v2 = vld [vmem:[#allocation11 + $0x188] ss:$16 sps:$4 sm:$0xff]   ;;  %3786 = vmatprep.subr.bf16.mxu1 %v6055_v5  ;;  %v6067_v5 = vld [vmem:[#allocation11 + $0x14c] ss:$16 sps:$4 sm:$0xff]  }
 0x5ed   : > { %v7892_v20 = vadd.f32 %v6383_v3, %v2787_v12  ;;  %v2788_v15 = vadd.f32 %v7757_v24, %v2722_v18  ;;  %v2724_v27 = vadd.f32 %v7766_v17, %v2530_v1  ;;  %2951 = vadd.xlane.f32.xlu1 %v2950_v45  ;;  %2857 = vadd.xlane.f32.xlu0 %v2856_v16  ;;  %v6384_v17 = vld [vmem:[%s6943_s3 + $0x80] sm:$0xff]  ;;  %v7918_v45 = vpop.f32.mrf.mxu1 }
 0x5ee   : > { %v2532_v54 = vpop.f32.mrf.mxu0  ;;  %v2953_v14 = vadd.f32 %v2916_v57, %v2915_v32  ;;  %v2917_v10 = vmul.f32 %v7885_v26, %v7885_v26  ;;  %3673 = vmatprep.subr.bf16.mxu0 %v6052_v31  ;;  %3787 = vmatpush2.bf16.msra.mxu1 %v6053_v2  ;;  %v6064_v31 = vld [vmem:[#allocation11 + $0x144] ss:$16 sps:$4 sm:$0xff]   ;;  %v6065_v2 = vld [vmem:[#allocation11 + $0x148] ss:$16 sps:$4 sm:$0xff]  }
 0x5ef   : > { %v2789_v9 = vadd.f32 %v7760_v35, %v2724_v27  ;;  %v2726_v23 = vadd.f32 %v7781_v42, %v2532_v54  ;;  %v2859_v53 = vadd.f32 %v7892_v20, %v7885_v26  ;;  %v7903_v7 = vadd.f32 %v6384_v17, %v2788_v15  ;;  %v6385_v42 = vld [vmem:[%s6943_s3 + $0x88] sm:$0xff]  ;;  %3674 = vmatpush2.bf16.msra.mxu0 %v6050_v47 }
 0x5f0   : > { %v2534_v22 = vpop.f32.mrf.mxu0  ;;  %v2918_v19 = vmul.f32 %v7892_v20, %v7892_v20  ;;  %v6058_v27 = vld [vmem:[#allocation11 + $0x164] ss:$16 sps:$4 sm:$0xff]   ;;  %v6056_v54 = vld [vmem:[#allocation11 + $0x160] ss:$16 sps:$4 sm:$0xff]   ;;  %3788 = vmatprep.subr.bf16.mxu1 %v6061_v62 }
 0x5f1   : > { %v7910_v21 = vadd.f32 %v6385_v42, %v2789_v9  ;;  %v2790_v51 = vadd.f32 %v7757_v24, %v2726_v23  ;;  %v2728_v4 = vadd.f32 %v7794_v25, %v2534_v22  ;;  %2860 = vadd.xlane.f32.xlu1 %v2859_v53  ;;  %2954 = vadd.xlane.f32.xlu0 %v2953_v14  ;;  %v6386_v25 = vld [vmem:[%s6943_s3 + $0x90] sm:$0xff]  ;;  %v2747_v14 = vpop.f32.mrf.mxu1  ;;  %v6389_v42 = vld [vmem:[%s6943_s3 + $0xa8] sm:$0xff] }
 0x5f2   : > { %v2538_v48 = vpop.f32.mrf.mxu0  ;;  %v2956_v12 = vadd.f32 %v2918_v19, %v2917_v10  ;;  %v2919_v1 = vmul.f32 %v7903_v7, %v7903_v7  ;;  %3675 = vmatprep.subr.bf16.mxu0 %v6058_v27  ;;  %3789 = vmatpush2.bf16.msra.mxu1 %v6059_v55  ;;  %v6062_v47 = vld [vmem:[#allocation11 + $0x140] ss:$16 sps:$4 sm:$0xff]   ;;  %v6070_v62 = vld [vmem:[#allocation11 + $0x124] ss:$16 sps:$4 sm:$0xff]  }
 0x5f3   : > { %v2791_v38 = vadd.f32 %v7760_v35, %v2728_v4  ;;  %v2732_v13 = vadd.f32 %v7810_v39, %v2538_v48  ;;  %v2862_v18 = vadd.f32 %v7910_v21, %v7903_v7  ;;  %v7921_v16 = vadd.f32 %v6386_v25, %v2790_v51  ;;  %v6387_v39 = vld [vmem:[%s6943_s3 + $0x98] sm:$0xff]  ;;  %3676 = vmatpush2.bf16.msra.mxu0 %v6056_v54  ;;  %v2751_v25 = vpop.f32.mrf.mxu1 }
 0x5f4   : > { %v2540_v6 = vpop.f32.mrf.mxu0  ;;  %v2920_v32 = vmul.f32 %v7910_v21, %v7910_v21  ;;  %3677 = vmatprep.subr.bf16.mxu0 %v6064_v31  ;;  %3790 = vmatprep.subr.bf16.mxu1 %v6067_v5  ;;  %v6068_v55 = vld [vmem:[#allocation11 + $0x120] ss:$16 sps:$4 sm:$0xff]  }
 0x5f5   : > { %v7928_v57 = vadd.f32 %v6387_v39, %v2791_v38  ;;  %v2792_v3 = vadd.f32 %v7757_v24, %v2732_v13  ;;  %v2734_v15 = vadd.f32 %v7828_v40, %v2540_v6  ;;  %2957 = vadd.xlane.f32.xlu1 %v2956_v12  ;;  %2863 = vadd.xlane.f32.xlu0 %v2862_v18  ;;  %v6388_v40 = vld [vmem:[%s6943_s3 + $0xa0] sm:$0xff] }
 0x5f6   : > { %v2542_v36 = vpop.f32.mrf.mxu0  ;;  %v2959_v53 = vadd.f32 %v2920_v32, %v2919_v1  ;;  %v2921_v10 = vmul.f32 %v7921_v16, %v7921_v16  ;;  %3791 = vmatpush2.bf16.msra.mxu1 %v6065_v2 }
 0x5f7   : > { %v2793_v8 = vadd.f32 %v7760_v35, %v2734_v15  ;;  %v2736_v9 = vadd.f32 %v7846_v37, %v2542_v36  ;;  %v2865_v23 = vadd.f32 %v7928_v57, %v7921_v16  ;;  %v7937_v17 = vadd.f32 %v6388_v40, %v2792_v3  ;;  %3678 = vmatpush2.bf16.msra.mxu0 %v6062_v47  ;;  %v6391_v3 = vld [vmem:[%s6943_s3 + $0xb8] sm:$0xff]  ;;  %v6073_v36 = vld [vmem:[#allocation11 + $0x12c] ss:$16 sps:$4 sm:$0xff]  }
 0x5f8   : > { %v2544_v22 = vpop.f32.mrf.mxu0  ;;  %v2922_v19 = vmul.f32 %v7928_v57, %v7928_v57  ;;  %3679 = vmatprep.subr.bf16.mxu0 %v6070_v62  ;;  %3792 = vmatprep.subr.bf16.mxu1 %v6073_v36  ;;  %v6079_v47 = vld [vmem:[#allocation11 + $0x10c] ss:$16 sps:$4 sm:$0xff]  }
 0x5f9   : > { %v7944_v37 = vadd.f32 %v6389_v42, %v2793_v8  ;;  %v2794_v51 = vadd.f32 %v7757_v24, %v2736_v9  ;;  %v2738_v4 = vadd.f32 %v7864_v30, %v2544_v22  ;;  %2866 = vadd.xlane.f32.xlu1 %v2865_v23  ;;  %2960 = vadd.xlane.f32.xlu0 %v2959_v53  ;;  %v6390_v30 = vld [vmem:[%s6943_s3 + $0xb0] sm:$0xff]  ;;  %v2753_v22 = vpop.f32.mrf.mxu1 }
 0x5fa   : > { %v2548_v48 = vpop.f32.mrf.mxu0  ;;  %v2962_v12 = vadd.f32 %v2922_v19, %v2921_v10  ;;  %v2923_v32 = vmul.f32 %v7937_v17, %v7937_v17  ;;  %v6071_v8 = vld [vmem:[#allocation11 + $0x128] ss:$16 sps:$4 sm:$0xff]  }
 0x5fb   : > { %v2795_v38 = vadd.f32 %v7760_v35, %v2738_v4  ;;  %v2742_v13 = vadd.f32 %v7882_v11, %v2548_v48  ;;  %v2868_v18 = vadd.f32 %v7944_v37, %v7937_v17  ;;  %v7953_v6 = vadd.f32 %v6390_v30, %v2794_v51  ;;  %3680 = vmatpush2.bf16.msra.mxu0 %v6068_v55  ;;  %v6393_v4 = vld [vmem:[%s6943_s3 + $0xc8] sm:$0xff] }
 0x5fc   : > { %v2550_v1 = vpop.f32.mrf.mxu0  ;;  %v2924_v39 = vmul.f32 %v7944_v37, %v7944_v37  ;;  %v6076_v48 = vld [vmem:[#allocation11 + $0x104] ss:$16 sps:$4 sm:$0xff]   ;;  %3793 = vmatpush2.bf16.msra.mxu1 %v6071_v8 }
 0x5fd   : > { %v7960_v11 = vadd.f32 %v6391_v3, %v2795_v38  ;;  %v2796_v15 = vadd.f32 %v7757_v24, %v2742_v13  ;;  %v2744_v27 = vadd.f32 %v7900_v56, %v2550_v1  ;;  %2963 = vadd.xlane.f32.xlu1 %v2962_v12  ;;  %2869 = vadd.xlane.f32.xlu0 %v2868_v18  ;;  %v6392_v56 = vld [vmem:[%s6943_s3 + $0xc0] sm:$0xff] }
 0x5fe   : > { %v2552_v54 = vpop.f32.mrf.mxu0  ;;  %v2965_v40 = vadd.f32 %v2924_v39, %v2923_v32  ;;  %v2925_v42 = vmul.f32 %v7953_v6, %v7953_v6  ;;  %v6074_v38 = vld [vmem:[#allocation11 + $0x100] ss:$16 sps:$4 sm:$0xff]   ;;  %v6077_v13 = vld [vmem:[#allocation11 + $0x108] ss:$16 sps:$4 sm:$0xff]   ;;  %3681 = vmatprep.subr.bf16.mxu0 %v6076_v48  ;;  %v2755_v32 = vpop.f32.mrf.mxu1  ;;  %3794 = vmatprep.subr.bf16.mxu1 %v6079_v47 }
 0x5ff   : > { %v2797_v9 = vadd.f32 %v7760_v35, %v2744_v27  ;;  %v2746_v23 = vadd.f32 %v7918_v45, %v2552_v54  ;;  %v2871_v53 = vadd.f32 %v7960_v11, %v7953_v6  ;;  %v7969_v10 = vadd.f32 %v6392_v56, %v2796_v15  ;;  %v6394_v39 = vld [vmem:[%s6943_s3 + $0xd0] sm:$0xff]  ;;  %3682 = vmatpush2.bf16.msra.mxu0 %v6074_v38  ;;  %v6396_v56 = vld [vmem:[%s6943_s3 + $0xe0] sm:$0xff] }
 0x600   : > { %v2554_v19 = vpop.f32.mrf.mxu0  ;;  %v2926_v51 = vmul.f32 %v7960_v11, %v7960_v11  ;;  %3795 = vmatpush2.bf16.msra.mxu1 %v6077_v13 }
 0x601   : > { %v7976_v45 = vadd.f32 %v6393_v4, %v2797_v9  ;;  %v2798_v31 = vadd.f32 %v7757_v24, %v2746_v23  ;;  %v2748_v5 = vadd.f32 %v2747_v14, %v2554_v19  ;;  %2872 = vadd.xlane.f32.xlu1 %v2871_v53  ;;  %2966 = vadd.xlane.f32.xlu0 %v2965_v40  ;;  %v2757_v40 = vpop.f32.mrf.mxu1  ;;  %v6397_v4 = vld [vmem:[%s6943_s3 + $0xe8] sm:$0xff] }
 0x602   : > { %v2558_v2 = vpop.f32.mrf.mxu0  ;;  %v2968_v30 = vadd.f32 %v2926_v51, %v2925_v42  ;;  %v2927_v15 = vmul.f32 %v7969_v10, %v7969_v10 }
 0x603   : > { %v2799_v12 = vadd.f32 %v7760_v35, %v2748_v5  ;;  %v2752_v18 = vadd.f32 %v2751_v25, %v2558_v2  ;;  %v2874_v1 = vadd.f32 %v7976_v45, %v7969_v10  ;;  %v7983_v14 = vadd.f32 %v6394_v39, %v2798_v31  ;;  %v6395_v25 = vld [vmem:[%s6943_s3 + $0xd8] sm:$0xff] }
 0x604   : > { %v2560_v3 = vpop.f32.mrf.mxu0  ;;  %v2928_v27 = vmul.f32 %v7976_v45, %v7976_v45 }
 0x605   : > { %v7990_v62 = vadd.f32 %v6395_v25, %v2799_v12  ;;  %v2800_v36 = vadd.f32 %v7757_v24, %v2752_v18  ;;  %v2754_v54 = vadd.f32 %v2753_v22, %v2560_v3  ;;  %2969 = vadd.xlane.f32.xlu1 %v2968_v30  ;;  %2875 = vadd.xlane.f32.xlu0 %v2874_v1  ;;  %v6398_v12 = vld [vmem:[%s6943_s3 + $0xf0] sm:$0xff]  ;;  %v6399_v30 = vld [vmem:[%s6943_s3 + $0xf8] sm:$0xff] }
 0x606   : > { %v2562_v55 = vpop.f32.mrf.mxu0  ;;  %v2971_v23 = vadd.f32 %v2928_v27, %v2927_v15  ;;  %v2929_v22 = vmul.f32 %v7983_v14, %v7983_v14  ;;  %v6082_v27 = vld [vmem:[#allocation13 + $0x74] ss:$8 sps:$4 sm:$0xff]  }
 0x607   : > { %v2801_v8 = vadd.f32 %v7760_v35, %v2754_v54  ;;  %v2756_v9 = vadd.f32 %v2755_v32, %v2562_v55  ;;  %v2877_v53 = vadd.f32 %v7990_v62, %v7983_v14  ;;  %v7997_v19 = vadd.f32 %v6396_v56, %v2800_v36  ;;  %v6085_v25 = vld [vmem:[#allocation13 + $0x174] ss:$8 sps:$4 sm:$0xff]   ;;  %4369 = vmatprep.subr.bf16.mxu0 %v6082_v27 }
 0x608   : > { %v2564_v42 = vpop.f32.mrf.mxu0  ;;  %v2930_v51 = vmul.f32 %v7990_v62, %v7990_v62  ;;  %4482 = vmatprep.subr.bf16.mxu1 %v6085_v25 }
 0x609   : > { %v8004_v31 = vadd.f32 %v6397_v4, %v2801_v8  ;;  %v2802_v5 = vadd.f32 %v7757_v24, %v2756_v9  ;;  %v2758_v48 = vadd.f32 %v2757_v40, %v2564_v42  ;;  %2972 = vadd.xlane.f32.xlu0 %v2971_v23  ;;  %2878 = vadd.xlane.f32.xlu1 %v2877_v53 }
 0x60a   : > { %v2974_v2 = vadd.f32 %v2930_v51, %v2929_v22  ;;  %v2931_v24 = vmul.f32 %v7997_v19, %v7997_v19 }
 0x60b   : > { %v2803_v47 = vadd.f32 %v7760_v35, %v2758_v48  ;;  %v2880_v38 = vadd.f32 %v8004_v31, %v7997_v19  ;;  %v2932_v13 = vmul.f32 %v8004_v31, %v8004_v31  ;;  %v8013_v18 = vadd.f32 %v6398_v12, %v2802_v5 }
 0x60d   : > { %v8016_v1 = vadd.f32 %v6399_v30, %v2803_v47  ;;  %2975 = vadd.xlane.f32.xlu1 %v2974_v2  ;;  %2881 = vadd.xlane.f32.xlu0 %v2880_v38  ;;  %v2977_v32 = vadd.f32 %v2932_v13, %v2931_v24  ;;  %v2933_v3 = vmul.f32 %v8013_v18, %v8013_v18 }
 0x60f   : > { %v2883_v35 = vadd.f32 %v8016_v1, %v8013_v18  ;;  %v2934_v39 = vmul.f32 %v8016_v1, %v8016_v1 }
 0x611   : > { %2978 = vadd.xlane.f32.xlu0 %v2977_v32  ;;  %2884 = vadd.xlane.f32.xlu1 %v2883_v35  ;;  %v2980_v15 = vadd.f32 %v2934_v39, %v2933_v3 }
 0x615   : > { %2981 = vadd.xlane.f32.xlu1 %v2980_v15 }
 0x65e   : > { %v2840_v36 = vpop.xlane.xlu0 %2839 }
 0x65f   : > { %v2887_v54 = vmul.f32 0.00390625, %v2840_v36 }
 0x661   : > { %v2999_v23 = vmul.f32 %v2887_v54, %v2887_v54 }
 0x662   : > { %v2843_v55 = vpop.xlane.xlu1 %2842  ;;  %v2937_v8 = vpop.xlane.xlu0 %2936 }
 0x663   : > { %v8026_v9 = vmul.f32 0.00390625, %v2843_v55  ;;  %v2983_v53 = vmul.f32 0.00390625, %v2937_v8 }
 0x665   : > { %v3015_v40 = vsub.f32 %v2983_v53, %v2999_v23  ;;  %v3000_v51 = vmul.f32 %v8026_v9, %v8026_v9 }
 0x666   : > { %v2940_v56 = vpop.xlane.xlu1 %2939  ;;  %v2846_v42 = vpop.xlane.xlu0 %2845 }
 0x667   : > { %v3031_v22 = vmax.f32 %v3015_v40, 0.0  ;;  %v2984_v4 = vmul.f32 0.00390625, %v2940_v56  ;;  %v8030_v5 = vmul.f32 0.00390625, %v2846_v42 }
 0x669   : > { %v3079_v48 = vadd.f32 1e-05, %v3031_v22  ;;  %v3016_v47 = vsub.f32 %v2984_v4, %v3000_v51  ;;  %v3001_v38 = vmul.f32 %v8030_v5, %v8030_v5  ;;  %v2836_v51 = vld [vmem:[%s8945_s6] sm:$0x3] }
 0x66a   : > { %v2849_v2 = vpop.xlane.xlu1 %2848  ;;  %v2943_v13 = vpop.xlane.xlu0 %2942 }
 0x66b   : > { %6304 = vrsqrt.f32 %v3079_v48  ;;  %v3032_v12 = vmax.f32 %v3016_v47, 0.0  ;;  %v8034_v30 = vmul.f32 0.00390625, %v2849_v2  ;;  %v2985_v24 = vmul.f32 0.00390625, %v2943_v13 }
 0x66c   : > { %v3047_v47 = vsub.f32 %v7769_v33, %v2887_v54 }
 0x66d   : > { %v3080_v32 = vadd.f32 1e-05, %v3032_v12  ;;  %v3017_v35 = vsub.f32 %v2985_v24, %v3001_v38  ;;  %v3002_v39 = vmul.f32 %v8034_v30, %v8034_v30 }
 0x66e   : > { %v2946_v3 = vpop.xlane.xlu1 %2945  ;;  %v2852_v15 = vpop.xlane.xlu0 %2851 }
 0x66f   : > { %6306 = vrsqrt.f32 %v3080_v32  ;;  %v3033_v27 = vmax.f32 %v3017_v35, 0.0  ;;  %v2986_v25 = vmul.f32 0.00390625, %v2946_v3  ;;  %v8038_v36 = vmul.f32 0.00390625, %v2852_v15  ;;  %v2837_v32 = vld [vmem:[%s8946_s7] sm:$0x3] }
 0x670   : > { %v8055_v3 = vrot.slane %v2836_v51, %v7099_v41 }
 0x671   : > { %v3081_v55 = vadd.f32 1e-05, %v3033_v27  ;;  %v3018_v8 = vsub.f32 %v2986_v25, %v3002_v39  ;;  %v3003_v53 = vmul.f32 %v8038_v36, %v8038_v36  ;;  %v3048_v39 = vsub.f32 %v7772_v63, %v2887_v54 }
 0x672   : > { %v2855_v23 = vpop.xlane.xlu1 %2854  ;;  %v2949_v40 = vpop.xlane.xlu0 %2948  ;;  %v3049_v63 = vsub.f32 %v7779_v50, %v8026_v9 }
 0x673   : > { %6308 = vrsqrt.f32 %v3081_v55  ;;  %v3034_v56 = vmax.f32 %v3018_v8, 0.0  ;;  %v8042_v42 = vmul.f32 0.00390625, %v2855_v23  ;;  %v2987_v22 = vmul.f32 0.00390625, %v2949_v40 }
 0x674   : > { %v8060_v55 = vrot.slane %v2836_v51, %v7106_v44  ;;  %v8063_v40 = vrot.slane %v2837_v32, %v7099_v41  ;;  %v3050_v51 = vsub.f32 %v7786_v60, %v8026_v9 }
 0x675   : > { %v3082_v4 = vadd.f32 1e-05, %v3034_v56  ;;  %v3019_v48 = vsub.f32 %v2987_v22, %v3003_v53  ;;  %v3004_v12 = vmul.f32 %v8042_v42, %v8042_v42  ;;  %v8070_v22 = vrot.slane %v2837_v32, %v7106_v44 }
 0x676   : > { %v2952_v2 = vpop.xlane.xlu1 %2951  ;;  %v2858_v38 = vpop.xlane.xlu0 %2857 }
 0x677   : > { %6310 = vrsqrt.f32 %v3082_v4  ;;  %v3035_v13 = vmax.f32 %v3019_v48, 0.0  ;;  %v2988_v24 = vmul.f32 0.00390625, %v2952_v2  ;;  %v8057_v15 = vmul.f32 0.00390625, %v2858_v38 }
 0x678   : > { %v6305_v35 = vpop.eup %6304 }
 0x679   : > { %v3111_v33 = vmul.f32 %v6305_v35, %v3047_v47  ;;  %v3083_v27 = vadd.f32 1e-05, %v3035_v13  ;;  %v3020_v25 = vsub.f32 %v2988_v24, %v3004_v12  ;;  %v3112_v53 = vmul.f32 %v6305_v35, %v3048_v39 }
 0x67a   : > { %v2861_v8 = vpop.xlane.xlu1 %2860  ;;  %v2955_v23 = vpop.xlane.xlu0 %2954  ;;  %v3005_v48 = vmul.f32 %v8057_v15, %v8057_v15  ;;  %v3051_v12 = vsub.f32 %v7797_v0, %v8030_v5  ;;  %v3053_v0 = vsub.f32 %v7813_v58, %v8034_v30 }
 0x67b   : > { %v3036_v54 = vmax.f32 %v3020_v25, 0.0  ;;  %v8067_v56 = vmul.f32 0.00390625, %v2861_v8  ;;  %6312 = vrsqrt.f32 %v3083_v27  ;;  %v2989_v47 = vmul.f32 0.00390625, %v2955_v23 }
 0x67c   : > { %v6307_v4 = vpop.eup %6306  ;;  %v3154_v2 = vmul.f32 %v8055_v3, %v3111_v33  ;;  %v3155_v50 = vmul.f32 %v8060_v55, %v3112_v53  ;;  %v3052_v8 = vsub.f32 %v7804_v46, %v8030_v5 }
 0x67d   : > { %v3113_v38 = vmul.f32 %v6307_v4, %v3049_v63  ;;  %v3084_v13 = vadd.f32 1e-05, %v3036_v54  ;;  %v3021_v24 = vsub.f32 %v2989_v47, %v3005_v48  ;;  %v3006_v32 = vmul.f32 %v8067_v56, %v8067_v56 }
 0x67e   : > { %v2958_v35 = vpop.xlane.xlu1 %2957  ;;  %v2864_v60 = vpop.xlane.xlu0 %2863  ;;  %v3114_v9 = vmul.f32 %v6307_v4, %v3050_v51  ;;  %v3054_v63 = vsub.f32 %v7820_v52, %v8034_v30  ;;  %v8093_v4 = vadd.f32 %v8070_v22, %v3155_v50  ;;  %v8096_v51 = vadd.f32 %v8063_v40, %v3154_v2 }
 0x67f   : > { %v3156_v39 = vmul.f32 %v8055_v3, %v3113_v38  ;;  %6314 = vrsqrt.f32 %v3084_v13  ;;  %v2990_v27 = vmul.f32 0.00390625, %v2958_v35  ;;  %v8083_v25 = vmul.f32 0.00390625, %v2864_v60  ;;  %v6080_v60 = vld [vmem:[#allocation13 + $0x70] ss:$8 sps:$4 sm:$0xff]  }
 0x680   : > { %v6309_v33 = vpop.eup %6308  ;;  %v3037_v23 = vmax.f32 %v3021_v24, 0.0  ;;  %v3157_v53 = vmul.f32 %v8060_v55, %v3114_v9  ;;  %v6083_v9 = vld [vmem:[#allocation13 + $0x170] ss:$8 sps:$4 sm:$0xff]  }
 0x681   : > { %v3022_v54 = vsub.f32 %v2990_v27, %v3006_v32  ;;  %v8102_v58 = vadd.f32 %v8063_v40, %v3156_v39  ;;  %v3116_v5 = vmul.f32 %v6309_v33, %v3052_v8  ;;  %v3007_v52 = vmul.f32 %v8083_v25, %v8083_v25 }
 0x682   : > { %v3085_v48 = vadd.f32 1e-05, %v3037_v23  ;;  %v2867_v47 = vpop.xlane.xlu1 %2866  ;;  %v2961_v38 = vpop.xlane.xlu0 %2960  ;;  %v8099_v46 = vadd.f32 %v8070_v22, %v3157_v53  ;;  %v3115_v35 = vmul.f32 %v6309_v33, %v3051_v12  ;;  %v3055_v39 = vsub.f32 %v7831_v61, %v8038_v36  ;;  %v6088_v53 = vld [vmem:[#allocation13 + $0x64] ss:$8 sps:$4 sm:$0xff]  }
 0x683   : > { %9016 = vst [vmem:[#allocation21_spill] sm:$0xff] %v8102_v58  ;;  %v3038_v13 = vmax.f32 %v3022_v54, 0.0  ;;  %v8104_v24 = vmul.f32 0.00390625, %v2867_v47  ;;  %v2991_v30 = vmul.f32 0.00390625, %v2961_v38  ;;  %v3229_v32 = vpack.c.bf16 %v8102_v58, %v8096_v51  ;;  %v6091_v54 = vld [vmem:[#allocation13 + $0x164] ss:$8 sps:$4 sm:$0xff]  }
 0x684   : > { %9015 = vst [vmem:[#allocation20_spill] sm:$0xff] %v8099_v46  ;;  %v6311_v50 = vpop.eup %6310  ;;  %6316 = vrsqrt.f32 %v3085_v48  ;;  %v3230_v2 = vpack.c.bf16 %v8099_v46, %v8093_v4  ;;  %v3056_v27 = vsub.f32 %v7838_v28, %v8038_v36  ;;  %v3159_v33 = vmul.f32 %v8060_v55, %v3116_v5 }
 0x685   : > { %v3086_v8 = vadd.f32 1e-05, %v3038_v13  ;;  %v3023_v23 = vsub.f32 %v2991_v30, %v3007_v52  ;;  %v3008_v48 = vmul.f32 %v8104_v24, %v8104_v24  ;;  %v3118_v12 = vmul.f32 %v6311_v50, %v3054_v63  ;;  %v6086_v52 = vld [vmem:[#allocation13 + $0x60] ss:$8 sps:$4 sm:$0xff]  }
 0x686   : > { %3683 = vmatprep.mubr.bf16.mxu0 %v3230_v2  ;;  %3796 = vmatprep.mubr.bf16.mxu1 %v3230_v2  ;;  %v2964_v47 = vpop.xlane.xlu1 %2963  ;;  %v2870_v38 = vpop.xlane.xlu0 %2869  ;;  %v3117_v36 = vmul.f32 %v6311_v50, %v3053_v0  ;;  %v3158_v13 = vmul.f32 %v8055_v3, %v3115_v35  ;;  %v3057_v63 = vsub.f32 %v7849_v29, %v8042_v42 }
 0x687   : > { %6318 = vrsqrt.f32 %v3086_v8  ;;  %v3039_v46 = vmax.f32 %v3023_v23, 0.0  ;;  %v2992_v61 = vmul.f32 0.00390625, %v2964_v47  ;;  %3797 = vmatmul.mubr.bf16.vlgmr.msra.gmra.mxu1 %v3229_v32  ;;  %v8119_v58 = vmul.f32 0.00390625, %v2870_v38  ;;  %3684 = vmatmul.mubr.bf16.vlgmr.msra.gmra.mxu0 %v3229_v32  ;;  %v6089_v23 = vld [vmem:[#allocation13 + $0x160] ss:$8 sps:$4 sm:$0xff]  }
 0x688   : > { %v3161_v28 = vmul.f32 %v8060_v55, %v3118_v12  ;;  %4370 = vmatpush1.bf16.msra.mxu0 %v6080_v60  ;;  %4483 = vmatpush1.bf16.msra.mxu1 %v6083_v9  ;;  %v6313_v30 = vpop.eup %6312  ;;  %v3058_v5 = vsub.f32 %v7856_v34, %v8042_v42  ;;  %v6094_v32 = vld [vmem:[#allocation13 + $0x54] ss:$8 sps:$4 sm:$0xff]   ;;  %v8130_v35 = vadd.f32 %v8070_v22, %v3159_v33 }
 0x689   : > { %v3087_v2 = vadd.f32 1e-05, %v3039_v46  ;;  %v3024_v8 = vsub.f32 %v2992_v61, %v3008_v48  ;;  %4371 = vmatprep.subr.bf16.mxu0 %v6088_v53  ;;  %4484 = vmatprep.subr.bf16.mxu1 %v6091_v54  ;;  %v3009_v0 = vmul.f32 %v8119_v58, %v8119_v58  ;;  %v3160_v29 = vmul.f32 %v8055_v3, %v3117_v36  ;;  %v6097_v53 = vld [vmem:[#allocation13 + $0x154] ss:$8 sps:$4 sm:$0xff]  }
 0x68a   : > { %v2873_v47 = vpop.xlane.xlu1 %2872  ;;  %v2967_v50 = vpop.xlane.xlu0 %2966  ;;  %v8133_v60 = vadd.f32 %v8070_v22, %v3161_v28  ;;  %v8139_v9 = vadd.f32 %v8063_v40, %v3158_v13  ;;  %v3120_v12 = vmul.f32 %v6313_v30, %v3056_v27  ;;  %v3119_v36 = vmul.f32 %v6313_v30, %v3055_v39  ;;  %v6092_v13 = vld [vmem:[#allocation13 + $0x50] ss:$8 sps:$4 sm:$0xff]   ;;  %v6103_v30 = vld [vmem:[#allocation13 + $0x144] ss:$8 sps:$4 sm:$0xff]  }
 0x68b   : > { %v3040_v34 = vmax.f32 %v3024_v8, 0.0  ;;  %v8136_v42 = vmul.f32 0.00390625, %v2873_v47  ;;  %v2993_v46 = vmul.f32 0.00390625, %v2967_v50  ;;  %6320 = vrsqrt.f32 %v3087_v2  ;;  %v6095_v8 = vld [vmem:[#allocation13 + $0x150] ss:$8 sps:$4 sm:$0xff]  }
 0x68c   : > { %9017 = vst [vmem:[#allocation22_spill] sm:$0xff] %v8133_v60  ;;  %v6315_v54 = vpop.eup %6314  ;;  %v3232_v48 = vpack.c.bf16 %v8133_v60, %v8130_v35  ;;  %v8144_v38 = vadd.f32 %v8063_v40, %v3160_v29  ;;  %4372 = vmatpush1.bf16.msra.mxu0 %v6086_v52  ;;  %4485 = vmatpush1.bf16.msra.mxu1 %v6089_v23  ;;  %v6100_v29 = vld [vmem:[#allocation13 + $0x44] ss:$8 sps:$4 sm:$0xff]  }
 0x68d   : > { %v3088_v61 = vadd.f32 1e-05, %v3040_v34  ;;  %v3025_v28 = vsub.f32 %v2993_v46, %v3009_v0  ;;  %4373 = vmatprep.subr.bf16.mxu0 %v6094_v32  ;;  %v3010_v2 = vmul.f32 %v8136_v42, %v8136_v42  ;;  %v3122_v50 = vmul.f32 %v6315_v54, %v3058_v5  ;;  %4486 = vmatprep.subr.bf16.mxu1 %v6097_v53  ;;  %v6098_v53 = vld [vmem:[#allocation13 + $0x40] ss:$8 sps:$4 sm:$0xff]  }
 0x68e   : > { %3693 = vmatprep.mubr.bf16.mxu0 %v3232_v48  ;;  %3806 = vmatprep.mubr.bf16.mxu1 %v3232_v48  ;;  %v2970_v47 = vpop.xlane.xlu1 %2969  ;;  %v3231_v27 = vpack.c.bf16 %v8144_v38, %v8139_v9  ;;  %v2876_v52 = vpop.xlane.xlu0 %2875  ;;  %v3163_v23 = vmul.f32 %v8060_v55, %v3120_v12  ;;  %v3121_v46 = vmul.f32 %v6315_v54, %v3057_v63 }
 0x68f   : > { %6322 = vrsqrt.f32 %v3088_v61  ;;  %v3041_v34 = vmax.f32 %v3025_v28, 0.0  ;;  %v2994_v0 = vmul.f32 0.00390625, %v2970_v47  ;;  %v8152_v39 = vmul.f32 0.00390625, %v2876_v52  ;;  %v6101_v47 = vld [vmem:[#allocation13 + $0x140] ss:$8 sps:$4 sm:$0xff]  }
 0x690   : > { %3694 = vmatmul.mubr.bf16.gmra.mxu0 %v3231_v27  ;;  %3807 = vmatmul.mubr.bf16.gmra.mxu1 %v3231_v27  ;;  %v3165_v32 = vmul.f32 %v8060_v55, %v3122_v50  ;;  %v3060_v33 = vsub.f32 %v7874_v49, %v8057_v15  ;;  %v8163_v63 = vadd.f32 %v8070_v22, %v3163_v23  ;;  %v6106_v50 = vld [vmem:[#allocation13 + $0x34] ss:$8 sps:$4 sm:$0xff]  }
 0x691   : > { %v6317_v48 = vpop.eup %6316  ;;  %v3089_v61 = vadd.f32 1e-05, %v3041_v34  ;;  %v3026_v28 = vsub.f32 %v2994_v0, %v3010_v2  ;;  %4374 = vmatpush1.bf16.msra.mxu0 %v6092_v13  ;;  %4487 = vmatpush1.bf16.msra.mxu1 %v6095_v8  ;;  %v3011_v27 = vmul.f32 %v8152_v39, %v8152_v39  ;;  %v3162_v49 = vmul.f32 %v8055_v3, %v3119_v36  ;;  %v6109_v34 = vld [vmem:[#allocation13 + $0x134] ss:$8 sps:$4 sm:$0xff]  }
 0x692   : > { %v2973_v12 = vpop.xlane.xlu0 %2972  ;;  %v2879_v52 = vpop.xlane.xlu1 %2878  ;;  %9018 = vst [vmem:[#allocation23_spill] sm:$0xff] %v8163_v63  ;;  %v8166_v54 = vadd.f32 %v8070_v22, %v3165_v32  ;;  %4375 = vmatprep.subr.bf16.mxu0 %v6100_v29  ;;  %4488 = vmatprep.subr.bf16.mxu1 %v6103_v30  ;;  %v3062_v5 = vsub.f32 %v7892_v20, %v8067_v56  ;;  %v6104_v30 = vld [vmem:[#allocation13 + $0x30] ss:$8 sps:$4 sm:$0xff]  }
 0x693   : > { %6324 = vrsqrt.f32 %v3089_v61  ;;  %v3042_v13 = vmax.f32 %v3026_v28, 0.0  ;;  %v2995_v8 = vmul.f32 0.00390625, %v2973_v12  ;;  %v8169_v2 = vmul.f32 0.00390625, %v2879_v52  ;;  %v6107_v12 = vld [vmem:[#allocation13 + $0x130] ss:$8 sps:$4 sm:$0xff]  }
 0x694   : > { %9019 = vst [vmem:[#allocation24_spill] sm:$0xff] %v8166_v54  ;;  %v6319_v0 = vpop.eup %6318  ;;  %v3234_v23 = vpack.c.bf16 %v8166_v54, %v8163_v63  ;;  %v3164_v32 = vmul.f32 %v8055_v3, %v3121_v46  ;;  %v3124_v60 = vmul.f32 %v6317_v48, %v3060_v33  ;;  %v8179_v28 = vadd.f32 %v8063_v40, %v3162_v49 }
 0x695   : > { %v3090_v29 = vadd.f32 1e-05, %v3042_v13  ;;  %v3027_v61 = vsub.f32 %v2995_v8, %v3011_v27  ;;  %4376 = vmatpush1.bf16.msra.mxu0 %v6098_v53  ;;  %4489 = vmatpush1.bf16.msra.mxu1 %v6101_v47  ;;  %v3012_v33 = vmul.f32 %v8169_v2, %v8169_v2  ;;  %v3126_v36 = vmul.f32 %v6319_v0, %v3062_v5  ;;  %v6112_v13 = vld [vmem:[#allocation13 + $0x24] ss:$8 sps:$4 sm:$0xff]  }
 0x696   : > { %3703 = vmatprep.mubr.bf16.mxu0 %v3234_v23  ;;  %3816 = vmatprep.mubr.bf16.mxu1 %v3234_v23  ;;  %v8182_v20 = vadd.f32 %v8063_v40, %v3164_v32  ;;  %v2976_v46 = vpop.xlane.xlu1 %2975  ;;  %v2882_v52 = vpop.xlane.xlu0 %2881  ;;  %v6115_v53 = vld [vmem:[#allocation13 + $0x124] ss:$8 sps:$4 sm:$0xff]   ;;  %v3167_v23 = vmul.f32 %v8060_v55, %v3124_v60  ;;  %v9020_v54 = vsub.f32 %v7867_v43, %v8057_v15 }
 0x697   : > { %6326 = vrsqrt.f32 %v3090_v29  ;;  %v3043_v27 = vmax.f32 %v3027_v61, 0.0  ;;  %v2996_v49 = vmul.f32 0.00390625, %v2976_v46  ;;  %v8186_v8 = vmul.f32 0.00390625, %v2882_v52  ;;  %4377 = vmatprep.subr.bf16.mxu0 %v6106_v50  ;;  %4490 = vmatprep.subr.bf16.mxu1 %v6109_v34  ;;  %v6110_v46 = vld [vmem:[#allocation13 + $0x20] ss:$8 sps:$4 sm:$0xff]  }
 0x698   : > { %v3233_v47 = vpack.c.bf16 %v8182_v20, %v8179_v28  ;;  %v3169_v32 = vmul.f32 %v8060_v55, %v3126_v36  ;;  %v3123_v5 = vmul.f32 %v6317_v48, %v9020_v54  ;;  %v6321_v63 = vpop.eup %6320  ;;  %v3064_v29 = vsub.f32 %v7910_v21, %v8083_v25  ;;  %v6113_v52 = vld [vmem:[#allocation13 + $0x120] ss:$8 sps:$4 sm:$0xff]  }
 0x699   : > { %v3065_v50 = vsub.f32 %v7921_v16, %v8104_v24  ;;  %v3091_v34 = vadd.f32 1e-05, %v3043_v27  ;;  %v3028_v61 = vsub.f32 %v2996_v49, %v3012_v33  ;;  %4378 = vmatpush1.bf16.msra.mxu0 %v6104_v30  ;;  %4491 = vmatpush1.bf16.msra.mxu1 %v6107_v12  ;;  %v3013_v60 = vmul.f32 %v8186_v8, %v8186_v8  ;;  %v6118_v16 = vld [vmem:[#allocation13 + $0x14] ss:$8 sps:$4 sm:$0xff]  }
 0x69a   : > { %3704 = vmatmul.mubr.bf16.gmra.mxu0 %v3233_v47  ;;  %3817 = vmatmul.mubr.bf16.gmra.mxu1 %v3233_v47  ;;  %v2979_v43 = vpop.xlane.xlu0 %2978  ;;  %v2885_v15 = vpop.xlane.xlu1 %2884  ;;  %v8202_v48 = vadd.f32 %v8070_v22, %v3167_v23  ;;  %v8205_v21 = vadd.f32 %v8070_v22, %v3169_v32  ;;  %v6121_v12 = vld [vmem:[#allocation13 + $0x114] ss:$8 sps:$4 sm:$0xff]   ;;  %v9021_v49 = vsub.f32 %v7885_v26, %v8067_v56 }
 0x69b   : > { %6328 = vrsqrt.f32 %v3091_v34  ;;  %v3044_v54 = vmax.f32 %v3028_v61, 0.0  ;;  %v2997_v36 = vmul.f32 0.00390625, %v2979_v43  ;;  %v8207_v30 = vmul.f32 0.00390625, %v2885_v15  ;;  %4379 = vmatprep.subr.bf16.mxu0 %v6112_v13  ;;  %4492 = vmatprep.subr.bf16.mxu1 %v6115_v53  ;;  %v6116_v43 = vld [vmem:[#allocation13 + $0x10] ss:$8 sps:$4 sm:$0xff]  }
 0x69c   : > { %v6323_v33 = vpop.eup %6322  ;;  %v3236_v27 = vpack.c.bf16 %v8205_v21, %v8202_v48  ;;  %v3125_v47 = vmul.f32 %v6319_v0, %v9021_v49  ;;  %v3166_v23 = vmul.f32 %v8055_v3, %v3123_v5  ;;  %v3128_v32 = vmul.f32 %v6321_v63, %v3064_v29  ;;  %v6119_v15 = vld [vmem:[#allocation13 + $0x110] ss:$8 sps:$4 sm:$0xff]  }
 0x69d   : > { %v3066_v34 = vsub.f32 %v7928_v57, %v8104_v24  ;;  %v3068_v61 = vsub.f32 %v7944_v37, %v8119_v58  ;;  %v3092_v13 = vadd.f32 1e-05, %v3044_v54  ;;  %v3029_v53 = vsub.f32 %v2997_v36, %v3013_v60  ;;  %4380 = vmatpush1.bf16.msra.mxu0 %v6110_v46  ;;  %4493 = vmatpush1.bf16.msra.mxu1 %v6113_v52  ;;  %v6124_v24 = vld [vmem:[#allocation13 + $0x4] ss:$8 sps:$4 sm:$0xff]  }
 0x69e   : > { %3713 = vmatprep.mubr.bf16.mxu0 %v3236_v27  ;;  %3826 = vmatprep.mubr.bf16.mxu1 %v3236_v27  ;;  %v3168_v26 = vmul.f32 %v8055_v3, %v3125_v47  ;;  %v8221_v56 = vadd.f32 %v8063_v40, %v3166_v23  ;;  %v3014_v0 = vmul.f32 %v8207_v30, %v8207_v30  ;;  %v2982_v57 = vpop.xlane.xlu1 %2981  ;;  %v6127_v46 = vld [vmem:[#allocation13 + $0x104] ss:$8 sps:$4 sm:$0xff]  }
 0x69f   : > { %6330 = vrsqrt.f32 %v3092_v13  ;;  %v3045_v37 = vmax.f32 %v3029_v53, 0.0  ;;  %v2998_v5 = vmul.f32 0.00390625, %v2982_v57  ;;  %v3130_v29 = vmul.f32 %v6323_v33, %v3066_v34  ;;  %4381 = vmatprep.subr.bf16.mxu0 %v6118_v16  ;;  %4494 = vmatprep.subr.bf16.mxu1 %v6121_v12  ;;  %v6122_v16 = vld [vmem:[#allocation13] ss:$8 sps:$4 sm:$0xff]  }
 0x6a0   : > { %v6325_v52 = vpop.eup %6324  ;;  %v8226_v60 = vadd.f32 %v8063_v40, %v3168_v26  ;;  %v3171_v54 = vmul.f32 %v8060_v55, %v3128_v32  ;;  %v9022_v36 = vsub.f32 %v7903_v7, %v8083_v25  ;;  %v3129_v49 = vmul.f32 %v6323_v33, %v3065_v50  ;;  %v6125_v12 = vld [vmem:[#allocation13 + $0x100] ss:$8 sps:$4 sm:$0xff]   ;;  %v6130_v25 = vld [vmem:[#allocation13 + $0xf4] ss:$8 sps:$4 sm:$0xff]  }
 0x6a1   : > { %v3093_v47 = vadd.f32 1e-05, %v3045_v37  ;;  %v3030_v23 = vsub.f32 %v2998_v5, %v3014_v0  ;;  %v3173_v13 = vmul.f32 %v8060_v55, %v3130_v29  ;;  %v3132_v53 = vmul.f32 %v6325_v52, %v3068_v61  ;;  %4382 = vmatpush1.bf16.msra.mxu0 %v6116_v43  ;;  %4495 = vmatpush1.bf16.msra.mxu1 %v6119_v15  ;;  %v6128_v29 = vld [vmem:[#allocation13 + $0xf0] ss:$8 sps:$4 sm:$0xff]  }
 0x6a2   : > { %v3127_v27 = vmul.f32 %v6321_v63, %v9022_v36  ;;  %v3070_v34 = vsub.f32 %v7960_v11, %v8136_v42  ;;  %v3235_v32 = vpack.c.bf16 %v8226_v60, %v8221_v56  ;;  %v3172_v7 = vmul.f32 %v8055_v3, %v3129_v49  ;;  %4383 = vmatprep.subr.bf16.mxu0 %v6124_v24  ;;  %v6133_v63 = vld [vmem:[#allocation13 + $0x1f4] ss:$8 sps:$4 sm:$0xff]  }
 0x6a3   : > { %6332 = vrsqrt.f32 %v3093_v47  ;;  %v3046_v50 = vmax.f32 %v3030_v23, 0.0  ;;  %v8240_v33 = vadd.f32 %v8070_v22, %v3171_v54  ;;  %v8243_v61 = vadd.f32 %v8070_v22, %v3173_v13  ;;  %4496 = vmatprep.subr.bf16.mxu1 %v6127_v46  ;;  %v6131_v46 = vld [vmem:[#allocation13 + $0x1f0] ss:$8 sps:$4 sm:$0xff]   ;;  %v6139_v54 = vld [vmem:[#allocation13 + $0x1e4] ss:$8 sps:$4 sm:$0xff]  }
 0x6a4   : > { %v3170_v26 = vmul.f32 %v8055_v3, %v3127_v27  ;;  %v6327_v11 = vpop.eup %6326  ;;  %v3067_v43 = vsub.f32 %v7937_v17, %v8119_v58  ;;  %v3069_v15 = vsub.f32 %v7953_v6, %v8136_v42  ;;  %3714 = vmatmul.mubr.bf16.gmra.mxu0 %v3235_v32  ;;  %3827 = vmatmul.mubr.bf16.gmra.mxu1 %v3235_v32  ;;  %v6136_v42 = vld [vmem:[#allocation13 + $0xe4] ss:$8 sps:$4 sm:$0xff]  }
 0x6a5   : > { %v8250_v0 = vadd.f32 %v8063_v40, %v3172_v7  ;;  %v3094_v57 = vadd.f32 1e-05, %v3046_v50  ;;  %v3238_v24 = vpack.c.bf16 %v8243_v61, %v8240_v33  ;;  %v3134_v37 = vmul.f32 %v6327_v11, %v3070_v34  ;;  %4384 = vmatpush1.bf16.msra.mxu0 %v6122_v16  ;;  %4497 = vmatpush1.bf16.msra.mxu1 %v6125_v12  ;;  %v6134_v16 = vld [vmem:[#allocation13 + $0xe0] ss:$8 sps:$4 sm:$0xff]   ;;  %v6142_v7 = vld [vmem:[#allocation13 + $0xd4] ss:$8 sps:$4 sm:$0xff]  }
 0x6a6   : > { %v3175_v5 = vmul.f32 %v8060_v55, %v3132_v53  ;;  %v8256_v17 = vadd.f32 %v8063_v40, %v3170_v26  ;;  %v3131_v6 = vmul.f32 %v6325_v52, %v3067_v43  ;;  %v3133_v58 = vmul.f32 %v6327_v11, %v3069_v15  ;;  %4385 = vmatprep.subr.bf16.mxu0 %v6130_v25  ;;  %v6137_v12 = vld [vmem:[#allocation13 + $0x1e0] ss:$8 sps:$4 sm:$0xff]   ;;  %v6145_v25 = vld [vmem:[#allocation13 + $0x1d4] ss:$8 sps:$4 sm:$0xff]  }
 0x6a7   : > { %4498 = vmatprep.subr.bf16.mxu1 %v6133_v63  ;;  %v3072_v36 = vsub.f32 %v7976_v45, %v8152_v39  ;;  %6334 = vrsqrt.f32 %v3094_v57  ;;  %3723 = vmatprep.mubr.bf16.mxu0 %v3238_v24  ;;  %v3177_v27 = vmul.f32 %v8060_v55, %v3134_v37  ;;  %v3073_v34 = vsub.f32 %v7983_v14, %v8169_v2  ;;  %v6140_v57 = vld [vmem:[#allocation13 + $0xd0] ss:$8 sps:$4 sm:$0xff]   ;;  %v6148_v37 = vld [vmem:[#allocation13 + $0xc4] ss:$8 sps:$4 sm:$0xff]  }
 0x6a8   : > { %3836 = vmatprep.mubr.bf16.mxu1 %v3238_v24  ;;  %v6329_v49 = vpop.eup %6328  ;;  %v3237_v47 = vpack.c.bf16 %v8250_v0, %v8256_v17  ;;  %v3176_v23 = vmul.f32 %v8055_v3, %v3133_v58  ;;  %v8265_v52 = vadd.f32 %v8070_v22, %v3175_v5  ;;  %v3174_v45 = vmul.f32 %v8055_v3, %v3131_v6  ;;  %v6143_v24 = vld [vmem:[#allocation13 + $0x1d0] ss:$8 sps:$4 sm:$0xff]  }
 0x6a9   : > { %v8268_v13 = vadd.f32 %v8070_v22, %v3177_v27  ;;  %v3136_v53 = vmul.f32 %v6329_v49, %v3072_v36  ;;  %4386 = vmatpush2.bf16.msra.mxu0 %v6128_v29  ;;  %4499 = vmatpush2.bf16.msra.mxu1 %v6131_v46  ;;  %v3074_v32 = vsub.f32 %v7990_v62, %v8169_v2  ;;  %v6151_v36 = vld [vmem:[#allocation13 + $0x1c4] ss:$8 sps:$4 sm:$0xff]  }
 0x6aa   : > { %4387 = vmatprep.subr.bf16.mxu0 %v6136_v42  ;;  %4500 = vmatprep.subr.bf16.mxu1 %v6139_v54  ;;  %v3071_v50 = vsub.f32 %v7969_v10, %v8152_v39  ;;  %v8280_v11 = vadd.f32 %v8063_v40, %v3176_v23  ;;  %v8284_v2 = vadd.f32 %v8063_v40, %v3174_v45  ;;  %v6146_v54 = vld [vmem:[#allocation13 + $0xc0] ss:$8 sps:$4 sm:$0xff]  }
 0x6ab   : > { %v3240_v26 = vpack.c.bf16 %v8268_v13, %v8265_v52  ;;  %v3179_v43 = vmul.f32 %v8060_v55, %v3136_v53  ;;  %v3076_v10 = vsub.f32 %v8004_v31, %v8186_v8  ;;  %v3077_v27 = vsub.f32 %v8013_v18, %v8207_v30  ;;  %v6149_v23 = vld [vmem:[#allocation13 + $0x1c0] ss:$8 sps:$4 sm:$0xff]   ;;  %v6154_v53 = vld [vmem:[#allocation13 + $0xb4] ss:$8 sps:$4 sm:$0xff]  }
 0x6ac   : > { %v6331_v63 = vpop.eup %6330  ;;  %3724 = vmatmul.mubr.bf16.gmra.mxu0 %v3237_v47  ;;  %3837 = vmatmul.mubr.bf16.gmra.mxu1 %v3237_v47  ;;  %v3135_v15 = vmul.f32 %v6329_v49, %v3071_v50  ;;  %v3239_v29 = vpack.c.bf16 %v8280_v11, %v8284_v2  ;;  %v3078_v49 = vsub.f32 %v8016_v1, %v8207_v30 }
 0x6ad   : > { %3733 = vmatprep.mubr.bf16.mxu0 %v3240_v26  ;;  %3846 = vmatprep.mubr.bf16.mxu1 %v3240_v26  ;;  %v3138_v14 = vmul.f32 %v6331_v63, %v3074_v32  ;;  %v3137_v62 = vmul.f32 %v6331_v63, %v3073_v34  ;;  %v8293_v6 = vadd.f32 %v8070_v22, %v3179_v43  ;;  %v6157_v34 = vld [vmem:[#allocation13 + $0x1b4] ss:$8 sps:$4 sm:$0xff]  }
 0x6ae   : > { %4388 = vmatpush2.bf16.msra.mxu0 %v6134_v16  ;;  %4501 = vmatpush2.bf16.msra.mxu1 %v6137_v12  ;;  %v3178_v31 = vmul.f32 %v8055_v3, %v3135_v15  ;;  %v3075_v16 = vsub.f32 %v7997_v19, %v8186_v8  ;;  %v6155_v8 = vld [vmem:[#allocation13 + $0x1b0] ss:$8 sps:$4 sm:$0xff]  }
 0x6af   : > { %v3181_v39 = vmul.f32 %v8060_v55, %v3138_v14  ;;  %4389 = vmatprep.subr.bf16.mxu0 %v6142_v7  ;;  %4502 = vmatprep.subr.bf16.mxu1 %v6145_v25  ;;  %v3180_v46 = vmul.f32 %v8055_v3, %v3137_v62  ;;  %v6152_v7 = vld [vmem:[#allocation13 + $0xb0] ss:$8 sps:$4 sm:$0xff]  }
 0x6b0   : > { %v6333_v5 = vpop.eup %6332  ;;  %v8312_v32 = vadd.f32 %v8063_v40, %v3178_v31  ;;  %v6175_v31 = vld [vmem:[#allocation13 + $0x184] ss:$8 sps:$4 sm:$0xff]  }
 0x6b1   : > { %v8296_v58 = vadd.f32 %v8070_v22, %v3181_v39  ;;  %v3140_v42 = vmul.f32 %v6333_v5, %v3076_v10  ;;  %v8308_v12 = vadd.f32 %v8063_v40, %v3180_v46  ;;  %v3139_v26 = vmul.f32 %v6333_v5, %v3075_v16  ;;  %v6163_v10 = vld [vmem:[#allocation13 + $0x1a4] ss:$8 sps:$4 sm:$0xff]   ;;  %v6164_v39 = vld [vmem:[#allocation13 + $0x90] ss:$8 sps:$4 sm:$0xff]  }
 0x6b2   : > { %4390 = vmatpush2.bf16.msra.mxu0 %v6140_v57  ;;  %4503 = vmatpush2.bf16.msra.mxu1 %v6143_v24  ;;  %v6160_v57 = vld [vmem:[#allocation13 + $0xa4] ss:$8 sps:$4 sm:$0xff]   ;;  %v6161_v24 = vld [vmem:[#allocation13 + $0x1a0] ss:$8 sps:$4 sm:$0xff]   ;;  %v6167_v5 = vld [vmem:[#allocation13 + $0x190] ss:$8 sps:$4 sm:$0xff]  }
 0x6b3   : > { %v3242_v47 = vpack.c.bf16 %v8296_v58, %v8293_v6  ;;  %4391 = vmatprep.subr.bf16.mxu0 %v6148_v37  ;;  %v3183_v1 = vmul.f32 %v8060_v55, %v3140_v42  ;;  %4504 = vmatprep.subr.bf16.mxu1 %v6151_v36  ;;  %v3241_v25 = vpack.c.bf16 %v8308_v12, %v8312_v32  ;;  %v6166_v37 = vld [vmem:[#allocation13 + $0x94] ss:$8 sps:$4 sm:$0xff]   ;;  %v6172_v46 = vld [vmem:[#allocation13 + $0x84] ss:$8 sps:$4 sm:$0xff]   ;;  %v6173_v42 = vld [vmem:[#allocation13 + $0x180] ss:$8 sps:$4 sm:$0xff]  }
 0x6b4   : > { %v6335_v45 = vpop.eup %6334  ;;  %3734 = vmatmul.mubr.bf16.gmra.mxu0 %v3239_v29  ;;  %3847 = vmatmul.mubr.bf16.gmra.mxu1 %v3239_v29  ;;  %v3182_v43 = vmul.f32 %v8055_v3, %v3139_v26  ;;  %v6169_v29 = vld [vmem:[#allocation13 + $0x194] ss:$8 sps:$4 sm:$0xff]  }
 0x6b5   : > { %3743 = vmatprep.mubr.bf16.mxu0 %v3242_v47  ;;  %3856 = vmatprep.mubr.bf16.mxu1 %v3242_v47  ;;  %v3142_v18 = vmul.f32 %v6335_v45, %v3078_v49  ;;  %v3141_v30 = vmul.f32 %v6335_v45, %v3077_v27  ;;  %v8319_v50 = vadd.f32 %v8070_v22, %v3183_v1  ;;  %v9023_v47 = vsub.s32 3, %v7068_v59 }
 0x6b6   : > { %4392 = vmatpush2.bf16.msra.mxu0 %v6146_v54  ;;  %4505 = vmatpush2.bf16.msra.mxu1 %v6149_v23  ;;  %v8331_v15 = vadd.f32 %v8063_v40, %v3182_v43  ;;  %v3309_v54 = vld [vmem:[%s8948_s9] sm:$0xf]  ;;  %v9024_v45 = vsub.s32 2, %v7068_v59 }
 0x6b7   : > { %v3185_v19 = vmul.f32 %v8060_v55, %v3142_v18  ;;  %4393 = vmatprep.subr.bf16.mxu0 %v6154_v53  ;;  %v3184_v63 = vmul.f32 %v8055_v3, %v3141_v30  ;;  %4506 = vmatprep.subr.bf16.mxu1 %v6157_v34  ;;  %v6158_v3 = vld [vmem:[#allocation13 + $0xa0] ss:$8 sps:$4 sm:$0xff]   ;;  %v8339_v49 = vrot.slane %v3309_v54, %v7106_v44 }
 0x6b8   : > { %v8343_v23 = vrot.slane %v3309_v54, %v9023_v47  ;;  %v8346_v53 = vrot.slane %v3309_v54, %v7099_v41  ;;  %v8350_v16 = vrot.slane %v3309_v54, %v9024_v45 }
 0x6b9   : > { %v8322_v14 = vadd.f32 %v8070_v22, %v3185_v19  ;;  %v8328_v62 = vadd.f32 %v8063_v40, %v3184_v63  ;;  %v6170_v40 = vld [vmem:[#allocation13 + $0x80] ss:$8 sps:$4 sm:$0xff]  }
 0x6ba   : > { %4394 = vmatpush2.bf16.msra.mxu0 %v6152_v7  ;;  %4507 = vmatpush2.bf16.msra.mxu1 %v6155_v8 }
 0x6bb   : > { %v3244_v55 = vpack.c.bf16 %v8322_v14, %v8319_v50  ;;  %v3243_v22 = vpack.c.bf16 %v8328_v62, %v8331_v15  ;;  %4395 = vmatprep.subr.bf16.mxu0 %v6160_v57  ;;  %4508 = vmatprep.subr.bf16.mxu1 %v6163_v10 }
 0x6bc   : > { %3744 = vmatmul.mubr.bf16.gmra.mxu0 %v3241_v25  ;;  %3857 = vmatmul.mubr.bf16.gmra.mxu1 %v3241_v25 }
 0x6bd   : > { %3753 = vmatprep.mubr.bf16.mxu0 %v3244_v55  ;;  %3866 = vmatprep.mubr.bf16.mxu1 %v3244_v55 }
 0x6be   : > { %4396 = vmatpush2.bf16.msra.mxu0 %v6158_v3  ;;  %4509 = vmatpush2.bf16.msra.mxu1 %v6161_v24 }
 0x6bf   : > { %4397 = vmatprep.subr.bf16.mxu0 %v6166_v37  ;;  %4510 = vmatprep.subr.bf16.mxu1 %v6169_v29 }
 0x6c2   : > { %4398 = vmatpush2.bf16.msra.mxu0 %v6164_v39  ;;  %4511 = vmatpush2.bf16.msra.mxu1 %v6167_v5 }
 0x6c3   : > { %4399 = vmatprep.subr.bf16.mxu0 %v6172_v46  ;;  %4512 = vmatprep.subr.bf16.mxu1 %v6175_v31 }
 0x6c4   : > { %3754 = vmatmul.mubr.bf16.gmra.mxu0 %v3243_v22  ;;  %3867 = vmatmul.mubr.bf16.gmra.mxu1 %v3243_v22 }
 0x6c6   : > { %4400 = vmatpush2.bf16.msra.mxu0 %v6170_v40  ;;  %4513 = vmatpush2.bf16.msra.mxu1 %v6173_v42 }
 0x747   : > { %v3685_v36 = vpop.f32.mrf.mxu0  ;;  %v3798_v27 = vpop.f32.mrf.mxu1 }
 0x748   : > { %v3686_v25 = vadd.f32 %v3685_v36, %v8346_v53  ;;  %v3799_v63 = vadd.f32 %v3798_v27, %v8350_v16 }
 0x749   : > { %v3687_v34 = vpop.f32.mrf.mxu0  ;;  %v3800_v18 = vpop.f32.mrf.mxu1 }
 0x74a   : > { %v3688_v26 = vadd.f32 %v3687_v34, %v8339_v49  ;;  %v3801_v7 = vadd.f32 %v3800_v18, %v8343_v23  ;;  %v3877_v40 = vmax.f32 %v3686_v25, 0.0  ;;  %v3879_v46 = vmax.f32 %v3799_v63, 0.0 }
 0x74b   : > { %v3689_v1 = vpop.f32.mrf.mxu0  ;;  %v3802_v30 = vpop.f32.mrf.mxu1 }
 0x74c   : > { %v3690_v19 = vadd.f32 %v3689_v1, %v8346_v53  ;;  %v3803_v8 = vadd.f32 %v3802_v30, %v8350_v16  ;;  %v3878_v24 = vmax.f32 %v3688_v26, 0.0  ;;  %v3880_v10 = vmax.f32 %v3801_v7, 0.0 }
 0x74d   : > { %v3691_v43 = vpop.f32.mrf.mxu0  ;;  %v3804_v59 = vpop.f32.mrf.mxu1 }
 0x74e   : > { %v3692_v55 = vadd.f32 %v3691_v43, %v8339_v49  ;;  %v3805_v22 = vadd.f32 %v3804_v59, %v8343_v23  ;;  %v3881_v3 = vmax.f32 %v3690_v19, 0.0  ;;  %v3883_v57 = vmax.f32 %v3803_v8, 0.0 }
 0x750   : > { %v3882_v39 = vmax.f32 %v3692_v55, 0.0  ;;  %v3884_v37 = vmax.f32 %v3805_v22, 0.0  ;;  %v3695_v5 = vpop.f32.mrf.mxu0  ;;  %v3808_v29 = vpop.f32.mrf.mxu1  ;;  %v3941_v27 = vpack.c.bf16 %v3881_v3, %v3877_v40  ;;  %v3943_v47 = vpack.c.bf16 %v3883_v57, %v3879_v46 }
 0x751   : > { %v3696_v7 = vadd.f32 %v3695_v5, %v8346_v53  ;;  %v3809_v19 = vadd.f32 %v3808_v29, %v8350_v16 }
 0x752   : > { %v3942_v42 = vpack.c.bf16 %v3882_v39, %v3878_v24  ;;  %v3944_v31 = vpack.c.bf16 %v3884_v37, %v3880_v10  ;;  %v3697_v54 = vpop.f32.mrf.mxu0  ;;  %v3810_v36 = vpop.f32.mrf.mxu1 }
 0x753   : > { %v3698_v45 = vadd.f32 %v3697_v54, %v8339_v49  ;;  %v3811_v1 = vadd.f32 %v3810_v36, %v8343_v23  ;;  %v3885_v10 = vmax.f32 %v3696_v7, 0.0  ;;  %v3887_v39 = vmax.f32 %v3809_v19, 0.0 }
 0x754   : > { %v3699_v34 = vpop.f32.mrf.mxu0  ;;  %v3812_v18 = vpop.f32.mrf.mxu1  ;;  %4401 = vmatprep.mubr.bf16.mxu0 %v3942_v42  ;;  %4514 = vmatprep.mubr.bf16.mxu1 %v3944_v31 }
 0x755   : > { %v3700_v30 = vadd.f32 %v3699_v34, %v8346_v53  ;;  %v3813_v26 = vadd.f32 %v3812_v18, %v8350_v16  ;;  %4402 = vmatmul.mubr.bf16.vlgmr.msra.gmra.mxu0 %v3941_v27  ;;  %4515 = vmatmul.mubr.bf16.vlgmr.msra.gmra.mxu1 %v3943_v47  ;;  %v3886_v22 = vmax.f32 %v3698_v45, 0.0  ;;  %v3888_v3 = vmax.f32 %v3811_v1, 0.0 }
 0x756   : > { %v3701_v8 = vpop.f32.mrf.mxu0  ;;  %v3814_v25 = vpop.f32.mrf.mxu1 }
 0x757   : > { %v3702_v63 = vadd.f32 %v3701_v8, %v8339_v49  ;;  %v3815_v43 = vadd.f32 %v3814_v25, %v8343_v23  ;;  %v3889_v59 = vmax.f32 %v3700_v30, 0.0  ;;  %v3891_v55 = vmax.f32 %v3813_v26, 0.0 }
 0x759   : > { %v3890_v57 = vmax.f32 %v3702_v63, 0.0  ;;  %v3892_v24 = vmax.f32 %v3815_v43, 0.0  ;;  %v3945_v42 = vpack.c.bf16 %v3889_v59, %v3885_v10  ;;  %v3947_v29 = vpack.c.bf16 %v3891_v55, %v3887_v39 }
 0x75a   : > { %v3705_v37 = vpop.f32.mrf.mxu0  ;;  %v3818_v40 = vpop.f32.mrf.mxu1 }
 0x75b   : > { %v3946_v46 = vpack.c.bf16 %v3890_v57, %v3886_v22  ;;  %v3948_v5 = vpack.c.bf16 %v3892_v24, %v3888_v3  ;;  %v3706_v1 = vadd.f32 %v3705_v37, %v8346_v53  ;;  %v3819_v30 = vadd.f32 %v3818_v40, %v8350_v16 }
 0x75c   : > { %v3707_v31 = vpop.f32.mrf.mxu0  ;;  %v3820_v54 = vpop.f32.mrf.mxu1 }
 0x75d   : > { %4411 = vmatprep.mubr.bf16.mxu0 %v3946_v46  ;;  %4524 = vmatprep.mubr.bf16.mxu1 %v3948_v5  ;;  %v3708_v47 = vadd.f32 %v3707_v31, %v8339_v49  ;;  %v3821_v45 = vadd.f32 %v3820_v54, %v8343_v23  ;;  %v3893_v3 = vmax.f32 %v3706_v1, 0.0  ;;  %v3895_v57 = vmax.f32 %v3819_v30, 0.0 }
 0x75e   : > { %v3709_v36 = vpop.f32.mrf.mxu0  ;;  %v3822_v27 = vpop.f32.mrf.mxu1  ;;  %4412 = vmatmul.mubr.bf16.gmra.mxu0 %v3945_v42  ;;  %4525 = vmatmul.mubr.bf16.gmra.mxu1 %v3947_v29 }
 0x75f   : > { %v3710_v34 = vadd.f32 %v3709_v36, %v8346_v53  ;;  %v3823_v18 = vadd.f32 %v3822_v27, %v8350_v16  ;;  %v3894_v43 = vmax.f32 %v3708_v47, 0.0  ;;  %v3896_v59 = vmax.f32 %v3821_v45, 0.0 }
 0x760   : > { %v3711_v26 = vpop.f32.mrf.mxu0  ;;  %v3824_v7 = vpop.f32.mrf.mxu1 }
 0x761   : > { %v3712_v19 = vadd.f32 %v3711_v26, %v8339_v49  ;;  %v3825_v8 = vadd.f32 %v3824_v7, %v8343_v23  ;;  %v3897_v25 = vmax.f32 %v3710_v34, 0.0  ;;  %v3899_v63 = vmax.f32 %v3823_v18, 0.0 }
 0x763   : > { %v3898_v55 = vmax.f32 %v3712_v19, 0.0  ;;  %v3900_v22 = vmax.f32 %v3825_v8, 0.0  ;;  %v3949_v46 = vpack.c.bf16 %v3897_v25, %v3893_v3  ;;  %v3951_v40 = vpack.c.bf16 %v3899_v63, %v3895_v57 }
 0x764   : > { %v3715_v24 = vpop.f32.mrf.mxu0  ;;  %v3828_v10 = vpop.f32.mrf.mxu1 }
 0x765   : > { %v3950_v39 = vpack.c.bf16 %v3898_v55, %v3894_v43  ;;  %v3952_v37 = vpack.c.bf16 %v3900_v22, %v3896_v59  ;;  %v3716_v45 = vadd.f32 %v3715_v24, %v8346_v53  ;;  %v3829_v34 = vadd.f32 %v3828_v10, %v8350_v16 }
 0x766   : > { %v3717_v5 = vpop.f32.mrf.mxu0  ;;  %v3830_v42 = vpop.f32.mrf.mxu1 }
 0x767   : > { %4421 = vmatprep.mubr.bf16.mxu0 %v3950_v39  ;;  %4534 = vmatprep.mubr.bf16.mxu1 %v3952_v37  ;;  %v3718_v54 = vadd.f32 %v3717_v5, %v8339_v49  ;;  %v3831_v36 = vadd.f32 %v3830_v42, %v8343_v23  ;;  %v3901_v22 = vmax.f32 %v3716_v45, 0.0  ;;  %v3903_v3 = vmax.f32 %v3829_v34, 0.0 }
 0x768   : > { %v3719_v29 = vpop.f32.mrf.mxu0  ;;  %v3832_v31 = vpop.f32.mrf.mxu1  ;;  %4422 = vmatmul.mubr.bf16.gmra.mxu0 %v3949_v46  ;;  %4535 = vmatmul.mubr.bf16.gmra.mxu1 %v3951_v40 }
 0x769   : > { %v3720_v27 = vadd.f32 %v3719_v29, %v8346_v53  ;;  %v3833_v47 = vadd.f32 %v3832_v31, %v8350_v16  ;;  %v3902_v63 = vmax.f32 %v3718_v54, 0.0  ;;  %v3904_v43 = vmax.f32 %v3831_v36, 0.0 }
 0x76a   : > { %v3721_v18 = vpop.f32.mrf.mxu0  ;;  %v3834_v1 = vpop.f32.mrf.mxu1 }
 0x76b   : > { %v3722_v30 = vadd.f32 %v3721_v18, %v8339_v49  ;;  %v3835_v26 = vadd.f32 %v3834_v1, %v8343_v23  ;;  %v3905_v7 = vmax.f32 %v3720_v27, 0.0  ;;  %v3907_v19 = vmax.f32 %v3833_v47, 0.0 }
 0x76c   : > { %v3725_v8 = vpop.f32.mrf.mxu0  ;;  %v3838_v25 = vpop.f32.mrf.mxu1 }
 0x76d   : > { %v3906_v59 = vmax.f32 %v3722_v30, 0.0  ;;  %v3908_v55 = vmax.f32 %v3835_v26, 0.0  ;;  %v3953_v37 = vpack.c.bf16 %v3905_v7, %v3901_v22  ;;  %v3955_v46 = vpack.c.bf16 %v3907_v19, %v3903_v3 }
 0x76e   : > { %v3727_v57 = vpop.f32.mrf.mxu0  ;;  %v3840_v24 = vpop.f32.mrf.mxu1  ;;  %v3726_v36 = vadd.f32 %v3725_v8, %v8346_v53  ;;  %v3839_v27 = vadd.f32 %v3838_v25, %v8350_v16 }
 0x76f   : > { %v3954_v39 = vpack.c.bf16 %v3906_v59, %v3902_v63  ;;  %v3956_v10 = vpack.c.bf16 %v3908_v55, %v3904_v43  ;;  %v3728_v40 = vadd.f32 %v3727_v57, %v8339_v49  ;;  %v3841_v29 = vadd.f32 %v3840_v24, %v8343_v23 }
 0x770   : > { %v3729_v5 = vpop.f32.mrf.mxu0  ;;  %v3842_v42 = vpop.f32.mrf.mxu1  ;;  %v3909_v55 = vmax.f32 %v3726_v36, 0.0  ;;  %v3911_v8 = vmax.f32 %v3839_v27, 0.0 }
 0x771   : > { %v3730_v31 = vadd.f32 %v3729_v5, %v8346_v53  ;;  %v3843_v54 = vadd.f32 %v3842_v42, %v8350_v16  ;;  %4431 = vmatprep.mubr.bf16.mxu0 %v3954_v39  ;;  %4544 = vmatprep.mubr.bf16.mxu1 %v3956_v10  ;;  %v3910_v19 = vmax.f32 %v3728_v40, 0.0  ;;  %v3912_v63 = vmax.f32 %v3841_v29, 0.0 }
 0x772   : > { %v3731_v47 = vpop.f32.mrf.mxu0  ;;  %v3844_v45 = vpop.f32.mrf.mxu1  ;;  %4432 = vmatmul.mubr.bf16.gmra.mxu0 %v3953_v37  ;;  %4545 = vmatmul.mubr.bf16.gmra.mxu1 %v3955_v46 }
 0x773   : > { %v3732_v34 = vadd.f32 %v3731_v47, %v8339_v49  ;;  %v3845_v18 = vadd.f32 %v3844_v45, %v8343_v23  ;;  %v3913_v1 = vmax.f32 %v3730_v31, 0.0  ;;  %v3915_v30 = vmax.f32 %v3843_v54, 0.0 }
 0x774   : > { %v3735_v26 = vpop.f32.mrf.mxu0  ;;  %v3848_v7 = vpop.f32.mrf.mxu1 }
 0x775   : > { %v3914_v43 = vmax.f32 %v3732_v34, 0.0  ;;  %v3916_v59 = vmax.f32 %v3845_v18, 0.0  ;;  %v3957_v24 = vpack.c.bf16 %v3913_v1, %v3909_v55  ;;  %v3959_v39 = vpack.c.bf16 %v3915_v30, %v3911_v8 }
 0x776   : > { %v3737_v22 = vpop.f32.mrf.mxu0  ;;  %v3850_v25 = vpop.f32.mrf.mxu1  ;;  %v3736_v29 = vadd.f32 %v3735_v26, %v8346_v53  ;;  %v3849_v31 = vadd.f32 %v3848_v7, %v8350_v16 }
 0x777   : > { %v3958_v3 = vpack.c.bf16 %v3914_v43, %v3910_v19  ;;  %v3960_v57 = vpack.c.bf16 %v3916_v59, %v3912_v63  ;;  %v3738_v10 = vadd.f32 %v3737_v22, %v8339_v49  ;;  %v3851_v5 = vadd.f32 %v3850_v25, %v8343_v23 }
 0x778   : > { %v3739_v37 = vpop.f32.mrf.mxu0  ;;  %v3852_v46 = vpop.f32.mrf.mxu1  ;;  %v3917_v59 = vmax.f32 %v3736_v29, 0.0  ;;  %v3919_v26 = vmax.f32 %v3849_v31, 0.0 }
 0x779   : > { %v3740_v42 = vadd.f32 %v3739_v37, %v8346_v53  ;;  %v3853_v40 = vadd.f32 %v3852_v46, %v8350_v16  ;;  %4441 = vmatprep.mubr.bf16.mxu0 %v3958_v3  ;;  %4554 = vmatprep.mubr.bf16.mxu1 %v3960_v57  ;;  %v3918_v30 = vmax.f32 %v3738_v10, 0.0  ;;  %v3920_v19 = vmax.f32 %v3851_v5, 0.0 }
 0x77a   : > { %v3741_v54 = vpop.f32.mrf.mxu0  ;;  %v3854_v36 = vpop.f32.mrf.mxu1  ;;  %4442 = vmatmul.mubr.bf16.gmra.mxu0 %v3957_v24  ;;  %4555 = vmatmul.mubr.bf16.gmra.mxu1 %v3959_v39 }
 0x77b   : > { %v3742_v27 = vadd.f32 %v3741_v54, %v8339_v49  ;;  %v3855_v47 = vadd.f32 %v3854_v36, %v8343_v23  ;;  %v3921_v45 = vmax.f32 %v3740_v42, 0.0  ;;  %v3923_v34 = vmax.f32 %v3853_v40, 0.0 }
 0x77c   : > { %v3745_v18 = vpop.f32.mrf.mxu0  ;;  %v3858_v1 = vpop.f32.mrf.mxu1 }
 0x77d   : > { %v3922_v63 = vmax.f32 %v3742_v27, 0.0  ;;  %v3924_v43 = vmax.f32 %v3855_v47, 0.0  ;;  %v3961_v25 = vpack.c.bf16 %v3921_v45, %v3917_v59  ;;  %v3963_v3 = vpack.c.bf16 %v3923_v34, %v3919_v26 }
 0x77e   : > { %v3747_v55 = vpop.f32.mrf.mxu0  ;;  %v3860_v7 = vpop.f32.mrf.mxu1  ;;  %v3746_v5 = vadd.f32 %v3745_v18, %v8346_v53  ;;  %v3859_v42 = vadd.f32 %v3858_v1, %v8350_v16 }
 0x77f   : > { %v3962_v8 = vpack.c.bf16 %v3922_v63, %v3918_v30  ;;  %v3964_v22 = vpack.c.bf16 %v3924_v43, %v3920_v19  ;;  %v3748_v57 = vadd.f32 %v3747_v55, %v8339_v49  ;;  %v3861_v37 = vadd.f32 %v3860_v7, %v8343_v23 }
 0x780   : > { %v3749_v24 = vpop.f32.mrf.mxu0  ;;  %v3862_v39 = vpop.f32.mrf.mxu1  ;;  %v3925_v43 = vmax.f32 %v3746_v5, 0.0  ;;  %v3927_v18 = vmax.f32 %v3859_v42, 0.0 }
 0x781   : > { %v3750_v46 = vadd.f32 %v3749_v24, %v8346_v53  ;;  %v3863_v10 = vadd.f32 %v3862_v39, %v8350_v16  ;;  %4451 = vmatprep.mubr.bf16.mxu0 %v3962_v8  ;;  %4564 = vmatprep.mubr.bf16.mxu1 %v3964_v22  ;;  %v3926_v34 = vmax.f32 %v3748_v57, 0.0  ;;  %v3928_v30 = vmax.f32 %v3861_v37, 0.0 }
 0x782   : > { %v3751_v40 = vpop.f32.mrf.mxu0  ;;  %v3864_v29 = vpop.f32.mrf.mxu1  ;;  %4452 = vmatmul.mubr.bf16.gmra.mxu0 %v3961_v25  ;;  %4565 = vmatmul.mubr.bf16.gmra.mxu1 %v3963_v3 }
 0x783   : > { %v3752_v31 = vadd.f32 %v3751_v40, %v8339_v49  ;;  %v3865_v54 = vadd.f32 %v3864_v29, %v8343_v23  ;;  %v3929_v36 = vmax.f32 %v3750_v46, 0.0  ;;  %v3931_v27 = vmax.f32 %v3863_v10, 0.0 }
 0x784   : > { %v3755_v47 = vpop.f32.mrf.mxu0  ;;  %v3868_v45 = vpop.f32.mrf.mxu1 }
 0x785   : > { %v3930_v19 = vmax.f32 %v3752_v31, 0.0  ;;  %v3932_v63 = vmax.f32 %v3865_v54, 0.0  ;;  %v3965_v7 = vpack.c.bf16 %v3929_v36, %v3925_v43  ;;  %v3967_v8 = vpack.c.bf16 %v3931_v27, %v3927_v18 }
 0x786   : > { %v3757_v59 = vpop.f32.mrf.mxu0  ;;  %v3870_v1 = vpop.f32.mrf.mxu1  ;;  %v3756_v37 = vadd.f32 %v3755_v47, %v8346_v53  ;;  %v3869_v46 = vadd.f32 %v3868_v45, %v8350_v16 }
 0x787   : > { %v3966_v26 = vpack.c.bf16 %v3930_v19, %v3926_v34  ;;  %v3968_v55 = vpack.c.bf16 %v3932_v63, %v3928_v30  ;;  %v3758_v22 = vadd.f32 %v3757_v59, %v8339_v49  ;;  %v3871_v24 = vadd.f32 %v3870_v1, %v8343_v23 }
 0x788   : > { %v3759_v25 = vpop.f32.mrf.mxu0  ;;  %v3872_v3 = vpop.f32.mrf.mxu1  ;;  %v3933_v30 = vmax.f32 %v3756_v37, 0.0  ;;  %v3935_v19 = vmax.f32 %v3869_v46, 0.0 }
 0x789   : > { %v3760_v39 = vadd.f32 %v3759_v25, %v8346_v53  ;;  %v3873_v57 = vadd.f32 %v3872_v3, %v8350_v16  ;;  %4461 = vmatprep.mubr.bf16.mxu0 %v3966_v26  ;;  %4574 = vmatprep.mubr.bf16.mxu1 %v3968_v55  ;;  %v3934_v54 = vmax.f32 %v3758_v22, 0.0  ;;  %v3936_v36 = vmax.f32 %v3871_v24, 0.0 }
 0x78a   : > { %v3761_v10 = vpop.f32.mrf.mxu0  ;;  %v3874_v5 = vpop.f32.mrf.mxu1  ;;  %4462 = vmatmul.mubr.bf16.gmra.mxu0 %v3965_v7  ;;  %4575 = vmatmul.mubr.bf16.gmra.mxu1 %v3967_v8 }
 0x78b   : > { %v3762_v42 = vadd.f32 %v3761_v10, %v8339_v49  ;;  %v3875_v40 = vadd.f32 %v3874_v5, %v8343_v23  ;;  %v3937_v29 = vmax.f32 %v3760_v39, 0.0  ;;  %v3939_v31 = vmax.f32 %v3873_v57, 0.0  ;;  %v4037_v49 = vld [vmem:[%s8950_s11] sm:$0x3] }
 0x78c   : > { %v8420_v23 = vrot.slane %v4037_v49, %v7099_v41  ;;  %v8423_v45 = vrot.slane %v4037_v49, %v7106_v44 }
 0x78d   : > { %v3938_v27 = vmax.f32 %v3762_v42, 0.0  ;;  %v3940_v34 = vmax.f32 %v3875_v40, 0.0  ;;  %v3969_v47 = vpack.c.bf16 %v3937_v29, %v3933_v30  ;;  %v3971_v16 = vpack.c.bf16 %v3939_v31, %v3935_v19 }
 0x78f   : > { %v3970_v63 = vpack.c.bf16 %v3938_v27, %v3934_v54  ;;  %v3972_v53 = vpack.c.bf16 %v3940_v34, %v3936_v36  ;;  %v9025_v36 = vld [vmem:[#allocation21_spill] sm:$0xff]  ;;  %v9026_v27 = vld [vmem:[#allocation20_spill] sm:$0xff] }
 0x791   : > { %4471 = vmatprep.mubr.bf16.mxu0 %v3970_v63  ;;  %4584 = vmatprep.mubr.bf16.mxu1 %v3972_v53 }
 0x792   : > { %4472 = vmatmul.mubr.bf16.gmra.mxu0 %v3969_v47  ;;  %4585 = vmatmul.mubr.bf16.gmra.mxu1 %v3971_v16 }
 0x815   : > { %v4403_v43 = vpop.f32.mrf.mxu0  ;;  %v4516_v18 = vpop.f32.mrf.mxu1 }
 0x816   : > { %v4404_v59 = vadd.f32 %v4403_v43, %v8420_v23 }
 0x817   : > { %v4405_v1 = vpop.f32.mrf.mxu0  ;;  %v4518_v26 = vpop.f32.mrf.mxu1 }
 0x818   : > { %v4517_v55 = vadd.f32 %v4516_v18, %v4404_v59  ;;  %v4406_v7 = vadd.f32 %v4405_v1, %v8423_v45 }
 0x819   : > { %v4407_v8 = vpop.f32.mrf.mxu0  ;;  %v4520_v22 = vpop.f32.mrf.mxu1 }
 0x81a   : > { %v4519_v25 = vadd.f32 %v4518_v26, %v4406_v7  ;;  %v4408_v3 = vadd.f32 %v4407_v8, %v8420_v23  ;;  %v8429_v57 = vadd.f32 %v4517_v55, %v8096_v51 }
 0x81b   : > { %v4409_v24 = vpop.f32.mrf.mxu0  ;;  %v4522_v39 = vpop.f32.mrf.mxu1 }
 0x81c   : > { %v8432_v37 = vadd.f32 %v4519_v25, %v8093_v4  ;;  %v4521_v46 = vadd.f32 %v4520_v22, %v4408_v3  ;;  %v4410_v10 = vadd.f32 %v4409_v24, %v8423_v45  ;;  %v4693_v19 = vmul.f32 %v8429_v57, %v8429_v57 }
 0x81e   : > { %v4523_v5 = vadd.f32 %v4522_v39, %v4410_v10  ;;  %v4413_v42 = vpop.f32.mrf.mxu0  ;;  %v4526_v40 = vpop.f32.mrf.mxu1  ;;  %v4629_v29 = vadd.f32 %v8432_v37, %v8429_v57  ;;  %v4694_v31 = vmul.f32 %v8432_v37, %v8432_v37  ;;  %v8441_v51 = vadd.f32 %v4521_v46, %v9025_v36 }
 0x81f   : > { %v4414_v54 = vadd.f32 %v4413_v42, %v8420_v23 }
 0x820   : > { %v8444_v4 = vadd.f32 %v4523_v5, %v9026_v27  ;;  %v4415_v34 = vpop.f32.mrf.mxu0  ;;  %v4528_v30 = vpop.f32.mrf.mxu1  ;;  %4630 = vadd.xlane.f32.xlu0 %v4629_v29  ;;  %v4725_v43 = vadd.f32 %v4694_v31, %v4693_v19  ;;  %v4695_v8 = vmul.f32 %v8441_v51, %v8441_v51 }
 0x821   : > { %v4527_v63 = vadd.f32 %v4526_v40, %v4414_v54  ;;  %v4416_v53 = vadd.f32 %v4415_v34, %v8423_v45  ;;  %v9027_v40 = vld [vmem:[#allocation22_spill] sm:$0xff] }
 0x822   : > { %v4417_v47 = vpop.f32.mrf.mxu0  ;;  %v4530_v16 = vpop.f32.mrf.mxu1  ;;  %v4632_v49 = vadd.f32 %v8444_v4, %v8441_v51  ;;  %v4696_v18 = vmul.f32 %v8444_v4, %v8444_v4 }
 0x823   : > { %v4529_v59 = vadd.f32 %v4528_v30, %v4416_v53  ;;  %v4418_v1 = vadd.f32 %v4417_v47, %v8420_v23  ;;  %v8455_v26 = vadd.f32 %v4527_v63, %v8139_v9 }
 0x824   : > { %v4419_v55 = vpop.f32.mrf.mxu0  ;;  %v4532_v7 = vpop.f32.mrf.mxu1  ;;  %4633 = vadd.xlane.f32.xlu1 %v4632_v49  ;;  %4726 = vadd.xlane.f32.xlu0 %v4725_v43  ;;  %v4728_v24 = vadd.f32 %v4696_v18, %v4695_v8 }
 0x825   : > { %v8460_v22 = vadd.f32 %v4529_v59, %v8130_v35  ;;  %v4531_v25 = vadd.f32 %v4530_v16, %v4418_v1  ;;  %v4420_v3 = vadd.f32 %v4419_v55, %v8423_v45  ;;  %v4697_v42 = vmul.f32 %v8455_v26, %v8455_v26  ;;  %v9028_v1 = vld [vmem:[#allocation23_spill] sm:$0xff] }
 0x827   : > { %v4533_v39 = vadd.f32 %v4532_v7, %v4420_v3  ;;  %v4635_v46 = vadd.f32 %v8460_v22, %v8455_v26  ;;  %v4698_v9 = vmul.f32 %v8460_v22, %v8460_v22  ;;  %v8470_v35 = vadd.f32 %v4531_v25, %v8144_v38 }
 0x828   : > { %v4423_v10 = vpop.f32.mrf.mxu0  ;;  %v4536_v5 = vpop.f32.mrf.mxu1  ;;  %4729 = vadd.xlane.f32.xlu1 %v4728_v24 }
 0x829   : > { %v8473_v29 = vadd.f32 %v4533_v39, %v9027_v40  ;;  %v4424_v31 = vadd.f32 %v4423_v10, %v8420_v23  ;;  %4636 = vadd.xlane.f32.xlu0 %v4635_v46  ;;  %v4731_v27 = vadd.f32 %v4698_v9, %v4697_v42  ;;  %v4699_v49 = vmul.f32 %v8470_v35, %v8470_v35 }
 0x82a   : > { %v4425_v54 = vpop.f32.mrf.mxu0  ;;  %v4538_v36 = vpop.f32.mrf.mxu1 }
 0x82b   : > { %v4537_v34 = vadd.f32 %v4536_v5, %v4424_v31  ;;  %v4426_v30 = vadd.f32 %v4425_v54, %v8423_v45  ;;  %v4638_v19 = vadd.f32 %v8473_v29, %v8470_v35  ;;  %v4700_v63 = vmul.f32 %v8473_v29, %v8473_v29  ;;  %v9029_v5 = vld [vmem:[#allocation24_spill] sm:$0xff] }
 0x82c   : > { %v4427_v38 = vpop.f32.mrf.mxu0  ;;  %v4540_v53 = vpop.f32.mrf.mxu1 }
 0x82d   : > { %v4539_v47 = vadd.f32 %v4538_v36, %v4426_v30  ;;  %v4428_v16 = vadd.f32 %v4427_v38, %v8420_v23  ;;  %4639 = vadd.xlane.f32.xlu1 %v4638_v19  ;;  %4732 = vadd.xlane.f32.xlu0 %v4731_v27  ;;  %v8485_v43 = vadd.f32 %v4537_v34, %v8179_v28 }
 0x82e   : > { %v4429_v18 = vpop.f32.mrf.mxu0  ;;  %v4542_v59 = vpop.f32.mrf.mxu1  ;;  %v4734_v25 = vadd.f32 %v4700_v63, %v4699_v49 }
 0x82f   : > { %v8488_v55 = vadd.f32 %v4539_v47, %v9028_v1  ;;  %v4541_v7 = vadd.f32 %v4540_v53, %v4428_v16  ;;  %v4430_v8 = vadd.f32 %v4429_v18, %v8423_v45  ;;  %v4701_v9 = vmul.f32 %v8485_v43, %v8485_v43 }
 0x831   : > { %v4543_v3 = vadd.f32 %v4542_v59, %v4430_v8  ;;  %4735 = vadd.xlane.f32.xlu1 %v4734_v25  ;;  %v4641_v24 = vadd.f32 %v8488_v55, %v8485_v43  ;;  %v4702_v39 = vmul.f32 %v8488_v55, %v8488_v55  ;;  %v8498_v10 = vadd.f32 %v4541_v7, %v8182_v20 }
 0x832   : > { %v4433_v46 = vpop.f32.mrf.mxu0  ;;  %v4546_v28 = vpop.f32.mrf.mxu1 }
 0x833   : > { %v8501_v42 = vadd.f32 %v4543_v3, %v9029_v5  ;;  %v4434_v40 = vadd.f32 %v4433_v46, %v8420_v23  ;;  %4642 = vadd.xlane.f32.xlu0 %v4641_v24  ;;  %v4737_v36 = vadd.f32 %v4702_v39, %v4701_v9  ;;  %v4703_v47 = vmul.f32 %v8498_v10, %v8498_v10 }
 0x834   : > { %v4435_v31 = vpop.f32.mrf.mxu0  ;;  %v4548_v54 = vpop.f32.mrf.mxu1 }
 0x835   : > { %v4547_v27 = vadd.f32 %v4546_v28, %v4434_v40  ;;  %v4436_v34 = vadd.f32 %v4435_v31, %v8423_v45  ;;  %v4644_v30 = vadd.f32 %v8501_v42, %v8498_v10  ;;  %v4704_v19 = vmul.f32 %v8501_v42, %v8501_v42 }
 0x836   : > { %v4437_v20 = vpop.f32.mrf.mxu0  ;;  %v4550_v63 = vpop.f32.mrf.mxu1 }
 0x837   : > { %v4549_v38 = vadd.f32 %v4548_v54, %v4436_v34  ;;  %v4438_v53 = vadd.f32 %v4437_v20, %v8420_v23  ;;  %4645 = vadd.xlane.f32.xlu1 %v4644_v30  ;;  %4738 = vadd.xlane.f32.xlu0 %v4737_v36  ;;  %v8513_v16 = vadd.f32 %v4547_v27, %v8221_v56 }
 0x838   : > { %v4439_v49 = vpop.f32.mrf.mxu0  ;;  %v4552_v18 = vpop.f32.mrf.mxu1  ;;  %v4740_v8 = vadd.f32 %v4704_v19, %v4703_v47 }
 0x839   : > { %v8516_v59 = vadd.f32 %v4549_v38, %v8202_v48  ;;  %v4551_v1 = vadd.f32 %v4550_v63, %v4438_v53  ;;  %v4440_v7 = vadd.f32 %v4439_v49, %v8423_v45  ;;  %v4705_v54 = vmul.f32 %v8513_v16, %v8513_v16 }
 0x83a   : > { %v4443_v25 = vpop.f32.mrf.mxu0  ;;  %v4556_v3 = vpop.f32.mrf.mxu1 }
 0x83b   : > { %v4553_v24 = vadd.f32 %v4552_v18, %v4440_v7  ;;  %v4444_v39 = vadd.f32 %v4443_v25, %v8420_v23  ;;  %4741 = vadd.xlane.f32.xlu1 %v4740_v8  ;;  %v4647_v46 = vadd.f32 %v8516_v59, %v8513_v16  ;;  %v8523_v56 = vadd.f32 %v4551_v1, %v8226_v60 }
 0x83c   : > { %v4445_v28 = vpop.f32.mrf.mxu0  ;;  %v4558_v9 = vpop.f32.mrf.mxu1  ;;  %v4706_v48 = vmul.f32 %v8516_v59, %v8516_v59 }
 0x83d   : > { %v8528_v5 = vadd.f32 %v4553_v24, %v8205_v21  ;;  %v4557_v40 = vadd.f32 %v4556_v3, %v4444_v39  ;;  %v4446_v31 = vadd.f32 %v4445_v28, %v8423_v45  ;;  %4648 = vadd.xlane.f32.xlu0 %v4647_v46  ;;  %v4707_v38 = vmul.f32 %v8523_v56, %v8523_v56 }
 0x83e   : > { %v4447_v36 = vpop.f32.mrf.mxu0  ;;  %v4560_v27 = vpop.f32.mrf.mxu1  ;;  %v4743_v19 = vadd.f32 %v4706_v48, %v4705_v54 }
 0x83f   : > { %v4559_v34 = vadd.f32 %v4558_v9, %v4446_v31  ;;  %v4448_v60 = vadd.f32 %v4447_v36, %v8420_v23  ;;  %v4650_v30 = vadd.f32 %v8528_v5, %v8523_v56  ;;  %v8537_v20 = vadd.f32 %v4557_v40, %v8256_v17 }
 0x840   : > { %v4449_v21 = vpop.f32.mrf.mxu0  ;;  %v4562_v63 = vpop.f32.mrf.mxu1  ;;  %v4708_v53 = vmul.f32 %v8528_v5, %v8528_v5 }
 0x841   : > { %v8544_v47 = vadd.f32 %v4559_v34, %v8240_v33  ;;  %v4561_v49 = vadd.f32 %v4560_v27, %v4448_v60  ;;  %v4450_v18 = vadd.f32 %v4449_v21, %v8423_v45  ;;  %4651 = vadd.xlane.f32.xlu1 %v4650_v30  ;;  %4744 = vadd.xlane.f32.xlu0 %v4743_v19 }
 0x842   : > { %v4453_v1 = vpop.f32.mrf.mxu0  ;;  %v4566_v7 = vpop.f32.mrf.mxu1  ;;  %v4746_v25 = vadd.f32 %v4708_v53, %v4707_v38  ;;  %v4709_v46 = vmul.f32 %v8537_v20, %v8537_v20 }
 0x843   : > { %v4563_v17 = vadd.f32 %v4562_v63, %v4450_v18  ;;  %v4454_v8 = vadd.f32 %v4453_v1, %v8420_v23  ;;  %v4653_v3 = vadd.f32 %v8544_v47, %v8537_v20  ;;  %v8551_v24 = vadd.f32 %v4561_v49, %v8250_v0 }
 0x844   : > { %v4455_v39 = vpop.f32.mrf.mxu0  ;;  %v4568_v33 = vpop.f32.mrf.mxu1  ;;  %v4710_v28 = vmul.f32 %v8544_v47, %v8544_v47 }
 0x845   : > { %v8558_v9 = vadd.f32 %v4563_v17, %v8243_v61  ;;  %v4567_v48 = vadd.f32 %v4566_v7, %v4454_v8  ;;  %v4456_v40 = vadd.f32 %v4455_v39, %v8423_v45  ;;  %4747 = vadd.xlane.f32.xlu1 %v4746_v25  ;;  %4654 = vadd.xlane.f32.xlu0 %v4653_v3 }
 0x846   : > { %v4457_v31 = vpop.f32.mrf.mxu0  ;;  %v4570_v54 = vpop.f32.mrf.mxu1  ;;  %v4749_v34 = vadd.f32 %v4710_v28, %v4709_v46  ;;  %v4711_v19 = vmul.f32 %v8551_v24, %v8551_v24 }
 0x847   : > { %v4569_v0 = vadd.f32 %v4568_v33, %v4456_v40  ;;  %v4458_v36 = vadd.f32 %v4457_v31, %v8420_v23  ;;  %v4656_v27 = vadd.f32 %v8558_v9, %v8551_v24  ;;  %v8565_v60 = vadd.f32 %v4567_v48, %v8284_v2 }
 0x848   : > { %v4459_v30 = vpop.f32.mrf.mxu0  ;;  %v4572_v61 = vpop.f32.mrf.mxu1  ;;  %v4712_v21 = vmul.f32 %v8558_v9, %v8558_v9 }
 0x849   : > { %v8572_v63 = vadd.f32 %v4569_v0, %v8265_v52  ;;  %v4571_v38 = vadd.f32 %v4570_v54, %v4458_v36  ;;  %v4460_v53 = vadd.f32 %v4459_v30, %v8423_v45  ;;  %4657 = vadd.xlane.f32.xlu1 %v4656_v27  ;;  %4750 = vadd.xlane.f32.xlu0 %v4749_v34 }
 0x84a   : > { %v4463_v49 = vpop.f32.mrf.mxu0  ;;  %v4576_v18 = vpop.f32.mrf.mxu1  ;;  %v4752_v7 = vadd.f32 %v4712_v21, %v4711_v19  ;;  %v4713_v3 = vmul.f32 %v8565_v60, %v8565_v60 }
 0x84b   : > { %v4573_v2 = vadd.f32 %v4572_v61, %v4460_v53  ;;  %v4464_v1 = vadd.f32 %v4463_v49, %v8420_v23  ;;  %v4659_v17 = vadd.f32 %v8572_v63, %v8565_v60  ;;  %v8579_v8 = vadd.f32 %v4571_v38, %v8280_v11 }
 0x84c   : > { %v4465_v25 = vpop.f32.mrf.mxu0  ;;  %v4578_v52 = vpop.f32.mrf.mxu1  ;;  %v4714_v39 = vmul.f32 %v8572_v63, %v8572_v63 }
 0x84d   : > { %v8586_v33 = vadd.f32 %v4573_v2, %v8268_v13  ;;  %v4577_v46 = vadd.f32 %v4576_v18, %v4464_v1  ;;  %v4466_v28 = vadd.f32 %v4465_v25, %v8423_v45  ;;  %4753 = vadd.xlane.f32.xlu1 %v4752_v7  ;;  %4660 = vadd.xlane.f32.xlu0 %v4659_v17 }
 0x84e   : > { %v4467_v48 = vpop.f32.mrf.mxu0  ;;  %v4580_v40 = vpop.f32.mrf.mxu1  ;;  %v4755_v0 = vadd.f32 %v4714_v39, %v4713_v3  ;;  %v4715_v34 = vmul.f32 %v8579_v8, %v8579_v8 }
 0x84f   : > { %v4579_v11 = vadd.f32 %v4578_v52, %v4466_v28  ;;  %v4468_v31 = vadd.f32 %v4467_v48, %v8420_v23  ;;  %v4662_v54 = vadd.f32 %v8586_v33, %v8579_v8  ;;  %v8593_v36 = vadd.f32 %v4577_v46, %v8312_v32 }
 0x850   : > { %v4469_v27 = vpop.f32.mrf.mxu0  ;;  %v4582_v13 = vpop.f32.mrf.mxu1  ;;  %v4716_v30 = vmul.f32 %v8586_v33, %v8586_v33 }
 0x851   : > { %v8600_v61 = vadd.f32 %v4579_v11, %v8293_v6  ;;  %v4581_v19 = vadd.f32 %v4580_v40, %v4468_v31  ;;  %v4470_v21 = vadd.f32 %v4469_v27, %v8423_v45  ;;  %4663 = vadd.xlane.f32.xlu1 %v4662_v54  ;;  %4756 = vadd.xlane.f32.xlu0 %v4755_v0 }
 0x852   : > { %v4473_v38 = vpop.f32.mrf.mxu0  ;;  %v4586_v53 = vpop.f32.mrf.mxu1  ;;  %v4758_v18 = vadd.f32 %v4716_v30, %v4715_v34  ;;  %v4717_v17 = vmul.f32 %v8593_v36, %v8593_v36 }
 0x853   : > { %v4583_v32 = vadd.f32 %v4582_v13, %v4470_v21  ;;  %v4474_v49 = vadd.f32 %v4473_v38, %v8420_v23  ;;  %v4665_v2 = vadd.f32 %v8600_v61, %v8593_v36  ;;  %v8607_v1 = vadd.f32 %v4581_v19, %v8308_v12 }
 0x854   : > { %v4475_v7 = vpop.f32.mrf.mxu0  ;;  %v4588_v6 = vpop.f32.mrf.mxu1  ;;  %v4718_v25 = vmul.f32 %v8600_v61, %v8600_v61 }
 0x855   : > { %v8614_v52 = vadd.f32 %v4583_v32, %v8296_v58  ;;  %v4587_v3 = vadd.f32 %v4586_v53, %v4474_v49  ;;  %v4476_v39 = vadd.f32 %v4475_v7, %v8423_v45  ;;  %4759 = vadd.xlane.f32.xlu1 %v4758_v18  ;;  %4666 = vadd.xlane.f32.xlu0 %v4665_v2 }
 0x856   : > { %v4477_v46 = vpop.f32.mrf.mxu0  ;;  %v4590_v28 = vpop.f32.mrf.mxu1  ;;  %v4761_v11 = vadd.f32 %v4718_v25, %v4717_v17  ;;  %v4719_v58 = vmul.f32 %v8607_v1, %v8607_v1 }
 0x857   : > { %v4589_v12 = vadd.f32 %v4588_v6, %v4476_v39  ;;  %v4478_v48 = vadd.f32 %v4477_v46, %v8420_v23  ;;  %v4668_v40 = vadd.f32 %v8614_v52, %v8607_v1  ;;  %v8621_v31 = vadd.f32 %v4587_v3, %v8331_v15 }
 0x858   : > { %v4479_v54 = vpop.f32.mrf.mxu0  ;;  %v4720_v0 = vmul.f32 %v8614_v52, %v8614_v52  ;;  %v4592_v34 = vpop.f32.mrf.mxu1 }
 0x859   : > { %v8628_v27 = vadd.f32 %v4589_v12, %v8319_v50  ;;  %v4591_v13 = vadd.f32 %v4590_v28, %v4478_v48  ;;  %v4480_v23 = vadd.f32 %v4479_v54, %v8423_v45  ;;  %4669 = vadd.xlane.f32.xlu1 %v4668_v40  ;;  %4762 = vadd.xlane.f32.xlu0 %v4761_v11 }
 0x85a   : > { %v4764_v19 = vadd.f32 %v4720_v0, %v4719_v58  ;;  %v4721_v45 = vmul.f32 %v8621_v31, %v8621_v31 }
 0x85b   : > { %v4593_v30 = vadd.f32 %v4592_v34, %v4480_v23  ;;  %v4671_v15 = vadd.f32 %v8628_v27, %v8621_v31  ;;  %v4722_v21 = vmul.f32 %v8628_v27, %v8628_v27  ;;  %v8636_v38 = vadd.f32 %v4591_v13, %v8328_v62 }
 0x85d   : > { %v8639_v50 = vadd.f32 %v4593_v30, %v8322_v14  ;;  %4765 = vadd.xlane.f32.xlu1 %v4764_v19  ;;  %4672 = vadd.xlane.f32.xlu0 %v4671_v15  ;;  %v4767_v32 = vadd.f32 %v4722_v21, %v4721_v45  ;;  %v4723_v62 = vmul.f32 %v8636_v38, %v8636_v38 }
 0x85f   : > { %v4674_v53 = vadd.f32 %v8639_v50, %v8636_v38  ;;  %v4724_v49 = vmul.f32 %v8639_v50, %v8639_v50 }
 0x861   : > { %4675 = vadd.xlane.f32.xlu1 %v4674_v53  ;;  %4768 = vadd.xlane.f32.xlu0 %v4767_v32  ;;  %v4770_v18 = vadd.f32 %v4724_v49, %v4723_v62 }
 0x865   : > { %4771 = vadd.xlane.f32.xlu1 %v4770_v18 }
 0x8a9   : > { %v4631_v14 = vpop.xlane.xlu0 %4630 }
 0x8aa   : > { %v4677_v2 = vmul.f32 0.00390625, %v4631_v14 }
 0x8ac   : > { %v4789_v25 = vmul.f32 %v4677_v2, %v4677_v2 }
 0x8ad   : > { %v4634_v7 = vpop.xlane.xlu1 %4633  ;;  %v4727_v6 = vpop.xlane.xlu0 %4726 }
 0x8ae   : > { %v8649_v17 = vmul.f32 0.00390625, %v4634_v7  ;;  %v4773_v3 = vmul.f32 0.00390625, %v4727_v6  ;;  %v4627_v6 = vld [vmem:[%s8951_s12] sm:$0x3] }
 0x8b0   : > { %v4805_v39 = vsub.f32 %v4773_v3, %v4789_v25  ;;  %v4790_v12 = vmul.f32 %v8649_v17, %v8649_v17 }
 0x8b1   : > { %v4730_v46 = vpop.xlane.xlu1 %4729 }
 0x8b2   : > { %v4821_v28 = vmax.f32 %v4805_v39, 0.0  ;;  %v4774_v48 = vmul.f32 0.00390625, %v4730_v46  ;;  %v4637_v40 = vpop.xlane.xlu0 %4636  ;;  %v4628_v46 = vld [vmem:[%s9030_s4] sm:$0x3] }
 0x8b3   : > { %v8653_v11 = vmul.f32 0.00390625, %v4637_v40 }
 0x8b4   : > { %v4869_v54 = vadd.f32 1e-05, %v4821_v28  ;;  %v4806_v58 = vsub.f32 %v4774_v48, %v4790_v12 }
 0x8b5   : > { %v4791_v30 = vmul.f32 %v8653_v11, %v8653_v11 }
 0x8b6   : > { %6336 = vrsqrt.f32 %v4869_v54  ;;  %v4822_v0 = vmax.f32 %v4806_v58, 0.0  ;;  %v4640_v13 = vpop.xlane.xlu1 %4639  ;;  %v4733_v23 = vpop.xlane.xlu0 %4732  ;;  %v4837_v54 = vsub.f32 %v8429_v57, %v4677_v2  ;;  %v4838_v58 = vsub.f32 %v8432_v37, %v4677_v2 }
 0x8b7   : > { %v8655_v34 = vmul.f32 0.00390625, %v4640_v13  ;;  %v4775_v19 = vmul.f32 0.00390625, %v4733_v23  ;;  %v8679_v13 = vrot.slane %v4627_v6, %v7106_v44 }
 0x8b8   : > { %v4870_v15 = vadd.f32 1e-05, %v4822_v0  ;;  %v8676_v0 = vrot.slane %v4627_v6, %v7099_v41 }
 0x8b9   : > { %v4807_v21 = vsub.f32 %v4775_v19, %v4791_v30  ;;  %v4792_v32 = vmul.f32 %v8655_v34, %v8655_v34  ;;  %v8682_v19 = vrot.slane %v4628_v46, %v7099_v41 }
 0x8ba   : > { %6338 = vrsqrt.f32 %v4870_v15  ;;  %v4736_v45 = vpop.xlane.xlu1 %4735  ;;  %v8685_v15 = vrot.slane %v4628_v46, %v7106_v44 }
 0x8bb   : > { %v4823_v53 = vmax.f32 %v4807_v21, 0.0  ;;  %v4776_v49 = vmul.f32 0.00390625, %v4736_v45 }
 0x8bc   : > { %v4643_v62 = vpop.xlane.xlu0 %4642 }
 0x8bd   : > { %v4871_v18 = vadd.f32 1e-05, %v4823_v53  ;;  %v4808_v14 = vsub.f32 %v4776_v49, %v4792_v32  ;;  %v8661_v7 = vmul.f32 0.00390625, %v4643_v62  ;;  %v4839_v32 = vsub.f32 %v8441_v51, %v8649_v17 }
 0x8be   : > { %v4840_v49 = vsub.f32 %v8444_v4, %v8649_v17 }
 0x8bf   : > { %6340 = vrsqrt.f32 %v4871_v18  ;;  %v4824_v25 = vmax.f32 %v4808_v14, 0.0  ;;  %v4793_v48 = vmul.f32 %v8661_v7, %v8661_v7 }
 0x8c0   : > { %v4646_v3 = vpop.xlane.xlu1 %4645  ;;  %v4739_v39 = vpop.xlane.xlu0 %4738 }
 0x8c1   : > { %v4872_v28 = vadd.f32 1e-05, %v4824_v25  ;;  %v8669_v12 = vmul.f32 0.00390625, %v4646_v3  ;;  %v4777_v40 = vmul.f32 0.00390625, %v4739_v39 }
 0x8c3   : > { %v6337_v23 = vpop.eup %6336  ;;  %6342 = vrsqrt.f32 %v4872_v28  ;;  %v4809_v30 = vsub.f32 %v4777_v40, %v4793_v48  ;;  %v4794_v37 = vmul.f32 %v8669_v12, %v8669_v12 }
 0x8c4   : > { %v4901_v21 = vmul.f32 %v6337_v23, %v4837_v54  ;;  %v4902_v45 = vmul.f32 %v6337_v23, %v4838_v58  ;;  %v4742_v57 = vpop.xlane.xlu1 %4741  ;;  %v4841_v54 = vsub.f32 %v8455_v26, %v8653_v11  ;;  %v4842_v58 = vsub.f32 %v8460_v22, %v8653_v11 }
 0x8c5   : > { %v4825_v53 = vmax.f32 %v4809_v30, 0.0  ;;  %v4778_v2 = vmul.f32 0.00390625, %v4742_v57  ;;  %v4843_v26 = vsub.f32 %v8470_v35, %v8655_v34 }
 0x8c6   : > { %v4944_v41 = vmul.f32 %v8676_v0, %v4901_v21  ;;  %v4945_v44 = vmul.f32 %v8679_v13, %v4902_v45  ;;  %v4649_v62 = vpop.xlane.xlu0 %4648 }
 0x8c7   : > { %v6339_v18 = vpop.eup %6338  ;;  %v4873_v14 = vadd.f32 1e-05, %v4825_v53  ;;  %v4810_v6 = vsub.f32 %v4778_v2, %v4794_v37  ;;  %v8695_v25 = vmul.f32 0.00390625, %v4649_v62 }
 0x8c8   : > { %v4987_v3 = vadd.f32 %v8682_v19, %v4944_v41  ;;  %v4988_v39 = vadd.f32 %v8685_v15, %v4945_v44  ;;  %v4903_v46 = vmul.f32 %v6339_v18, %v4839_v32  ;;  %v4904_v28 = vmul.f32 %v6339_v18, %v4840_v49 }
 0x8c9   : > { %6344 = vrsqrt.f32 %v4873_v14  ;;  %v4826_v51 = vmax.f32 %v4810_v6, 0.0  ;;  %v4795_v37 = vmul.f32 %v8695_v25, %v8695_v25  ;;  %v4844_v41 = vsub.f32 %v8473_v29, %v8655_v34 }
 0x8ca   : > { %5019 = vst [vmem:[%s8701_s20] sm:$0xff] %v4987_v3  ;;  %5020 = vst [vmem:[%s8701_s20 + $0x8] sm:$0xff] %v4988_v39  ;;  %v4946_v4 = vmul.f32 %v8676_v0, %v4903_v46  ;;  %v4947_v17 = vmul.f32 %v8679_v13, %v4904_v28  ;;  %v4652_v48 = vpop.xlane.xlu1 %4651  ;;  %v4745_v40 = vpop.xlane.xlu0 %4744 }
 0x8cb   : > { %v4874_v23 = vadd.f32 1e-05, %v4826_v51  ;;  %v4779_v30 = vmul.f32 0.00390625, %v4745_v40  ;;  %v8713_v53 = vmul.f32 0.00390625, %v4652_v48 }
 0x8cc   : > { %v6341_v21 = vpop.eup %6340  ;;  %v4989_v45 = vadd.f32 %v8682_v19, %v4946_v4  ;;  %v4990_v57 = vadd.f32 %v8685_v15, %v4947_v17 }
 0x8cd   : > { %v4905_v2 = vmul.f32 %v6341_v21, %v4841_v54  ;;  %v4906_v32 = vmul.f32 %v6341_v21, %v4842_v58  ;;  %6346 = vrsqrt.f32 %v4874_v23  ;;  %v4811_v22 = vsub.f32 %v4779_v30, %v4795_v37 }
 0x8ce   : > { %5021 = vst [vmem:[%s8701_s20 + $0x10] sm:$0xff] %v4989_v45  ;;  %5022 = vst [vmem:[%s8701_s20 + $0x18] sm:$0xff] %v4990_v57  ;;  %v4748_v11 = vpop.xlane.xlu1 %4747  ;;  %v4655_v49 = vpop.xlane.xlu0 %4654  ;;  %v4796_v3 = vmul.f32 %v8713_v53, %v8713_v53  ;;  %v4845_v57 = vsub.f32 %v8485_v43, %v8661_v7  ;;  %v4846_v37 = vsub.f32 %v8488_v55, %v8661_v7 }
 0x8cf   : > { %v4948_v44 = vmul.f32 %v8676_v0, %v4905_v2  ;;  %v4949_v62 = vmul.f32 %v8679_v13, %v4906_v32  ;;  %v4780_v18 = vmul.f32 0.00390625, %v4748_v11  ;;  %v4827_v6 = vmax.f32 %v4811_v22, 0.0 }
 0x8d0   : > { %v6343_v14 = vpop.eup %6342  ;;  %v8727_v39 = vmul.f32 0.00390625, %v4655_v49  ;;  %v4847_v43 = vsub.f32 %v8498_v10, %v8669_v12  ;;  %v4848_v7 = vsub.f32 %v8501_v42, %v8669_v12 }
 0x8d1   : > { %v4991_v35 = vadd.f32 %v8682_v19, %v4948_v44  ;;  %v4992_v46 = vadd.f32 %v8685_v15, %v4949_v62  ;;  %v4907_v28 = vmul.f32 %v6343_v14, %v4843_v26  ;;  %v4908_v29 = vmul.f32 %v6343_v14, %v4844_v41 }
 0x8d2   : > { %v4875_v34 = vadd.f32 1e-05, %v4827_v6  ;;  %v4812_v51 = vsub.f32 %v4780_v18, %v4796_v3  ;;  %v4658_v4 = vpop.xlane.xlu1 %4657  ;;  %v4751_v17 = vpop.xlane.xlu0 %4750  ;;  %v4797_v23 = vmul.f32 %v8727_v39, %v8727_v39 }
 0x8d3   : > { %5023 = vst [vmem:[%s8701_s20 + $0x20] sm:$0xff] %v4991_v35  ;;  %5024 = vst [vmem:[%s8701_s20 + $0x28] sm:$0xff] %v4992_v46  ;;  %v4950_v48 = vmul.f32 %v8676_v0, %v4907_v28  ;;  %v4951_v40 = vmul.f32 %v8679_v13, %v4908_v29  ;;  %v8735_v54 = vmul.f32 0.00390625, %v4658_v4  ;;  %v4781_v30 = vmul.f32 0.00390625, %v4751_v17 }
 0x8d4   : > { %6348 = vrsqrt.f32 %v4875_v34  ;;  %v4828_v58 = vmax.f32 %v4812_v51, 0.0 }
 0x8d5   : > { %v4993_v21 = vadd.f32 %v8682_v19, %v4950_v48  ;;  %v4994_v45 = vadd.f32 %v8685_v15, %v4951_v40  ;;  %v4813_v26 = vsub.f32 %v4781_v30, %v4797_v23  ;;  %v4798_v22 = vmul.f32 %v8735_v54, %v8735_v54 }
 0x8d6   : > { %v6345_v2 = vpop.eup %6344  ;;  %v4876_v32 = vadd.f32 1e-05, %v4828_v58  ;;  %v4754_v11 = vpop.xlane.xlu1 %4753 }
 0x8d7   : > { %v4661_v49 = vpop.xlane.xlu0 %4660  ;;  %5025 = vst [vmem:[%s8701_s20 + $0x30] sm:$0xff] %v4993_v21  ;;  %5026 = vst [vmem:[%s8701_s20 + $0x38] sm:$0xff] %v4994_v45  ;;  %v4909_v41 = vmul.f32 %v6345_v2, %v4845_v57  ;;  %v4910_v44 = vmul.f32 %v6345_v2, %v4846_v37  ;;  %v4782_v62 = vmul.f32 0.00390625, %v4754_v11  ;;  %v4829_v55 = vmax.f32 %v4813_v26, 0.0 }
 0x8d8   : > { %v8749_v18 = vmul.f32 0.00390625, %v4661_v49  ;;  %6350 = vrsqrt.f32 %v4876_v32  ;;  %v4849_v26 = vsub.f32 %v8513_v16, %v8695_v25  ;;  %v4852_v16 = vsub.f32 %v8528_v5, %v8713_v53 }
 0x8d9   : > { %v4952_v14 = vmul.f32 %v8676_v0, %v4909_v41  ;;  %v4953_v6 = vmul.f32 %v8679_v13, %v4910_v44  ;;  %v4814_v3 = vsub.f32 %v4782_v62, %v4798_v22  ;;  %v4877_v46 = vadd.f32 1e-05, %v4829_v55 }
 0x8da   : > { %v6347_v35 = vpop.eup %6346  ;;  %v4664_v28 = vpop.xlane.xlu1 %4663  ;;  %v4799_v29 = vmul.f32 %v8749_v18, %v8749_v18  ;;  %v4850_v22 = vsub.f32 %v8516_v59, %v8695_v25 }
 0x8db   : > { %v4757_v34 = vpop.xlane.xlu0 %4756  ;;  %v4995_v10 = vadd.f32 %v8682_v19, %v4952_v14  ;;  %v4996_v51 = vadd.f32 %v8685_v15, %v4953_v6  ;;  %v4911_v4 = vmul.f32 %v6347_v35, %v4847_v43  ;;  %v4912_v42 = vmul.f32 %v6347_v35, %v4848_v7 }
 0x8dc   : > { %6352 = vrsqrt.f32 %v4877_v46  ;;  %v4830_v12 = vmax.f32 %v4814_v3, 0.0  ;;  %v8761_v17 = vmul.f32 0.00390625, %v4664_v28  ;;  %v4783_v48 = vmul.f32 0.00390625, %v4757_v34 }
 0x8dd   : > { %5027 = vst [vmem:[%s8701_s20 + $0x40] sm:$0xff] %v4995_v10  ;;  %5028 = vst [vmem:[%s8701_s20 + $0x48] sm:$0xff] %v4996_v51  ;;  %v4954_v40 = vmul.f32 %v8676_v0, %v4911_v4  ;;  %v4955_v58 = vmul.f32 %v8679_v13, %v4912_v42  ;;  %v4851_v6 = vsub.f32 %v8523_v56, %v8713_v53 }
 0x8de   : > { %v4878_v23 = vadd.f32 1e-05, %v4830_v12  ;;  %v4815_v30 = vsub.f32 %v4783_v48, %v4799_v29  ;;  %v4760_v21 = vpop.xlane.xlu1 %4759  ;;  %v4800_v2 = vmul.f32 %v8761_v17, %v8761_v17 }
 0x8df   : > { %v4667_v45 = vpop.xlane.xlu0 %4666  ;;  %v4997_v57 = vadd.f32 %v8682_v19, %v4954_v40  ;;  %v4998_v37 = vadd.f32 %v8685_v15, %v4955_v58  ;;  %v4784_v32 = vmul.f32 0.00390625, %v4760_v21 }
 0x8e0   : > { %6354 = vrsqrt.f32 %v4878_v23  ;;  %v4831_v11 = vmax.f32 %v4815_v30, 0.0  ;;  %v8777_v44 = vmul.f32 0.00390625, %v4667_v45  ;;  %v4853_v23 = vsub.f32 %v8537_v20, %v8727_v39 }
 0x8e1   : > { %v6349_v49 = vpop.eup %6348  ;;  %5029 = vst [vmem:[%s8701_s20 + $0x50] sm:$0xff] %v4997_v57  ;;  %5030 = vst [vmem:[%s8701_s20 + $0x58] sm:$0xff] %v4998_v37  ;;  %v4816_v41 = vsub.f32 %v4784_v32, %v4800_v2  ;;  %v4854_v30 = vsub.f32 %v8544_v47, %v8727_v39  ;;  %v4855_v20 = vsub.f32 %v8551_v24, %v8735_v54 }
 0x8e2   : > { %v4913_v62 = vmul.f32 %v6349_v49, %v4849_v26  ;;  %v4914_v43 = vmul.f32 %v6349_v49, %v4850_v22  ;;  %v4879_v55 = vadd.f32 1e-05, %v4831_v11  ;;  %v4670_v7 = vpop.xlane.xlu1 %4669  ;;  %v4801_v34 = vmul.f32 %v8777_v44, %v8777_v44 }
 0x8e3   : > { %v4763_v14 = vpop.xlane.xlu0 %4762  ;;  %v4832_v59 = vmax.f32 %v4816_v41, 0.0  ;;  %v8783_v25 = vmul.f32 0.00390625, %v4670_v7  ;;  %v4856_v39 = vsub.f32 %v8558_v9, %v8735_v54 }
 0x8e4   : > { %v4956_v3 = vmul.f32 %v8676_v0, %v4913_v62  ;;  %v4957_v35 = vmul.f32 %v8679_v13, %v4914_v43  ;;  %6356 = vrsqrt.f32 %v4879_v55  ;;  %v4785_v46 = vmul.f32 0.00390625, %v4763_v14 }
 0x8e5   : > { %v6351_v28 = vpop.eup %6350  ;;  %v4880_v29 = vadd.f32 1e-05, %v4832_v59  ;;  %v4802_v12 = vmul.f32 %v8783_v25, %v8783_v25 }
 0x8e6   : > { %v4999_v56 = vadd.f32 %v8682_v19, %v4956_v3  ;;  %v5000_v5 = vadd.f32 %v8685_v15, %v4957_v35  ;;  %v4915_v53 = vmul.f32 %v6351_v28, %v4851_v6  ;;  %v4916_v10 = vmul.f32 %v6351_v28, %v4852_v16  ;;  %v4766_v51 = vpop.xlane.xlu1 %4765 }
 0x8e7   : > { %v4673_v4 = vpop.xlane.xlu0 %4672  ;;  %6358 = vrsqrt.f32 %v4880_v29  ;;  %v4817_v42 = vsub.f32 %v4785_v46, %v4801_v34  ;;  %v4786_v48 = vmul.f32 0.00390625, %v4766_v51 }
 0x8e8   : > { %5031 = vst [vmem:[%s8701_s20 + $0x60] sm:$0xff] %v4999_v56  ;;  %5032 = vst [vmem:[%s8701_s20 + $0x68] sm:$0xff] %v5000_v5  ;;  %v4958_v40 = vmul.f32 %v8676_v0, %v4915_v53  ;;  %v4959_v58 = vmul.f32 %v8679_v13, %v4916_v10  ;;  %v8801_v37 = vmul.f32 0.00390625, %v4673_v4  ;;  %v4857_v56 = vsub.f32 %v8565_v60, %v8749_v18 }
 0x8e9   : > { %v6353_v21 = vpop.eup %6352  ;;  %v4833_v45 = vmax.f32 %v4817_v42, 0.0  ;;  %v4818_v57 = vsub.f32 %v4786_v48, %v4802_v12  ;;  %v4858_v5 = vsub.f32 %v8572_v63, %v8749_v18 }
 0x8ea   : > { %v5001_v2 = vadd.f32 %v8682_v19, %v4958_v40  ;;  %v5002_v32 = vadd.f32 %v8685_v15, %v4959_v58  ;;  %v4917_v26 = vmul.f32 %v6353_v21, %v4853_v23  ;;  %v4918_v22 = vmul.f32 %v6353_v21, %v4854_v30  ;;  %v4676_v11 = vpop.xlane.xlu1 %4675 }
 0x8eb   : > { %v4769_v49 = vpop.xlane.xlu0 %4768  ;;  %v4881_v41 = vadd.f32 1e-05, %v4833_v45  ;;  %v4834_v62 = vmax.f32 %v4818_v57, 0.0  ;;  %v8807_v47 = vmul.f32 0.00390625, %v4676_v11  ;;  %v4803_v24 = vmul.f32 %v8801_v37, %v8801_v37 }
 0x8ec   : > { %5033 = vst [vmem:[%s8701_s20 + $0x70] sm:$0xff] %v5001_v2  ;;  %5034 = vst [vmem:[%s8701_s20 + $0x78] sm:$0xff] %v5002_v32  ;;  %v4960_v43 = vmul.f32 %v8676_v0, %v4917_v26  ;;  %v4961_v55 = vmul.f32 %v8679_v13, %v4918_v22  ;;  %v4787_v7 = vmul.f32 0.00390625, %v4769_v49  ;;  %v4859_v40 = vsub.f32 %v8579_v8, %v8761_v17 }
 0x8ed   : > { %v6355_v14 = vpop.eup %6354  ;;  %6360 = vrsqrt.f32 %v4881_v41  ;;  %v4882_v6 = vadd.f32 1e-05, %v4834_v62  ;;  %v4804_v46 = vmul.f32 %v8807_v47, %v8807_v47  ;;  %v4860_v58 = vsub.f32 %v8586_v33, %v8761_v17 }
 0x8ee   : > { %v5003_v16 = vadd.f32 %v8682_v19, %v4960_v43  ;;  %v5004_v59 = vadd.f32 %v8685_v15, %v4961_v55  ;;  %v4919_v3 = vmul.f32 %v6355_v14, %v4855_v20  ;;  %v4920_v35 = vmul.f32 %v6355_v14, %v4856_v39  ;;  %v4772_v9 = vpop.xlane.xlu1 %4771 }
 0x8ef   : > { %6362 = vrsqrt.f32 %v4882_v6  ;;  %v4819_v54 = vsub.f32 %v4787_v7, %v4803_v24  ;;  %v4788_v28 = vmul.f32 0.00390625, %v4772_v9  ;;  %v4861_v22 = vsub.f32 %v8593_v36, %v8777_v44 }
 0x8f0   : > { %5035 = vst [vmem:[%s8701_s20 + $0x80] sm:$0xff] %v5003_v16  ;;  %5036 = vst [vmem:[%s8701_s20 + $0x88] sm:$0xff] %v5004_v59  ;;  %v4962_v29 = vmul.f32 %v8676_v0, %v4919_v3  ;;  %v4963_v34 = vmul.f32 %v8679_v13, %v4920_v35  ;;  %v4862_v11 = vsub.f32 %v8600_v61, %v8777_v44 }
 0x8f1   : > { %v6357_v53 = vpop.eup %6356  ;;  %v4835_v10 = vmax.f32 %v4819_v54, 0.0  ;;  %v4820_v51 = vsub.f32 %v4788_v28, %v4804_v46  ;;  %v4863_v20 = vsub.f32 %v8607_v1, %v8783_v25  ;;  %v4864_v41 = vsub.f32 %v8614_v52, %v8783_v25 }
 0x8f2   : > { %v5005_v4 = vadd.f32 %v8682_v19, %v4962_v29  ;;  %v5006_v42 = vadd.f32 %v8685_v15, %v4963_v34  ;;  %v4921_v12 = vmul.f32 %v6357_v53, %v4857_v56  ;;  %v4922_v48 = vmul.f32 %v6357_v53, %v4858_v5 }
 0x8f3   : > { %v4883_v23 = vadd.f32 1e-05, %v4835_v10  ;;  %v4836_v60 = vmax.f32 %v4820_v51, 0.0  ;;  %v4865_v24 = vsub.f32 %v8621_v31, %v8801_v37  ;;  %v4866_v16 = vsub.f32 %v8628_v27, %v8801_v37 }
 0x8f4   : > { %v6359_v63 = vpop.eup %6358  ;;  %5037 = vst [vmem:[%s8701_s20 + $0x90] sm:$0xff] %v5005_v4  ;;  %5038 = vst [vmem:[%s8701_s20 + $0x98] sm:$0xff] %v5006_v42  ;;  %v4964_v18 = vmul.f32 %v8676_v0, %v4921_v12  ;;  %v4965_v30 = vmul.f32 %v8679_v13, %v4922_v48  ;;  %v4867_v3 = vsub.f32 %v8636_v38, %v8807_v47 }
 0x8f5   : > { %v4923_v21 = vmul.f32 %v6359_v63, %v4859_v40  ;;  %v4924_v45 = vmul.f32 %v6359_v63, %v4860_v58  ;;  %6364 = vrsqrt.f32 %v4883_v23  ;;  %v4884_v8 = vadd.f32 1e-05, %v4836_v60 }
 0x8f6   : > { %v5007_v57 = vadd.f32 %v8682_v19, %v4964_v18  ;;  %v5008_v33 = vadd.f32 %v8685_v15, %v4965_v30  ;;  %v4868_v35 = vsub.f32 %v8639_v50, %v8807_v47 }
 0x8f7   : > { %v4966_v17 = vmul.f32 %v8676_v0, %v4923_v21  ;;  %v4967_v2 = vmul.f32 %v8679_v13, %v4924_v45  ;;  %6366 = vrsqrt.f32 %v4884_v8 }
 0x8f8   : > { %5039 = vst [vmem:[%s8701_s20 + $0xa0] sm:$0xff] %v5007_v57  ;;  %5040 = vst [vmem:[%s8701_s20 + $0xa8] sm:$0xff] %v5008_v33 }
 0x8f9   : > { %v5009_v32 = vadd.f32 %v8682_v19, %v4966_v17  ;;  %v5010_v26 = vadd.f32 %v8685_v15, %v4967_v2 }
 0x8fa   : > { %v6361_v49 = vpop.eup %6360 }
 0x8fb   : > { %5041 = vst [vmem:[%s8701_s20 + $0xb0] sm:$0xff] %v5009_v32  ;;  %5042 = vst [vmem:[%s8701_s20 + $0xb8] sm:$0xff] %v5010_v26  ;;  %v4925_v62 = vmul.f32 %v6361_v49, %v4861_v22  ;;  %v4926_v39 = vmul.f32 %v6361_v49, %v4862_v11 }
 0x8fc   : > { %v6363_v43 = vpop.eup %6362 }
 0x8fd   : > { %v4968_v36 = vmul.f32 %v8676_v0, %v4925_v62  ;;  %v4969_v61 = vmul.f32 %v8679_v13, %v4926_v39  ;;  %v4927_v44 = vmul.f32 %v6363_v43, %v4863_v20  ;;  %v4928_v55 = vmul.f32 %v6363_v43, %v4864_v41 }
 0x8ff   : > { %v5011_v7 = vadd.f32 %v8682_v19, %v4968_v36  ;;  %v5012_v14 = vadd.f32 %v8685_v15, %v4969_v61  ;;  %v4970_v1 = vmul.f32 %v8676_v0, %v4927_v44  ;;  %v4971_v6 = vmul.f32 %v8679_v13, %v4928_v55 }
 0x901   : > { %5043 = vst [vmem:[%s8701_s20 + $0xc0] sm:$0xff] %v5011_v7  ;;  %5044 = vst [vmem:[%s8701_s20 + $0xc8] sm:$0xff] %v5012_v14  ;;  %v5013_v52 = vadd.f32 %v8682_v19, %v4970_v1  ;;  %v5014_v25 = vadd.f32 %v8685_v15, %v4971_v6 }
 0x902   : > { %v6365_v59 = vpop.eup %6364 }
 0x903   : > { %5045 = vst [vmem:[%s8701_s20 + $0xd0] sm:$0xff] %v5013_v52  ;;  %5046 = vst [vmem:[%s8701_s20 + $0xd8] sm:$0xff] %v5014_v25  ;;  %v4929_v9 = vmul.f32 %v6365_v59, %v4865_v24  ;;  %v4930_v54 = vmul.f32 %v6365_v59, %v4866_v16 }
 0x904   : > { %v6367_v46 = vpop.eup %6366 }
 0x905   : > { %v4972_v28 = vmul.f32 %v8676_v0, %v4929_v9  ;;  %v4973_v31 = vmul.f32 %v8679_v13, %v4930_v54  ;;  %v4931_v27 = vmul.f32 %v6367_v46, %v4867_v3  ;;  %v4932_v37 = vmul.f32 %v6367_v46, %v4868_v35 }
 0x907   : > { %v5015_v38 = vadd.f32 %v8682_v19, %v4972_v28  ;;  %v5016_v50 = vadd.f32 %v8685_v15, %v4973_v31  ;;  %v4974_v47 = vmul.f32 %v8676_v0, %v4931_v27  ;;  %v4975_v29 = vmul.f32 %v8679_v13, %v4932_v37 }
 0x909   : > { %5047 = vst [vmem:[%s8701_s20 + $0xe0] sm:$0xff] %v5015_v38  ;;  %5048 = vst [vmem:[%s8701_s20 + $0xe8] sm:$0xff] %v5016_v50  ;;  %v5017_v34 = vadd.f32 %v8682_v19, %v4974_v47  ;;  %v5018_v56 = vadd.f32 %v8685_v15, %v4975_v29 }
 0x90b   : > { %5049 = vst [vmem:[%s8701_s20 + $0xf0] sm:$0xff] %v5017_v34  ;;  %5050 = vst [vmem:[%s8701_s20 + $0xf8] sm:$0xff] %v5018_v56 }
 0x90c   : > { %6597 = shalt.err (!%p6594_p3)
}
 0x90d   : > { %s6598_s3 = scalar_lea.hbm %s8888_s18, 4096  ;;  %s6602_s20 = scalar_lea.hbm %s9031_s17, 8192 }
 0x90e   : > { %p6599_p6 = scmp.ne.s32.totalorder %s8888_s18, %s6598_s3  ;;  %p6603_p11 = scmp.lt.s32.totalorder %s8888_s18, %s9031_s17 }
 0x90f   : > { %p6604_p7 = scmp.lt.s32.totalorder %s6602_s20, %s6598_s3 }
 0x910   : > { %p6600_p10 = pnand %p6599_p6, %p9032_p5 }
 0x911   : > { %p6605_p0 = por %p6604_p7, %p6603_p11 }
 0x912   : > { %p6601_p12 = pneg %p6600_p10 }
 0x914   : > { %p6606_p2 = pnand %p6605_p0, %p6601_p12 }
 0x916   : > { %6609 = shalt.err (!%p6606_p2)
}
 0x917   : > { %s6677_s23 = smov 256   ;;  %s6678_s1 = smov 16  }
 0x918   : > { %5702 = dma.vmem_to_hbm [thread:$0]  (%p9032_p5), %s8890_s13, 4096, %s8888_s18, %s5052_s19, %s6677_s23, %s6677_s23, %s6678_s1  }
 0x919 PF: > { %s5081_s8 = sand.u32 1, %s6648_s29   ;;  %p9033_p9 = scmp.ne.s32.totalorder %s8994_s27, 0 }
 0x91a   : > { %p9034_p8 = scmp.ge.s32.totalorder %s6660_s16, 2  ;;  %s5082_s22 = scalar_lea.sflag [#allocation4], %s5081_s8 }
 0x91c   : > { %p5728_p4 = pnand %p9034_p8, %p9033_p9 }
 0x91e   : > { %p5729_p13 = pneg %p5728_p4 }
 0x920   : > { %6643 = dma.done.wait (%p5729_p13), %s5082_s22, 4096  }
 0x921   : > { %6645 = vsyncadd (%p5729_p13), %s5082_s22, 4294963200  ;;  %p30_p1 = scmp.ge.s32.totalorder %s6862_s26, 4   ;;  %s9035_s29 = smov %s6652_s30 }
 0x922   : > { %s9036_s30 = smov %s6656_s15  ;;  %s9037_s15 = smov %s6873_s24 }
 0x923   : > { %s9038_s16 = smov %s6862_s26  ;;  %32 = sbr.rel (!%p30_p1) target bundleno = 17 (0x11), region = 145 }
 0x928   :  { %5087 = vsyncpa [#allocation3], 1 }
 0x929   :  { %5089 = vsyncpa [#allocation3 + $0x1], 1 }
 0x92a   :  { %5090 = vsyncpa [#allocation6], 1 }
 0x92b   :  { %5091 = vsyncpa [#allocation9], 1 }
 0x92c   :  { %5092 = vsyncpa [#allocation12], 1 }
 0x92d   :  { %5093 = vsyncpa [#allocation4], 1 }
 0x92e   :  { %5095 = vsyncpa [#allocation4 + $0x1], 1 }

</bundles_post_ra>
